<compile_context>
chip_gen: v6e
topology: v6e:2x2x1
jax: 0.10.0
libtpu: 0.0.40
codegen_flags: <defaults>
</compile_context>

<pallas_src>
import functools

import jax
import jax.numpy as jnp
from jax import lax
from jax.experimental import pallas as pl
from jax.experimental.pallas import tpu as pltpu

# ----------------------------- model config (scaled-down MobileNetV1) -------
WIDTH_MULT = 0.25
KERNEL_SIZE = 3
NUM_CLASSES = 10
STRIDES = (2, 2, 2, 2, 2)
LAYER_SETTING = [
    [1, 32, 1, STRIDES[0]],
    [1, 64, 1, 1],
    [1, 128, 2, STRIDES[1]],
    [1, 256, 2, STRIDES[2]],
    [1, 512, 6, STRIDES[3]],
    [1, 1024, 2, STRIDES[4]],
]


def make_div8(v):
    return max(8, int(int(v) + 4) // 8 * 8)


def _round_up(v, m):
    return -(-v // m) * m


# ----------------------------- the fused whole-network kernel ----------------
def _mobilenet_kernel(*refs, plan):
    """Whole-network forward for ONE image; everything VMEM-resident.

    refs = [conv1 patches, conv1 w/b, 13x(dw_w, dw_b, pw_w, pw_b), cls w/b,
            out_ref, 14 activation canvases (VMEM scratch)].
    Each canvas holds one layer's input with a built-in zero ring (1-pixel
    spatial halo) and its width padded to a multiple of 8 so the flatten
    before every pointwise matmul is layout-preserving.
    """
    blocks = plan["blocks"]
    nb = len(blocks)
    n_in = 3 + 4 * nb + 2
    in_refs = refs[:n_in]
    out_ref = refs[n_in]
    canvases = refs[n_in + 1:]

    p2_ref, w1_ref, b1_ref = in_refs[0], in_refs[1], in_refs[2]
    cls_w_ref, cls_b_ref = in_refs[n_in - 2], in_refs[n_in - 1]

    f32 = jnp.float32
    bf16 = jnp.bfloat16

    # Zero all canvases (cheap, ~1 MiB of VMEM stores): keeps the halo ring and
    # the width-alignment slack columns at zero for every block and every
    # grid step (works under megacore grid partitioning too).
    for c_ref in canvases:
        c_ref[...] = jnp.zeros(c_ref.shape, f32)

    # ---- first conv: 3x3/stride-2 patches were extracted host-side (Cin=3),
    # so here it is one MXU matmul + bias + ReLU written into canvas 0.
    cv = plan["conv"]
    ho1, wo1, c0 = cv["ho"], cv["wo"], cv["cout"]
    y = jnp.dot(p2_ref[0], w1_ref[...], preferred_element_type=f32)
    y = jnp.maximum(y + b1_ref[...], 0.0)
    y = y.reshape(ho1, wo1, c0)          # wo1 % 8 == 0 -> layout-safe reshape
    canvases[0][1:1 + ho1, 1:1 + wo1, :] = y

    # ---- 13 depthwise-separable blocks, fully fused and VMEM resident.
    for bi, pb in enumerate(blocks):
        dww_ref = in_refs[3 + 4 * bi + 0]
        dwb_ref = in_refs[3 + 4 * bi + 1]
        pww_ref = in_refs[3 + 4 * bi + 2]
        pwb_ref = in_refs[3 + 4 * bi + 3]
        src = canvases[bi]
        dst = canvases[bi + 1]
        s, ho, wo, wdw = pb["stride"], pb["ho"], pb["wo"], pb["wdw"]
        cin, cout = pb["cin"], pb["cout"]

        dww = dww_ref[...]                        # (9, cin) f32 (VPU path)
        dwb = dwb_ref[...].reshape(1, 1, cin)

        # 3x3 depthwise as 9 shifted-window FMAs in f32 on the VPU.
        # The H stride is applied exactly (layout-safe reshape + index); along
        # W we evaluate up to the 8-aligned width wdw - junk columns beyond the
        # valid range are computed but never stored.
        acc = None
        for t in range(9):
            i, j = t // 3, t % 3
            if s == 1:
                tap = src[i:i + ho, j:j + wdw, :]
            else:
                tap = src[i:i + 2 * ho, j:j + wdw, :]
                tap = tap.reshape(ho, 2, wdw, cin)[:, 0]
            term = tap * dww[t:t + 1, :].reshape(1, 1, cin)
            acc = term if acc is None else acc + term
        h = jnp.maximum(acc + dwb, 0.0)           # (ho, wdw, cin) f32

        # 1x1 pointwise on the MXU: bf16 operands, f32 accumulate.
        o = jnp.dot(h.reshape(ho * wdw, cin).astype(bf16), pww_ref[...],
                    preferred_element_type=f32)
        o = jnp.maximum(o + pwb_ref[...], 0.0)
        o = o.reshape(ho, wdw, cout)

        # Write only valid centres into the next canvas interior; for stride-2
        # the W subsample is applied here with per-column masked stores.
        if s == 1:
            dst[1:1 + ho, 1:1 + wo, :] = o[:, :wo, :]
        else:
            for v in range(wo):
                dst[1:1 + ho, 1 + v:2 + v, :] = o[:, 2 * v:2 * v + 1, :]

    # ---- adaptive_avg_pool2d((1,1)) + flatten + (Dropout = id) + Linear.
    hf_, wf_, _ = plan["feat"]
    fb = canvases[nb][1:1 + hf_, 1:1 + wf_, :]
    feat = fb.sum(axis=0).sum(axis=0, keepdims=True) * (1.0 / (hf_ * wf_))
    logits = jnp.dot(feat.astype(bf16), cls_w_ref[...],
                     preferred_element_type=f32) + cls_b_ref[...]
    out_ref[...] = logits.reshape(1, 1, plan["num_classes"])


# ----------------------------- host wrapper ----------------------------------
def mobilenetv1_forward(x_nchw, params, classifier):
    k = KERNEL_SIZE
    pad = k // 2
    bf16 = jnp.bfloat16

    n = x_nchw.shape[0]
    x = jnp.transpose(x_nchw, (0, 2, 3, 1)).astype(jnp.float32)   # NHWC
    hin, win = x.shape[1], x.shape[2]

    # -- host-side patch extraction for the first (dense, Cin=3) conv only.
    # TODO(synk): could be folded into the kernel; kept host-side to keep the
    # (already large) fused kernel small.
    conv = params[0]
    s0 = conv["stride"]
    c0 = conv["w"].shape[-1]
    ho1 = (hin + 2 * pad - k) // s0 + 1
    wo1 = (win + 2 * pad - k) // s0 + 1
    assert wo1 % 8 == 0, "first-conv output width must be a multiple of 8"
    xp = jnp.pad(x, ((0, 0), (pad, pad), (pad, pad), (0, 0)))
    taps = [xp[:, i:i + (ho1 - 1) * s0 + 1:s0, j:j + (wo1 - 1) * s0 + 1:s0, :]
            for i in range(k) for j in range(k)]
    p2 = jnp.concatenate(taps, axis=-1).reshape(n, ho1 * wo1, k * k * 3)

    # -- static per-block plan (shapes, strides, canvas sizes).
    blocks = params[1:]
    plan_blocks = []
    canvas_shapes = []
    h, w, c = ho1, wo1, c0
    for p in blocks:
        s = p["stride"]
        cout = p["pw_w"].shape[1]
        if s == 2:
            assert h % 2 == 0 and w % 2 == 0
        oh = (h + 2 * pad - k) // s + 1
        ow = (w + 2 * pad - k) // s + 1
        wdw = _round_up(max(w, 8), 8)
        plan_blocks.append(dict(stride=s, cin=c, cout=cout,
                                ho=oh, wo=ow, wdw=wdw))
        canvas_shapes.append((h + 2, wdw + 2, c))
        h, w, c = oh, ow, cout
    canvas_shapes.append((h + 2, _round_up(max(w, 8), 8) + 2, c))

    ncls = classifier["w"].shape[1]
    plan = dict(conv=dict(ho=ho1, wo=wo1, cout=c0),
                blocks=plan_blocks, feat=(h, w, c), num_classes=ncls)

    # -- operands: conv patches + all (BN-folded) weights; MXU operands bf16.
    inputs = [p2.astype(bf16),
              conv["w"].reshape(k * k * 3, c0).astype(bf16),
              conv["b"].reshape(1, c0)]
    for p in blocks:
        cin = p["dw_w"].shape[1]
        cout = p["pw_w"].shape[1]
        inputs += [p["dw_w"], p["dw_b"].reshape(1, cin),
                   p["pw_w"].astype(bf16), p["pw_b"].reshape(1, cout)]
    inputs += [classifier["w"].astype(bf16), classifier["b"].reshape(1, ncls)]

    def _whole(a):
        nd = a.ndim
        return pl.BlockSpec(a.shape, lambda b, _nd=nd: (0,) * _nd)

    in_specs = [pl.BlockSpec((1, ho1 * wo1, k * k * 3), lambda b: (b, 0, 0))]
    in_specs += [_whole(a) for a in inputs[1:]]

    # Total VMEM: ~1 MiB of canvases + <1 MiB of weights/patches - far below
    # the default scoped limit on v5e/v6e/v7x, so vmem_limit_bytes is left at
    # its default.
    out = pl.pallas_call(
        functools.partial(_mobilenet_kernel, plan=plan),
        out_shape=jax.ShapeDtypeStruct((n, 1, ncls), jnp.float32),
        grid=(n,),
        in_specs=in_specs,
        out_specs=pl.BlockSpec((1, 1, ncls), lambda b: (b, 0, 0)),
        scratch_shapes=[pltpu.VMEM(sh, jnp.float32) for sh in canvas_shapes],
        compiler_params=pltpu.CompilerParams(
            dimension_semantics=("parallel",)),
    )(*inputs)
    return out[:, 0, :]


# ----------------------------- parameter init --------------------------------
def init_params(key):
    params = []
    k2 = KERNEL_SIZE * KERNEL_SIZE
    c0 = make_div8(int(LAYER_SETTING[0][1] * WIDTH_MULT))
    key, ka, kb = jax.random.split(key, 3)
    # BN (gamma, beta, running stats) folded into conv weight/bias (eval mode).
    params.append(dict(
        type="conv",
        w=(2.0 / (k2 * 3)) ** 0.5 *
          jax.random.normal(ka, (k2, 3, c0), jnp.float32),
        b=0.01 * jax.random.normal(kb, (c0,), jnp.float32),
        stride=LAYER_SETTING[0][3],
    ))
    channels = c0
    for _t, c, nrep, s in LAYER_SETTING[1:]:
        cout = make_div8(int(c * WIDTH_MULT))
        for i in range(nrep):
            stride = s if i == 0 else 1
            key, kd, kbd, kp, kbp = jax.random.split(key, 5)
            params.append(dict(
                type="dwsep",
                dw_w=(2.0 / k2) ** 0.5 *
                     jax.random.normal(kd, (k2, channels), jnp.float32),
                dw_b=0.01 * jax.random.normal(kbd, (channels,), jnp.float32),
                pw_w=(2.0 / channels) ** 0.5 *
                     jax.random.normal(kp, (channels, cout), jnp.float32),
                pw_b=0.01 * jax.random.normal(kbp, (cout,), jnp.float32),
                stride=stride,
            ))
            channels = cout
    key, kc, kcb = jax.random.split(key, 3)
    classifier = dict(
        w=(1.0 / channels) ** 0.5 *
          jax.random.normal(kc, (channels, NUM_CLASSES), jnp.float32),
        b=0.01 * jax.random.normal(kcb, (NUM_CLASSES,), jnp.float32),
    )
    return params, classifier


# ----------------------------- pure-JAX reference -----------------------------
def _ref_forward(x_nchw, params, classifier):
    """Reference with the SAME bf16 operand quantisation as the kernel
    (f32 accumulate), so the comparison tolerance can be tight."""
    f32 = jnp.float32
    bf16 = jnp.bfloat16
    k = KERNEL_SIZE
    dn = ("NHWC", "HWIO", "NHWC")
    x = jnp.transpose(x_nchw, (0, 2, 3, 1)).astype(f32)

    p0 = params[0]
    w0 = p0["w"].reshape(k, k, 3, -1)
    x = lax.conv_general_dilated(
        x.astype(bf16), w0.astype(bf16), (p0["stride"],) * 2,
        ((1, 1), (1, 1)), dimension_numbers=dn, preferred_element_type=f32)
    x = jax.nn.relu(x + p0["b"])

    for p in params[1:]:
        c = x.shape[-1]
        wd = p["dw_w"].reshape(k, k, 1, c)
        x = lax.conv_general_dilated(
            x, wd, (p["stride"],) * 2, ((1, 1), (1, 1)),
            dimension_numbers=dn, feature_group_count=c,
            precision=lax.Precision.HIGHEST)          # f32, like the VPU chain
        x = jax.nn.relu(x + p["dw_b"])
        cout = p["pw_w"].shape[1]
        y = jnp.dot(x.astype(bf16).reshape(-1, c), p["pw_w"].astype(bf16),
                    preferred_element_type=f32)
        x = jax.nn.relu(y.reshape(x.shape[:-1] + (cout,)) + p["pw_b"])

    feat = jnp.mean(x, axis=(1, 2))
    return (jnp.dot(feat.astype(bf16), classifier["w"].astype(bf16),
                    preferred_element_type=f32) + classifier["b"])


if __name__ == "__main__":
    key = jax.random.PRNGKey(0)
    kparam, kinput = jax.random.split(key)
    params, classifier = init_params(kparam)

    # small input consistent with the module: NCHW, 3 input channels
    x = jax.random.normal(kinput, (2, 3, 32, 32), jnp.float32)

    fwd = jax.jit(lambda inp: mobilenetv1_forward(inp, params, classifier))
    out = fwd(x)
    jax.block_until_ready(out)
    assert out.shape == (2, NUM_CLASSES), out.shape

    ref = jax.jit(lambda inp: _ref_forward(inp, params, classifier))(x)
    jax.block_until_ready(ref)
    rel = float(jnp.max(jnp.abs(out - ref)) / (jnp.max(jnp.abs(ref)) + 1e-6))
    # Both paths quantise MXU operands to bf16 identically and accumulate in
    # f32, so only summation-order noise remains; any tap/stride/bias/layout
    # bug produces O(1) relative error and trips this.
    assert rel < 2e-2, f"Pallas vs reference mismatch: rel={rel}"

    print("KERNEL_OK")
</pallas_src>

<mosaic_0001>
module attributes {stable_mosaic.version = 11 : i64} {
  func.func @_mobilenet_kernel(%arg0: i32, %arg1: memref<1x256x27xbf16, #tpu.memory_space<vmem>>, %arg2: memref<27x8xbf16, #tpu.memory_space<vmem>>, %arg3: memref<1x8xf32, #tpu.memory_space<vmem>>, %arg4: memref<9x8xf32, #tpu.memory_space<vmem>>, %arg5: memref<1x8xf32, #tpu.memory_space<vmem>>, %arg6: memref<8x16xbf16, #tpu.memory_space<vmem>>, %arg7: memref<1x16xf32, #tpu.memory_space<vmem>>, %arg8: memref<9x16xf32, #tpu.memory_space<vmem>>, %arg9: memref<1x16xf32, #tpu.memory_space<vmem>>, %arg10: memref<16x32xbf16, #tpu.memory_space<vmem>>, %arg11: memref<1x32xf32, #tpu.memory_space<vmem>>, %arg12: memref<9x32xf32, #tpu.memory_space<vmem>>, %arg13: memref<1x32xf32, #tpu.memory_space<vmem>>, %arg14: memref<32x32xbf16, #tpu.memory_space<vmem>>, %arg15: memref<1x32xf32, #tpu.memory_space<vmem>>, %arg16: memref<9x32xf32, #tpu.memory_space<vmem>>, %arg17: memref<1x32xf32, #tpu.memory_space<vmem>>, %arg18: memref<32x64xbf16, #tpu.memory_space<vmem>>, %arg19: memref<1x64xf32, #tpu.memory_space<vmem>>, %arg20: memref<9x64xf32, #tpu.memory_space<vmem>>, %arg21: memref<1x64xf32, #tpu.memory_space<vmem>>, %arg22: memref<64x64xbf16, #tpu.memory_space<vmem>>, %arg23: memref<1x64xf32, #tpu.memory_space<vmem>>, %arg24: memref<9x64xf32, #tpu.memory_space<vmem>>, %arg25: memref<1x64xf32, #tpu.memory_space<vmem>>, %arg26: memref<64x128xbf16, #tpu.memory_space<vmem>>, %arg27: memref<1x128xf32, #tpu.memory_space<vmem>>, %arg28: memref<9x128xf32, #tpu.memory_space<vmem>>, %arg29: memref<1x128xf32, #tpu.memory_space<vmem>>, %arg30: memref<128x128xbf16, #tpu.memory_space<vmem>>, %arg31: memref<1x128xf32, #tpu.memory_space<vmem>>, %arg32: memref<9x128xf32, #tpu.memory_space<vmem>>, %arg33: memref<1x128xf32, #tpu.memory_space<vmem>>, %arg34: memref<128x128xbf16, #tpu.memory_space<vmem>>, %arg35: memref<1x128xf32, #tpu.memory_space<vmem>>, %arg36: memref<9x128xf32, #tpu.memory_space<vmem>>, %arg37: memref<1x128xf32, #tpu.memory_space<vmem>>, %arg38: memref<128x128xbf16, #tpu.memory_space<vmem>>, %arg39: memref<1x128xf32, #tpu.memory_space<vmem>>, %arg40: memref<9x128xf32, #tpu.memory_space<vmem>>, %arg41: memref<1x128xf32, #tpu.memory_space<vmem>>, %arg42: memref<128x128xbf16, #tpu.memory_space<vmem>>, %arg43: memref<1x128xf32, #tpu.memory_space<vmem>>, %arg44: memref<9x128xf32, #tpu.memory_space<vmem>>, %arg45: memref<1x128xf32, #tpu.memory_space<vmem>>, %arg46: memref<128x128xbf16, #tpu.memory_space<vmem>>, %arg47: memref<1x128xf32, #tpu.memory_space<vmem>>, %arg48: memref<9x128xf32, #tpu.memory_space<vmem>>, %arg49: memref<1x128xf32, #tpu.memory_space<vmem>>, %arg50: memref<128x256xbf16, #tpu.memory_space<vmem>>, %arg51: memref<1x256xf32, #tpu.memory_space<vmem>>, %arg52: memref<9x256xf32, #tpu.memory_space<vmem>>, %arg53: memref<1x256xf32, #tpu.memory_space<vmem>>, %arg54: memref<256x256xbf16, #tpu.memory_space<vmem>>, %arg55: memref<1x256xf32, #tpu.memory_space<vmem>>, %arg56: memref<256x10xbf16, #tpu.memory_space<vmem>>, %arg57: memref<1x10xf32, #tpu.memory_space<vmem>>, %arg58: memref<1x1x10xf32, #tpu.memory_space<vmem>>, %arg59: memref<18x18x8xf32, #tpu.memory_space<vmem>>, %arg60: memref<18x18x16xf32, #tpu.memory_space<vmem>>, %arg61: memref<10x10x32xf32, #tpu.memory_space<vmem>>, %arg62: memref<10x10x32xf32, #tpu.memory_space<vmem>>, %arg63: memref<6x10x64xf32, #tpu.memory_space<vmem>>, %arg64: memref<6x10x64xf32, #tpu.memory_space<vmem>>, %arg65: memref<4x10x128xf32, #tpu.memory_space<vmem>>, %arg66: memref<4x10x128xf32, #tpu.memory_space<vmem>>, %arg67: memref<4x10x128xf32, #tpu.memory_space<vmem>>, %arg68: memref<4x10x128xf32, #tpu.memory_space<vmem>>, %arg69: memref<4x10x128xf32, #tpu.memory_space<vmem>>, %arg70: memref<4x10x128xf32, #tpu.memory_space<vmem>>, %arg71: memref<3x10x256xf32, #tpu.memory_space<vmem>>, %arg72: memref<3x10x256xf32, #tpu.memory_space<vmem>>) attributes {dimension_semantics = [#tpu.dimension_semantics<parallel>], iteration_bounds = array<i64: 2>, scalar_prefetch = 0 : i64, scratch_operands = 14 : i64, tpu.core_type = #tpu.core_type<tc>, window_params = [{transform_indices = @transform_0, window_bounds = array<i64: 1, 256, 27>}, {pipeline_mode = #tpu.pipeline_mode<synchronous>, transform_indices = @transform_1, window_bounds = array<i64: 27, 8>}, {pipeline_mode = #tpu.pipeline_mode<synchronous>, transform_indices = @transform_2, window_bounds = array<i64: 1, 8>}, {pipeline_mode = #tpu.pipeline_mode<synchronous>, transform_indices = @transform_3, window_bounds = array<i64: 9, 8>}, {pipeline_mode = #tpu.pipeline_mode<synchronous>, transform_indices = @transform_4, window_bounds = array<i64: 1, 8>}, {pipeline_mode = #tpu.pipeline_mode<synchronous>, transform_indices = @transform_5, window_bounds = array<i64: 8, 16>}, {pipeline_mode = #tpu.pipeline_mode<synchronous>, transform_indices = @transform_6, window_bounds = array<i64: 1, 16>}, {pipeline_mode = #tpu.pipeline_mode<synchronous>, transform_indices = @transform_7, window_bounds = array<i64: 9, 16>}, {pipeline_mode = #tpu.pipeline_mode<synchronous>, transform_indices = @transform_8, window_bounds = array<i64: 1, 16>}, {pipeline_mode = #tpu.pipeline_mode<synchronous>, transform_indices = @transform_9, window_bounds = array<i64: 16, 32>}, {pipeline_mode = #tpu.pipeline_mode<synchronous>, transform_indices = @transform_10, window_bounds = array<i64: 1, 32>}, {pipeline_mode = #tpu.pipeline_mode<synchronous>, transform_indices = @transform_11, window_bounds = array<i64: 9, 32>}, {pipeline_mode = #tpu.pipeline_mode<synchronous>, transform_indices = @transform_12, window_bounds = array<i64: 1, 32>}, {pipeline_mode = #tpu.pipeline_mode<synchronous>, transform_indices = @transform_13, window_bounds = array<i64: 32, 32>}, {pipeline_mode = #tpu.pipeline_mode<synchronous>, transform_indices = @transform_14, window_bounds = array<i64: 1, 32>}, {pipeline_mode = #tpu.pipeline_mode<synchronous>, transform_indices = @transform_15, window_bounds = array<i64: 9, 32>}, {pipeline_mode = #tpu.pipeline_mode<synchronous>, transform_indices = @transform_16, window_bounds = array<i64: 1, 32>}, {pipeline_mode = #tpu.pipeline_mode<synchronous>, transform_indices = @transform_17, window_bounds = array<i64: 32, 64>}, {pipeline_mode = #tpu.pipeline_mode<synchronous>, transform_indices = @transform_18, window_bounds = array<i64: 1, 64>}, {pipeline_mode = #tpu.pipeline_mode<synchronous>, transform_indices = @transform_19, window_bounds = array<i64: 9, 64>}, {pipeline_mode = #tpu.pipeline_mode<synchronous>, transform_indices = @transform_20, window_bounds = array<i64: 1, 64>}, {pipeline_mode = #tpu.pipeline_mode<synchronous>, transform_indices = @transform_21, window_bounds = array<i64: 64, 64>}, {pipeline_mode = #tpu.pipeline_mode<synchronous>, transform_indices = @transform_22, window_bounds = array<i64: 1, 64>}, {pipeline_mode = #tpu.pipeline_mode<synchronous>, transform_indices = @transform_23, window_bounds = array<i64: 9, 64>}, {pipeline_mode = #tpu.pipeline_mode<synchronous>, transform_indices = @transform_24, window_bounds = array<i64: 1, 64>}, {pipeline_mode = #tpu.pipeline_mode<synchronous>, transform_indices = @transform_25, window_bounds = array<i64: 64, 128>}, {pipeline_mode = #tpu.pipeline_mode<synchronous>, transform_indices = @transform_26, window_bounds = array<i64: 1, 128>}, {pipeline_mode = #tpu.pipeline_mode<synchronous>, transform_indices = @transform_27, window_bounds = array<i64: 9, 128>}, {pipeline_mode = #tpu.pipeline_mode<synchronous>, transform_indices = @transform_28, window_bounds = array<i64: 1, 128>}, {pipeline_mode = #tpu.pipeline_mode<synchronous>, transform_indices = @transform_29, window_bounds = array<i64: 128, 128>}, {pipeline_mode = #tpu.pipeline_mode<synchronous>, transform_indices = @transform_30, window_bounds = array<i64: 1, 128>}, {pipeline_mode = #tpu.pipeline_mode<synchronous>, transform_indices = @transform_31, window_bounds = array<i64: 9, 128>}, {pipeline_mode = #tpu.pipeline_mode<synchronous>, transform_indices = @transform_32, window_bounds = array<i64: 1, 128>}, {pipeline_mode = #tpu.pipeline_mode<synchronous>, transform_indices = @transform_33, window_bounds = array<i64: 128, 128>}, {pipeline_mode = #tpu.pipeline_mode<synchronous>, transform_indices = @transform_34, window_bounds = array<i64: 1, 128>}, {pipeline_mode = #tpu.pipeline_mode<synchronous>, transform_indices = @transform_35, window_bounds = array<i64: 9, 128>}, {pipeline_mode = #tpu.pipeline_mode<synchronous>, transform_indices = @transform_36, window_bounds = array<i64: 1, 128>}, {pipeline_mode = #tpu.pipeline_mode<synchronous>, transform_indices = @transform_37, window_bounds = array<i64: 128, 128>}, {pipeline_mode = #tpu.pipeline_mode<synchronous>, transform_indices = @transform_38, window_bounds = array<i64: 1, 128>}, {pipeline_mode = #tpu.pipeline_mode<synchronous>, transform_indices = @transform_39, window_bounds = array<i64: 9, 128>}, {pipeline_mode = #tpu.pipeline_mode<synchronous>, transform_indices = @transform_40, window_bounds = array<i64: 1, 128>}, {pipeline_mode = #tpu.pipeline_mode<synchronous>, transform_indices = @transform_41, window_bounds = array<i64: 128, 128>}, {pipeline_mode = #tpu.pipeline_mode<synchronous>, transform_indices = @transform_42, window_bounds = array<i64: 1, 128>}, {pipeline_mode = #tpu.pipeline_mode<synchronous>, transform_indices = @transform_43, window_bounds = array<i64: 9, 128>}, {pipeline_mode = #tpu.pipeline_mode<synchronous>, transform_indices = @transform_44, window_bounds = array<i64: 1, 128>}, {pipeline_mode = #tpu.pipeline_mode<synchronous>, transform_indices = @transform_45, window_bounds = array<i64: 128, 128>}, {pipeline_mode = #tpu.pipeline_mode<synchronous>, transform_indices = @transform_46, window_bounds = array<i64: 1, 128>}, {pipeline_mode = #tpu.pipeline_mode<synchronous>, transform_indices = @transform_47, window_bounds = array<i64: 9, 128>}, {pipeline_mode = #tpu.pipeline_mode<synchronous>, transform_indices = @transform_48, window_bounds = array<i64: 1, 128>}, {pipeline_mode = #tpu.pipeline_mode<synchronous>, transform_indices = @transform_49, window_bounds = array<i64: 128, 256>}, {pipeline_mode = #tpu.pipeline_mode<synchronous>, transform_indices = @transform_50, window_bounds = array<i64: 1, 256>}, {pipeline_mode = #tpu.pipeline_mode<synchronous>, transform_indices = @transform_51, window_bounds = array<i64: 9, 256>}, {pipeline_mode = #tpu.pipeline_mode<synchronous>, transform_indices = @transform_52, window_bounds = array<i64: 1, 256>}, {pipeline_mode = #tpu.pipeline_mode<synchronous>, transform_indices = @transform_53, window_bounds = array<i64: 256, 256>}, {pipeline_mode = #tpu.pipeline_mode<synchronous>, transform_indices = @transform_54, window_bounds = array<i64: 1, 256>}, {pipeline_mode = #tpu.pipeline_mode<synchronous>, transform_indices = @transform_55, window_bounds = array<i64: 256, 10>}, {pipeline_mode = #tpu.pipeline_mode<synchronous>, transform_indices = @transform_56, window_bounds = array<i64: 1, 10>}, {transform_indices = @transform_57, window_bounds = array<i64: 1, 1, 10>}]} {
    %cst = arith.constant 0.000000e+00 : f32
    %0 = vector.broadcast %cst : f32 to vector<18x18x8xf32>
    %c0 = arith.constant 0 : index
    %c0_0 = arith.constant 0 : index
    %c0_1 = arith.constant 0 : index
    %1 = vector.load %arg59[%c0, %c0_0, %c0_1] : memref<18x18x8xf32, #tpu.memory_space<vmem>>, vector<18x18x8xf32>
    tpu.vector_store %arg59[%c0, %c0_0, %c0_1], %0 {strides = array<i32>} : memref<18x18x8xf32, #tpu.memory_space<vmem>>, vector<18x18x8xf32>,
    %cst_2 = arith.constant 0.000000e+00 : f32
    %2 = vector.broadcast %cst_2 : f32 to vector<18x18x16xf32>
    %c0_3 = arith.constant 0 : index
    %c0_4 = arith.constant 0 : index
    %c0_5 = arith.constant 0 : index
    %3 = vector.load %arg60[%c0_3, %c0_4, %c0_5] : memref<18x18x16xf32, #tpu.memory_space<vmem>>, vector<18x18x16xf32>
    tpu.vector_store %arg60[%c0_3, %c0_4, %c0_5], %2 {strides = array<i32>} : memref<18x18x16xf32, #tpu.memory_space<vmem>>, vector<18x18x16xf32>,
    %cst_6 = arith.constant 0.000000e+00 : f32
    %4 = vector.broadcast %cst_6 : f32 to vector<10x10x32xf32>
    %c0_7 = arith.constant 0 : index
    %c0_8 = arith.constant 0 : index
    %c0_9 = arith.constant 0 : index
    %5 = vector.load %arg61[%c0_7, %c0_8, %c0_9] : memref<10x10x32xf32, #tpu.memory_space<vmem>>, vector<10x10x32xf32>
    tpu.vector_store %arg61[%c0_7, %c0_8, %c0_9], %4 {strides = array<i32>} : memref<10x10x32xf32, #tpu.memory_space<vmem>>, vector<10x10x32xf32>,
    %cst_10 = arith.constant 0.000000e+00 : f32
    %6 = vector.broadcast %cst_10 : f32 to vector<10x10x32xf32>
    %c0_11 = arith.constant 0 : index
    %c0_12 = arith.constant 0 : index
    %c0_13 = arith.constant 0 : index
    %7 = vector.load %arg62[%c0_11, %c0_12, %c0_13] : memref<10x10x32xf32, #tpu.memory_space<vmem>>, vector<10x10x32xf32>
    tpu.vector_store %arg62[%c0_11, %c0_12, %c0_13], %6 {strides = array<i32>} : memref<10x10x32xf32, #tpu.memory_space<vmem>>, vector<10x10x32xf32>,
    %cst_14 = arith.constant 0.000000e+00 : f32
    %8 = vector.broadcast %cst_14 : f32 to vector<6x10x64xf32>
    %c0_15 = arith.constant 0 : index
    %c0_16 = arith.constant 0 : index
    %c0_17 = arith.constant 0 : index
    %9 = vector.load %arg63[%c0_15, %c0_16, %c0_17] : memref<6x10x64xf32, #tpu.memory_space<vmem>>, vector<6x10x64xf32>
    tpu.vector_store %arg63[%c0_15, %c0_16, %c0_17], %8 {strides = array<i32>} : memref<6x10x64xf32, #tpu.memory_space<vmem>>, vector<6x10x64xf32>,
    %cst_18 = arith.constant 0.000000e+00 : f32
    %10 = vector.broadcast %cst_18 : f32 to vector<6x10x64xf32>
    %c0_19 = arith.constant 0 : index
    %c0_20 = arith.constant 0 : index
    %c0_21 = arith.constant 0 : index
    %11 = vector.load %arg64[%c0_19, %c0_20, %c0_21] : memref<6x10x64xf32, #tpu.memory_space<vmem>>, vector<6x10x64xf32>
    tpu.vector_store %arg64[%c0_19, %c0_20, %c0_21], %10 {strides = array<i32>} : memref<6x10x64xf32, #tpu.memory_space<vmem>>, vector<6x10x64xf32>,
    %cst_22 = arith.constant 0.000000e+00 : f32
    %12 = vector.broadcast %cst_22 : f32 to vector<4x10x128xf32>
    %c0_23 = arith.constant 0 : index
    %c0_24 = arith.constant 0 : index
    %c0_25 = arith.constant 0 : index
    %13 = vector.load %arg65[%c0_23, %c0_24, %c0_25] : memref<4x10x128xf32, #tpu.memory_space<vmem>>, vector<4x10x128xf32>
    tpu.vector_store %arg65[%c0_23, %c0_24, %c0_25], %12 {strides = array<i32>} : memref<4x10x128xf32, #tpu.memory_space<vmem>>, vector<4x10x128xf32>,
    %cst_26 = arith.constant 0.000000e+00 : f32
    %14 = vector.broadcast %cst_26 : f32 to vector<4x10x128xf32>
    %c0_27 = arith.constant 0 : index
    %c0_28 = arith.constant 0 : index
    %c0_29 = arith.constant 0 : index
    %15 = vector.load %arg66[%c0_27, %c0_28, %c0_29] : memref<4x10x128xf32, #tpu.memory_space<vmem>>, vector<4x10x128xf32>
    tpu.vector_store %arg66[%c0_27, %c0_28, %c0_29], %14 {strides = array<i32>} : memref<4x10x128xf32, #tpu.memory_space<vmem>>, vector<4x10x128xf32>,
    %cst_30 = arith.constant 0.000000e+00 : f32
    %16 = vector.broadcast %cst_30 : f32 to vector<4x10x128xf32>
    %c0_31 = arith.constant 0 : index
    %c0_32 = arith.constant 0 : index
    %c0_33 = arith.constant 0 : index
    %17 = vector.load %arg67[%c0_31, %c0_32, %c0_33] : memref<4x10x128xf32, #tpu.memory_space<vmem>>, vector<4x10x128xf32>
    tpu.vector_store %arg67[%c0_31, %c0_32, %c0_33], %16 {strides = array<i32>} : memref<4x10x128xf32, #tpu.memory_space<vmem>>, vector<4x10x128xf32>,
    %cst_34 = arith.constant 0.000000e+00 : f32
    %18 = vector.broadcast %cst_34 : f32 to vector<4x10x128xf32>
    %c0_35 = arith.constant 0 : index
    %c0_36 = arith.constant 0 : index
    %c0_37 = arith.constant 0 : index
    %19 = vector.load %arg68[%c0_35, %c0_36, %c0_37] : memref<4x10x128xf32, #tpu.memory_space<vmem>>, vector<4x10x128xf32>
    tpu.vector_store %arg68[%c0_35, %c0_36, %c0_37], %18 {strides = array<i32>} : memref<4x10x128xf32, #tpu.memory_space<vmem>>, vector<4x10x128xf32>,
    %cst_38 = arith.constant 0.000000e+00 : f32
    %20 = vector.broadcast %cst_38 : f32 to vector<4x10x128xf32>
    %c0_39 = arith.constant 0 : index
    %c0_40 = arith.constant 0 : index
    %c0_41 = arith.constant 0 : index
    %21 = vector.load %arg69[%c0_39, %c0_40, %c0_41] : memref<4x10x128xf32, #tpu.memory_space<vmem>>, vector<4x10x128xf32>
    tpu.vector_store %arg69[%c0_39, %c0_40, %c0_41], %20 {strides = array<i32>} : memref<4x10x128xf32, #tpu.memory_space<vmem>>, vector<4x10x128xf32>,
    %cst_42 = arith.constant 0.000000e+00 : f32
    %22 = vector.broadcast %cst_42 : f32 to vector<4x10x128xf32>
    %c0_43 = arith.constant 0 : index
    %c0_44 = arith.constant 0 : index
    %c0_45 = arith.constant 0 : index
    %23 = vector.load %arg70[%c0_43, %c0_44, %c0_45] : memref<4x10x128xf32, #tpu.memory_space<vmem>>, vector<4x10x128xf32>
    tpu.vector_store %arg70[%c0_43, %c0_44, %c0_45], %22 {strides = array<i32>} : memref<4x10x128xf32, #tpu.memory_space<vmem>>, vector<4x10x128xf32>,
    %cst_46 = arith.constant 0.000000e+00 : f32
    %24 = vector.broadcast %cst_46 : f32 to vector<3x10x256xf32>
    %c0_47 = arith.constant 0 : index
    %c0_48 = arith.constant 0 : index
    %c0_49 = arith.constant 0 : index
    %25 = vector.load %arg71[%c0_47, %c0_48, %c0_49] : memref<3x10x256xf32, #tpu.memory_space<vmem>>, vector<3x10x256xf32>
    tpu.vector_store %arg71[%c0_47, %c0_48, %c0_49], %24 {strides = array<i32>} : memref<3x10x256xf32, #tpu.memory_space<vmem>>, vector<3x10x256xf32>,
    %cst_50 = arith.constant 0.000000e+00 : f32
    %26 = vector.broadcast %cst_50 : f32 to vector<3x10x256xf32>
    %c0_51 = arith.constant 0 : index
    %c0_52 = arith.constant 0 : index
    %c0_53 = arith.constant 0 : index
    %27 = vector.load %arg72[%c0_51, %c0_52, %c0_53] : memref<3x10x256xf32, #tpu.memory_space<vmem>>, vector<3x10x256xf32>
    tpu.vector_store %arg72[%c0_51, %c0_52, %c0_53], %26 {strides = array<i32>} : memref<3x10x256xf32, #tpu.memory_space<vmem>>, vector<3x10x256xf32>,
    %c0_54 = arith.constant 0 : index
    %c0_55 = arith.constant 0 : index
    %c0_56 = arith.constant 0 : index
    %28 = vector.load %arg1[%c0_54, %c0_55, %c0_56] : memref<1x256x27xbf16, #tpu.memory_space<vmem>>, vector<1x256x27xbf16>
    %29 = vector.shape_cast %28 : vector<1x256x27xbf16> to vector<256x27xbf16>
    %c0_57 = arith.constant 0 : index
    %c0_58 = arith.constant 0 : index
    %30 = vector.load %arg2[%c0_57, %c0_58] : memref<27x8xbf16, #tpu.memory_space<vmem>>, vector<27x8xbf16>
    %cst_59 = arith.constant dense<0.000000e+00> : vector<256x8xf32>
    %31 = tpu.matmul %29, %30, %cst_59 {dimension_numbers = #tpu.dot_dimension_numbers<[1], [0], [0], [1], [0, 0, 1, 1], [], []>} : vector<256x27xbf16>, vector<27x8xbf16>, vector<256x8xf32> -> vector<256x8xf32>
    %c0_60 = arith.constant 0 : index
    %c0_61 = arith.constant 0 : index
    %32 = vector.load %arg3[%c0_60, %c0_61] : memref<1x8xf32, #tpu.memory_space<vmem>>, vector<1x8xf32>
    %33 = vector.broadcast %32 : vector<1x8xf32> to vector<256x8xf32>
    %34 = arith.addf %31, %33 : vector<256x8xf32>
    %cst_62 = arith.constant 0.000000e+00 : f32
    %35 = vector.broadcast %cst_62 : f32 to vector<256x8xf32>
    %36 = arith.maximumf %34, %35 : vector<256x8xf32>
    %37 = vector.shape_cast %36 : vector<256x8xf32> to vector<16x16x8xf32>
    %c1 = arith.constant 1 : index
    %c1_63 = arith.constant 1 : index
    %c0_64 = arith.constant 0 : index
    %38 = vector.load %arg59[%c1, %c1_63, %c0_64] : memref<18x18x8xf32, #tpu.memory_space<vmem>>, vector<16x16x8xf32>
    tpu.vector_store %arg59[%c1, %c1_63, %c0_64], %37 {strides = array<i32>} : memref<18x18x8xf32, #tpu.memory_space<vmem>>, vector<16x16x8xf32>,
    %c0_65 = arith.constant 0 : index
    %c0_66 = arith.constant 0 : index
    %39 = vector.load %arg4[%c0_65, %c0_66] : memref<9x8xf32, #tpu.memory_space<vmem>>, vector<9x8xf32>
    %c0_67 = arith.constant 0 : index
    %c0_68 = arith.constant 0 : index
    %40 = vector.load %arg5[%c0_67, %c0_68] : memref<1x8xf32, #tpu.memory_space<vmem>>, vector<1x8xf32>
    %41 = vector.shape_cast %40 : vector<1x8xf32> to vector<1x1x8xf32>
    %c0_69 = arith.constant 0 : index
    %c0_70 = arith.constant 0 : index
    %c0_71 = arith.constant 0 : index
    %42 = vector.load %arg59[%c0_69, %c0_70, %c0_71] : memref<18x18x8xf32, #tpu.memory_space<vmem>>, vector<16x16x8xf32>
    %43 = vector.extract_strided_slice %39 {offsets = [0, 0], sizes = [1, 8], strides = [1, 1]} : vector<9x8xf32> to vector<1x8xf32>
    %44 = vector.shape_cast %43 : vector<1x8xf32> to vector<1x1x8xf32>
    %45 = vector.broadcast %44 : vector<1x1x8xf32> to vector<16x16x8xf32>
    %46 = arith.mulf %42, %45 : vector<16x16x8xf32>
    %c0_72 = arith.constant 0 : index
    %c1_73 = arith.constant 1 : index
    %c0_74 = arith.constant 0 : index
    %47 = vector.load %arg59[%c0_72, %c1_73, %c0_74] : memref<18x18x8xf32, #tpu.memory_space<vmem>>, vector<16x16x8xf32>
    %48 = vector.extract_strided_slice %39 {offsets = [1, 0], sizes = [1, 8], strides = [1, 1]} : vector<9x8xf32> to vector<1x8xf32>
    %49 = vector.shape_cast %48 : vector<1x8xf32> to vector<1x1x8xf32>
    %50 = vector.broadcast %49 : vector<1x1x8xf32> to vector<16x16x8xf32>
    %51 = arith.mulf %47, %50 : vector<16x16x8xf32>
    %52 = arith.addf %46, %51 : vector<16x16x8xf32>
    %c0_75 = arith.constant 0 : index
    %c2 = arith.constant 2 : index
    %c0_76 = arith.constant 0 : index
    %53 = vector.load %arg59[%c0_75, %c2, %c0_76] : memref<18x18x8xf32, #tpu.memory_space<vmem>>, vector<16x16x8xf32>
    %54 = vector.extract_strided_slice %39 {offsets = [2, 0], sizes = [1, 8], strides = [1, 1]} : vector<9x8xf32> to vector<1x8xf32>
    %55 = vector.shape_cast %54 : vector<1x8xf32> to vector<1x1x8xf32>
    %56 = vector.broadcast %55 : vector<1x1x8xf32> to vector<16x16x8xf32>
    %57 = arith.mulf %53, %56 : vector<16x16x8xf32>
    %58 = arith.addf %52, %57 : vector<16x16x8xf32>
    %c1_77 = arith.constant 1 : index
    %c0_78 = arith.constant 0 : index
    %c0_79 = arith.constant 0 : index
    %59 = vector.load %arg59[%c1_77, %c0_78, %c0_79] : memref<18x18x8xf32, #tpu.memory_space<vmem>>, vector<16x16x8xf32>
    %60 = vector.extract_strided_slice %39 {offsets = [3, 0], sizes = [1, 8], strides = [1, 1]} : vector<9x8xf32> to vector<1x8xf32>
    %61 = vector.shape_cast %60 : vector<1x8xf32> to vector<1x1x8xf32>
    %62 = vector.broadcast %61 : vector<1x1x8xf32> to vector<16x16x8xf32>
    %63 = arith.mulf %59, %62 : vector<16x16x8xf32>
    %64 = arith.addf %58, %63 : vector<16x16x8xf32>
    %c1_80 = arith.constant 1 : index
    %c1_81 = arith.constant 1 : index
    %c0_82 = arith.constant 0 : index
    %65 = vector.load %arg59[%c1_80, %c1_81, %c0_82] : memref<18x18x8xf32, #tpu.memory_space<vmem>>, vector<16x16x8xf32>
    %66 = vector.extract_strided_slice %39 {offsets = [4, 0], sizes = [1, 8], strides = [1, 1]} : vector<9x8xf32> to vector<1x8xf32>
    %67 = vector.shape_cast %66 : vector<1x8xf32> to vector<1x1x8xf32>
    %68 = vector.broadcast %67 : vector<1x1x8xf32> to vector<16x16x8xf32>
    %69 = arith.mulf %65, %68 : vector<16x16x8xf32>
    %70 = arith.addf %64, %69 : vector<16x16x8xf32>
    %c1_83 = arith.constant 1 : index
    %c2_84 = arith.constant 2 : index
    %c0_85 = arith.constant 0 : index
    %71 = vector.load %arg59[%c1_83, %c2_84, %c0_85] : memref<18x18x8xf32, #tpu.memory_space<vmem>>, vector<16x16x8xf32>
    %72 = vector.extract_strided_slice %39 {offsets = [5, 0], sizes = [1, 8], strides = [1, 1]} : vector<9x8xf32> to vector<1x8xf32>
    %73 = vector.shape_cast %72 : vector<1x8xf32> to vector<1x1x8xf32>
    %74 = vector.broadcast %73 : vector<1x1x8xf32> to vector<16x16x8xf32>
    %75 = arith.mulf %71, %74 : vector<16x16x8xf32>
    %76 = arith.addf %70, %75 : vector<16x16x8xf32>
    %c2_86 = arith.constant 2 : index
    %c0_87 = arith.constant 0 : index
    %c0_88 = arith.constant 0 : index
    %77 = vector.load %arg59[%c2_86, %c0_87, %c0_88] : memref<18x18x8xf32, #tpu.memory_space<vmem>>, vector<16x16x8xf32>
    %78 = vector.extract_strided_slice %39 {offsets = [6, 0], sizes = [1, 8], strides = [1, 1]} : vector<9x8xf32> to vector<1x8xf32>
    %79 = vector.shape_cast %78 : vector<1x8xf32> to vector<1x1x8xf32>
    %80 = vector.broadcast %79 : vector<1x1x8xf32> to vector<16x16x8xf32>
    %81 = arith.mulf %77, %80 : vector<16x16x8xf32>
    %82 = arith.addf %76, %81 : vector<16x16x8xf32>
    %c2_89 = arith.constant 2 : index
    %c1_90 = arith.constant 1 : index
    %c0_91 = arith.constant 0 : index
    %83 = vector.load %arg59[%c2_89, %c1_90, %c0_91] : memref<18x18x8xf32, #tpu.memory_space<vmem>>, vector<16x16x8xf32>
    %84 = vector.extract_strided_slice %39 {offsets = [7, 0], sizes = [1, 8], strides = [1, 1]} : vector<9x8xf32> to vector<1x8xf32>
    %85 = vector.shape_cast %84 : vector<1x8xf32> to vector<1x1x8xf32>
    %86 = vector.broadcast %85 : vector<1x1x8xf32> to vector<16x16x8xf32>
    %87 = arith.mulf %83, %86 : vector<16x16x8xf32>
    %88 = arith.addf %82, %87 : vector<16x16x8xf32>
    %c2_92 = arith.constant 2 : index
    %c2_93 = arith.constant 2 : index
    %c0_94 = arith.constant 0 : index
    %89 = vector.load %arg59[%c2_92, %c2_93, %c0_94] : memref<18x18x8xf32, #tpu.memory_space<vmem>>, vector<16x16x8xf32>
    %90 = vector.extract_strided_slice %39 {offsets = [8, 0], sizes = [1, 8], strides = [1, 1]} : vector<9x8xf32> to vector<1x8xf32>
    %91 = vector.shape_cast %90 : vector<1x8xf32> to vector<1x1x8xf32>
    %92 = vector.broadcast %91 : vector<1x1x8xf32> to vector<16x16x8xf32>
    %93 = arith.mulf %89, %92 : vector<16x16x8xf32>
    %94 = arith.addf %88, %93 : vector<16x16x8xf32>
    %95 = vector.broadcast %41 : vector<1x1x8xf32> to vector<16x16x8xf32>
    %96 = arith.addf %94, %95 : vector<16x16x8xf32>
    %cst_95 = arith.constant 0.000000e+00 : f32
    %97 = vector.broadcast %cst_95 : f32 to vector<16x16x8xf32>
    %98 = arith.maximumf %96, %97 : vector<16x16x8xf32>
    %99 = vector.shape_cast %98 : vector<16x16x8xf32> to vector<256x8xf32>
    %100 = arith.truncf %99 : vector<256x8xf32> to vector<256x8xbf16>
    %c0_96 = arith.constant 0 : index
    %c0_97 = arith.constant 0 : index
    %101 = vector.load %arg6[%c0_96, %c0_97] : memref<8x16xbf16, #tpu.memory_space<vmem>>, vector<8x16xbf16>
    %cst_98 = arith.constant dense<0.000000e+00> : vector<256x16xf32>
    %102 = tpu.matmul %100, %101, %cst_98 {dimension_numbers = #tpu.dot_dimension_numbers<[1], [0], [0], [1], [0, 0, 1, 1], [], []>} : vector<256x8xbf16>, vector<8x16xbf16>, vector<256x16xf32> -> vector<256x16xf32>
    %c0_99 = arith.constant 0 : index
    %c0_100 = arith.constant 0 : index
    %103 = vector.load %arg7[%c0_99, %c0_100] : memref<1x16xf32, #tpu.memory_space<vmem>>, vector<1x16xf32>
    %104 = vector.broadcast %103 : vector<1x16xf32> to vector<256x16xf32>
    %105 = arith.addf %102, %104 : vector<256x16xf32>
    %cst_101 = arith.constant 0.000000e+00 : f32
    %106 = vector.broadcast %cst_101 : f32 to vector<256x16xf32>
    %107 = arith.maximumf %105, %106 : vector<256x16xf32>
    %108 = vector.shape_cast %107 : vector<256x16xf32> to vector<16x16x16xf32>
    %c1_102 = arith.constant 1 : index
    %c1_103 = arith.constant 1 : index
    %c0_104 = arith.constant 0 : index
    %109 = vector.load %arg60[%c1_102, %c1_103, %c0_104] : memref<18x18x16xf32, #tpu.memory_space<vmem>>, vector<16x16x16xf32>
    tpu.vector_store %arg60[%c1_102, %c1_103, %c0_104], %108 {strides = array<i32>} : memref<18x18x16xf32, #tpu.memory_space<vmem>>, vector<16x16x16xf32>,
    %c0_105 = arith.constant 0 : index
    %c0_106 = arith.constant 0 : index
    %110 = vector.load %arg8[%c0_105, %c0_106] : memref<9x16xf32, #tpu.memory_space<vmem>>, vector<9x16xf32>
    %c0_107 = arith.constant 0 : index
    %c0_108 = arith.constant 0 : index
    %111 = vector.load %arg9[%c0_107, %c0_108] : memref<1x16xf32, #tpu.memory_space<vmem>>, vector<1x16xf32>
    %112 = vector.shape_cast %111 : vector<1x16xf32> to vector<1x1x16xf32>
    %c0_109 = arith.constant 0 : index
    %c0_110 = arith.constant 0 : index
    %c0_111 = arith.constant 0 : index
    %113 = vector.load %arg60[%c0_109, %c0_110, %c0_111] : memref<18x18x16xf32, #tpu.memory_space<vmem>>, vector<16x16x16xf32>
    %114 = vector.shape_cast %113 : vector<16x16x16xf32> to vector<8x2x16x16xf32>
    %115 = vector.extract_strided_slice %114 {offsets = [0, 0, 0, 0], sizes = [8, 1, 16, 16], strides = [1, 1, 1, 1]} : vector<8x2x16x16xf32> to vector<8x1x16x16xf32>
    %116 = vector.shape_cast %115 : vector<8x1x16x16xf32> to vector<8x16x16xf32>
    %117 = vector.extract_strided_slice %110 {offsets = [0, 0], sizes = [1, 16], strides = [1, 1]} : vector<9x16xf32> to vector<1x16xf32>
    %118 = vector.shape_cast %117 : vector<1x16xf32> to vector<1x1x16xf32>
    %119 = vector.broadcast %118 : vector<1x1x16xf32> to vector<8x16x16xf32>
    %120 = arith.mulf %116, %119 : vector<8x16x16xf32>
    %c0_112 = arith.constant 0 : index
    %c1_113 = arith.constant 1 : index
    %c0_114 = arith.constant 0 : index
    %121 = vector.load %arg60[%c0_112, %c1_113, %c0_114] : memref<18x18x16xf32, #tpu.memory_space<vmem>>, vector<16x16x16xf32>
    %122 = vector.shape_cast %121 : vector<16x16x16xf32> to vector<8x2x16x16xf32>
    %123 = vector.extract_strided_slice %122 {offsets = [0, 0, 0, 0], sizes = [8, 1, 16, 16], strides = [1, 1, 1, 1]} : vector<8x2x16x16xf32> to vector<8x1x16x16xf32>
    %124 = vector.shape_cast %123 : vector<8x1x16x16xf32> to vector<8x16x16xf32>
    %125 = vector.extract_strided_slice %110 {offsets = [1, 0], sizes = [1, 16], strides = [1, 1]} : vector<9x16xf32> to vector<1x16xf32>
    %126 = vector.shape_cast %125 : vector<1x16xf32> to vector<1x1x16xf32>
    %127 = vector.broadcast %126 : vector<1x1x16xf32> to vector<8x16x16xf32>
    %128 = arith.mulf %124, %127 : vector<8x16x16xf32>
    %129 = arith.addf %120, %128 : vector<8x16x16xf32>
    %c0_115 = arith.constant 0 : index
    %c2_116 = arith.constant 2 : index
    %c0_117 = arith.constant 0 : index
    %130 = vector.load %arg60[%c0_115, %c2_116, %c0_117] : memref<18x18x16xf32, #tpu.memory_space<vmem>>, vector<16x16x16xf32>
    %131 = vector.shape_cast %130 : vector<16x16x16xf32> to vector<8x2x16x16xf32>
    %132 = vector.extract_strided_slice %131 {offsets = [0, 0, 0, 0], sizes = [8, 1, 16, 16], strides = [1, 1, 1, 1]} : vector<8x2x16x16xf32> to vector<8x1x16x16xf32>
    %133 = vector.shape_cast %132 : vector<8x1x16x16xf32> to vector<8x16x16xf32>
    %134 = vector.extract_strided_slice %110 {offsets = [2, 0], sizes = [1, 16], strides = [1, 1]} : vector<9x16xf32> to vector<1x16xf32>
    %135 = vector.shape_cast %134 : vector<1x16xf32> to vector<1x1x16xf32>
    %136 = vector.broadcast %135 : vector<1x1x16xf32> to vector<8x16x16xf32>
    %137 = arith.mulf %133, %136 : vector<8x16x16xf32>
    %138 = arith.addf %129, %137 : vector<8x16x16xf32>
    %c1_118 = arith.constant 1 : index
    %c0_119 = arith.constant 0 : index
    %c0_120 = arith.constant 0 : index
    %139 = vector.load %arg60[%c1_118, %c0_119, %c0_120] : memref<18x18x16xf32, #tpu.memory_space<vmem>>, vector<16x16x16xf32>
    %140 = vector.shape_cast %139 : vector<16x16x16xf32> to vector<8x2x16x16xf32>
    %141 = vector.extract_strided_slice %140 {offsets = [0, 0, 0, 0], sizes = [8, 1, 16, 16], strides = [1, 1, 1, 1]} : vector<8x2x16x16xf32> to vector<8x1x16x16xf32>
    %142 = vector.shape_cast %141 : vector<8x1x16x16xf32> to vector<8x16x16xf32>
    %143 = vector.extract_strided_slice %110 {offsets = [3, 0], sizes = [1, 16], strides = [1, 1]} : vector<9x16xf32> to vector<1x16xf32>
    %144 = vector.shape_cast %143 : vector<1x16xf32> to vector<1x1x16xf32>
    %145 = vector.broadcast %144 : vector<1x1x16xf32> to vector<8x16x16xf32>
    %146 = arith.mulf %142, %145 : vector<8x16x16xf32>
    %147 = arith.addf %138, %146 : vector<8x16x16xf32>
    %c1_121 = arith.constant 1 : index
    %c1_122 = arith.constant 1 : index
    %c0_123 = arith.constant 0 : index
    %148 = vector.load %arg60[%c1_121, %c1_122, %c0_123] : memref<18x18x16xf32, #tpu.memory_space<vmem>>, vector<16x16x16xf32>
    %149 = vector.shape_cast %148 : vector<16x16x16xf32> to vector<8x2x16x16xf32>
    %150 = vector.extract_strided_slice %149 {offsets = [0, 0, 0, 0], sizes = [8, 1, 16, 16], strides = [1, 1, 1, 1]} : vector<8x2x16x16xf32> to vector<8x1x16x16xf32>
    %151 = vector.shape_cast %150 : vector<8x1x16x16xf32> to vector<8x16x16xf32>
    %152 = vector.extract_strided_slice %110 {offsets = [4, 0], sizes = [1, 16], strides = [1, 1]} : vector<9x16xf32> to vector<1x16xf32>
    %153 = vector.shape_cast %152 : vector<1x16xf32> to vector<1x1x16xf32>
    %154 = vector.broadcast %153 : vector<1x1x16xf32> to vector<8x16x16xf32>
    %155 = arith.mulf %151, %154 : vector<8x16x16xf32>
    %156 = arith.addf %147, %155 : vector<8x16x16xf32>
    %c1_124 = arith.constant 1 : index
    %c2_125 = arith.constant 2 : index
    %c0_126 = arith.constant 0 : index
    %157 = vector.load %arg60[%c1_124, %c2_125, %c0_126] : memref<18x18x16xf32, #tpu.memory_space<vmem>>, vector<16x16x16xf32>
    %158 = vector.shape_cast %157 : vector<16x16x16xf32> to vector<8x2x16x16xf32>
    %159 = vector.extract_strided_slice %158 {offsets = [0, 0, 0, 0], sizes = [8, 1, 16, 16], strides = [1, 1, 1, 1]} : vector<8x2x16x16xf32> to vector<8x1x16x16xf32>
    %160 = vector.shape_cast %159 : vector<8x1x16x16xf32> to vector<8x16x16xf32>
    %161 = vector.extract_strided_slice %110 {offsets = [5, 0], sizes = [1, 16], strides = [1, 1]} : vector<9x16xf32> to vector<1x16xf32>
    %162 = vector.shape_cast %161 : vector<1x16xf32> to vector<1x1x16xf32>
    %163 = vector.broadcast %162 : vector<1x1x16xf32> to vector<8x16x16xf32>
    %164 = arith.mulf %160, %163 : vector<8x16x16xf32>
    %165 = arith.addf %156, %164 : vector<8x16x16xf32>
    %c2_127 = arith.constant 2 : index
    %c0_128 = arith.constant 0 : index
    %c0_129 = arith.constant 0 : index
    %166 = vector.load %arg60[%c2_127, %c0_128, %c0_129] : memref<18x18x16xf32, #tpu.memory_space<vmem>>, vector<16x16x16xf32>
    %167 = vector.shape_cast %166 : vector<16x16x16xf32> to vector<8x2x16x16xf32>
    %168 = vector.extract_strided_slice %167 {offsets = [0, 0, 0, 0], sizes = [8, 1, 16, 16], strides = [1, 1, 1, 1]} : vector<8x2x16x16xf32> to vector<8x1x16x16xf32>
    %169 = vector.shape_cast %168 : vector<8x1x16x16xf32> to vector<8x16x16xf32>
    %170 = vector.extract_strided_slice %110 {offsets = [6, 0], sizes = [1, 16], strides = [1, 1]} : vector<9x16xf32> to vector<1x16xf32>
    %171 = vector.shape_cast %170 : vector<1x16xf32> to vector<1x1x16xf32>
    %172 = vector.broadcast %171 : vector<1x1x16xf32> to vector<8x16x16xf32>
    %173 = arith.mulf %169, %172 : vector<8x16x16xf32>
    %174 = arith.addf %165, %173 : vector<8x16x16xf32>
    %c2_130 = arith.constant 2 : index
    %c1_131 = arith.constant 1 : index
    %c0_132 = arith.constant 0 : index
    %175 = vector.load %arg60[%c2_130, %c1_131, %c0_132] : memref<18x18x16xf32, #tpu.memory_space<vmem>>, vector<16x16x16xf32>
    %176 = vector.shape_cast %175 : vector<16x16x16xf32> to vector<8x2x16x16xf32>
    %177 = vector.extract_strided_slice %176 {offsets = [0, 0, 0, 0], sizes = [8, 1, 16, 16], strides = [1, 1, 1, 1]} : vector<8x2x16x16xf32> to vector<8x1x16x16xf32>
    %178 = vector.shape_cast %177 : vector<8x1x16x16xf32> to vector<8x16x16xf32>
    %179 = vector.extract_strided_slice %110 {offsets = [7, 0], sizes = [1, 16], strides = [1, 1]} : vector<9x16xf32> to vector<1x16xf32>
    %180 = vector.shape_cast %179 : vector<1x16xf32> to vector<1x1x16xf32>
    %181 = vector.broadcast %180 : vector<1x1x16xf32> to vector<8x16x16xf32>
    %182 = arith.mulf %178, %181 : vector<8x16x16xf32>
    %183 = arith.addf %174, %182 : vector<8x16x16xf32>
    %c2_133 = arith.constant 2 : index
    %c2_134 = arith.constant 2 : index
    %c0_135 = arith.constant 0 : index
    %184 = vector.load %arg60[%c2_133, %c2_134, %c0_135] : memref<18x18x16xf32, #tpu.memory_space<vmem>>, vector<16x16x16xf32>
    %185 = vector.shape_cast %184 : vector<16x16x16xf32> to vector<8x2x16x16xf32>
    %186 = vector.extract_strided_slice %185 {offsets = [0, 0, 0, 0], sizes = [8, 1, 16, 16], strides = [1, 1, 1, 1]} : vector<8x2x16x16xf32> to vector<8x1x16x16xf32>
    %187 = vector.shape_cast %186 : vector<8x1x16x16xf32> to vector<8x16x16xf32>
    %188 = vector.extract_strided_slice %110 {offsets = [8, 0], sizes = [1, 16], strides = [1, 1]} : vector<9x16xf32> to vector<1x16xf32>
    %189 = vector.shape_cast %188 : vector<1x16xf32> to vector<1x1x16xf32>
    %190 = vector.broadcast %189 : vector<1x1x16xf32> to vector<8x16x16xf32>
    %191 = arith.mulf %187, %190 : vector<8x16x16xf32>
    %192 = arith.addf %183, %191 : vector<8x16x16xf32>
    %193 = vector.broadcast %112 : vector<1x1x16xf32> to vector<8x16x16xf32>
    %194 = arith.addf %192, %193 : vector<8x16x16xf32>
    %cst_136 = arith.constant 0.000000e+00 : f32
    %195 = vector.broadcast %cst_136 : f32 to vector<8x16x16xf32>
    %196 = arith.maximumf %194, %195 : vector<8x16x16xf32>
    %197 = vector.shape_cast %196 : vector<8x16x16xf32> to vector<128x16xf32>
    %198 = arith.truncf %197 : vector<128x16xf32> to vector<128x16xbf16>
    %c0_137 = arith.constant 0 : index
    %c0_138 = arith.constant 0 : index
    %199 = vector.load %arg10[%c0_137, %c0_138] : memref<16x32xbf16, #tpu.memory_space<vmem>>, vector<16x32xbf16>
    %cst_139 = arith.constant dense<0.000000e+00> : vector<128x32xf32>
    %200 = tpu.matmul %198, %199, %cst_139 {dimension_numbers = #tpu.dot_dimension_numbers<[1], [0], [0], [1], [0, 0, 1, 1], [], []>} : vector<128x16xbf16>, vector<16x32xbf16>, vector<128x32xf32> -> vector<128x32xf32>
    %c0_140 = arith.constant 0 : index
    %c0_141 = arith.constant 0 : index
    %201 = vector.load %arg11[%c0_140, %c0_141] : memref<1x32xf32, #tpu.memory_space<vmem>>, vector<1x32xf32>
    %202 = vector.broadcast %201 : vector<1x32xf32> to vector<128x32xf32>
    %203 = arith.addf %200, %202 : vector<128x32xf32>
    %cst_142 = arith.constant 0.000000e+00 : f32
    %204 = vector.broadcast %cst_142 : f32 to vector<128x32xf32>
    %205 = arith.maximumf %203, %204 : vector<128x32xf32>
    %206 = vector.shape_cast %205 : vector<128x32xf32> to vector<8x16x32xf32>
    %207 = vector.extract_strided_slice %206 {offsets = [0, 0, 0], sizes = [8, 1, 32], strides = [1, 1, 1]} : vector<8x16x32xf32> to vector<8x1x32xf32>
    %c1_143 = arith.constant 1 : index
    %c1_144 = arith.constant 1 : index
    %c0_145 = arith.constant 0 : index
    %208 = vector.load %arg61[%c1_143, %c1_144, %c0_145] : memref<10x10x32xf32, #tpu.memory_space<vmem>>, vector<8x1x32xf32>
    tpu.vector_store %arg61[%c1_143, %c1_144, %c0_145], %207 {strides = array<i32>} : memref<10x10x32xf32, #tpu.memory_space<vmem>>, vector<8x1x32xf32>,
    %209 = vector.extract_strided_slice %206 {offsets = [0, 2, 0], sizes = [8, 1, 32], strides = [1, 1, 1]} : vector<8x16x32xf32> to vector<8x1x32xf32>
    %c1_146 = arith.constant 1 : index
    %c2_147 = arith.constant 2 : index
    %c0_148 = arith.constant 0 : index
    %210 = vector.load %arg61[%c1_146, %c2_147, %c0_148] : memref<10x10x32xf32, #tpu.memory_space<vmem>>, vector<8x1x32xf32>
    tpu.vector_store %arg61[%c1_146, %c2_147, %c0_148], %209 {strides = array<i32>} : memref<10x10x32xf32, #tpu.memory_space<vmem>>, vector<8x1x32xf32>,
    %211 = vector.extract_strided_slice %206 {offsets = [0, 4, 0], sizes = [8, 1, 32], strides = [1, 1, 1]} : vector<8x16x32xf32> to vector<8x1x32xf32>
    %c1_149 = arith.constant 1 : index
    %c3 = arith.constant 3 : index
    %c0_150 = arith.constant 0 : index
    %212 = vector.load %arg61[%c1_149, %c3, %c0_150] : memref<10x10x32xf32, #tpu.memory_space<vmem>>, vector<8x1x32xf32>
    tpu.vector_store %arg61[%c1_149, %c3, %c0_150], %211 {strides = array<i32>} : memref<10x10x32xf32, #tpu.memory_space<vmem>>, vector<8x1x32xf32>,
    %213 = vector.extract_strided_slice %206 {offsets = [0, 6, 0], sizes = [8, 1, 32], strides = [1, 1, 1]} : vector<8x16x32xf32> to vector<8x1x32xf32>
    %c1_151 = arith.constant 1 : index
    %c4 = arith.constant 4 : index
    %c0_152 = arith.constant 0 : index
    %214 = vector.load %arg61[%c1_151, %c4, %c0_152] : memref<10x10x32xf32, #tpu.memory_space<vmem>>, vector<8x1x32xf32>
    tpu.vector_store %arg61[%c1_151, %c4, %c0_152], %213 {strides = array<i32>} : memref<10x10x32xf32, #tpu.memory_space<vmem>>, vector<8x1x32xf32>,
    %215 = vector.extract_strided_slice %206 {offsets = [0, 8, 0], sizes = [8, 1, 32], strides = [1, 1, 1]} : vector<8x16x32xf32> to vector<8x1x32xf32>
    %c1_153 = arith.constant 1 : index
    %c5 = arith.constant 5 : index
    %c0_154 = arith.constant 0 : index
    %216 = vector.load %arg61[%c1_153, %c5, %c0_154] : memref<10x10x32xf32, #tpu.memory_space<vmem>>, vector<8x1x32xf32>
    tpu.vector_store %arg61[%c1_153, %c5, %c0_154], %215 {strides = array<i32>} : memref<10x10x32xf32, #tpu.memory_space<vmem>>, vector<8x1x32xf32>,
    %217 = vector.extract_strided_slice %206 {offsets = [0, 10, 0], sizes = [8, 1, 32], strides = [1, 1, 1]} : vector<8x16x32xf32> to vector<8x1x32xf32>
    %c1_155 = arith.constant 1 : index
    %c6 = arith.constant 6 : index
    %c0_156 = arith.constant 0 : index
    %218 = vector.load %arg61[%c1_155, %c6, %c0_156] : memref<10x10x32xf32, #tpu.memory_space<vmem>>, vector<8x1x32xf32>
    tpu.vector_store %arg61[%c1_155, %c6, %c0_156], %217 {strides = array<i32>} : memref<10x10x32xf32, #tpu.memory_space<vmem>>, vector<8x1x32xf32>,
    %219 = vector.extract_strided_slice %206 {offsets = [0, 12, 0], sizes = [8, 1, 32], strides = [1, 1, 1]} : vector<8x16x32xf32> to vector<8x1x32xf32>
    %c1_157 = arith.constant 1 : index
    %c7 = arith.constant 7 : index
    %c0_158 = arith.constant 0 : index
    %220 = vector.load %arg61[%c1_157, %c7, %c0_158] : memref<10x10x32xf32, #tpu.memory_space<vmem>>, vector<8x1x32xf32>
    tpu.vector_store %arg61[%c1_157, %c7, %c0_158], %219 {strides = array<i32>} : memref<10x10x32xf32, #tpu.memory_space<vmem>>, vector<8x1x32xf32>,
    %221 = vector.extract_strided_slice %206 {offsets = [0, 14, 0], sizes = [8, 1, 32], strides = [1, 1, 1]} : vector<8x16x32xf32> to vector<8x1x32xf32>
    %c1_159 = arith.constant 1 : index
    %c8 = arith.constant 8 : index
    %c0_160 = arith.constant 0 : index
    %222 = vector.load %arg61[%c1_159, %c8, %c0_160] : memref<10x10x32xf32, #tpu.memory_space<vmem>>, vector<8x1x32xf32>
    tpu.vector_store %arg61[%c1_159, %c8, %c0_160], %221 {strides = array<i32>} : memref<10x10x32xf32, #tpu.memory_space<vmem>>, vector<8x1x32xf32>,
    %c0_161 = arith.constant 0 : index
    %c0_162 = arith.constant 0 : index
    %223 = vector.load %arg12[%c0_161, %c0_162] : memref<9x32xf32, #tpu.memory_space<vmem>>, vector<9x32xf32>
    %c0_163 = arith.constant 0 : index
    %c0_164 = arith.constant 0 : index
    %224 = vector.load %arg13[%c0_163, %c0_164] : memref<1x32xf32, #tpu.memory_space<vmem>>, vector<1x32xf32>
    %225 = vector.shape_cast %224 : vector<1x32xf32> to vector<1x1x32xf32>
    %c0_165 = arith.constant 0 : index
    %c0_166 = arith.constant 0 : index
    %c0_167 = arith.constant 0 : index
    %226 = vector.load %arg61[%c0_165, %c0_166, %c0_167] : memref<10x10x32xf32, #tpu.memory_space<vmem>>, vector<8x8x32xf32>
    %227 = vector.extract_strided_slice %223 {offsets = [0, 0], sizes = [1, 32], strides = [1, 1]} : vector<9x32xf32> to vector<1x32xf32>
    %228 = vector.shape_cast %227 : vector<1x32xf32> to vector<1x1x32xf32>
    %229 = vector.broadcast %228 : vector<1x1x32xf32> to vector<8x8x32xf32>
    %230 = arith.mulf %226, %229 : vector<8x8x32xf32>
    %c0_168 = arith.constant 0 : index
    %c1_169 = arith.constant 1 : index
    %c0_170 = arith.constant 0 : index
    %231 = vector.load %arg61[%c0_168, %c1_169, %c0_170] : memref<10x10x32xf32, #tpu.memory_space<vmem>>, vector<8x8x32xf32>
    %232 = vector.extract_strided_slice %223 {offsets = [1, 0], sizes = [1, 32], strides = [1, 1]} : vector<9x32xf32> to vector<1x32xf32>
    %233 = vector.shape_cast %232 : vector<1x32xf32> to vector<1x1x32xf32>
    %234 = vector.broadcast %233 : vector<1x1x32xf32> to vector<8x8x32xf32>
    %235 = arith.mulf %231, %234 : vector<8x8x32xf32>
    %236 = arith.addf %230, %235 : vector<8x8x32xf32>
    %c0_171 = arith.constant 0 : index
    %c2_172 = arith.constant 2 : index
    %c0_173 = arith.constant 0 : index
    %237 = vector.load %arg61[%c0_171, %c2_172, %c0_173] : memref<10x10x32xf32, #tpu.memory_space<vmem>>, vector<8x8x32xf32>
    %238 = vector.extract_strided_slice %223 {offsets = [2, 0], sizes = [1, 32], strides = [1, 1]} : vector<9x32xf32> to vector<1x32xf32>
    %239 = vector.shape_cast %238 : vector<1x32xf32> to vector<1x1x32xf32>
    %240 = vector.broadcast %239 : vector<1x1x32xf32> to vector<8x8x32xf32>
    %241 = arith.mulf %237, %240 : vector<8x8x32xf32>
    %242 = arith.addf %236, %241 : vector<8x8x32xf32>
    %c1_174 = arith.constant 1 : index
    %c0_175 = arith.constant 0 : index
    %c0_176 = arith.constant 0 : index
    %243 = vector.load %arg61[%c1_174, %c0_175, %c0_176] : memref<10x10x32xf32, #tpu.memory_space<vmem>>, vector<8x8x32xf32>
    %244 = vector.extract_strided_slice %223 {offsets = [3, 0], sizes = [1, 32], strides = [1, 1]} : vector<9x32xf32> to vector<1x32xf32>
    %245 = vector.shape_cast %244 : vector<1x32xf32> to vector<1x1x32xf32>
    %246 = vector.broadcast %245 : vector<1x1x32xf32> to vector<8x8x32xf32>
    %247 = arith.mulf %243, %246 : vector<8x8x32xf32>
    %248 = arith.addf %242, %247 : vector<8x8x32xf32>
    %c1_177 = arith.constant 1 : index
    %c1_178 = arith.constant 1 : index
    %c0_179 = arith.constant 0 : index
    %249 = vector.load %arg61[%c1_177, %c1_178, %c0_179] : memref<10x10x32xf32, #tpu.memory_space<vmem>>, vector<8x8x32xf32>
    %250 = vector.extract_strided_slice %223 {offsets = [4, 0], sizes = [1, 32], strides = [1, 1]} : vector<9x32xf32> to vector<1x32xf32>
    %251 = vector.shape_cast %250 : vector<1x32xf32> to vector<1x1x32xf32>
    %252 = vector.broadcast %251 : vector<1x1x32xf32> to vector<8x8x32xf32>
    %253 = arith.mulf %249, %252 : vector<8x8x32xf32>
    %254 = arith.addf %248, %253 : vector<8x8x32xf32>
    %c1_180 = arith.constant 1 : index
    %c2_181 = arith.constant 2 : index
    %c0_182 = arith.constant 0 : index
    %255 = vector.load %arg61[%c1_180, %c2_181, %c0_182] : memref<10x10x32xf32, #tpu.memory_space<vmem>>, vector<8x8x32xf32>
    %256 = vector.extract_strided_slice %223 {offsets = [5, 0], sizes = [1, 32], strides = [1, 1]} : vector<9x32xf32> to vector<1x32xf32>
    %257 = vector.shape_cast %256 : vector<1x32xf32> to vector<1x1x32xf32>
    %258 = vector.broadcast %257 : vector<1x1x32xf32> to vector<8x8x32xf32>
    %259 = arith.mulf %255, %258 : vector<8x8x32xf32>
    %260 = arith.addf %254, %259 : vector<8x8x32xf32>
    %c2_183 = arith.constant 2 : index
    %c0_184 = arith.constant 0 : index
    %c0_185 = arith.constant 0 : index
    %261 = vector.load %arg61[%c2_183, %c0_184, %c0_185] : memref<10x10x32xf32, #tpu.memory_space<vmem>>, vector<8x8x32xf32>
    %262 = vector.extract_strided_slice %223 {offsets = [6, 0], sizes = [1, 32], strides = [1, 1]} : vector<9x32xf32> to vector<1x32xf32>
    %263 = vector.shape_cast %262 : vector<1x32xf32> to vector<1x1x32xf32>
    %264 = vector.broadcast %263 : vector<1x1x32xf32> to vector<8x8x32xf32>
    %265 = arith.mulf %261, %264 : vector<8x8x32xf32>
    %266 = arith.addf %260, %265 : vector<8x8x32xf32>
    %c2_186 = arith.constant 2 : index
    %c1_187 = arith.constant 1 : index
    %c0_188 = arith.constant 0 : index
    %267 = vector.load %arg61[%c2_186, %c1_187, %c0_188] : memref<10x10x32xf32, #tpu.memory_space<vmem>>, vector<8x8x32xf32>
    %268 = vector.extract_strided_slice %223 {offsets = [7, 0], sizes = [1, 32], strides = [1, 1]} : vector<9x32xf32> to vector<1x32xf32>
    %269 = vector.shape_cast %268 : vector<1x32xf32> to vector<1x1x32xf32>
    %270 = vector.broadcast %269 : vector<1x1x32xf32> to vector<8x8x32xf32>
    %271 = arith.mulf %267, %270 : vector<8x8x32xf32>
    %272 = arith.addf %266, %271 : vector<8x8x32xf32>
    %c2_189 = arith.constant 2 : index
    %c2_190 = arith.constant 2 : index
    %c0_191 = arith.constant 0 : index
    %273 = vector.load %arg61[%c2_189, %c2_190, %c0_191] : memref<10x10x32xf32, #tpu.memory_space<vmem>>, vector<8x8x32xf32>
    %274 = vector.extract_strided_slice %223 {offsets = [8, 0], sizes = [1, 32], strides = [1, 1]} : vector<9x32xf32> to vector<1x32xf32>
    %275 = vector.shape_cast %274 : vector<1x32xf32> to vector<1x1x32xf32>
    %276 = vector.broadcast %275 : vector<1x1x32xf32> to vector<8x8x32xf32>
    %277 = arith.mulf %273, %276 : vector<8x8x32xf32>
    %278 = arith.addf %272, %277 : vector<8x8x32xf32>
    %279 = vector.broadcast %225 : vector<1x1x32xf32> to vector<8x8x32xf32>
    %280 = arith.addf %278, %279 : vector<8x8x32xf32>
    %cst_192 = arith.constant 0.000000e+00 : f32
    %281 = vector.broadcast %cst_192 : f32 to vector<8x8x32xf32>
    %282 = arith.maximumf %280, %281 : vector<8x8x32xf32>
    %283 = vector.shape_cast %282 : vector<8x8x32xf32> to vector<64x32xf32>
    %284 = arith.truncf %283 : vector<64x32xf32> to vector<64x32xbf16>
    %c0_193 = arith.constant 0 : index
    %c0_194 = arith.constant 0 : index
    %285 = vector.load %arg14[%c0_193, %c0_194] : memref<32x32xbf16, #tpu.memory_space<vmem>>, vector<32x32xbf16>
    %cst_195 = arith.constant dense<0.000000e+00> : vector<64x32xf32>
    %286 = tpu.matmul %284, %285, %cst_195 {dimension_numbers = #tpu.dot_dimension_numbers<[1], [0], [0], [1], [0, 0, 1, 1], [], []>} : vector<64x32xbf16>, vector<32x32xbf16>, vector<64x32xf32> -> vector<64x32xf32>
    %c0_196 = arith.constant 0 : index
    %c0_197 = arith.constant 0 : index
    %287 = vector.load %arg15[%c0_196, %c0_197] : memref<1x32xf32, #tpu.memory_space<vmem>>, vector<1x32xf32>
    %288 = vector.broadcast %287 : vector<1x32xf32> to vector<64x32xf32>
    %289 = arith.addf %286, %288 : vector<64x32xf32>
    %cst_198 = arith.constant 0.000000e+00 : f32
    %290 = vector.broadcast %cst_198 : f32 to vector<64x32xf32>
    %291 = arith.maximumf %289, %290 : vector<64x32xf32>
    %292 = vector.shape_cast %291 : vector<64x32xf32> to vector<8x8x32xf32>
    %c1_199 = arith.constant 1 : index
    %c1_200 = arith.constant 1 : index
    %c0_201 = arith.constant 0 : index
    %293 = vector.load %arg62[%c1_199, %c1_200, %c0_201] : memref<10x10x32xf32, #tpu.memory_space<vmem>>, vector<8x8x32xf32>
    tpu.vector_store %arg62[%c1_199, %c1_200, %c0_201], %292 {strides = array<i32>} : memref<10x10x32xf32, #tpu.memory_space<vmem>>, vector<8x8x32xf32>,
    %c0_202 = arith.constant 0 : index
    %c0_203 = arith.constant 0 : index
    %294 = vector.load %arg16[%c0_202, %c0_203] : memref<9x32xf32, #tpu.memory_space<vmem>>, vector<9x32xf32>
    %c0_204 = arith.constant 0 : index
    %c0_205 = arith.constant 0 : index
    %295 = vector.load %arg17[%c0_204, %c0_205] : memref<1x32xf32, #tpu.memory_space<vmem>>, vector<1x32xf32>
    %296 = vector.shape_cast %295 : vector<1x32xf32> to vector<1x1x32xf32>
    %c0_206 = arith.constant 0 : index
    %c0_207 = arith.constant 0 : index
    %c0_208 = arith.constant 0 : index
    %297 = vector.load %arg62[%c0_206, %c0_207, %c0_208] : memref<10x10x32xf32, #tpu.memory_space<vmem>>, vector<8x8x32xf32>
    %298 = vector.shape_cast %297 : vector<8x8x32xf32> to vector<4x2x8x32xf32>
    %299 = vector.extract_strided_slice %298 {offsets = [0, 0, 0, 0], sizes = [4, 1, 8, 32], strides = [1, 1, 1, 1]} : vector<4x2x8x32xf32> to vector<4x1x8x32xf32>
    %300 = vector.shape_cast %299 : vector<4x1x8x32xf32> to vector<4x8x32xf32>
    %301 = vector.extract_strided_slice %294 {offsets = [0, 0], sizes = [1, 32], strides = [1, 1]} : vector<9x32xf32> to vector<1x32xf32>
    %302 = vector.shape_cast %301 : vector<1x32xf32> to vector<1x1x32xf32>
    %303 = vector.broadcast %302 : vector<1x1x32xf32> to vector<4x8x32xf32>
    %304 = arith.mulf %300, %303 : vector<4x8x32xf32>
    %c0_209 = arith.constant 0 : index
    %c1_210 = arith.constant 1 : index
    %c0_211 = arith.constant 0 : index
    %305 = vector.load %arg62[%c0_209, %c1_210, %c0_211] : memref<10x10x32xf32, #tpu.memory_space<vmem>>, vector<8x8x32xf32>
    %306 = vector.shape_cast %305 : vector<8x8x32xf32> to vector<4x2x8x32xf32>
    %307 = vector.extract_strided_slice %306 {offsets = [0, 0, 0, 0], sizes = [4, 1, 8, 32], strides = [1, 1, 1, 1]} : vector<4x2x8x32xf32> to vector<4x1x8x32xf32>
    %308 = vector.shape_cast %307 : vector<4x1x8x32xf32> to vector<4x8x32xf32>
    %309 = vector.extract_strided_slice %294 {offsets = [1, 0], sizes = [1, 32], strides = [1, 1]} : vector<9x32xf32> to vector<1x32xf32>
    %310 = vector.shape_cast %309 : vector<1x32xf32> to vector<1x1x32xf32>
    %311 = vector.broadcast %310 : vector<1x1x32xf32> to vector<4x8x32xf32>
    %312 = arith.mulf %308, %311 : vector<4x8x32xf32>
    %313 = arith.addf %304, %312 : vector<4x8x32xf32>
    %c0_212 = arith.constant 0 : index
    %c2_213 = arith.constant 2 : index
    %c0_214 = arith.constant 0 : index
    %314 = vector.load %arg62[%c0_212, %c2_213, %c0_214] : memref<10x10x32xf32, #tpu.memory_space<vmem>>, vector<8x8x32xf32>
    %315 = vector.shape_cast %314 : vector<8x8x32xf32> to vector<4x2x8x32xf32>
    %316 = vector.extract_strided_slice %315 {offsets = [0, 0, 0, 0], sizes = [4, 1, 8, 32], strides = [1, 1, 1, 1]} : vector<4x2x8x32xf32> to vector<4x1x8x32xf32>
    %317 = vector.shape_cast %316 : vector<4x1x8x32xf32> to vector<4x8x32xf32>
    %318 = vector.extract_strided_slice %294 {offsets = [2, 0], sizes = [1, 32], strides = [1, 1]} : vector<9x32xf32> to vector<1x32xf32>
    %319 = vector.shape_cast %318 : vector<1x32xf32> to vector<1x1x32xf32>
    %320 = vector.broadcast %319 : vector<1x1x32xf32> to vector<4x8x32xf32>
    %321 = arith.mulf %317, %320 : vector<4x8x32xf32>
    %322 = arith.addf %313, %321 : vector<4x8x32xf32>
    %c1_215 = arith.constant 1 : index
    %c0_216 = arith.constant 0 : index
    %c0_217 = arith.constant 0 : index
    %323 = vector.load %arg62[%c1_215, %c0_216, %c0_217] : memref<10x10x32xf32, #tpu.memory_space<vmem>>, vector<8x8x32xf32>
    %324 = vector.shape_cast %323 : vector<8x8x32xf32> to vector<4x2x8x32xf32>
    %325 = vector.extract_strided_slice %324 {offsets = [0, 0, 0, 0], sizes = [4, 1, 8, 32], strides = [1, 1, 1, 1]} : vector<4x2x8x32xf32> to vector<4x1x8x32xf32>
    %326 = vector.shape_cast %325 : vector<4x1x8x32xf32> to vector<4x8x32xf32>
    %327 = vector.extract_strided_slice %294 {offsets = [3, 0], sizes = [1, 32], strides = [1, 1]} : vector<9x32xf32> to vector<1x32xf32>
    %328 = vector.shape_cast %327 : vector<1x32xf32> to vector<1x1x32xf32>
    %329 = vector.broadcast %328 : vector<1x1x32xf32> to vector<4x8x32xf32>
    %330 = arith.mulf %326, %329 : vector<4x8x32xf32>
    %331 = arith.addf %322, %330 : vector<4x8x32xf32>
    %c1_218 = arith.constant 1 : index
    %c1_219 = arith.constant 1 : index
    %c0_220 = arith.constant 0 : index
    %332 = vector.load %arg62[%c1_218, %c1_219, %c0_220] : memref<10x10x32xf32, #tpu.memory_space<vmem>>, vector<8x8x32xf32>
    %333 = vector.shape_cast %332 : vector<8x8x32xf32> to vector<4x2x8x32xf32>
    %334 = vector.extract_strided_slice %333 {offsets = [0, 0, 0, 0], sizes = [4, 1, 8, 32], strides = [1, 1, 1, 1]} : vector<4x2x8x32xf32> to vector<4x1x8x32xf32>
    %335 = vector.shape_cast %334 : vector<4x1x8x32xf32> to vector<4x8x32xf32>
    %336 = vector.extract_strided_slice %294 {offsets = [4, 0], sizes = [1, 32], strides = [1, 1]} : vector<9x32xf32> to vector<1x32xf32>
    %337 = vector.shape_cast %336 : vector<1x32xf32> to vector<1x1x32xf32>
    %338 = vector.broadcast %337 : vector<1x1x32xf32> to vector<4x8x32xf32>
    %339 = arith.mulf %335, %338 : vector<4x8x32xf32>
    %340 = arith.addf %331, %339 : vector<4x8x32xf32>
    %c1_221 = arith.constant 1 : index
    %c2_222 = arith.constant 2 : index
    %c0_223 = arith.constant 0 : index
    %341 = vector.load %arg62[%c1_221, %c2_222, %c0_223] : memref<10x10x32xf32, #tpu.memory_space<vmem>>, vector<8x8x32xf32>
    %342 = vector.shape_cast %341 : vector<8x8x32xf32> to vector<4x2x8x32xf32>
    %343 = vector.extract_strided_slice %342 {offsets = [0, 0, 0, 0], sizes = [4, 1, 8, 32], strides = [1, 1, 1, 1]} : vector<4x2x8x32xf32> to vector<4x1x8x32xf32>
    %344 = vector.shape_cast %343 : vector<4x1x8x32xf32> to vector<4x8x32xf32>
    %345 = vector.extract_strided_slice %294 {offsets = [5, 0], sizes = [1, 32], strides = [1, 1]} : vector<9x32xf32> to vector<1x32xf32>
    %346 = vector.shape_cast %345 : vector<1x32xf32> to vector<1x1x32xf32>
    %347 = vector.broadcast %346 : vector<1x1x32xf32> to vector<4x8x32xf32>
    %348 = arith.mulf %344, %347 : vector<4x8x32xf32>
    %349 = arith.addf %340, %348 : vector<4x8x32xf32>
    %c2_224 = arith.constant 2 : index
    %c0_225 = arith.constant 0 : index
    %c0_226 = arith.constant 0 : index
    %350 = vector.load %arg62[%c2_224, %c0_225, %c0_226] : memref<10x10x32xf32, #tpu.memory_space<vmem>>, vector<8x8x32xf32>
    %351 = vector.shape_cast %350 : vector<8x8x32xf32> to vector<4x2x8x32xf32>
    %352 = vector.extract_strided_slice %351 {offsets = [0, 0, 0, 0], sizes = [4, 1, 8, 32], strides = [1, 1, 1, 1]} : vector<4x2x8x32xf32> to vector<4x1x8x32xf32>
    %353 = vector.shape_cast %352 : vector<4x1x8x32xf32> to vector<4x8x32xf32>
    %354 = vector.extract_strided_slice %294 {offsets = [6, 0], sizes = [1, 32], strides = [1, 1]} : vector<9x32xf32> to vector<1x32xf32>
    %355 = vector.shape_cast %354 : vector<1x32xf32> to vector<1x1x32xf32>
    %356 = vector.broadcast %355 : vector<1x1x32xf32> to vector<4x8x32xf32>
    %357 = arith.mulf %353, %356 : vector<4x8x32xf32>
    %358 = arith.addf %349, %357 : vector<4x8x32xf32>
    %c2_227 = arith.constant 2 : index
    %c1_228 = arith.constant 1 : index
    %c0_229 = arith.constant 0 : index
    %359 = vector.load %arg62[%c2_227, %c1_228, %c0_229] : memref<10x10x32xf32, #tpu.memory_space<vmem>>, vector<8x8x32xf32>
    %360 = vector.shape_cast %359 : vector<8x8x32xf32> to vector<4x2x8x32xf32>
    %361 = vector.extract_strided_slice %360 {offsets = [0, 0, 0, 0], sizes = [4, 1, 8, 32], strides = [1, 1, 1, 1]} : vector<4x2x8x32xf32> to vector<4x1x8x32xf32>
    %362 = vector.shape_cast %361 : vector<4x1x8x32xf32> to vector<4x8x32xf32>
    %363 = vector.extract_strided_slice %294 {offsets = [7, 0], sizes = [1, 32], strides = [1, 1]} : vector<9x32xf32> to vector<1x32xf32>
    %364 = vector.shape_cast %363 : vector<1x32xf32> to vector<1x1x32xf32>
    %365 = vector.broadcast %364 : vector<1x1x32xf32> to vector<4x8x32xf32>
    %366 = arith.mulf %362, %365 : vector<4x8x32xf32>
    %367 = arith.addf %358, %366 : vector<4x8x32xf32>
    %c2_230 = arith.constant 2 : index
    %c2_231 = arith.constant 2 : index
    %c0_232 = arith.constant 0 : index
    %368 = vector.load %arg62[%c2_230, %c2_231, %c0_232] : memref<10x10x32xf32, #tpu.memory_space<vmem>>, vector<8x8x32xf32>
    %369 = vector.shape_cast %368 : vector<8x8x32xf32> to vector<4x2x8x32xf32>
    %370 = vector.extract_strided_slice %369 {offsets = [0, 0, 0, 0], sizes = [4, 1, 8, 32], strides = [1, 1, 1, 1]} : vector<4x2x8x32xf32> to vector<4x1x8x32xf32>
    %371 = vector.shape_cast %370 : vector<4x1x8x32xf32> to vector<4x8x32xf32>
    %372 = vector.extract_strided_slice %294 {offsets = [8, 0], sizes = [1, 32], strides = [1, 1]} : vector<9x32xf32> to vector<1x32xf32>
    %373 = vector.shape_cast %372 : vector<1x32xf32> to vector<1x1x32xf32>
    %374 = vector.broadcast %373 : vector<1x1x32xf32> to vector<4x8x32xf32>
    %375 = arith.mulf %371, %374 : vector<4x8x32xf32>
    %376 = arith.addf %367, %375 : vector<4x8x32xf32>
    %377 = vector.broadcast %296 : vector<1x1x32xf32> to vector<4x8x32xf32>
    %378 = arith.addf %376, %377 : vector<4x8x32xf32>
    %cst_233 = arith.constant 0.000000e+00 : f32
    %379 = vector.broadcast %cst_233 : f32 to vector<4x8x32xf32>
    %380 = arith.maximumf %378, %379 : vector<4x8x32xf32>
    %381 = vector.shape_cast %380 : vector<4x8x32xf32> to vector<32x32xf32>
    %382 = arith.truncf %381 : vector<32x32xf32> to vector<32x32xbf16>
    %c0_234 = arith.constant 0 : index
    %c0_235 = arith.constant 0 : index
    %383 = vector.load %arg18[%c0_234, %c0_235] : memref<32x64xbf16, #tpu.memory_space<vmem>>, vector<32x64xbf16>
    %cst_236 = arith.constant dense<0.000000e+00> : vector<32x64xf32>
    %384 = tpu.matmul %382, %383, %cst_236 {dimension_numbers = #tpu.dot_dimension_numbers<[1], [0], [0], [1], [0, 0, 1, 1], [], []>} : vector<32x32xbf16>, vector<32x64xbf16>, vector<32x64xf32> -> vector<32x64xf32>
    %c0_237 = arith.constant 0 : index
    %c0_238 = arith.constant 0 : index
    %385 = vector.load %arg19[%c0_237, %c0_238] : memref<1x64xf32, #tpu.memory_space<vmem>>, vector<1x64xf32>
    %386 = vector.broadcast %385 : vector<1x64xf32> to vector<32x64xf32>
    %387 = arith.addf %384, %386 : vector<32x64xf32>
    %cst_239 = arith.constant 0.000000e+00 : f32
    %388 = vector.broadcast %cst_239 : f32 to vector<32x64xf32>
    %389 = arith.maximumf %387, %388 : vector<32x64xf32>
    %390 = vector.shape_cast %389 : vector<32x64xf32> to vector<4x8x64xf32>
    %391 = vector.extract_strided_slice %390 {offsets = [0, 0, 0], sizes = [4, 1, 64], strides = [1, 1, 1]} : vector<4x8x64xf32> to vector<4x1x64xf32>
    %c1_240 = arith.constant 1 : index
    %c1_241 = arith.constant 1 : index
    %c0_242 = arith.constant 0 : index
    %392 = vector.load %arg63[%c1_240, %c1_241, %c0_242] : memref<6x10x64xf32, #tpu.memory_space<vmem>>, vector<4x1x64xf32>
    tpu.vector_store %arg63[%c1_240, %c1_241, %c0_242], %391 {strides = array<i32>} : memref<6x10x64xf32, #tpu.memory_space<vmem>>, vector<4x1x64xf32>,
    %393 = vector.extract_strided_slice %390 {offsets = [0, 2, 0], sizes = [4, 1, 64], strides = [1, 1, 1]} : vector<4x8x64xf32> to vector<4x1x64xf32>
    %c1_243 = arith.constant 1 : index
    %c2_244 = arith.constant 2 : index
    %c0_245 = arith.constant 0 : index
    %394 = vector.load %arg63[%c1_243, %c2_244, %c0_245] : memref<6x10x64xf32, #tpu.memory_space<vmem>>, vector<4x1x64xf32>
    tpu.vector_store %arg63[%c1_243, %c2_244, %c0_245], %393 {strides = array<i32>} : memref<6x10x64xf32, #tpu.memory_space<vmem>>, vector<4x1x64xf32>,
    %395 = vector.extract_strided_slice %390 {offsets = [0, 4, 0], sizes = [4, 1, 64], strides = [1, 1, 1]} : vector<4x8x64xf32> to vector<4x1x64xf32>
    %c1_246 = arith.constant 1 : index
    %c3_247 = arith.constant 3 : index
    %c0_248 = arith.constant 0 : index
    %396 = vector.load %arg63[%c1_246, %c3_247, %c0_248] : memref<6x10x64xf32, #tpu.memory_space<vmem>>, vector<4x1x64xf32>
    tpu.vector_store %arg63[%c1_246, %c3_247, %c0_248], %395 {strides = array<i32>} : memref<6x10x64xf32, #tpu.memory_space<vmem>>, vector<4x1x64xf32>,
    %397 = vector.extract_strided_slice %390 {offsets = [0, 6, 0], sizes = [4, 1, 64], strides = [1, 1, 1]} : vector<4x8x64xf32> to vector<4x1x64xf32>
    %c1_249 = arith.constant 1 : index
    %c4_250 = arith.constant 4 : index
    %c0_251 = arith.constant 0 : index
    %398 = vector.load %arg63[%c1_249, %c4_250, %c0_251] : memref<6x10x64xf32, #tpu.memory_space<vmem>>, vector<4x1x64xf32>
    tpu.vector_store %arg63[%c1_249, %c4_250, %c0_251], %397 {strides = array<i32>} : memref<6x10x64xf32, #tpu.memory_space<vmem>>, vector<4x1x64xf32>,
    %c0_252 = arith.constant 0 : index
    %c0_253 = arith.constant 0 : index
    %399 = vector.load %arg20[%c0_252, %c0_253] : memref<9x64xf32, #tpu.memory_space<vmem>>, vector<9x64xf32>
    %c0_254 = arith.constant 0 : index
    %c0_255 = arith.constant 0 : index
    %400 = vector.load %arg21[%c0_254, %c0_255] : memref<1x64xf32, #tpu.memory_space<vmem>>, vector<1x64xf32>
    %401 = vector.shape_cast %400 : vector<1x64xf32> to vector<1x1x64xf32>
    %c0_256 = arith.constant 0 : index
    %c0_257 = arith.constant 0 : index
    %c0_258 = arith.constant 0 : index
    %402 = vector.load %arg63[%c0_256, %c0_257, %c0_258] : memref<6x10x64xf32, #tpu.memory_space<vmem>>, vector<4x8x64xf32>
    %403 = vector.extract_strided_slice %399 {offsets = [0, 0], sizes = [1, 64], strides = [1, 1]} : vector<9x64xf32> to vector<1x64xf32>
    %404 = vector.shape_cast %403 : vector<1x64xf32> to vector<1x1x64xf32>
    %405 = vector.broadcast %404 : vector<1x1x64xf32> to vector<4x8x64xf32>
    %406 = arith.mulf %402, %405 : vector<4x8x64xf32>
    %c0_259 = arith.constant 0 : index
    %c1_260 = arith.constant 1 : index
    %c0_261 = arith.constant 0 : index
    %407 = vector.load %arg63[%c0_259, %c1_260, %c0_261] : memref<6x10x64xf32, #tpu.memory_space<vmem>>, vector<4x8x64xf32>
    %408 = vector.extract_strided_slice %399 {offsets = [1, 0], sizes = [1, 64], strides = [1, 1]} : vector<9x64xf32> to vector<1x64xf32>
    %409 = vector.shape_cast %408 : vector<1x64xf32> to vector<1x1x64xf32>
    %410 = vector.broadcast %409 : vector<1x1x64xf32> to vector<4x8x64xf32>
    %411 = arith.mulf %407, %410 : vector<4x8x64xf32>
    %412 = arith.addf %406, %411 : vector<4x8x64xf32>
    %c0_262 = arith.constant 0 : index
    %c2_263 = arith.constant 2 : index
    %c0_264 = arith.constant 0 : index
    %413 = vector.load %arg63[%c0_262, %c2_263, %c0_264] : memref<6x10x64xf32, #tpu.memory_space<vmem>>, vector<4x8x64xf32>
    %414 = vector.extract_strided_slice %399 {offsets = [2, 0], sizes = [1, 64], strides = [1, 1]} : vector<9x64xf32> to vector<1x64xf32>
    %415 = vector.shape_cast %414 : vector<1x64xf32> to vector<1x1x64xf32>
    %416 = vector.broadcast %415 : vector<1x1x64xf32> to vector<4x8x64xf32>
    %417 = arith.mulf %413, %416 : vector<4x8x64xf32>
    %418 = arith.addf %412, %417 : vector<4x8x64xf32>
    %c1_265 = arith.constant 1 : index
    %c0_266 = arith.constant 0 : index
    %c0_267 = arith.constant 0 : index
    %419 = vector.load %arg63[%c1_265, %c0_266, %c0_267] : memref<6x10x64xf32, #tpu.memory_space<vmem>>, vector<4x8x64xf32>
    %420 = vector.extract_strided_slice %399 {offsets = [3, 0], sizes = [1, 64], strides = [1, 1]} : vector<9x64xf32> to vector<1x64xf32>
    %421 = vector.shape_cast %420 : vector<1x64xf32> to vector<1x1x64xf32>
    %422 = vector.broadcast %421 : vector<1x1x64xf32> to vector<4x8x64xf32>
    %423 = arith.mulf %419, %422 : vector<4x8x64xf32>
    %424 = arith.addf %418, %423 : vector<4x8x64xf32>
    %c1_268 = arith.constant 1 : index
    %c1_269 = arith.constant 1 : index
    %c0_270 = arith.constant 0 : index
    %425 = vector.load %arg63[%c1_268, %c1_269, %c0_270] : memref<6x10x64xf32, #tpu.memory_space<vmem>>, vector<4x8x64xf32>
    %426 = vector.extract_strided_slice %399 {offsets = [4, 0], sizes = [1, 64], strides = [1, 1]} : vector<9x64xf32> to vector<1x64xf32>
    %427 = vector.shape_cast %426 : vector<1x64xf32> to vector<1x1x64xf32>
    %428 = vector.broadcast %427 : vector<1x1x64xf32> to vector<4x8x64xf32>
    %429 = arith.mulf %425, %428 : vector<4x8x64xf32>
    %430 = arith.addf %424, %429 : vector<4x8x64xf32>
    %c1_271 = arith.constant 1 : index
    %c2_272 = arith.constant 2 : index
    %c0_273 = arith.constant 0 : index
    %431 = vector.load %arg63[%c1_271, %c2_272, %c0_273] : memref<6x10x64xf32, #tpu.memory_space<vmem>>, vector<4x8x64xf32>
    %432 = vector.extract_strided_slice %399 {offsets = [5, 0], sizes = [1, 64], strides = [1, 1]} : vector<9x64xf32> to vector<1x64xf32>
    %433 = vector.shape_cast %432 : vector<1x64xf32> to vector<1x1x64xf32>
    %434 = vector.broadcast %433 : vector<1x1x64xf32> to vector<4x8x64xf32>
    %435 = arith.mulf %431, %434 : vector<4x8x64xf32>
    %436 = arith.addf %430, %435 : vector<4x8x64xf32>
    %c2_274 = arith.constant 2 : index
    %c0_275 = arith.constant 0 : index
    %c0_276 = arith.constant 0 : index
    %437 = vector.load %arg63[%c2_274, %c0_275, %c0_276] : memref<6x10x64xf32, #tpu.memory_space<vmem>>, vector<4x8x64xf32>
    %438 = vector.extract_strided_slice %399 {offsets = [6, 0], sizes = [1, 64], strides = [1, 1]} : vector<9x64xf32> to vector<1x64xf32>
    %439 = vector.shape_cast %438 : vector<1x64xf32> to vector<1x1x64xf32>
    %440 = vector.broadcast %439 : vector<1x1x64xf32> to vector<4x8x64xf32>
    %441 = arith.mulf %437, %440 : vector<4x8x64xf32>
    %442 = arith.addf %436, %441 : vector<4x8x64xf32>
    %c2_277 = arith.constant 2 : index
    %c1_278 = arith.constant 1 : index
    %c0_279 = arith.constant 0 : index
    %443 = vector.load %arg63[%c2_277, %c1_278, %c0_279] : memref<6x10x64xf32, #tpu.memory_space<vmem>>, vector<4x8x64xf32>
    %444 = vector.extract_strided_slice %399 {offsets = [7, 0], sizes = [1, 64], strides = [1, 1]} : vector<9x64xf32> to vector<1x64xf32>
    %445 = vector.shape_cast %444 : vector<1x64xf32> to vector<1x1x64xf32>
    %446 = vector.broadcast %445 : vector<1x1x64xf32> to vector<4x8x64xf32>
    %447 = arith.mulf %443, %446 : vector<4x8x64xf32>
    %448 = arith.addf %442, %447 : vector<4x8x64xf32>
    %c2_280 = arith.constant 2 : index
    %c2_281 = arith.constant 2 : index
    %c0_282 = arith.constant 0 : index
    %449 = vector.load %arg63[%c2_280, %c2_281, %c0_282] : memref<6x10x64xf32, #tpu.memory_space<vmem>>, vector<4x8x64xf32>
    %450 = vector.extract_strided_slice %399 {offsets = [8, 0], sizes = [1, 64], strides = [1, 1]} : vector<9x64xf32> to vector<1x64xf32>
    %451 = vector.shape_cast %450 : vector<1x64xf32> to vector<1x1x64xf32>
    %452 = vector.broadcast %451 : vector<1x1x64xf32> to vector<4x8x64xf32>
    %453 = arith.mulf %449, %452 : vector<4x8x64xf32>
    %454 = arith.addf %448, %453 : vector<4x8x64xf32>
    %455 = vector.broadcast %401 : vector<1x1x64xf32> to vector<4x8x64xf32>
    %456 = arith.addf %454, %455 : vector<4x8x64xf32>
    %cst_283 = arith.constant 0.000000e+00 : f32
    %457 = vector.broadcast %cst_283 : f32 to vector<4x8x64xf32>
    %458 = arith.maximumf %456, %457 : vector<4x8x64xf32>
    %459 = vector.shape_cast %458 : vector<4x8x64xf32> to vector<32x64xf32>
    %460 = arith.truncf %459 : vector<32x64xf32> to vector<32x64xbf16>
    %c0_284 = arith.constant 0 : index
    %c0_285 = arith.constant 0 : index
    %461 = vector.load %arg22[%c0_284, %c0_285] : memref<64x64xbf16, #tpu.memory_space<vmem>>, vector<64x64xbf16>
    %cst_286 = arith.constant dense<0.000000e+00> : vector<32x64xf32>
    %462 = tpu.matmul %460, %461, %cst_286 {dimension_numbers = #tpu.dot_dimension_numbers<[1], [0], [0], [1], [0, 0, 1, 1], [], []>} : vector<32x64xbf16>, vector<64x64xbf16>, vector<32x64xf32> -> vector<32x64xf32>
    %c0_287 = arith.constant 0 : index
    %c0_288 = arith.constant 0 : index
    %463 = vector.load %arg23[%c0_287, %c0_288] : memref<1x64xf32, #tpu.memory_space<vmem>>, vector<1x64xf32>
    %464 = vector.broadcast %463 : vector<1x64xf32> to vector<32x64xf32>
    %465 = arith.addf %462, %464 : vector<32x64xf32>
    %cst_289 = arith.constant 0.000000e+00 : f32
    %466 = vector.broadcast %cst_289 : f32 to vector<32x64xf32>
    %467 = arith.maximumf %465, %466 : vector<32x64xf32>
    %468 = vector.shape_cast %467 : vector<32x64xf32> to vector<4x8x64xf32>
    %469 = vector.extract_strided_slice %468 {offsets = [0, 0, 0], sizes = [4, 4, 64], strides = [1, 1, 1]} : vector<4x8x64xf32> to vector<4x4x64xf32>
    %c1_290 = arith.constant 1 : index
    %c1_291 = arith.constant 1 : index
    %c0_292 = arith.constant 0 : index
    %470 = vector.load %arg64[%c1_290, %c1_291, %c0_292] : memref<6x10x64xf32, #tpu.memory_space<vmem>>, vector<4x4x64xf32>
    tpu.vector_store %arg64[%c1_290, %c1_291, %c0_292], %469 {strides = array<i32>} : memref<6x10x64xf32, #tpu.memory_space<vmem>>, vector<4x4x64xf32>,
    %c0_293 = arith.constant 0 : index
    %c0_294 = arith.constant 0 : index
    %471 = vector.load %arg24[%c0_293, %c0_294] : memref<9x64xf32, #tpu.memory_space<vmem>>, vector<9x64xf32>
    %c0_295 = arith.constant 0 : index
    %c0_296 = arith.constant 0 : index
    %472 = vector.load %arg25[%c0_295, %c0_296] : memref<1x64xf32, #tpu.memory_space<vmem>>, vector<1x64xf32>
    %473 = vector.shape_cast %472 : vector<1x64xf32> to vector<1x1x64xf32>
    %c0_297 = arith.constant 0 : index
    %c0_298 = arith.constant 0 : index
    %c0_299 = arith.constant 0 : index
    %474 = vector.load %arg64[%c0_297, %c0_298, %c0_299] : memref<6x10x64xf32, #tpu.memory_space<vmem>>, vector<4x8x64xf32>
    %475 = vector.shape_cast %474 : vector<4x8x64xf32> to vector<2x2x8x64xf32>
    %476 = vector.extract_strided_slice %475 {offsets = [0, 0, 0, 0], sizes = [2, 1, 8, 64], strides = [1, 1, 1, 1]} : vector<2x2x8x64xf32> to vector<2x1x8x64xf32>
    %477 = vector.shape_cast %476 : vector<2x1x8x64xf32> to vector<2x8x64xf32>
    %478 = vector.extract_strided_slice %471 {offsets = [0, 0], sizes = [1, 64], strides = [1, 1]} : vector<9x64xf32> to vector<1x64xf32>
    %479 = vector.shape_cast %478 : vector<1x64xf32> to vector<1x1x64xf32>
    %480 = vector.broadcast %479 : vector<1x1x64xf32> to vector<2x8x64xf32>
    %481 = arith.mulf %477, %480 : vector<2x8x64xf32>
    %c0_300 = arith.constant 0 : index
    %c1_301 = arith.constant 1 : index
    %c0_302 = arith.constant 0 : index
    %482 = vector.load %arg64[%c0_300, %c1_301, %c0_302] : memref<6x10x64xf32, #tpu.memory_space<vmem>>, vector<4x8x64xf32>
    %483 = vector.shape_cast %482 : vector<4x8x64xf32> to vector<2x2x8x64xf32>
    %484 = vector.extract_strided_slice %483 {offsets = [0, 0, 0, 0], sizes = [2, 1, 8, 64], strides = [1, 1, 1, 1]} : vector<2x2x8x64xf32> to vector<2x1x8x64xf32>
    %485 = vector.shape_cast %484 : vector<2x1x8x64xf32> to vector<2x8x64xf32>
    %486 = vector.extract_strided_slice %471 {offsets = [1, 0], sizes = [1, 64], strides = [1, 1]} : vector<9x64xf32> to vector<1x64xf32>
    %487 = vector.shape_cast %486 : vector<1x64xf32> to vector<1x1x64xf32>
    %488 = vector.broadcast %487 : vector<1x1x64xf32> to vector<2x8x64xf32>
    %489 = arith.mulf %485, %488 : vector<2x8x64xf32>
    %490 = arith.addf %481, %489 : vector<2x8x64xf32>
    %c0_303 = arith.constant 0 : index
    %c2_304 = arith.constant 2 : index
    %c0_305 = arith.constant 0 : index
    %491 = vector.load %arg64[%c0_303, %c2_304, %c0_305] : memref<6x10x64xf32, #tpu.memory_space<vmem>>, vector<4x8x64xf32>
    %492 = vector.shape_cast %491 : vector<4x8x64xf32> to vector<2x2x8x64xf32>
    %493 = vector.extract_strided_slice %492 {offsets = [0, 0, 0, 0], sizes = [2, 1, 8, 64], strides = [1, 1, 1, 1]} : vector<2x2x8x64xf32> to vector<2x1x8x64xf32>
    %494 = vector.shape_cast %493 : vector<2x1x8x64xf32> to vector<2x8x64xf32>
    %495 = vector.extract_strided_slice %471 {offsets = [2, 0], sizes = [1, 64], strides = [1, 1]} : vector<9x64xf32> to vector<1x64xf32>
    %496 = vector.shape_cast %495 : vector<1x64xf32> to vector<1x1x64xf32>
    %497 = vector.broadcast %496 : vector<1x1x64xf32> to vector<2x8x64xf32>
    %498 = arith.mulf %494, %497 : vector<2x8x64xf32>
    %499 = arith.addf %490, %498 : vector<2x8x64xf32>
    %c1_306 = arith.constant 1 : index
    %c0_307 = arith.constant 0 : index
    %c0_308 = arith.constant 0 : index
    %500 = vector.load %arg64[%c1_306, %c0_307, %c0_308] : memref<6x10x64xf32, #tpu.memory_space<vmem>>, vector<4x8x64xf32>
    %501 = vector.shape_cast %500 : vector<4x8x64xf32> to vector<2x2x8x64xf32>
    %502 = vector.extract_strided_slice %501 {offsets = [0, 0, 0, 0], sizes = [2, 1, 8, 64], strides = [1, 1, 1, 1]} : vector<2x2x8x64xf32> to vector<2x1x8x64xf32>
    %503 = vector.shape_cast %502 : vector<2x1x8x64xf32> to vector<2x8x64xf32>
    %504 = vector.extract_strided_slice %471 {offsets = [3, 0], sizes = [1, 64], strides = [1, 1]} : vector<9x64xf32> to vector<1x64xf32>
    %505 = vector.shape_cast %504 : vector<1x64xf32> to vector<1x1x64xf32>
    %506 = vector.broadcast %505 : vector<1x1x64xf32> to vector<2x8x64xf32>
    %507 = arith.mulf %503, %506 : vector<2x8x64xf32>
    %508 = arith.addf %499, %507 : vector<2x8x64xf32>
    %c1_309 = arith.constant 1 : index
    %c1_310 = arith.constant 1 : index
    %c0_311 = arith.constant 0 : index
    %509 = vector.load %arg64[%c1_309, %c1_310, %c0_311] : memref<6x10x64xf32, #tpu.memory_space<vmem>>, vector<4x8x64xf32>
    %510 = vector.shape_cast %509 : vector<4x8x64xf32> to vector<2x2x8x64xf32>
    %511 = vector.extract_strided_slice %510 {offsets = [0, 0, 0, 0], sizes = [2, 1, 8, 64], strides = [1, 1, 1, 1]} : vector<2x2x8x64xf32> to vector<2x1x8x64xf32>
    %512 = vector.shape_cast %511 : vector<2x1x8x64xf32> to vector<2x8x64xf32>
    %513 = vector.extract_strided_slice %471 {offsets = [4, 0], sizes = [1, 64], strides = [1, 1]} : vector<9x64xf32> to vector<1x64xf32>
    %514 = vector.shape_cast %513 : vector<1x64xf32> to vector<1x1x64xf32>
    %515 = vector.broadcast %514 : vector<1x1x64xf32> to vector<2x8x64xf32>
    %516 = arith.mulf %512, %515 : vector<2x8x64xf32>
    %517 = arith.addf %508, %516 : vector<2x8x64xf32>
    %c1_312 = arith.constant 1 : index
    %c2_313 = arith.constant 2 : index
    %c0_314 = arith.constant 0 : index
    %518 = vector.load %arg64[%c1_312, %c2_313, %c0_314] : memref<6x10x64xf32, #tpu.memory_space<vmem>>, vector<4x8x64xf32>
    %519 = vector.shape_cast %518 : vector<4x8x64xf32> to vector<2x2x8x64xf32>
    %520 = vector.extract_strided_slice %519 {offsets = [0, 0, 0, 0], sizes = [2, 1, 8, 64], strides = [1, 1, 1, 1]} : vector<2x2x8x64xf32> to vector<2x1x8x64xf32>
    %521 = vector.shape_cast %520 : vector<2x1x8x64xf32> to vector<2x8x64xf32>
    %522 = vector.extract_strided_slice %471 {offsets = [5, 0], sizes = [1, 64], strides = [1, 1]} : vector<9x64xf32> to vector<1x64xf32>
    %523 = vector.shape_cast %522 : vector<1x64xf32> to vector<1x1x64xf32>
    %524 = vector.broadcast %523 : vector<1x1x64xf32> to vector<2x8x64xf32>
    %525 = arith.mulf %521, %524 : vector<2x8x64xf32>
    %526 = arith.addf %517, %525 : vector<2x8x64xf32>
    %c2_315 = arith.constant 2 : index
    %c0_316 = arith.constant 0 : index
    %c0_317 = arith.constant 0 : index
    %527 = vector.load %arg64[%c2_315, %c0_316, %c0_317] : memref<6x10x64xf32, #tpu.memory_space<vmem>>, vector<4x8x64xf32>
    %528 = vector.shape_cast %527 : vector<4x8x64xf32> to vector<2x2x8x64xf32>
    %529 = vector.extract_strided_slice %528 {offsets = [0, 0, 0, 0], sizes = [2, 1, 8, 64], strides = [1, 1, 1, 1]} : vector<2x2x8x64xf32> to vector<2x1x8x64xf32>
    %530 = vector.shape_cast %529 : vector<2x1x8x64xf32> to vector<2x8x64xf32>
    %531 = vector.extract_strided_slice %471 {offsets = [6, 0], sizes = [1, 64], strides = [1, 1]} : vector<9x64xf32> to vector<1x64xf32>
    %532 = vector.shape_cast %531 : vector<1x64xf32> to vector<1x1x64xf32>
    %533 = vector.broadcast %532 : vector<1x1x64xf32> to vector<2x8x64xf32>
    %534 = arith.mulf %530, %533 : vector<2x8x64xf32>
    %535 = arith.addf %526, %534 : vector<2x8x64xf32>
    %c2_318 = arith.constant 2 : index
    %c1_319 = arith.constant 1 : index
    %c0_320 = arith.constant 0 : index
    %536 = vector.load %arg64[%c2_318, %c1_319, %c0_320] : memref<6x10x64xf32, #tpu.memory_space<vmem>>, vector<4x8x64xf32>
    %537 = vector.shape_cast %536 : vector<4x8x64xf32> to vector<2x2x8x64xf32>
    %538 = vector.extract_strided_slice %537 {offsets = [0, 0, 0, 0], sizes = [2, 1, 8, 64], strides = [1, 1, 1, 1]} : vector<2x2x8x64xf32> to vector<2x1x8x64xf32>
    %539 = vector.shape_cast %538 : vector<2x1x8x64xf32> to vector<2x8x64xf32>
    %540 = vector.extract_strided_slice %471 {offsets = [7, 0], sizes = [1, 64], strides = [1, 1]} : vector<9x64xf32> to vector<1x64xf32>
    %541 = vector.shape_cast %540 : vector<1x64xf32> to vector<1x1x64xf32>
    %542 = vector.broadcast %541 : vector<1x1x64xf32> to vector<2x8x64xf32>
    %543 = arith.mulf %539, %542 : vector<2x8x64xf32>
    %544 = arith.addf %535, %543 : vector<2x8x64xf32>
    %c2_321 = arith.constant 2 : index
    %c2_322 = arith.constant 2 : index
    %c0_323 = arith.constant 0 : index
    %545 = vector.load %arg64[%c2_321, %c2_322, %c0_323] : memref<6x10x64xf32, #tpu.memory_space<vmem>>, vector<4x8x64xf32>
    %546 = vector.shape_cast %545 : vector<4x8x64xf32> to vector<2x2x8x64xf32>
    %547 = vector.extract_strided_slice %546 {offsets = [0, 0, 0, 0], sizes = [2, 1, 8, 64], strides = [1, 1, 1, 1]} : vector<2x2x8x64xf32> to vector<2x1x8x64xf32>
    %548 = vector.shape_cast %547 : vector<2x1x8x64xf32> to vector<2x8x64xf32>
    %549 = vector.extract_strided_slice %471 {offsets = [8, 0], sizes = [1, 64], strides = [1, 1]} : vector<9x64xf32> to vector<1x64xf32>
    %550 = vector.shape_cast %549 : vector<1x64xf32> to vector<1x1x64xf32>
    %551 = vector.broadcast %550 : vector<1x1x64xf32> to vector<2x8x64xf32>
    %552 = arith.mulf %548, %551 : vector<2x8x64xf32>
    %553 = arith.addf %544, %552 : vector<2x8x64xf32>
    %554 = vector.broadcast %473 : vector<1x1x64xf32> to vector<2x8x64xf32>
    %555 = arith.addf %553, %554 : vector<2x8x64xf32>
    %cst_324 = arith.constant 0.000000e+00 : f32
    %556 = vector.broadcast %cst_324 : f32 to vector<2x8x64xf32>
    %557 = arith.maximumf %555, %556 : vector<2x8x64xf32>
    %558 = vector.shape_cast %557 : vector<2x8x64xf32> to vector<16x64xf32>
    %559 = arith.truncf %558 : vector<16x64xf32> to vector<16x64xbf16>
    %c0_325 = arith.constant 0 : index
    %c0_326 = arith.constant 0 : index
    %560 = vector.load %arg26[%c0_325, %c0_326] : memref<64x128xbf16, #tpu.memory_space<vmem>>, vector<64x128xbf16>
    %cst_327 = arith.constant dense<0.000000e+00> : vector<16x128xf32>
    %561 = tpu.matmul %559, %560, %cst_327 {dimension_numbers = #tpu.dot_dimension_numbers<[1], [0], [0], [1], [0, 0, 1, 1], [], []>} : vector<16x64xbf16>, vector<64x128xbf16>, vector<16x128xf32> -> vector<16x128xf32>
    %c0_328 = arith.constant 0 : index
    %c0_329 = arith.constant 0 : index
    %562 = vector.load %arg27[%c0_328, %c0_329] : memref<1x128xf32, #tpu.memory_space<vmem>>, vector<1x128xf32>
    %563 = vector.broadcast %562 : vector<1x128xf32> to vector<16x128xf32>
    %564 = arith.addf %561, %563 : vector<16x128xf32>
    %cst_330 = arith.constant 0.000000e+00 : f32
    %565 = vector.broadcast %cst_330 : f32 to vector<16x128xf32>
    %566 = arith.maximumf %564, %565 : vector<16x128xf32>
    %567 = vector.shape_cast %566 : vector<16x128xf32> to vector<2x8x128xf32>
    %568 = vector.extract_strided_slice %567 {offsets = [0, 0, 0], sizes = [2, 1, 128], strides = [1, 1, 1]} : vector<2x8x128xf32> to vector<2x1x128xf32>
    %c1_331 = arith.constant 1 : index
    %c1_332 = arith.constant 1 : index
    %c0_333 = arith.constant 0 : index
    %569 = vector.load %arg65[%c1_331, %c1_332, %c0_333] : memref<4x10x128xf32, #tpu.memory_space<vmem>>, vector<2x1x128xf32>
    tpu.vector_store %arg65[%c1_331, %c1_332, %c0_333], %568 {strides = array<i32>} : memref<4x10x128xf32, #tpu.memory_space<vmem>>, vector<2x1x128xf32>,
    %570 = vector.extract_strided_slice %567 {offsets = [0, 2, 0], sizes = [2, 1, 128], strides = [1, 1, 1]} : vector<2x8x128xf32> to vector<2x1x128xf32>
    %c1_334 = arith.constant 1 : index
    %c2_335 = arith.constant 2 : index
    %c0_336 = arith.constant 0 : index
    %571 = vector.load %arg65[%c1_334, %c2_335, %c0_336] : memref<4x10x128xf32, #tpu.memory_space<vmem>>, vector<2x1x128xf32>
    tpu.vector_store %arg65[%c1_334, %c2_335, %c0_336], %570 {strides = array<i32>} : memref<4x10x128xf32, #tpu.memory_space<vmem>>, vector<2x1x128xf32>,
    %c0_337 = arith.constant 0 : index
    %c0_338 = arith.constant 0 : index
    %572 = vector.load %arg28[%c0_337, %c0_338] : memref<9x128xf32, #tpu.memory_space<vmem>>, vector<9x128xf32>
    %c0_339 = arith.constant 0 : index
    %c0_340 = arith.constant 0 : index
    %573 = vector.load %arg29[%c0_339, %c0_340] : memref<1x128xf32, #tpu.memory_space<vmem>>, vector<1x128xf32>
    %574 = vector.shape_cast %573 : vector<1x128xf32> to vector<1x1x128xf32>
    %c0_341 = arith.constant 0 : index
    %c0_342 = arith.constant 0 : index
    %c0_343 = arith.constant 0 : index
    %575 = vector.load %arg65[%c0_341, %c0_342, %c0_343] : memref<4x10x128xf32, #tpu.memory_space<vmem>>, vector<2x8x128xf32>
    %576 = vector.extract_strided_slice %572 {offsets = [0, 0], sizes = [1, 128], strides = [1, 1]} : vector<9x128xf32> to vector<1x128xf32>
    %577 = vector.shape_cast %576 : vector<1x128xf32> to vector<1x1x128xf32>
    %578 = vector.broadcast %577 : vector<1x1x128xf32> to vector<2x8x128xf32>
    %579 = arith.mulf %575, %578 : vector<2x8x128xf32>
    %c0_344 = arith.constant 0 : index
    %c1_345 = arith.constant 1 : index
    %c0_346 = arith.constant 0 : index
    %580 = vector.load %arg65[%c0_344, %c1_345, %c0_346] : memref<4x10x128xf32, #tpu.memory_space<vmem>>, vector<2x8x128xf32>
    %581 = vector.extract_strided_slice %572 {offsets = [1, 0], sizes = [1, 128], strides = [1, 1]} : vector<9x128xf32> to vector<1x128xf32>
    %582 = vector.shape_cast %581 : vector<1x128xf32> to vector<1x1x128xf32>
    %583 = vector.broadcast %582 : vector<1x1x128xf32> to vector<2x8x128xf32>
    %584 = arith.mulf %580, %583 : vector<2x8x128xf32>
    %585 = arith.addf %579, %584 : vector<2x8x128xf32>
    %c0_347 = arith.constant 0 : index
    %c2_348 = arith.constant 2 : index
    %c0_349 = arith.constant 0 : index
    %586 = vector.load %arg65[%c0_347, %c2_348, %c0_349] : memref<4x10x128xf32, #tpu.memory_space<vmem>>, vector<2x8x128xf32>
    %587 = vector.extract_strided_slice %572 {offsets = [2, 0], sizes = [1, 128], strides = [1, 1]} : vector<9x128xf32> to vector<1x128xf32>
    %588 = vector.shape_cast %587 : vector<1x128xf32> to vector<1x1x128xf32>
    %589 = vector.broadcast %588 : vector<1x1x128xf32> to vector<2x8x128xf32>
    %590 = arith.mulf %586, %589 : vector<2x8x128xf32>
    %591 = arith.addf %585, %590 : vector<2x8x128xf32>
    %c1_350 = arith.constant 1 : index
    %c0_351 = arith.constant 0 : index
    %c0_352 = arith.constant 0 : index
    %592 = vector.load %arg65[%c1_350, %c0_351, %c0_352] : memref<4x10x128xf32, #tpu.memory_space<vmem>>, vector<2x8x128xf32>
    %593 = vector.extract_strided_slice %572 {offsets = [3, 0], sizes = [1, 128], strides = [1, 1]} : vector<9x128xf32> to vector<1x128xf32>
    %594 = vector.shape_cast %593 : vector<1x128xf32> to vector<1x1x128xf32>
    %595 = vector.broadcast %594 : vector<1x1x128xf32> to vector<2x8x128xf32>
    %596 = arith.mulf %592, %595 : vector<2x8x128xf32>
    %597 = arith.addf %591, %596 : vector<2x8x128xf32>
    %c1_353 = arith.constant 1 : index
    %c1_354 = arith.constant 1 : index
    %c0_355 = arith.constant 0 : index
    %598 = vector.load %arg65[%c1_353, %c1_354, %c0_355] : memref<4x10x128xf32, #tpu.memory_space<vmem>>, vector<2x8x128xf32>
    %599 = vector.extract_strided_slice %572 {offsets = [4, 0], sizes = [1, 128], strides = [1, 1]} : vector<9x128xf32> to vector<1x128xf32>
    %600 = vector.shape_cast %599 : vector<1x128xf32> to vector<1x1x128xf32>
    %601 = vector.broadcast %600 : vector<1x1x128xf32> to vector<2x8x128xf32>
    %602 = arith.mulf %598, %601 : vector<2x8x128xf32>
    %603 = arith.addf %597, %602 : vector<2x8x128xf32>
    %c1_356 = arith.constant 1 : index
    %c2_357 = arith.constant 2 : index
    %c0_358 = arith.constant 0 : index
    %604 = vector.load %arg65[%c1_356, %c2_357, %c0_358] : memref<4x10x128xf32, #tpu.memory_space<vmem>>, vector<2x8x128xf32>
    %605 = vector.extract_strided_slice %572 {offsets = [5, 0], sizes = [1, 128], strides = [1, 1]} : vector<9x128xf32> to vector<1x128xf32>
    %606 = vector.shape_cast %605 : vector<1x128xf32> to vector<1x1x128xf32>
    %607 = vector.broadcast %606 : vector<1x1x128xf32> to vector<2x8x128xf32>
    %608 = arith.mulf %604, %607 : vector<2x8x128xf32>
    %609 = arith.addf %603, %608 : vector<2x8x128xf32>
    %c2_359 = arith.constant 2 : index
    %c0_360 = arith.constant 0 : index
    %c0_361 = arith.constant 0 : index
    %610 = vector.load %arg65[%c2_359, %c0_360, %c0_361] : memref<4x10x128xf32, #tpu.memory_space<vmem>>, vector<2x8x128xf32>
    %611 = vector.extract_strided_slice %572 {offsets = [6, 0], sizes = [1, 128], strides = [1, 1]} : vector<9x128xf32> to vector<1x128xf32>
    %612 = vector.shape_cast %611 : vector<1x128xf32> to vector<1x1x128xf32>
    %613 = vector.broadcast %612 : vector<1x1x128xf32> to vector<2x8x128xf32>
    %614 = arith.mulf %610, %613 : vector<2x8x128xf32>
    %615 = arith.addf %609, %614 : vector<2x8x128xf32>
    %c2_362 = arith.constant 2 : index
    %c1_363 = arith.constant 1 : index
    %c0_364 = arith.constant 0 : index
    %616 = vector.load %arg65[%c2_362, %c1_363, %c0_364] : memref<4x10x128xf32, #tpu.memory_space<vmem>>, vector<2x8x128xf32>
    %617 = vector.extract_strided_slice %572 {offsets = [7, 0], sizes = [1, 128], strides = [1, 1]} : vector<9x128xf32> to vector<1x128xf32>
    %618 = vector.shape_cast %617 : vector<1x128xf32> to vector<1x1x128xf32>
    %619 = vector.broadcast %618 : vector<1x1x128xf32> to vector<2x8x128xf32>
    %620 = arith.mulf %616, %619 : vector<2x8x128xf32>
    %621 = arith.addf %615, %620 : vector<2x8x128xf32>
    %c2_365 = arith.constant 2 : index
    %c2_366 = arith.constant 2 : index
    %c0_367 = arith.constant 0 : index
    %622 = vector.load %arg65[%c2_365, %c2_366, %c0_367] : memref<4x10x128xf32, #tpu.memory_space<vmem>>, vector<2x8x128xf32>
    %623 = vector.extract_strided_slice %572 {offsets = [8, 0], sizes = [1, 128], strides = [1, 1]} : vector<9x128xf32> to vector<1x128xf32>
    %624 = vector.shape_cast %623 : vector<1x128xf32> to vector<1x1x128xf32>
    %625 = vector.broadcast %624 : vector<1x1x128xf32> to vector<2x8x128xf32>
    %626 = arith.mulf %622, %625 : vector<2x8x128xf32>
    %627 = arith.addf %621, %626 : vector<2x8x128xf32>
    %628 = vector.broadcast %574 : vector<1x1x128xf32> to vector<2x8x128xf32>
    %629 = arith.addf %627, %628 : vector<2x8x128xf32>
    %cst_368 = arith.constant 0.000000e+00 : f32
    %630 = vector.broadcast %cst_368 : f32 to vector<2x8x128xf32>
    %631 = arith.maximumf %629, %630 : vector<2x8x128xf32>
    %632 = vector.shape_cast %631 : vector<2x8x128xf32> to vector<16x128xf32>
    %633 = arith.truncf %632 : vector<16x128xf32> to vector<16x128xbf16>
    %c0_369 = arith.constant 0 : index
    %c0_370 = arith.constant 0 : index
    %634 = vector.load %arg30[%c0_369, %c0_370] : memref<128x128xbf16, #tpu.memory_space<vmem>>, vector<128x128xbf16>
    %cst_371 = arith.constant dense<0.000000e+00> : vector<16x128xf32>
    %635 = tpu.matmul %633, %634, %cst_371 {dimension_numbers = #tpu.dot_dimension_numbers<[1], [0], [0], [1], [0, 0, 1, 1], [], []>} : vector<16x128xbf16>, vector<128x128xbf16>, vector<16x128xf32> -> vector<16x128xf32>
    %c0_372 = arith.constant 0 : index
    %c0_373 = arith.constant 0 : index
    %636 = vector.load %arg31[%c0_372, %c0_373] : memref<1x128xf32, #tpu.memory_space<vmem>>, vector<1x128xf32>
    %637 = vector.broadcast %636 : vector<1x128xf32> to vector<16x128xf32>
    %638 = arith.addf %635, %637 : vector<16x128xf32>
    %cst_374 = arith.constant 0.000000e+00 : f32
    %639 = vector.broadcast %cst_374 : f32 to vector<16x128xf32>
    %640 = arith.maximumf %638, %639 : vector<16x128xf32>
    %641 = vector.shape_cast %640 : vector<16x128xf32> to vector<2x8x128xf32>
    %642 = vector.extract_strided_slice %641 {offsets = [0, 0, 0], sizes = [2, 2, 128], strides = [1, 1, 1]} : vector<2x8x128xf32> to vector<2x2x128xf32>
    %c1_375 = arith.constant 1 : index
    %c1_376 = arith.constant 1 : index
    %c0_377 = arith.constant 0 : index
    %643 = vector.load %arg66[%c1_375, %c1_376, %c0_377] : memref<4x10x128xf32, #tpu.memory_space<vmem>>, vector<2x2x128xf32>
    tpu.vector_store %arg66[%c1_375, %c1_376, %c0_377], %642 {strides = array<i32>} : memref<4x10x128xf32, #tpu.memory_space<vmem>>, vector<2x2x128xf32>,
    %c0_378 = arith.constant 0 : index
    %c0_379 = arith.constant 0 : index
    %644 = vector.load %arg32[%c0_378, %c0_379] : memref<9x128xf32, #tpu.memory_space<vmem>>, vector<9x128xf32>
    %c0_380 = arith.constant 0 : index
    %c0_381 = arith.constant 0 : index
    %645 = vector.load %arg33[%c0_380, %c0_381] : memref<1x128xf32, #tpu.memory_space<vmem>>, vector<1x128xf32>
    %646 = vector.shape_cast %645 : vector<1x128xf32> to vector<1x1x128xf32>
    %c0_382 = arith.constant 0 : index
    %c0_383 = arith.constant 0 : index
    %c0_384 = arith.constant 0 : index
    %647 = vector.load %arg66[%c0_382, %c0_383, %c0_384] : memref<4x10x128xf32, #tpu.memory_space<vmem>>, vector<2x8x128xf32>
    %648 = vector.extract_strided_slice %644 {offsets = [0, 0], sizes = [1, 128], strides = [1, 1]} : vector<9x128xf32> to vector<1x128xf32>
    %649 = vector.shape_cast %648 : vector<1x128xf32> to vector<1x1x128xf32>
    %650 = vector.broadcast %649 : vector<1x1x128xf32> to vector<2x8x128xf32>
    %651 = arith.mulf %647, %650 : vector<2x8x128xf32>
    %c0_385 = arith.constant 0 : index
    %c1_386 = arith.constant 1 : index
    %c0_387 = arith.constant 0 : index
    %652 = vector.load %arg66[%c0_385, %c1_386, %c0_387] : memref<4x10x128xf32, #tpu.memory_space<vmem>>, vector<2x8x128xf32>
    %653 = vector.extract_strided_slice %644 {offsets = [1, 0], sizes = [1, 128], strides = [1, 1]} : vector<9x128xf32> to vector<1x128xf32>
    %654 = vector.shape_cast %653 : vector<1x128xf32> to vector<1x1x128xf32>
    %655 = vector.broadcast %654 : vector<1x1x128xf32> to vector<2x8x128xf32>
    %656 = arith.mulf %652, %655 : vector<2x8x128xf32>
    %657 = arith.addf %651, %656 : vector<2x8x128xf32>
    %c0_388 = arith.constant 0 : index
    %c2_389 = arith.constant 2 : index
    %c0_390 = arith.constant 0 : index
    %658 = vector.load %arg66[%c0_388, %c2_389, %c0_390] : memref<4x10x128xf32, #tpu.memory_space<vmem>>, vector<2x8x128xf32>
    %659 = vector.extract_strided_slice %644 {offsets = [2, 0], sizes = [1, 128], strides = [1, 1]} : vector<9x128xf32> to vector<1x128xf32>
    %660 = vector.shape_cast %659 : vector<1x128xf32> to vector<1x1x128xf32>
    %661 = vector.broadcast %660 : vector<1x1x128xf32> to vector<2x8x128xf32>
    %662 = arith.mulf %658, %661 : vector<2x8x128xf32>
    %663 = arith.addf %657, %662 : vector<2x8x128xf32>
    %c1_391 = arith.constant 1 : index
    %c0_392 = arith.constant 0 : index
    %c0_393 = arith.constant 0 : index
    %664 = vector.load %arg66[%c1_391, %c0_392, %c0_393] : memref<4x10x128xf32, #tpu.memory_space<vmem>>, vector<2x8x128xf32>
    %665 = vector.extract_strided_slice %644 {offsets = [3, 0], sizes = [1, 128], strides = [1, 1]} : vector<9x128xf32> to vector<1x128xf32>
    %666 = vector.shape_cast %665 : vector<1x128xf32> to vector<1x1x128xf32>
    %667 = vector.broadcast %666 : vector<1x1x128xf32> to vector<2x8x128xf32>
    %668 = arith.mulf %664, %667 : vector<2x8x128xf32>
    %669 = arith.addf %663, %668 : vector<2x8x128xf32>
    %c1_394 = arith.constant 1 : index
    %c1_395 = arith.constant 1 : index
    %c0_396 = arith.constant 0 : index
    %670 = vector.load %arg66[%c1_394, %c1_395, %c0_396] : memref<4x10x128xf32, #tpu.memory_space<vmem>>, vector<2x8x128xf32>
    %671 = vector.extract_strided_slice %644 {offsets = [4, 0], sizes = [1, 128], strides = [1, 1]} : vector<9x128xf32> to vector<1x128xf32>
    %672 = vector.shape_cast %671 : vector<1x128xf32> to vector<1x1x128xf32>
    %673 = vector.broadcast %672 : vector<1x1x128xf32> to vector<2x8x128xf32>
    %674 = arith.mulf %670, %673 : vector<2x8x128xf32>
    %675 = arith.addf %669, %674 : vector<2x8x128xf32>
    %c1_397 = arith.constant 1 : index
    %c2_398 = arith.constant 2 : index
    %c0_399 = arith.constant 0 : index
    %676 = vector.load %arg66[%c1_397, %c2_398, %c0_399] : memref<4x10x128xf32, #tpu.memory_space<vmem>>, vector<2x8x128xf32>
    %677 = vector.extract_strided_slice %644 {offsets = [5, 0], sizes = [1, 128], strides = [1, 1]} : vector<9x128xf32> to vector<1x128xf32>
    %678 = vector.shape_cast %677 : vector<1x128xf32> to vector<1x1x128xf32>
    %679 = vector.broadcast %678 : vector<1x1x128xf32> to vector<2x8x128xf32>
    %680 = arith.mulf %676, %679 : vector<2x8x128xf32>
    %681 = arith.addf %675, %680 : vector<2x8x128xf32>
    %c2_400 = arith.constant 2 : index
    %c0_401 = arith.constant 0 : index
    %c0_402 = arith.constant 0 : index
    %682 = vector.load %arg66[%c2_400, %c0_401, %c0_402] : memref<4x10x128xf32, #tpu.memory_space<vmem>>, vector<2x8x128xf32>
    %683 = vector.extract_strided_slice %644 {offsets = [6, 0], sizes = [1, 128], strides = [1, 1]} : vector<9x128xf32> to vector<1x128xf32>
    %684 = vector.shape_cast %683 : vector<1x128xf32> to vector<1x1x128xf32>
    %685 = vector.broadcast %684 : vector<1x1x128xf32> to vector<2x8x128xf32>
    %686 = arith.mulf %682, %685 : vector<2x8x128xf32>
    %687 = arith.addf %681, %686 : vector<2x8x128xf32>
    %c2_403 = arith.constant 2 : index
    %c1_404 = arith.constant 1 : index
    %c0_405 = arith.constant 0 : index
    %688 = vector.load %arg66[%c2_403, %c1_404, %c0_405] : memref<4x10x128xf32, #tpu.memory_space<vmem>>, vector<2x8x128xf32>
    %689 = vector.extract_strided_slice %644 {offsets = [7, 0], sizes = [1, 128], strides = [1, 1]} : vector<9x128xf32> to vector<1x128xf32>
    %690 = vector.shape_cast %689 : vector<1x128xf32> to vector<1x1x128xf32>
    %691 = vector.broadcast %690 : vector<1x1x128xf32> to vector<2x8x128xf32>
    %692 = arith.mulf %688, %691 : vector<2x8x128xf32>
    %693 = arith.addf %687, %692 : vector<2x8x128xf32>
    %c2_406 = arith.constant 2 : index
    %c2_407 = arith.constant 2 : index
    %c0_408 = arith.constant 0 : index
    %694 = vector.load %arg66[%c2_406, %c2_407, %c0_408] : memref<4x10x128xf32, #tpu.memory_space<vmem>>, vector<2x8x128xf32>
    %695 = vector.extract_strided_slice %644 {offsets = [8, 0], sizes = [1, 128], strides = [1, 1]} : vector<9x128xf32> to vector<1x128xf32>
    %696 = vector.shape_cast %695 : vector<1x128xf32> to vector<1x1x128xf32>
    %697 = vector.broadcast %696 : vector<1x1x128xf32> to vector<2x8x128xf32>
    %698 = arith.mulf %694, %697 : vector<2x8x128xf32>
    %699 = arith.addf %693, %698 : vector<2x8x128xf32>
    %700 = vector.broadcast %646 : vector<1x1x128xf32> to vector<2x8x128xf32>
    %701 = arith.addf %699, %700 : vector<2x8x128xf32>
    %cst_409 = arith.constant 0.000000e+00 : f32
    %702 = vector.broadcast %cst_409 : f32 to vector<2x8x128xf32>
    %703 = arith.maximumf %701, %702 : vector<2x8x128xf32>
    %704 = vector.shape_cast %703 : vector<2x8x128xf32> to vector<16x128xf32>
    %705 = arith.truncf %704 : vector<16x128xf32> to vector<16x128xbf16>
    %c0_410 = arith.constant 0 : index
    %c0_411 = arith.constant 0 : index
    %706 = vector.load %arg34[%c0_410, %c0_411] : memref<128x128xbf16, #tpu.memory_space<vmem>>, vector<128x128xbf16>
    %cst_412 = arith.constant dense<0.000000e+00> : vector<16x128xf32>
    %707 = tpu.matmul %705, %706, %cst_412 {dimension_numbers = #tpu.dot_dimension_numbers<[1], [0], [0], [1], [0, 0, 1, 1], [], []>} : vector<16x128xbf16>, vector<128x128xbf16>, vector<16x128xf32> -> vector<16x128xf32>
    %c0_413 = arith.constant 0 : index
    %c0_414 = arith.constant 0 : index
    %708 = vector.load %arg35[%c0_413, %c0_414] : memref<1x128xf32, #tpu.memory_space<vmem>>, vector<1x128xf32>
    %709 = vector.broadcast %708 : vector<1x128xf32> to vector<16x128xf32>
    %710 = arith.addf %707, %709 : vector<16x128xf32>
    %cst_415 = arith.constant 0.000000e+00 : f32
    %711 = vector.broadcast %cst_415 : f32 to vector<16x128xf32>
    %712 = arith.maximumf %710, %711 : vector<16x128xf32>
    %713 = vector.shape_cast %712 : vector<16x128xf32> to vector<2x8x128xf32>
    %714 = vector.extract_strided_slice %713 {offsets = [0, 0, 0], sizes = [2, 2, 128], strides = [1, 1, 1]} : vector<2x8x128xf32> to vector<2x2x128xf32>
    %c1_416 = arith.constant 1 : index
    %c1_417 = arith.constant 1 : index
    %c0_418 = arith.constant 0 : index
    %715 = vector.load %arg67[%c1_416, %c1_417, %c0_418] : memref<4x10x128xf32, #tpu.memory_space<vmem>>, vector<2x2x128xf32>
    tpu.vector_store %arg67[%c1_416, %c1_417, %c0_418], %714 {strides = array<i32>} : memref<4x10x128xf32, #tpu.memory_space<vmem>>, vector<2x2x128xf32>,
    %c0_419 = arith.constant 0 : index
    %c0_420 = arith.constant 0 : index
    %716 = vector.load %arg36[%c0_419, %c0_420] : memref<9x128xf32, #tpu.memory_space<vmem>>, vector<9x128xf32>
    %c0_421 = arith.constant 0 : index
    %c0_422 = arith.constant 0 : index
    %717 = vector.load %arg37[%c0_421, %c0_422] : memref<1x128xf32, #tpu.memory_space<vmem>>, vector<1x128xf32>
    %718 = vector.shape_cast %717 : vector<1x128xf32> to vector<1x1x128xf32>
    %c0_423 = arith.constant 0 : index
    %c0_424 = arith.constant 0 : index
    %c0_425 = arith.constant 0 : index
    %719 = vector.load %arg67[%c0_423, %c0_424, %c0_425] : memref<4x10x128xf32, #tpu.memory_space<vmem>>, vector<2x8x128xf32>
    %720 = vector.extract_strided_slice %716 {offsets = [0, 0], sizes = [1, 128], strides = [1, 1]} : vector<9x128xf32> to vector<1x128xf32>
    %721 = vector.shape_cast %720 : vector<1x128xf32> to vector<1x1x128xf32>
    %722 = vector.broadcast %721 : vector<1x1x128xf32> to vector<2x8x128xf32>
    %723 = arith.mulf %719, %722 : vector<2x8x128xf32>
    %c0_426 = arith.constant 0 : index
    %c1_427 = arith.constant 1 : index
    %c0_428 = arith.constant 0 : index
    %724 = vector.load %arg67[%c0_426, %c1_427, %c0_428] : memref<4x10x128xf32, #tpu.memory_space<vmem>>, vector<2x8x128xf32>
    %725 = vector.extract_strided_slice %716 {offsets = [1, 0], sizes = [1, 128], strides = [1, 1]} : vector<9x128xf32> to vector<1x128xf32>
    %726 = vector.shape_cast %725 : vector<1x128xf32> to vector<1x1x128xf32>
    %727 = vector.broadcast %726 : vector<1x1x128xf32> to vector<2x8x128xf32>
    %728 = arith.mulf %724, %727 : vector<2x8x128xf32>
    %729 = arith.addf %723, %728 : vector<2x8x128xf32>
    %c0_429 = arith.constant 0 : index
    %c2_430 = arith.constant 2 : index
    %c0_431 = arith.constant 0 : index
    %730 = vector.load %arg67[%c0_429, %c2_430, %c0_431] : memref<4x10x128xf32, #tpu.memory_space<vmem>>, vector<2x8x128xf32>
    %731 = vector.extract_strided_slice %716 {offsets = [2, 0], sizes = [1, 128], strides = [1, 1]} : vector<9x128xf32> to vector<1x128xf32>
    %732 = vector.shape_cast %731 : vector<1x128xf32> to vector<1x1x128xf32>
    %733 = vector.broadcast %732 : vector<1x1x128xf32> to vector<2x8x128xf32>
    %734 = arith.mulf %730, %733 : vector<2x8x128xf32>
    %735 = arith.addf %729, %734 : vector<2x8x128xf32>
    %c1_432 = arith.constant 1 : index
    %c0_433 = arith.constant 0 : index
    %c0_434 = arith.constant 0 : index
    %736 = vector.load %arg67[%c1_432, %c0_433, %c0_434] : memref<4x10x128xf32, #tpu.memory_space<vmem>>, vector<2x8x128xf32>
    %737 = vector.extract_strided_slice %716 {offsets = [3, 0], sizes = [1, 128], strides = [1, 1]} : vector<9x128xf32> to vector<1x128xf32>
    %738 = vector.shape_cast %737 : vector<1x128xf32> to vector<1x1x128xf32>
    %739 = vector.broadcast %738 : vector<1x1x128xf32> to vector<2x8x128xf32>
    %740 = arith.mulf %736, %739 : vector<2x8x128xf32>
    %741 = arith.addf %735, %740 : vector<2x8x128xf32>
    %c1_435 = arith.constant 1 : index
    %c1_436 = arith.constant 1 : index
    %c0_437 = arith.constant 0 : index
    %742 = vector.load %arg67[%c1_435, %c1_436, %c0_437] : memref<4x10x128xf32, #tpu.memory_space<vmem>>, vector<2x8x128xf32>
    %743 = vector.extract_strided_slice %716 {offsets = [4, 0], sizes = [1, 128], strides = [1, 1]} : vector<9x128xf32> to vector<1x128xf32>
    %744 = vector.shape_cast %743 : vector<1x128xf32> to vector<1x1x128xf32>
    %745 = vector.broadcast %744 : vector<1x1x128xf32> to vector<2x8x128xf32>
    %746 = arith.mulf %742, %745 : vector<2x8x128xf32>
    %747 = arith.addf %741, %746 : vector<2x8x128xf32>
    %c1_438 = arith.constant 1 : index
    %c2_439 = arith.constant 2 : index
    %c0_440 = arith.constant 0 : index
    %748 = vector.load %arg67[%c1_438, %c2_439, %c0_440] : memref<4x10x128xf32, #tpu.memory_space<vmem>>, vector<2x8x128xf32>
    %749 = vector.extract_strided_slice %716 {offsets = [5, 0], sizes = [1, 128], strides = [1, 1]} : vector<9x128xf32> to vector<1x128xf32>
    %750 = vector.shape_cast %749 : vector<1x128xf32> to vector<1x1x128xf32>
    %751 = vector.broadcast %750 : vector<1x1x128xf32> to vector<2x8x128xf32>
    %752 = arith.mulf %748, %751 : vector<2x8x128xf32>
    %753 = arith.addf %747, %752 : vector<2x8x128xf32>
    %c2_441 = arith.constant 2 : index
    %c0_442 = arith.constant 0 : index
    %c0_443 = arith.constant 0 : index
    %754 = vector.load %arg67[%c2_441, %c0_442, %c0_443] : memref<4x10x128xf32, #tpu.memory_space<vmem>>, vector<2x8x128xf32>
    %755 = vector.extract_strided_slice %716 {offsets = [6, 0], sizes = [1, 128], strides = [1, 1]} : vector<9x128xf32> to vector<1x128xf32>
    %756 = vector.shape_cast %755 : vector<1x128xf32> to vector<1x1x128xf32>
    %757 = vector.broadcast %756 : vector<1x1x128xf32> to vector<2x8x128xf32>
    %758 = arith.mulf %754, %757 : vector<2x8x128xf32>
    %759 = arith.addf %753, %758 : vector<2x8x128xf32>
    %c2_444 = arith.constant 2 : index
    %c1_445 = arith.constant 1 : index
    %c0_446 = arith.constant 0 : index
    %760 = vector.load %arg67[%c2_444, %c1_445, %c0_446] : memref<4x10x128xf32, #tpu.memory_space<vmem>>, vector<2x8x128xf32>
    %761 = vector.extract_strided_slice %716 {offsets = [7, 0], sizes = [1, 128], strides = [1, 1]} : vector<9x128xf32> to vector<1x128xf32>
    %762 = vector.shape_cast %761 : vector<1x128xf32> to vector<1x1x128xf32>
    %763 = vector.broadcast %762 : vector<1x1x128xf32> to vector<2x8x128xf32>
    %764 = arith.mulf %760, %763 : vector<2x8x128xf32>
    %765 = arith.addf %759, %764 : vector<2x8x128xf32>
    %c2_447 = arith.constant 2 : index
    %c2_448 = arith.constant 2 : index
    %c0_449 = arith.constant 0 : index
    %766 = vector.load %arg67[%c2_447, %c2_448, %c0_449] : memref<4x10x128xf32, #tpu.memory_space<vmem>>, vector<2x8x128xf32>
    %767 = vector.extract_strided_slice %716 {offsets = [8, 0], sizes = [1, 128], strides = [1, 1]} : vector<9x128xf32> to vector<1x128xf32>
    %768 = vector.shape_cast %767 : vector<1x128xf32> to vector<1x1x128xf32>
    %769 = vector.broadcast %768 : vector<1x1x128xf32> to vector<2x8x128xf32>
    %770 = arith.mulf %766, %769 : vector<2x8x128xf32>
    %771 = arith.addf %765, %770 : vector<2x8x128xf32>
    %772 = vector.broadcast %718 : vector<1x1x128xf32> to vector<2x8x128xf32>
    %773 = arith.addf %771, %772 : vector<2x8x128xf32>
    %cst_450 = arith.constant 0.000000e+00 : f32
    %774 = vector.broadcast %cst_450 : f32 to vector<2x8x128xf32>
    %775 = arith.maximumf %773, %774 : vector<2x8x128xf32>
    %776 = vector.shape_cast %775 : vector<2x8x128xf32> to vector<16x128xf32>
    %777 = arith.truncf %776 : vector<16x128xf32> to vector<16x128xbf16>
    %c0_451 = arith.constant 0 : index
    %c0_452 = arith.constant 0 : index
    %778 = vector.load %arg38[%c0_451, %c0_452] : memref<128x128xbf16, #tpu.memory_space<vmem>>, vector<128x128xbf16>
    %cst_453 = arith.constant dense<0.000000e+00> : vector<16x128xf32>
    %779 = tpu.matmul %777, %778, %cst_453 {dimension_numbers = #tpu.dot_dimension_numbers<[1], [0], [0], [1], [0, 0, 1, 1], [], []>} : vector<16x128xbf16>, vector<128x128xbf16>, vector<16x128xf32> -> vector<16x128xf32>
    %c0_454 = arith.constant 0 : index
    %c0_455 = arith.constant 0 : index
    %780 = vector.load %arg39[%c0_454, %c0_455] : memref<1x128xf32, #tpu.memory_space<vmem>>, vector<1x128xf32>
    %781 = vector.broadcast %780 : vector<1x128xf32> to vector<16x128xf32>
    %782 = arith.addf %779, %781 : vector<16x128xf32>
    %cst_456 = arith.constant 0.000000e+00 : f32
    %783 = vector.broadcast %cst_456 : f32 to vector<16x128xf32>
    %784 = arith.maximumf %782, %783 : vector<16x128xf32>
    %785 = vector.shape_cast %784 : vector<16x128xf32> to vector<2x8x128xf32>
    %786 = vector.extract_strided_slice %785 {offsets = [0, 0, 0], sizes = [2, 2, 128], strides = [1, 1, 1]} : vector<2x8x128xf32> to vector<2x2x128xf32>
    %c1_457 = arith.constant 1 : index
    %c1_458 = arith.constant 1 : index
    %c0_459 = arith.constant 0 : index
    %787 = vector.load %arg68[%c1_457, %c1_458, %c0_459] : memref<4x10x128xf32, #tpu.memory_space<vmem>>, vector<2x2x128xf32>
    tpu.vector_store %arg68[%c1_457, %c1_458, %c0_459], %786 {strides = array<i32>} : memref<4x10x128xf32, #tpu.memory_space<vmem>>, vector<2x2x128xf32>,
    %c0_460 = arith.constant 0 : index
    %c0_461 = arith.constant 0 : index
    %788 = vector.load %arg40[%c0_460, %c0_461] : memref<9x128xf32, #tpu.memory_space<vmem>>, vector<9x128xf32>
    %c0_462 = arith.constant 0 : index
    %c0_463 = arith.constant 0 : index
    %789 = vector.load %arg41[%c0_462, %c0_463] : memref<1x128xf32, #tpu.memory_space<vmem>>, vector<1x128xf32>
    %790 = vector.shape_cast %789 : vector<1x128xf32> to vector<1x1x128xf32>
    %c0_464 = arith.constant 0 : index
    %c0_465 = arith.constant 0 : index
    %c0_466 = arith.constant 0 : index
    %791 = vector.load %arg68[%c0_464, %c0_465, %c0_466] : memref<4x10x128xf32, #tpu.memory_space<vmem>>, vector<2x8x128xf32>
    %792 = vector.extract_strided_slice %788 {offsets = [0, 0], sizes = [1, 128], strides = [1, 1]} : vector<9x128xf32> to vector<1x128xf32>
    %793 = vector.shape_cast %792 : vector<1x128xf32> to vector<1x1x128xf32>
    %794 = vector.broadcast %793 : vector<1x1x128xf32> to vector<2x8x128xf32>
    %795 = arith.mulf %791, %794 : vector<2x8x128xf32>
    %c0_467 = arith.constant 0 : index
    %c1_468 = arith.constant 1 : index
    %c0_469 = arith.constant 0 : index
    %796 = vector.load %arg68[%c0_467, %c1_468, %c0_469] : memref<4x10x128xf32, #tpu.memory_space<vmem>>, vector<2x8x128xf32>
    %797 = vector.extract_strided_slice %788 {offsets = [1, 0], sizes = [1, 128], strides = [1, 1]} : vector<9x128xf32> to vector<1x128xf32>
    %798 = vector.shape_cast %797 : vector<1x128xf32> to vector<1x1x128xf32>
    %799 = vector.broadcast %798 : vector<1x1x128xf32> to vector<2x8x128xf32>
    %800 = arith.mulf %796, %799 : vector<2x8x128xf32>
    %801 = arith.addf %795, %800 : vector<2x8x128xf32>
    %c0_470 = arith.constant 0 : index
    %c2_471 = arith.constant 2 : index
    %c0_472 = arith.constant 0 : index
    %802 = vector.load %arg68[%c0_470, %c2_471, %c0_472] : memref<4x10x128xf32, #tpu.memory_space<vmem>>, vector<2x8x128xf32>
    %803 = vector.extract_strided_slice %788 {offsets = [2, 0], sizes = [1, 128], strides = [1, 1]} : vector<9x128xf32> to vector<1x128xf32>
    %804 = vector.shape_cast %803 : vector<1x128xf32> to vector<1x1x128xf32>
    %805 = vector.broadcast %804 : vector<1x1x128xf32> to vector<2x8x128xf32>
    %806 = arith.mulf %802, %805 : vector<2x8x128xf32>
    %807 = arith.addf %801, %806 : vector<2x8x128xf32>
    %c1_473 = arith.constant 1 : index
    %c0_474 = arith.constant 0 : index
    %c0_475 = arith.constant 0 : index
    %808 = vector.load %arg68[%c1_473, %c0_474, %c0_475] : memref<4x10x128xf32, #tpu.memory_space<vmem>>, vector<2x8x128xf32>
    %809 = vector.extract_strided_slice %788 {offsets = [3, 0], sizes = [1, 128], strides = [1, 1]} : vector<9x128xf32> to vector<1x128xf32>
    %810 = vector.shape_cast %809 : vector<1x128xf32> to vector<1x1x128xf32>
    %811 = vector.broadcast %810 : vector<1x1x128xf32> to vector<2x8x128xf32>
    %812 = arith.mulf %808, %811 : vector<2x8x128xf32>
    %813 = arith.addf %807, %812 : vector<2x8x128xf32>
    %c1_476 = arith.constant 1 : index
    %c1_477 = arith.constant 1 : index
    %c0_478 = arith.constant 0 : index
    %814 = vector.load %arg68[%c1_476, %c1_477, %c0_478] : memref<4x10x128xf32, #tpu.memory_space<vmem>>, vector<2x8x128xf32>
    %815 = vector.extract_strided_slice %788 {offsets = [4, 0], sizes = [1, 128], strides = [1, 1]} : vector<9x128xf32> to vector<1x128xf32>
    %816 = vector.shape_cast %815 : vector<1x128xf32> to vector<1x1x128xf32>
    %817 = vector.broadcast %816 : vector<1x1x128xf32> to vector<2x8x128xf32>
    %818 = arith.mulf %814, %817 : vector<2x8x128xf32>
    %819 = arith.addf %813, %818 : vector<2x8x128xf32>
    %c1_479 = arith.constant 1 : index
    %c2_480 = arith.constant 2 : index
    %c0_481 = arith.constant 0 : index
    %820 = vector.load %arg68[%c1_479, %c2_480, %c0_481] : memref<4x10x128xf32, #tpu.memory_space<vmem>>, vector<2x8x128xf32>
    %821 = vector.extract_strided_slice %788 {offsets = [5, 0], sizes = [1, 128], strides = [1, 1]} : vector<9x128xf32> to vector<1x128xf32>
    %822 = vector.shape_cast %821 : vector<1x128xf32> to vector<1x1x128xf32>
    %823 = vector.broadcast %822 : vector<1x1x128xf32> to vector<2x8x128xf32>
    %824 = arith.mulf %820, %823 : vector<2x8x128xf32>
    %825 = arith.addf %819, %824 : vector<2x8x128xf32>
    %c2_482 = arith.constant 2 : index
    %c0_483 = arith.constant 0 : index
    %c0_484 = arith.constant 0 : index
    %826 = vector.load %arg68[%c2_482, %c0_483, %c0_484] : memref<4x10x128xf32, #tpu.memory_space<vmem>>, vector<2x8x128xf32>
    %827 = vector.extract_strided_slice %788 {offsets = [6, 0], sizes = [1, 128], strides = [1, 1]} : vector<9x128xf32> to vector<1x128xf32>
    %828 = vector.shape_cast %827 : vector<1x128xf32> to vector<1x1x128xf32>
    %829 = vector.broadcast %828 : vector<1x1x128xf32> to vector<2x8x128xf32>
    %830 = arith.mulf %826, %829 : vector<2x8x128xf32>
    %831 = arith.addf %825, %830 : vector<2x8x128xf32>
    %c2_485 = arith.constant 2 : index
    %c1_486 = arith.constant 1 : index
    %c0_487 = arith.constant 0 : index
    %832 = vector.load %arg68[%c2_485, %c1_486, %c0_487] : memref<4x10x128xf32, #tpu.memory_space<vmem>>, vector<2x8x128xf32>
    %833 = vector.extract_strided_slice %788 {offsets = [7, 0], sizes = [1, 128], strides = [1, 1]} : vector<9x128xf32> to vector<1x128xf32>
    %834 = vector.shape_cast %833 : vector<1x128xf32> to vector<1x1x128xf32>
    %835 = vector.broadcast %834 : vector<1x1x128xf32> to vector<2x8x128xf32>
    %836 = arith.mulf %832, %835 : vector<2x8x128xf32>
    %837 = arith.addf %831, %836 : vector<2x8x128xf32>
    %c2_488 = arith.constant 2 : index
    %c2_489 = arith.constant 2 : index
    %c0_490 = arith.constant 0 : index
    %838 = vector.load %arg68[%c2_488, %c2_489, %c0_490] : memref<4x10x128xf32, #tpu.memory_space<vmem>>, vector<2x8x128xf32>
    %839 = vector.extract_strided_slice %788 {offsets = [8, 0], sizes = [1, 128], strides = [1, 1]} : vector<9x128xf32> to vector<1x128xf32>
    %840 = vector.shape_cast %839 : vector<1x128xf32> to vector<1x1x128xf32>
    %841 = vector.broadcast %840 : vector<1x1x128xf32> to vector<2x8x128xf32>
    %842 = arith.mulf %838, %841 : vector<2x8x128xf32>
    %843 = arith.addf %837, %842 : vector<2x8x128xf32>
    %844 = vector.broadcast %790 : vector<1x1x128xf32> to vector<2x8x128xf32>
    %845 = arith.addf %843, %844 : vector<2x8x128xf32>
    %cst_491 = arith.constant 0.000000e+00 : f32
    %846 = vector.broadcast %cst_491 : f32 to vector<2x8x128xf32>
    %847 = arith.maximumf %845, %846 : vector<2x8x128xf32>
    %848 = vector.shape_cast %847 : vector<2x8x128xf32> to vector<16x128xf32>
    %849 = arith.truncf %848 : vector<16x128xf32> to vector<16x128xbf16>
    %c0_492 = arith.constant 0 : index
    %c0_493 = arith.constant 0 : index
    %850 = vector.load %arg42[%c0_492, %c0_493] : memref<128x128xbf16, #tpu.memory_space<vmem>>, vector<128x128xbf16>
    %cst_494 = arith.constant dense<0.000000e+00> : vector<16x128xf32>
    %851 = tpu.matmul %849, %850, %cst_494 {dimension_numbers = #tpu.dot_dimension_numbers<[1], [0], [0], [1], [0, 0, 1, 1], [], []>} : vector<16x128xbf16>, vector<128x128xbf16>, vector<16x128xf32> -> vector<16x128xf32>
    %c0_495 = arith.constant 0 : index
    %c0_496 = arith.constant 0 : index
    %852 = vector.load %arg43[%c0_495, %c0_496] : memref<1x128xf32, #tpu.memory_space<vmem>>, vector<1x128xf32>
    %853 = vector.broadcast %852 : vector<1x128xf32> to vector<16x128xf32>
    %854 = arith.addf %851, %853 : vector<16x128xf32>
    %cst_497 = arith.constant 0.000000e+00 : f32
    %855 = vector.broadcast %cst_497 : f32 to vector<16x128xf32>
    %856 = arith.maximumf %854, %855 : vector<16x128xf32>
    %857 = vector.shape_cast %856 : vector<16x128xf32> to vector<2x8x128xf32>
    %858 = vector.extract_strided_slice %857 {offsets = [0, 0, 0], sizes = [2, 2, 128], strides = [1, 1, 1]} : vector<2x8x128xf32> to vector<2x2x128xf32>
    %c1_498 = arith.constant 1 : index
    %c1_499 = arith.constant 1 : index
    %c0_500 = arith.constant 0 : index
    %859 = vector.load %arg69[%c1_498, %c1_499, %c0_500] : memref<4x10x128xf32, #tpu.memory_space<vmem>>, vector<2x2x128xf32>
    tpu.vector_store %arg69[%c1_498, %c1_499, %c0_500], %858 {strides = array<i32>} : memref<4x10x128xf32, #tpu.memory_space<vmem>>, vector<2x2x128xf32>,
    %c0_501 = arith.constant 0 : index
    %c0_502 = arith.constant 0 : index
    %860 = vector.load %arg44[%c0_501, %c0_502] : memref<9x128xf32, #tpu.memory_space<vmem>>, vector<9x128xf32>
    %c0_503 = arith.constant 0 : index
    %c0_504 = arith.constant 0 : index
    %861 = vector.load %arg45[%c0_503, %c0_504] : memref<1x128xf32, #tpu.memory_space<vmem>>, vector<1x128xf32>
    %862 = vector.shape_cast %861 : vector<1x128xf32> to vector<1x1x128xf32>
    %c0_505 = arith.constant 0 : index
    %c0_506 = arith.constant 0 : index
    %c0_507 = arith.constant 0 : index
    %863 = vector.load %arg69[%c0_505, %c0_506, %c0_507] : memref<4x10x128xf32, #tpu.memory_space<vmem>>, vector<2x8x128xf32>
    %864 = vector.extract_strided_slice %860 {offsets = [0, 0], sizes = [1, 128], strides = [1, 1]} : vector<9x128xf32> to vector<1x128xf32>
    %865 = vector.shape_cast %864 : vector<1x128xf32> to vector<1x1x128xf32>
    %866 = vector.broadcast %865 : vector<1x1x128xf32> to vector<2x8x128xf32>
    %867 = arith.mulf %863, %866 : vector<2x8x128xf32>
    %c0_508 = arith.constant 0 : index
    %c1_509 = arith.constant 1 : index
    %c0_510 = arith.constant 0 : index
    %868 = vector.load %arg69[%c0_508, %c1_509, %c0_510] : memref<4x10x128xf32, #tpu.memory_space<vmem>>, vector<2x8x128xf32>
    %869 = vector.extract_strided_slice %860 {offsets = [1, 0], sizes = [1, 128], strides = [1, 1]} : vector<9x128xf32> to vector<1x128xf32>
    %870 = vector.shape_cast %869 : vector<1x128xf32> to vector<1x1x128xf32>
    %871 = vector.broadcast %870 : vector<1x1x128xf32> to vector<2x8x128xf32>
    %872 = arith.mulf %868, %871 : vector<2x8x128xf32>
    %873 = arith.addf %867, %872 : vector<2x8x128xf32>
    %c0_511 = arith.constant 0 : index
    %c2_512 = arith.constant 2 : index
    %c0_513 = arith.constant 0 : index
    %874 = vector.load %arg69[%c0_511, %c2_512, %c0_513] : memref<4x10x128xf32, #tpu.memory_space<vmem>>, vector<2x8x128xf32>
    %875 = vector.extract_strided_slice %860 {offsets = [2, 0], sizes = [1, 128], strides = [1, 1]} : vector<9x128xf32> to vector<1x128xf32>
    %876 = vector.shape_cast %875 : vector<1x128xf32> to vector<1x1x128xf32>
    %877 = vector.broadcast %876 : vector<1x1x128xf32> to vector<2x8x128xf32>
    %878 = arith.mulf %874, %877 : vector<2x8x128xf32>
    %879 = arith.addf %873, %878 : vector<2x8x128xf32>
    %c1_514 = arith.constant 1 : index
    %c0_515 = arith.constant 0 : index
    %c0_516 = arith.constant 0 : index
    %880 = vector.load %arg69[%c1_514, %c0_515, %c0_516] : memref<4x10x128xf32, #tpu.memory_space<vmem>>, vector<2x8x128xf32>
    %881 = vector.extract_strided_slice %860 {offsets = [3, 0], sizes = [1, 128], strides = [1, 1]} : vector<9x128xf32> to vector<1x128xf32>
    %882 = vector.shape_cast %881 : vector<1x128xf32> to vector<1x1x128xf32>
    %883 = vector.broadcast %882 : vector<1x1x128xf32> to vector<2x8x128xf32>
    %884 = arith.mulf %880, %883 : vector<2x8x128xf32>
    %885 = arith.addf %879, %884 : vector<2x8x128xf32>
    %c1_517 = arith.constant 1 : index
    %c1_518 = arith.constant 1 : index
    %c0_519 = arith.constant 0 : index
    %886 = vector.load %arg69[%c1_517, %c1_518, %c0_519] : memref<4x10x128xf32, #tpu.memory_space<vmem>>, vector<2x8x128xf32>
    %887 = vector.extract_strided_slice %860 {offsets = [4, 0], sizes = [1, 128], strides = [1, 1]} : vector<9x128xf32> to vector<1x128xf32>
    %888 = vector.shape_cast %887 : vector<1x128xf32> to vector<1x1x128xf32>
    %889 = vector.broadcast %888 : vector<1x1x128xf32> to vector<2x8x128xf32>
    %890 = arith.mulf %886, %889 : vector<2x8x128xf32>
    %891 = arith.addf %885, %890 : vector<2x8x128xf32>
    %c1_520 = arith.constant 1 : index
    %c2_521 = arith.constant 2 : index
    %c0_522 = arith.constant 0 : index
    %892 = vector.load %arg69[%c1_520, %c2_521, %c0_522] : memref<4x10x128xf32, #tpu.memory_space<vmem>>, vector<2x8x128xf32>
    %893 = vector.extract_strided_slice %860 {offsets = [5, 0], sizes = [1, 128], strides = [1, 1]} : vector<9x128xf32> to vector<1x128xf32>
    %894 = vector.shape_cast %893 : vector<1x128xf32> to vector<1x1x128xf32>
    %895 = vector.broadcast %894 : vector<1x1x128xf32> to vector<2x8x128xf32>
    %896 = arith.mulf %892, %895 : vector<2x8x128xf32>
    %897 = arith.addf %891, %896 : vector<2x8x128xf32>
    %c2_523 = arith.constant 2 : index
    %c0_524 = arith.constant 0 : index
    %c0_525 = arith.constant 0 : index
    %898 = vector.load %arg69[%c2_523, %c0_524, %c0_525] : memref<4x10x128xf32, #tpu.memory_space<vmem>>, vector<2x8x128xf32>
    %899 = vector.extract_strided_slice %860 {offsets = [6, 0], sizes = [1, 128], strides = [1, 1]} : vector<9x128xf32> to vector<1x128xf32>
    %900 = vector.shape_cast %899 : vector<1x128xf32> to vector<1x1x128xf32>
    %901 = vector.broadcast %900 : vector<1x1x128xf32> to vector<2x8x128xf32>
    %902 = arith.mulf %898, %901 : vector<2x8x128xf32>
    %903 = arith.addf %897, %902 : vector<2x8x128xf32>
    %c2_526 = arith.constant 2 : index
    %c1_527 = arith.constant 1 : index
    %c0_528 = arith.constant 0 : index
    %904 = vector.load %arg69[%c2_526, %c1_527, %c0_528] : memref<4x10x128xf32, #tpu.memory_space<vmem>>, vector<2x8x128xf32>
    %905 = vector.extract_strided_slice %860 {offsets = [7, 0], sizes = [1, 128], strides = [1, 1]} : vector<9x128xf32> to vector<1x128xf32>
    %906 = vector.shape_cast %905 : vector<1x128xf32> to vector<1x1x128xf32>
    %907 = vector.broadcast %906 : vector<1x1x128xf32> to vector<2x8x128xf32>
    %908 = arith.mulf %904, %907 : vector<2x8x128xf32>
    %909 = arith.addf %903, %908 : vector<2x8x128xf32>
    %c2_529 = arith.constant 2 : index
    %c2_530 = arith.constant 2 : index
    %c0_531 = arith.constant 0 : index
    %910 = vector.load %arg69[%c2_529, %c2_530, %c0_531] : memref<4x10x128xf32, #tpu.memory_space<vmem>>, vector<2x8x128xf32>
    %911 = vector.extract_strided_slice %860 {offsets = [8, 0], sizes = [1, 128], strides = [1, 1]} : vector<9x128xf32> to vector<1x128xf32>
    %912 = vector.shape_cast %911 : vector<1x128xf32> to vector<1x1x128xf32>
    %913 = vector.broadcast %912 : vector<1x1x128xf32> to vector<2x8x128xf32>
    %914 = arith.mulf %910, %913 : vector<2x8x128xf32>
    %915 = arith.addf %909, %914 : vector<2x8x128xf32>
    %916 = vector.broadcast %862 : vector<1x1x128xf32> to vector<2x8x128xf32>
    %917 = arith.addf %915, %916 : vector<2x8x128xf32>
    %cst_532 = arith.constant 0.000000e+00 : f32
    %918 = vector.broadcast %cst_532 : f32 to vector<2x8x128xf32>
    %919 = arith.maximumf %917, %918 : vector<2x8x128xf32>
    %920 = vector.shape_cast %919 : vector<2x8x128xf32> to vector<16x128xf32>
    %921 = arith.truncf %920 : vector<16x128xf32> to vector<16x128xbf16>
    %c0_533 = arith.constant 0 : index
    %c0_534 = arith.constant 0 : index
    %922 = vector.load %arg46[%c0_533, %c0_534] : memref<128x128xbf16, #tpu.memory_space<vmem>>, vector<128x128xbf16>
    %cst_535 = arith.constant dense<0.000000e+00> : vector<16x128xf32>
    %923 = tpu.matmul %921, %922, %cst_535 {dimension_numbers = #tpu.dot_dimension_numbers<[1], [0], [0], [1], [0, 0, 1, 1], [], []>} : vector<16x128xbf16>, vector<128x128xbf16>, vector<16x128xf32> -> vector<16x128xf32>
    %c0_536 = arith.constant 0 : index
    %c0_537 = arith.constant 0 : index
    %924 = vector.load %arg47[%c0_536, %c0_537] : memref<1x128xf32, #tpu.memory_space<vmem>>, vector<1x128xf32>
    %925 = vector.broadcast %924 : vector<1x128xf32> to vector<16x128xf32>
    %926 = arith.addf %923, %925 : vector<16x128xf32>
    %cst_538 = arith.constant 0.000000e+00 : f32
    %927 = vector.broadcast %cst_538 : f32 to vector<16x128xf32>
    %928 = arith.maximumf %926, %927 : vector<16x128xf32>
    %929 = vector.shape_cast %928 : vector<16x128xf32> to vector<2x8x128xf32>
    %930 = vector.extract_strided_slice %929 {offsets = [0, 0, 0], sizes = [2, 2, 128], strides = [1, 1, 1]} : vector<2x8x128xf32> to vector<2x2x128xf32>
    %c1_539 = arith.constant 1 : index
    %c1_540 = arith.constant 1 : index
    %c0_541 = arith.constant 0 : index
    %931 = vector.load %arg70[%c1_539, %c1_540, %c0_541] : memref<4x10x128xf32, #tpu.memory_space<vmem>>, vector<2x2x128xf32>
    tpu.vector_store %arg70[%c1_539, %c1_540, %c0_541], %930 {strides = array<i32>} : memref<4x10x128xf32, #tpu.memory_space<vmem>>, vector<2x2x128xf32>,
    %c0_542 = arith.constant 0 : index
    %c0_543 = arith.constant 0 : index
    %932 = vector.load %arg48[%c0_542, %c0_543] : memref<9x128xf32, #tpu.memory_space<vmem>>, vector<9x128xf32>
    %c0_544 = arith.constant 0 : index
    %c0_545 = arith.constant 0 : index
    %933 = vector.load %arg49[%c0_544, %c0_545] : memref<1x128xf32, #tpu.memory_space<vmem>>, vector<1x128xf32>
    %934 = vector.shape_cast %933 : vector<1x128xf32> to vector<1x1x128xf32>
    %c0_546 = arith.constant 0 : index
    %c0_547 = arith.constant 0 : index
    %c0_548 = arith.constant 0 : index
    %935 = vector.load %arg70[%c0_546, %c0_547, %c0_548] : memref<4x10x128xf32, #tpu.memory_space<vmem>>, vector<2x8x128xf32>
    %936 = vector.shape_cast %935 : vector<2x8x128xf32> to vector<1x2x8x128xf32>
    %937 = vector.extract_strided_slice %936 {offsets = [0, 0, 0, 0], sizes = [1, 1, 8, 128], strides = [1, 1, 1, 1]} : vector<1x2x8x128xf32> to vector<1x1x8x128xf32>
    %938 = vector.shape_cast %937 : vector<1x1x8x128xf32> to vector<1x8x128xf32>
    %939 = vector.extract_strided_slice %932 {offsets = [0, 0], sizes = [1, 128], strides = [1, 1]} : vector<9x128xf32> to vector<1x128xf32>
    %940 = vector.shape_cast %939 : vector<1x128xf32> to vector<1x1x128xf32>
    %941 = vector.broadcast %940 : vector<1x1x128xf32> to vector<1x8x128xf32>
    %942 = arith.mulf %938, %941 : vector<1x8x128xf32>
    %c0_549 = arith.constant 0 : index
    %c1_550 = arith.constant 1 : index
    %c0_551 = arith.constant 0 : index
    %943 = vector.load %arg70[%c0_549, %c1_550, %c0_551] : memref<4x10x128xf32, #tpu.memory_space<vmem>>, vector<2x8x128xf32>
    %944 = vector.shape_cast %943 : vector<2x8x128xf32> to vector<1x2x8x128xf32>
    %945 = vector.extract_strided_slice %944 {offsets = [0, 0, 0, 0], sizes = [1, 1, 8, 128], strides = [1, 1, 1, 1]} : vector<1x2x8x128xf32> to vector<1x1x8x128xf32>
    %946 = vector.shape_cast %945 : vector<1x1x8x128xf32> to vector<1x8x128xf32>
    %947 = vector.extract_strided_slice %932 {offsets = [1, 0], sizes = [1, 128], strides = [1, 1]} : vector<9x128xf32> to vector<1x128xf32>
    %948 = vector.shape_cast %947 : vector<1x128xf32> to vector<1x1x128xf32>
    %949 = vector.broadcast %948 : vector<1x1x128xf32> to vector<1x8x128xf32>
    %950 = arith.mulf %946, %949 : vector<1x8x128xf32>
    %951 = arith.addf %942, %950 : vector<1x8x128xf32>
    %c0_552 = arith.constant 0 : index
    %c2_553 = arith.constant 2 : index
    %c0_554 = arith.constant 0 : index
    %952 = vector.load %arg70[%c0_552, %c2_553, %c0_554] : memref<4x10x128xf32, #tpu.memory_space<vmem>>, vector<2x8x128xf32>
    %953 = vector.shape_cast %952 : vector<2x8x128xf32> to vector<1x2x8x128xf32>
    %954 = vector.extract_strided_slice %953 {offsets = [0, 0, 0, 0], sizes = [1, 1, 8, 128], strides = [1, 1, 1, 1]} : vector<1x2x8x128xf32> to vector<1x1x8x128xf32>
    %955 = vector.shape_cast %954 : vector<1x1x8x128xf32> to vector<1x8x128xf32>
    %956 = vector.extract_strided_slice %932 {offsets = [2, 0], sizes = [1, 128], strides = [1, 1]} : vector<9x128xf32> to vector<1x128xf32>
    %957 = vector.shape_cast %956 : vector<1x128xf32> to vector<1x1x128xf32>
    %958 = vector.broadcast %957 : vector<1x1x128xf32> to vector<1x8x128xf32>
    %959 = arith.mulf %955, %958 : vector<1x8x128xf32>
    %960 = arith.addf %951, %959 : vector<1x8x128xf32>
    %c1_555 = arith.constant 1 : index
    %c0_556 = arith.constant 0 : index
    %c0_557 = arith.constant 0 : index
    %961 = vector.load %arg70[%c1_555, %c0_556, %c0_557] : memref<4x10x128xf32, #tpu.memory_space<vmem>>, vector<2x8x128xf32>
    %962 = vector.shape_cast %961 : vector<2x8x128xf32> to vector<1x2x8x128xf32>
    %963 = vector.extract_strided_slice %962 {offsets = [0, 0, 0, 0], sizes = [1, 1, 8, 128], strides = [1, 1, 1, 1]} : vector<1x2x8x128xf32> to vector<1x1x8x128xf32>
    %964 = vector.shape_cast %963 : vector<1x1x8x128xf32> to vector<1x8x128xf32>
    %965 = vector.extract_strided_slice %932 {offsets = [3, 0], sizes = [1, 128], strides = [1, 1]} : vector<9x128xf32> to vector<1x128xf32>
    %966 = vector.shape_cast %965 : vector<1x128xf32> to vector<1x1x128xf32>
    %967 = vector.broadcast %966 : vector<1x1x128xf32> to vector<1x8x128xf32>
    %968 = arith.mulf %964, %967 : vector<1x8x128xf32>
    %969 = arith.addf %960, %968 : vector<1x8x128xf32>
    %c1_558 = arith.constant 1 : index
    %c1_559 = arith.constant 1 : index
    %c0_560 = arith.constant 0 : index
    %970 = vector.load %arg70[%c1_558, %c1_559, %c0_560] : memref<4x10x128xf32, #tpu.memory_space<vmem>>, vector<2x8x128xf32>
    %971 = vector.shape_cast %970 : vector<2x8x128xf32> to vector<1x2x8x128xf32>
    %972 = vector.extract_strided_slice %971 {offsets = [0, 0, 0, 0], sizes = [1, 1, 8, 128], strides = [1, 1, 1, 1]} : vector<1x2x8x128xf32> to vector<1x1x8x128xf32>
    %973 = vector.shape_cast %972 : vector<1x1x8x128xf32> to vector<1x8x128xf32>
    %974 = vector.extract_strided_slice %932 {offsets = [4, 0], sizes = [1, 128], strides = [1, 1]} : vector<9x128xf32> to vector<1x128xf32>
    %975 = vector.shape_cast %974 : vector<1x128xf32> to vector<1x1x128xf32>
    %976 = vector.broadcast %975 : vector<1x1x128xf32> to vector<1x8x128xf32>
    %977 = arith.mulf %973, %976 : vector<1x8x128xf32>
    %978 = arith.addf %969, %977 : vector<1x8x128xf32>
    %c1_561 = arith.constant 1 : index
    %c2_562 = arith.constant 2 : index
    %c0_563 = arith.constant 0 : index
    %979 = vector.load %arg70[%c1_561, %c2_562, %c0_563] : memref<4x10x128xf32, #tpu.memory_space<vmem>>, vector<2x8x128xf32>
    %980 = vector.shape_cast %979 : vector<2x8x128xf32> to vector<1x2x8x128xf32>
    %981 = vector.extract_strided_slice %980 {offsets = [0, 0, 0, 0], sizes = [1, 1, 8, 128], strides = [1, 1, 1, 1]} : vector<1x2x8x128xf32> to vector<1x1x8x128xf32>
    %982 = vector.shape_cast %981 : vector<1x1x8x128xf32> to vector<1x8x128xf32>
    %983 = vector.extract_strided_slice %932 {offsets = [5, 0], sizes = [1, 128], strides = [1, 1]} : vector<9x128xf32> to vector<1x128xf32>
    %984 = vector.shape_cast %983 : vector<1x128xf32> to vector<1x1x128xf32>
    %985 = vector.broadcast %984 : vector<1x1x128xf32> to vector<1x8x128xf32>
    %986 = arith.mulf %982, %985 : vector<1x8x128xf32>
    %987 = arith.addf %978, %986 : vector<1x8x128xf32>
    %c2_564 = arith.constant 2 : index
    %c0_565 = arith.constant 0 : index
    %c0_566 = arith.constant 0 : index
    %988 = vector.load %arg70[%c2_564, %c0_565, %c0_566] : memref<4x10x128xf32, #tpu.memory_space<vmem>>, vector<2x8x128xf32>
    %989 = vector.shape_cast %988 : vector<2x8x128xf32> to vector<1x2x8x128xf32>
    %990 = vector.extract_strided_slice %989 {offsets = [0, 0, 0, 0], sizes = [1, 1, 8, 128], strides = [1, 1, 1, 1]} : vector<1x2x8x128xf32> to vector<1x1x8x128xf32>
    %991 = vector.shape_cast %990 : vector<1x1x8x128xf32> to vector<1x8x128xf32>
    %992 = vector.extract_strided_slice %932 {offsets = [6, 0], sizes = [1, 128], strides = [1, 1]} : vector<9x128xf32> to vector<1x128xf32>
    %993 = vector.shape_cast %992 : vector<1x128xf32> to vector<1x1x128xf32>
    %994 = vector.broadcast %993 : vector<1x1x128xf32> to vector<1x8x128xf32>
    %995 = arith.mulf %991, %994 : vector<1x8x128xf32>
    %996 = arith.addf %987, %995 : vector<1x8x128xf32>
    %c2_567 = arith.constant 2 : index
    %c1_568 = arith.constant 1 : index
    %c0_569 = arith.constant 0 : index
    %997 = vector.load %arg70[%c2_567, %c1_568, %c0_569] : memref<4x10x128xf32, #tpu.memory_space<vmem>>, vector<2x8x128xf32>
    %998 = vector.shape_cast %997 : vector<2x8x128xf32> to vector<1x2x8x128xf32>
    %999 = vector.extract_strided_slice %998 {offsets = [0, 0, 0, 0], sizes = [1, 1, 8, 128], strides = [1, 1, 1, 1]} : vector<1x2x8x128xf32> to vector<1x1x8x128xf32>
    %1000 = vector.shape_cast %999 : vector<1x1x8x128xf32> to vector<1x8x128xf32>
    %1001 = vector.extract_strided_slice %932 {offsets = [7, 0], sizes = [1, 128], strides = [1, 1]} : vector<9x128xf32> to vector<1x128xf32>
    %1002 = vector.shape_cast %1001 : vector<1x128xf32> to vector<1x1x128xf32>
    %1003 = vector.broadcast %1002 : vector<1x1x128xf32> to vector<1x8x128xf32>
    %1004 = arith.mulf %1000, %1003 : vector<1x8x128xf32>
    %1005 = arith.addf %996, %1004 : vector<1x8x128xf32>
    %c2_570 = arith.constant 2 : index
    %c2_571 = arith.constant 2 : index
    %c0_572 = arith.constant 0 : index
    %1006 = vector.load %arg70[%c2_570, %c2_571, %c0_572] : memref<4x10x128xf32, #tpu.memory_space<vmem>>, vector<2x8x128xf32>
    %1007 = vector.shape_cast %1006 : vector<2x8x128xf32> to vector<1x2x8x128xf32>
    %1008 = vector.extract_strided_slice %1007 {offsets = [0, 0, 0, 0], sizes = [1, 1, 8, 128], strides = [1, 1, 1, 1]} : vector<1x2x8x128xf32> to vector<1x1x8x128xf32>
    %1009 = vector.shape_cast %1008 : vector<1x1x8x128xf32> to vector<1x8x128xf32>
    %1010 = vector.extract_strided_slice %932 {offsets = [8, 0], sizes = [1, 128], strides = [1, 1]} : vector<9x128xf32> to vector<1x128xf32>
    %1011 = vector.shape_cast %1010 : vector<1x128xf32> to vector<1x1x128xf32>
    %1012 = vector.broadcast %1011 : vector<1x1x128xf32> to vector<1x8x128xf32>
    %1013 = arith.mulf %1009, %1012 : vector<1x8x128xf32>
    %1014 = arith.addf %1005, %1013 : vector<1x8x128xf32>
    %1015 = vector.broadcast %934 : vector<1x1x128xf32> to vector<1x8x128xf32>
    %1016 = arith.addf %1014, %1015 : vector<1x8x128xf32>
    %cst_573 = arith.constant 0.000000e+00 : f32
    %1017 = vector.broadcast %cst_573 : f32 to vector<1x8x128xf32>
    %1018 = arith.maximumf %1016, %1017 : vector<1x8x128xf32>
    %1019 = vector.shape_cast %1018 : vector<1x8x128xf32> to vector<8x128xf32>
    %1020 = arith.truncf %1019 : vector<8x128xf32> to vector<8x128xbf16>
    %c0_574 = arith.constant 0 : index
    %c0_575 = arith.constant 0 : index
    %1021 = vector.load %arg50[%c0_574, %c0_575] : memref<128x256xbf16, #tpu.memory_space<vmem>>, vector<128x256xbf16>
    %cst_576 = arith.constant dense<0.000000e+00> : vector<8x256xf32>
    %1022 = tpu.matmul %1020, %1021, %cst_576 {dimension_numbers = #tpu.dot_dimension_numbers<[1], [0], [0], [1], [0, 0, 1, 1], [], []>} : vector<8x128xbf16>, vector<128x256xbf16>, vector<8x256xf32> -> vector<8x256xf32>
    %c0_577 = arith.constant 0 : index
    %c0_578 = arith.constant 0 : index
    %1023 = vector.load %arg51[%c0_577, %c0_578] : memref<1x256xf32, #tpu.memory_space<vmem>>, vector<1x256xf32>
    %1024 = vector.broadcast %1023 : vector<1x256xf32> to vector<8x256xf32>
    %1025 = arith.addf %1022, %1024 : vector<8x256xf32>
    %cst_579 = arith.constant 0.000000e+00 : f32
    %1026 = vector.broadcast %cst_579 : f32 to vector<8x256xf32>
    %1027 = arith.maximumf %1025, %1026 : vector<8x256xf32>
    %1028 = vector.shape_cast %1027 : vector<8x256xf32> to vector<1x8x256xf32>
    %1029 = vector.extract_strided_slice %1028 {offsets = [0, 0, 0], sizes = [1, 1, 256], strides = [1, 1, 1]} : vector<1x8x256xf32> to vector<1x1x256xf32>
    %c1_580 = arith.constant 1 : index
    %c1_581 = arith.constant 1 : index
    %c0_582 = arith.constant 0 : index
    %1030 = vector.load %arg71[%c1_580, %c1_581, %c0_582] : memref<3x10x256xf32, #tpu.memory_space<vmem>>, vector<1x1x256xf32>
    tpu.vector_store %arg71[%c1_580, %c1_581, %c0_582], %1029 {strides = array<i32>} : memref<3x10x256xf32, #tpu.memory_space<vmem>>, vector<1x1x256xf32>,
    %c0_583 = arith.constant 0 : index
    %c0_584 = arith.constant 0 : index
    %1031 = vector.load %arg52[%c0_583, %c0_584] : memref<9x256xf32, #tpu.memory_space<vmem>>, vector<9x256xf32>
    %c0_585 = arith.constant 0 : index
    %c0_586 = arith.constant 0 : index
    %1032 = vector.load %arg53[%c0_585, %c0_586] : memref<1x256xf32, #tpu.memory_space<vmem>>, vector<1x256xf32>
    %1033 = vector.shape_cast %1032 : vector<1x256xf32> to vector<1x1x256xf32>
    %c0_587 = arith.constant 0 : index
    %c0_588 = arith.constant 0 : index
    %c0_589 = arith.constant 0 : index
    %1034 = vector.load %arg71[%c0_587, %c0_588, %c0_589] : memref<3x10x256xf32, #tpu.memory_space<vmem>>, vector<1x8x256xf32>
    %1035 = vector.extract_strided_slice %1031 {offsets = [0, 0], sizes = [1, 256], strides = [1, 1]} : vector<9x256xf32> to vector<1x256xf32>
    %1036 = vector.shape_cast %1035 : vector<1x256xf32> to vector<1x1x256xf32>
    %1037 = vector.broadcast %1036 : vector<1x1x256xf32> to vector<1x8x256xf32>
    %1038 = arith.mulf %1034, %1037 : vector<1x8x256xf32>
    %c0_590 = arith.constant 0 : index
    %c1_591 = arith.constant 1 : index
    %c0_592 = arith.constant 0 : index
    %1039 = vector.load %arg71[%c0_590, %c1_591, %c0_592] : memref<3x10x256xf32, #tpu.memory_space<vmem>>, vector<1x8x256xf32>
    %1040 = vector.extract_strided_slice %1031 {offsets = [1, 0], sizes = [1, 256], strides = [1, 1]} : vector<9x256xf32> to vector<1x256xf32>
    %1041 = vector.shape_cast %1040 : vector<1x256xf32> to vector<1x1x256xf32>
    %1042 = vector.broadcast %1041 : vector<1x1x256xf32> to vector<1x8x256xf32>
    %1043 = arith.mulf %1039, %1042 : vector<1x8x256xf32>
    %1044 = arith.addf %1038, %1043 : vector<1x8x256xf32>
    %c0_593 = arith.constant 0 : index
    %c2_594 = arith.constant 2 : index
    %c0_595 = arith.constant 0 : index
    %1045 = vector.load %arg71[%c0_593, %c2_594, %c0_595] : memref<3x10x256xf32, #tpu.memory_space<vmem>>, vector<1x8x256xf32>
    %1046 = vector.extract_strided_slice %1031 {offsets = [2, 0], sizes = [1, 256], strides = [1, 1]} : vector<9x256xf32> to vector<1x256xf32>
    %1047 = vector.shape_cast %1046 : vector<1x256xf32> to vector<1x1x256xf32>
    %1048 = vector.broadcast %1047 : vector<1x1x256xf32> to vector<1x8x256xf32>
    %1049 = arith.mulf %1045, %1048 : vector<1x8x256xf32>
    %1050 = arith.addf %1044, %1049 : vector<1x8x256xf32>
    %c1_596 = arith.constant 1 : index
    %c0_597 = arith.constant 0 : index
    %c0_598 = arith.constant 0 : index
    %1051 = vector.load %arg71[%c1_596, %c0_597, %c0_598] : memref<3x10x256xf32, #tpu.memory_space<vmem>>, vector<1x8x256xf32>
    %1052 = vector.extract_strided_slice %1031 {offsets = [3, 0], sizes = [1, 256], strides = [1, 1]} : vector<9x256xf32> to vector<1x256xf32>
    %1053 = vector.shape_cast %1052 : vector<1x256xf32> to vector<1x1x256xf32>
    %1054 = vector.broadcast %1053 : vector<1x1x256xf32> to vector<1x8x256xf32>
    %1055 = arith.mulf %1051, %1054 : vector<1x8x256xf32>
    %1056 = arith.addf %1050, %1055 : vector<1x8x256xf32>
    %c1_599 = arith.constant 1 : index
    %c1_600 = arith.constant 1 : index
    %c0_601 = arith.constant 0 : index
    %1057 = vector.load %arg71[%c1_599, %c1_600, %c0_601] : memref<3x10x256xf32, #tpu.memory_space<vmem>>, vector<1x8x256xf32>
    %1058 = vector.extract_strided_slice %1031 {offsets = [4, 0], sizes = [1, 256], strides = [1, 1]} : vector<9x256xf32> to vector<1x256xf32>
    %1059 = vector.shape_cast %1058 : vector<1x256xf32> to vector<1x1x256xf32>
    %1060 = vector.broadcast %1059 : vector<1x1x256xf32> to vector<1x8x256xf32>
    %1061 = arith.mulf %1057, %1060 : vector<1x8x256xf32>
    %1062 = arith.addf %1056, %1061 : vector<1x8x256xf32>
    %c1_602 = arith.constant 1 : index
    %c2_603 = arith.constant 2 : index
    %c0_604 = arith.constant 0 : index
    %1063 = vector.load %arg71[%c1_602, %c2_603, %c0_604] : memref<3x10x256xf32, #tpu.memory_space<vmem>>, vector<1x8x256xf32>
    %1064 = vector.extract_strided_slice %1031 {offsets = [5, 0], sizes = [1, 256], strides = [1, 1]} : vector<9x256xf32> to vector<1x256xf32>
    %1065 = vector.shape_cast %1064 : vector<1x256xf32> to vector<1x1x256xf32>
    %1066 = vector.broadcast %1065 : vector<1x1x256xf32> to vector<1x8x256xf32>
    %1067 = arith.mulf %1063, %1066 : vector<1x8x256xf32>
    %1068 = arith.addf %1062, %1067 : vector<1x8x256xf32>
    %c2_605 = arith.constant 2 : index
    %c0_606 = arith.constant 0 : index
    %c0_607 = arith.constant 0 : index
    %1069 = vector.load %arg71[%c2_605, %c0_606, %c0_607] : memref<3x10x256xf32, #tpu.memory_space<vmem>>, vector<1x8x256xf32>
    %1070 = vector.extract_strided_slice %1031 {offsets = [6, 0], sizes = [1, 256], strides = [1, 1]} : vector<9x256xf32> to vector<1x256xf32>
    %1071 = vector.shape_cast %1070 : vector<1x256xf32> to vector<1x1x256xf32>
    %1072 = vector.broadcast %1071 : vector<1x1x256xf32> to vector<1x8x256xf32>
    %1073 = arith.mulf %1069, %1072 : vector<1x8x256xf32>
    %1074 = arith.addf %1068, %1073 : vector<1x8x256xf32>
    %c2_608 = arith.constant 2 : index
    %c1_609 = arith.constant 1 : index
    %c0_610 = arith.constant 0 : index
    %1075 = vector.load %arg71[%c2_608, %c1_609, %c0_610] : memref<3x10x256xf32, #tpu.memory_space<vmem>>, vector<1x8x256xf32>
    %1076 = vector.extract_strided_slice %1031 {offsets = [7, 0], sizes = [1, 256], strides = [1, 1]} : vector<9x256xf32> to vector<1x256xf32>
    %1077 = vector.shape_cast %1076 : vector<1x256xf32> to vector<1x1x256xf32>
    %1078 = vector.broadcast %1077 : vector<1x1x256xf32> to vector<1x8x256xf32>
    %1079 = arith.mulf %1075, %1078 : vector<1x8x256xf32>
    %1080 = arith.addf %1074, %1079 : vector<1x8x256xf32>
    %c2_611 = arith.constant 2 : index
    %c2_612 = arith.constant 2 : index
    %c0_613 = arith.constant 0 : index
    %1081 = vector.load %arg71[%c2_611, %c2_612, %c0_613] : memref<3x10x256xf32, #tpu.memory_space<vmem>>, vector<1x8x256xf32>
    %1082 = vector.extract_strided_slice %1031 {offsets = [8, 0], sizes = [1, 256], strides = [1, 1]} : vector<9x256xf32> to vector<1x256xf32>
    %1083 = vector.shape_cast %1082 : vector<1x256xf32> to vector<1x1x256xf32>
    %1084 = vector.broadcast %1083 : vector<1x1x256xf32> to vector<1x8x256xf32>
    %1085 = arith.mulf %1081, %1084 : vector<1x8x256xf32>
    %1086 = arith.addf %1080, %1085 : vector<1x8x256xf32>
    %1087 = vector.broadcast %1033 : vector<1x1x256xf32> to vector<1x8x256xf32>
    %1088 = arith.addf %1086, %1087 : vector<1x8x256xf32>
    %cst_614 = arith.constant 0.000000e+00 : f32
    %1089 = vector.broadcast %cst_614 : f32 to vector<1x8x256xf32>
    %1090 = arith.maximumf %1088, %1089 : vector<1x8x256xf32>
    %1091 = vector.shape_cast %1090 : vector<1x8x256xf32> to vector<8x256xf32>
    %1092 = arith.truncf %1091 : vector<8x256xf32> to vector<8x256xbf16>
    %c0_615 = arith.constant 0 : index
    %c0_616 = arith.constant 0 : index
    %1093 = vector.load %arg54[%c0_615, %c0_616] : memref<256x256xbf16, #tpu.memory_space<vmem>>, vector<256x256xbf16>
    %cst_617 = arith.constant dense<0.000000e+00> : vector<8x256xf32>
    %1094 = tpu.matmul %1092, %1093, %cst_617 {dimension_numbers = #tpu.dot_dimension_numbers<[1], [0], [0], [1], [0, 0, 1, 1], [], []>} : vector<8x256xbf16>, vector<256x256xbf16>, vector<8x256xf32> -> vector<8x256xf32>
    %c0_618 = arith.constant 0 : index
    %c0_619 = arith.constant 0 : index
    %1095 = vector.load %arg55[%c0_618, %c0_619] : memref<1x256xf32, #tpu.memory_space<vmem>>, vector<1x256xf32>
    %1096 = vector.broadcast %1095 : vector<1x256xf32> to vector<8x256xf32>
    %1097 = arith.addf %1094, %1096 : vector<8x256xf32>
    %cst_620 = arith.constant 0.000000e+00 : f32
    %1098 = vector.broadcast %cst_620 : f32 to vector<8x256xf32>
    %1099 = arith.maximumf %1097, %1098 : vector<8x256xf32>
    %1100 = vector.shape_cast %1099 : vector<8x256xf32> to vector<1x8x256xf32>
    %1101 = vector.extract_strided_slice %1100 {offsets = [0, 0, 0], sizes = [1, 1, 256], strides = [1, 1, 1]} : vector<1x8x256xf32> to vector<1x1x256xf32>
    %c1_621 = arith.constant 1 : index
    %c1_622 = arith.constant 1 : index
    %c0_623 = arith.constant 0 : index
    %1102 = vector.load %arg72[%c1_621, %c1_622, %c0_623] : memref<3x10x256xf32, #tpu.memory_space<vmem>>, vector<1x1x256xf32>
    tpu.vector_store %arg72[%c1_621, %c1_622, %c0_623], %1101 {strides = array<i32>} : memref<3x10x256xf32, #tpu.memory_space<vmem>>, vector<1x1x256xf32>,
    %c1_624 = arith.constant 1 : index
    %c1_625 = arith.constant 1 : index
    %c0_626 = arith.constant 0 : index
    %1103 = vector.load %arg72[%c1_624, %c1_625, %c0_626] : memref<3x10x256xf32, #tpu.memory_space<vmem>>, vector<1x1x256xf32>
    %cst_627 = arith.constant dense<0.000000e+00> : vector<1x256xf32>
    %1104 = vector.multi_reduction <add>, %1103, %cst_627 [0] : vector<1x1x256xf32> to vector<1x256xf32>
    %cst_628 = arith.constant dense<0.000000e+00> : vector<256xf32>
    %1105 = vector.multi_reduction <add>, %1104, %cst_628 [0] : vector<1x256xf32> to vector<256xf32>
    %1106 = vector.shape_cast %1105 : vector<256xf32> to vector<1x256xf32>
    %cst_629 = arith.constant 1.000000e+00 : f32
    %1107 = vector.broadcast %cst_629 : f32 to vector<1x256xf32>
    %1108 = arith.mulf %1106, %1107 : vector<1x256xf32>
    %1109 = arith.truncf %1108 : vector<1x256xf32> to vector<1x256xbf16>
    %c0_630 = arith.constant 0 : index
    %c0_631 = arith.constant 0 : index
    %1110 = vector.load %arg56[%c0_630, %c0_631] : memref<256x10xbf16, #tpu.memory_space<vmem>>, vector<256x10xbf16>
    %cst_632 = arith.constant dense<0.000000e+00> : vector<1x10xf32>
    %1111 = tpu.matmul %1109, %1110, %cst_632 {dimension_numbers = #tpu.dot_dimension_numbers<[1], [0], [0], [1], [0, 0, 1, 1], [], []>} : vector<1x256xbf16>, vector<256x10xbf16>, vector<1x10xf32> -> vector<1x10xf32>
    %c0_633 = arith.constant 0 : index
    %c0_634 = arith.constant 0 : index
    %1112 = vector.load %arg57[%c0_633, %c0_634] : memref<1x10xf32, #tpu.memory_space<vmem>>, vector<1x10xf32>
    %1113 = arith.addf %1111, %1112 : vector<1x10xf32>
    %1114 = vector.shape_cast %1113 : vector<1x10xf32> to vector<1x1x10xf32>
    %c0_635 = arith.constant 0 : index
    %c0_636 = arith.constant 0 : index
    %c0_637 = arith.constant 0 : index
    %1115 = vector.load %arg58[%c0_635, %c0_636, %c0_637] : memref<1x1x10xf32, #tpu.memory_space<vmem>>, vector<1x1x10xf32>
    tpu.vector_store %arg58[%c0_635, %c0_636, %c0_637], %1114 {strides = array<i32>} : memref<1x1x10xf32, #tpu.memory_space<vmem>>, vector<1x1x10xf32>,
    return
  }
  func.func @transform_0(%arg0: i32) -> (i32, i32, i32) {
    %c0_i32 = arith.constant 0 : i32
    %c0_i32_0 = arith.constant 0 : i32
    %c0_i32_1 = arith.constant 0 : i32
    return %arg0, %c0_i32, %c0_i32_0 : i32, i32, i32
  }
  func.func @transform_1(%arg0: i32) -> (i32, i32) {
    %c0_i32 = arith.constant 0 : i32
    %c0_i32_0 = arith.constant 0 : i32
    %c0_i32_1 = arith.constant 0 : i32
    return %c0_i32, %c0_i32_0 : i32, i32
  }
  func.func @transform_2(%arg0: i32) -> (i32, i32) {
    %c0_i32 = arith.constant 0 : i32
    %c0_i32_0 = arith.constant 0 : i32
    %c0_i32_1 = arith.constant 0 : i32
    return %c0_i32, %c0_i32_0 : i32, i32
  }
  func.func @transform_3(%arg0: i32) -> (i32, i32) {
    %c0_i32 = arith.constant 0 : i32
    %c0_i32_0 = arith.constant 0 : i32
    %c0_i32_1 = arith.constant 0 : i32
    return %c0_i32, %c0_i32_0 : i32, i32
  }
  func.func @transform_4(%arg0: i32) -> (i32, i32) {
    %c0_i32 = arith.constant 0 : i32
    %c0_i32_0 = arith.constant 0 : i32
    %c0_i32_1 = arith.constant 0 : i32
    return %c0_i32, %c0_i32_0 : i32, i32
  }
  func.func @transform_5(%arg0: i32) -> (i32, i32) {
    %c0_i32 = arith.constant 0 : i32
    %c0_i32_0 = arith.constant 0 : i32
    %c0_i32_1 = arith.constant 0 : i32
    return %c0_i32, %c0_i32_0 : i32, i32
  }
  func.func @transform_6(%arg0: i32) -> (i32, i32) {
    %c0_i32 = arith.constant 0 : i32
    %c0_i32_0 = arith.constant 0 : i32
    %c0_i32_1 = arith.constant 0 : i32
    return %c0_i32, %c0_i32_0 : i32, i32
  }
  func.func @transform_7(%arg0: i32) -> (i32, i32) {
    %c0_i32 = arith.constant 0 : i32
    %c0_i32_0 = arith.constant 0 : i32
    %c0_i32_1 = arith.constant 0 : i32
    return %c0_i32, %c0_i32_0 : i32, i32
  }
  func.func @transform_8(%arg0: i32) -> (i32, i32) {
    %c0_i32 = arith.constant 0 : i32
    %c0_i32_0 = arith.constant 0 : i32
    %c0_i32_1 = arith.constant 0 : i32
    return %c0_i32, %c0_i32_0 : i32, i32
  }
  func.func @transform_9(%arg0: i32) -> (i32, i32) {
    %c0_i32 = arith.constant 0 : i32
    %c0_i32_0 = arith.constant 0 : i32
    %c0_i32_1 = arith.constant 0 : i32
    return %c0_i32, %c0_i32_0 : i32, i32
  }
  func.func @transform_10(%arg0: i32) -> (i32, i32) {
    %c0_i32 = arith.constant 0 : i32
    %c0_i32_0 = arith.constant 0 : i32
    %c0_i32_1 = arith.constant 0 : i32
    return %c0_i32, %c0_i32_0 : i32, i32
  }
  func.func @transform_11(%arg0: i32) -> (i32, i32) {
    %c0_i32 = arith.constant 0 : i32
    %c0_i32_0 = arith.constant 0 : i32
    %c0_i32_1 = arith.constant 0 : i32
    return %c0_i32, %c0_i32_0 : i32, i32
  }
  func.func @transform_12(%arg0: i32) -> (i32, i32) {
    %c0_i32 = arith.constant 0 : i32
    %c0_i32_0 = arith.constant 0 : i32
    %c0_i32_1 = arith.constant 0 : i32
    return %c0_i32, %c0_i32_0 : i32, i32
  }
  func.func @transform_13(%arg0: i32) -> (i32, i32) {
    %c0_i32 = arith.constant 0 : i32
    %c0_i32_0 = arith.constant 0 : i32
    %c0_i32_1 = arith.constant 0 : i32
    return %c0_i32, %c0_i32_0 : i32, i32
  }
  func.func @transform_14(%arg0: i32) -> (i32, i32) {
    %c0_i32 = arith.constant 0 : i32
    %c0_i32_0 = arith.constant 0 : i32
    %c0_i32_1 = arith.constant 0 : i32
    return %c0_i32, %c0_i32_0 : i32, i32
  }
  func.func @transform_15(%arg0: i32) -> (i32, i32) {
    %c0_i32 = arith.constant 0 : i32
    %c0_i32_0 = arith.constant 0 : i32
    %c0_i32_1 = arith.constant 0 : i32
    return %c0_i32, %c0_i32_0 : i32, i32
  }
  func.func @transform_16(%arg0: i32) -> (i32, i32) {
    %c0_i32 = arith.constant 0 : i32
    %c0_i32_0 = arith.constant 0 : i32
    %c0_i32_1 = arith.constant 0 : i32
    return %c0_i32, %c0_i32_0 : i32, i32
  }
  func.func @transform_17(%arg0: i32) -> (i32, i32) {
    %c0_i32 = arith.constant 0 : i32
    %c0_i32_0 = arith.constant 0 : i32
    %c0_i32_1 = arith.constant 0 : i32
    return %c0_i32, %c0_i32_0 : i32, i32
  }
  func.func @transform_18(%arg0: i32) -> (i32, i32) {
    %c0_i32 = arith.constant 0 : i32
    %c0_i32_0 = arith.constant 0 : i32
    %c0_i32_1 = arith.constant 0 : i32
    return %c0_i32, %c0_i32_0 : i32, i32
  }
  func.func @transform_19(%arg0: i32) -> (i32, i32) {
    %c0_i32 = arith.constant 0 : i32
    %c0_i32_0 = arith.constant 0 : i32
    %c0_i32_1 = arith.constant 0 : i32
    return %c0_i32, %c0_i32_0 : i32, i32
  }
  func.func @transform_20(%arg0: i32) -> (i32, i32) {
    %c0_i32 = arith.constant 0 : i32
    %c0_i32_0 = arith.constant 0 : i32
    %c0_i32_1 = arith.constant 0 : i32
    return %c0_i32, %c0_i32_0 : i32, i32
  }
  func.func @transform_21(%arg0: i32) -> (i32, i32) {
    %c0_i32 = arith.constant 0 : i32
    %c0_i32_0 = arith.constant 0 : i32
    %c0_i32_1 = arith.constant 0 : i32
    return %c0_i32, %c0_i32_0 : i32, i32
  }
  func.func @transform_22(%arg0: i32) -> (i32, i32) {
    %c0_i32 = arith.constant 0 : i32
    %c0_i32_0 = arith.constant 0 : i32
    %c0_i32_1 = arith.constant 0 : i32
    return %c0_i32, %c0_i32_0 : i32, i32
  }
  func.func @transform_23(%arg0: i32) -> (i32, i32) {
    %c0_i32 = arith.constant 0 : i32
    %c0_i32_0 = arith.constant 0 : i32
    %c0_i32_1 = arith.constant 0 : i32
    return %c0_i32, %c0_i32_0 : i32, i32
  }
  func.func @transform_24(%arg0: i32) -> (i32, i32) {
    %c0_i32 = arith.constant 0 : i32
    %c0_i32_0 = arith.constant 0 : i32
    %c0_i32_1 = arith.constant 0 : i32
    return %c0_i32, %c0_i32_0 : i32, i32
  }
  func.func @transform_25(%arg0: i32) -> (i32, i32) {
    %c0_i32 = arith.constant 0 : i32
    %c0_i32_0 = arith.constant 0 : i32
    %c0_i32_1 = arith.constant 0 : i32
    return %c0_i32, %c0_i32_0 : i32, i32
  }
  func.func @transform_26(%arg0: i32) -> (i32, i32) {
    %c0_i32 = arith.constant 0 : i32
    %c0_i32_0 = arith.constant 0 : i32
    %c0_i32_1 = arith.constant 0 : i32
    return %c0_i32, %c0_i32_0 : i32, i32
  }
  func.func @transform_27(%arg0: i32) -> (i32, i32) {
    %c0_i32 = arith.constant 0 : i32
    %c0_i32_0 = arith.constant 0 : i32
    %c0_i32_1 = arith.constant 0 : i32
    return %c0_i32, %c0_i32_0 : i32, i32
  }
  func.func @transform_28(%arg0: i32) -> (i32, i32) {
    %c0_i32 = arith.constant 0 : i32
    %c0_i32_0 = arith.constant 0 : i32
    %c0_i32_1 = arith.constant 0 : i32
    return %c0_i32, %c0_i32_0 : i32, i32
  }
  func.func @transform_29(%arg0: i32) -> (i32, i32) {
    %c0_i32 = arith.constant 0 : i32
    %c0_i32_0 = arith.constant 0 : i32
    %c0_i32_1 = arith.constant 0 : i32
    return %c0_i32, %c0_i32_0 : i32, i32
  }
  func.func @transform_30(%arg0: i32) -> (i32, i32) {
    %c0_i32 = arith.constant 0 : i32
    %c0_i32_0 = arith.constant 0 : i32
    %c0_i32_1 = arith.constant 0 : i32
    return %c0_i32, %c0_i32_0 : i32, i32
  }
  func.func @transform_31(%arg0: i32) -> (i32, i32) {
    %c0_i32 = arith.constant 0 : i32
    %c0_i32_0 = arith.constant 0 : i32
    %c0_i32_1 = arith.constant 0 : i32
    return %c0_i32, %c0_i32_0 : i32, i32
  }
  func.func @transform_32(%arg0: i32) -> (i32, i32) {
    %c0_i32 = arith.constant 0 : i32
    %c0_i32_0 = arith.constant 0 : i32
    %c0_i32_1 = arith.constant 0 : i32
    return %c0_i32, %c0_i32_0 : i32, i32
  }
  func.func @transform_33(%arg0: i32) -> (i32, i32) {
    %c0_i32 = arith.constant 0 : i32
    %c0_i32_0 = arith.constant 0 : i32
    %c0_i32_1 = arith.constant 0 : i32
    return %c0_i32, %c0_i32_0 : i32, i32
  }
  func.func @transform_34(%arg0: i32) -> (i32, i32) {
    %c0_i32 = arith.constant 0 : i32
    %c0_i32_0 = arith.constant 0 : i32
    %c0_i32_1 = arith.constant 0 : i32
    return %c0_i32, %c0_i32_0 : i32, i32
  }
  func.func @transform_35(%arg0: i32) -> (i32, i32) {
    %c0_i32 = arith.constant 0 : i32
    %c0_i32_0 = arith.constant 0 : i32
    %c0_i32_1 = arith.constant 0 : i32
    return %c0_i32, %c0_i32_0 : i32, i32
  }
  func.func @transform_36(%arg0: i32) -> (i32, i32) {
    %c0_i32 = arith.constant 0 : i32
    %c0_i32_0 = arith.constant 0 : i32
    %c0_i32_1 = arith.constant 0 : i32
    return %c0_i32, %c0_i32_0 : i32, i32
  }
  func.func @transform_37(%arg0: i32) -> (i32, i32) {
    %c0_i32 = arith.constant 0 : i32
    %c0_i32_0 = arith.constant 0 : i32
    %c0_i32_1 = arith.constant 0 : i32
    return %c0_i32, %c0_i32_0 : i32, i32
  }
  func.func @transform_38(%arg0: i32) -> (i32, i32) {
    %c0_i32 = arith.constant 0 : i32
    %c0_i32_0 = arith.constant 0 : i32
    %c0_i32_1 = arith.constant 0 : i32
    return %c0_i32, %c0_i32_0 : i32, i32
  }
  func.func @transform_39(%arg0: i32) -> (i32, i32) {
    %c0_i32 = arith.constant 0 : i32
    %c0_i32_0 = arith.constant 0 : i32
    %c0_i32_1 = arith.constant 0 : i32
    return %c0_i32, %c0_i32_0 : i32, i32
  }
  func.func @transform_40(%arg0: i32) -> (i32, i32) {
    %c0_i32 = arith.constant 0 : i32
    %c0_i32_0 = arith.constant 0 : i32
    %c0_i32_1 = arith.constant 0 : i32
    return %c0_i32, %c0_i32_0 : i32, i32
  }
  func.func @transform_41(%arg0: i32) -> (i32, i32) {
    %c0_i32 = arith.constant 0 : i32
    %c0_i32_0 = arith.constant 0 : i32
    %c0_i32_1 = arith.constant 0 : i32
    return %c0_i32, %c0_i32_0 : i32, i32
  }
  func.func @transform_42(%arg0: i32) -> (i32, i32) {
    %c0_i32 = arith.constant 0 : i32
    %c0_i32_0 = arith.constant 0 : i32
    %c0_i32_1 = arith.constant 0 : i32
    return %c0_i32, %c0_i32_0 : i32, i32
  }
  func.func @transform_43(%arg0: i32) -> (i32, i32) {
    %c0_i32 = arith.constant 0 : i32
    %c0_i32_0 = arith.constant 0 : i32
    %c0_i32_1 = arith.constant 0 : i32
    return %c0_i32, %c0_i32_0 : i32, i32
  }
  func.func @transform_44(%arg0: i32) -> (i32, i32) {
    %c0_i32 = arith.constant 0 : i32
    %c0_i32_0 = arith.constant 0 : i32
    %c0_i32_1 = arith.constant 0 : i32
    return %c0_i32, %c0_i32_0 : i32, i32
  }
  func.func @transform_45(%arg0: i32) -> (i32, i32) {
    %c0_i32 = arith.constant 0 : i32
    %c0_i32_0 = arith.constant 0 : i32
    %c0_i32_1 = arith.constant 0 : i32
    return %c0_i32, %c0_i32_0 : i32, i32
  }
  func.func @transform_46(%arg0: i32) -> (i32, i32) {
    %c0_i32 = arith.constant 0 : i32
    %c0_i32_0 = arith.constant 0 : i32
    %c0_i32_1 = arith.constant 0 : i32
    return %c0_i32, %c0_i32_0 : i32, i32
  }
  func.func @transform_47(%arg0: i32) -> (i32, i32) {
    %c0_i32 = arith.constant 0 : i32
    %c0_i32_0 = arith.constant 0 : i32
    %c0_i32_1 = arith.constant 0 : i32
    return %c0_i32, %c0_i32_0 : i32, i32
  }
  func.func @transform_48(%arg0: i32) -> (i32, i32) {
    %c0_i32 = arith.constant 0 : i32
    %c0_i32_0 = arith.constant 0 : i32
    %c0_i32_1 = arith.constant 0 : i32
    return %c0_i32, %c0_i32_0 : i32, i32
  }
  func.func @transform_49(%arg0: i32) -> (i32, i32) {
    %c0_i32 = arith.constant 0 : i32
    %c0_i32_0 = arith.constant 0 : i32
    %c0_i32_1 = arith.constant 0 : i32
    return %c0_i32, %c0_i32_0 : i32, i32
  }
  func.func @transform_50(%arg0: i32) -> (i32, i32) {
    %c0_i32 = arith.constant 0 : i32
    %c0_i32_0 = arith.constant 0 : i32
    %c0_i32_1 = arith.constant 0 : i32
    return %c0_i32, %c0_i32_0 : i32, i32
  }
  func.func @transform_51(%arg0: i32) -> (i32, i32) {
    %c0_i32 = arith.constant 0 : i32
    %c0_i32_0 = arith.constant 0 : i32
    %c0_i32_1 = arith.constant 0 : i32
    return %c0_i32, %c0_i32_0 : i32, i32
  }
  func.func @transform_52(%arg0: i32) -> (i32, i32) {
    %c0_i32 = arith.constant 0 : i32
    %c0_i32_0 = arith.constant 0 : i32
    %c0_i32_1 = arith.constant 0 : i32
    return %c0_i32, %c0_i32_0 : i32, i32
  }
  func.func @transform_53(%arg0: i32) -> (i32, i32) {
    %c0_i32 = arith.constant 0 : i32
    %c0_i32_0 = arith.constant 0 : i32
    %c0_i32_1 = arith.constant 0 : i32
    return %c0_i32, %c0_i32_0 : i32, i32
  }
  func.func @transform_54(%arg0: i32) -> (i32, i32) {
    %c0_i32 = arith.constant 0 : i32
    %c0_i32_0 = arith.constant 0 : i32
    %c0_i32_1 = arith.constant 0 : i32
    return %c0_i32, %c0_i32_0 : i32, i32
  }
  func.func @transform_55(%arg0: i32) -> (i32, i32) {
    %c0_i32 = arith.constant 0 : i32
    %c0_i32_0 = arith.constant 0 : i32
    %c0_i32_1 = arith.constant 0 : i32
    return %c0_i32, %c0_i32_0 : i32, i32
  }
  func.func @transform_56(%arg0: i32) -> (i32, i32) {
    %c0_i32 = arith.constant 0 : i32
    %c0_i32_0 = arith.constant 0 : i32
    %c0_i32_1 = arith.constant 0 : i32
    return %c0_i32, %c0_i32_0 : i32, i32
  }
  func.func @transform_57(%arg0: i32) -> (i32, i32, i32) {
    %c0_i32 = arith.constant 0 : i32
    %c0_i32_0 = arith.constant 0 : i32
    %c0_i32_1 = arith.constant 0 : i32
    return %arg0, %c0_i32, %c0_i32_0 : i32, i32, i32
  }
}

</mosaic_0001>

<bundles_post_ra>
// kernel: _lambda_.1
= control target key start
LH: loop header
LB: loop body
LE: loop exit
PB: predicated region body
PF: predicated region fallthrough
CT: control target
= control target key end

     0   :  { %s9537_s6 = smov 1   ;;  %s9538_s10 = smov 2   ;;  %s12359_s0 = inlined_call_operand.smem [shape: u32[58], index: -1, kind: input, shape index: {}] }
   0x1   :  { %s9624_s5 = sld [smem:[%s12359_s0]]   ;;  %s9539_s14 = smov 3  }
   0x2   :  { %s9629_s9 = sld [smem:[%s12359_s0 + %s9537_s6]]   ;;  %s9540_s18 = smov 4  }
   0x3   :  { %s9634_s13 = sld [smem:[%s12359_s0 + %s9538_s10]]   ;;  %s9541_s22 = smov 5  }
   0x4   :  { %s9639_s17 = sld [smem:[%s12359_s0 + %s9539_s14]]   ;;  %s9542_s26 = smov 6  }
   0x5   :  { %s9644_s21 = sld [smem:[%s12359_s0 + %s9540_s18]]   ;;  %s9543_s30 = smov 7  }
   0x6   :  { %s9649_s25 = sld [smem:[%s12359_s0 + %s9541_s22]]   ;;  %s9544_s4 = smov 8  }
   0x7   :  { %12414 = sst [smem:[#allocation53_spill]] %s9624_s5  ;;  %s9545_s10 = smov 9  }
   0x8   :  { %12415 = sst [smem:[#allocation54_spill]] %s9629_s9  ;;  %s9546_s15 = smov 10  }
   0x9   :  { %s9654_s29 = sld [smem:[%s12359_s0 + %s9542_s26]]   ;;  %s9547_s20 = smov 11  }
   0xa   :  { %12416 = sst [smem:[#allocation55_spill]] %s9639_s17  ;;  %s9548_s26 = smov 12  }
   0xb   :  { %12417 = sst [smem:[#allocation56_spill]] %s9644_s21  ;;  %s9549_s1 = smov 13  }
   0xc   :  { %12418 = sst [smem:[#allocation57_spill]] %s9649_s25  ;;  %s9550_s7 = smov 14  }
   0xd   :  { %s9659_s3 = sld [smem:[%s12359_s0 + %s9543_s30]]   ;;  %s9552_s22 = smov 16  }
   0xe   :  { %s9664_s8 = sld [smem:[%s12359_s0 + %s9544_s4]]   ;;  %s9553_s28 = smov 17  }
   0xf   :  { %s9669_s14 = sld [smem:[%s12359_s0 + %s9545_s10]]  }
  0x10   :  { %s9674_s19 = sld [smem:[%s12359_s0 + %s9546_s15]]   ;;  %s9551_s15 = smov 15  }
  0x11   :  { %s9679_s24 = sld [smem:[%s12359_s0 + %s9547_s20]]  }
  0x12   :  { %s9684_s30 = sld [smem:[%s12359_s0 + %s9548_s26]]  }
  0x13   :  { %12419 = sst [smem:[#allocation58_spill]] %s9659_s3 }
  0x14   :  { %12420 = sst [smem:[#allocation59_spill]] %s9664_s8 }
  0x15   :  { %12421 = sst [smem:[#allocation60_spill]] %s9669_s14 }
  0x16   :  { %s9689_s6 = sld [smem:[%s12359_s0 + %s9549_s1]]  }
  0x17   :  { %12422 = sst [smem:[#allocation61_spill]] %s9679_s24 }
  0x18   :  { %s9694_s12 = sld [smem:[%s12359_s0 + %s9550_s7]]   ;;  %s9554_s7 = smov 18  }
  0x19   :  { %s9699_s20 = sld [smem:[%s12359_s0 + %s9551_s15]]   ;;  %s9555_s15 = smov 19  }
  0x1a   :  { %s9704_s27 = sld [smem:[%s12359_s0 + %s9552_s22]]   ;;  %s9556_s22 = smov 20  }
  0x1b   :  { %s9709_s4 = sld [smem:[%s12359_s0 + %s9553_s28]]   ;;  %s9557_s28 = smov 21  }
  0x1c   :  { %12423 = sst [smem:[#allocation62_spill]] %s9689_s6 }
  0x1d   :  { %s9714_s24 = sld [smem:[%s12359_s0 + %s9554_s7]]   ;;  %s9558_s7 = smov 22  }
  0x1e   :  { %s9724_s6 = sld [smem:[%s12359_s0 + %s9556_s22]]   ;;  %s9560_s22 = smov 24  }
  0x1f   :  { %12424 = sst [smem:[#allocation63_spill]] %s9699_s20 }
  0x20   :  { %s9719_s20 = sld [smem:[%s12359_s0 + %s9555_s15]]   ;;  %s9559_s15 = smov 23  }
  0x21   :  { %12425 = sst [smem:[#allocation64_spill]] %s9709_s4 }
  0x22   :  { %s9729_s4 = sld [smem:[%s12359_s0 + %s9557_s28]]   ;;  %s9561_s28 = smov 25  }
  0x23   :  { %s9734_s3 = sld [smem:[%s12359_s0 + %s9558_s7]]   ;;  %s9562_s7 = smov 26  }
  0x24   :  { %12427 = sst [smem:[#allocation66_spill]] %s9724_s6 }
  0x25   :  { %s9744_s14 = sld [smem:[%s12359_s0 + %s9560_s22]]   ;;  %s9564_s22 = smov 28  }
  0x26   :  { %12426 = sst [smem:[#allocation65_spill]] %s9719_s20 }
  0x27   :  { %s9739_s20 = sld [smem:[%s12359_s0 + %s9559_s15]]   ;;  %s9563_s15 = smov 27  }
  0x28   :  { %12428 = sst [smem:[#allocation67_spill]] %s9729_s4 }
  0x29   :  { %12429 = sst [smem:[#allocation68_spill]] %s9734_s3 }
  0x2a   :  { %s9749_s4 = sld [smem:[%s12359_s0 + %s9561_s28]]   ;;  %s9565_s28 = smov 29  }
  0x2b   :  { %s9754_s17 = sld [smem:[%s12359_s0 + %s9562_s7]]   ;;  %s9566_s7 = smov 30  }
  0x2c   :  { %s9764_s25 = sld [smem:[%s12359_s0 + %s9564_s22]]   ;;  %s9568_s22 = smov 32  }
  0x2d   :  { %12430 = sst [smem:[#allocation69_spill]] %s9739_s20 }
  0x2e   :  { %s9759_s20 = sld [smem:[%s12359_s0 + %s9563_s15]]   ;;  %s9567_s15 = smov 31  }
  0x2f   :  { %s9774_s9 = sld [smem:[%s12359_s0 + %s9566_s7]]   ;;  %s9570_s7 = smov 34  }
  0x30   :  { %12431 = sst [smem:[#allocation70_spill]] %s9749_s4 }
  0x31   :  { %s9769_s4 = sld [smem:[%s12359_s0 + %s9565_s28]]   ;;  %s9569_s28 = smov 33  }
  0x32   :  { %s9784_s5 = sld [smem:[%s12359_s0 + %s9568_s22]]   ;;  %s9572_s22 = smov 36  }
  0x34   :  { %12432 = sst [smem:[#allocation71_spill]] %s9759_s20 }
  0x35   :  { %12434 = sst [smem:[#allocation73_spill]] %s9774_s9 }
  0x36   :  { %s9779_s20 = sld [smem:[%s12359_s0 + %s9567_s15]]   ;;  %s9571_s15 = smov 35  }
  0x37   :  { %12433 = sst [smem:[#allocation72_spill]] %s9769_s4 }
  0x38   :  { %12436 = sst [smem:[#allocation75_spill]] %s9784_s5 }
  0x39   :  { %s9789_s4 = sld [smem:[%s12359_s0 + %s9569_s28]]   ;;  %s9573_s28 = smov 37  }
  0x3a   :  { %s9794_s9 = sld [smem:[%s12359_s0 + %s9570_s7]]   ;;  %s9574_s7 = smov 38  }
  0x3b   :  { %s9804_s5 = sld [smem:[%s12359_s0 + %s9572_s22]]   ;;  %s9576_s22 = smov 40  }
  0x3c   :  { %12435 = sst [smem:[#allocation74_spill]] %s9779_s20 }
  0x3d   :  { %s9799_s20 = sld [smem:[%s12359_s0 + %s9571_s15]]   ;;  %s9575_s15 = smov 39  }
  0x3f   :  { %12437 = sst [smem:[#allocation76_spill]] %s9789_s4 }
  0x40   :  { %12438 = sst [smem:[#allocation77_spill]] %s9794_s9 }
  0x41   :  { %12440 = sst [smem:[#allocation79_spill]] %s9804_s5 }
  0x42   :  { %s9809_s4 = sld [smem:[%s12359_s0 + %s9573_s28]]   ;;  %s9577_s28 = smov 41  }
  0x43   :  { %12439 = sst [smem:[#allocation78_spill]] %s9799_s20 }
  0x44   :  { %s9814_s9 = sld [smem:[%s12359_s0 + %s9574_s7]]   ;;  %s9578_s7 = smov 42  }
  0x45   :  { %s9819_s20 = sld [smem:[%s12359_s0 + %s9575_s15]]   ;;  %s9579_s15 = smov 43  }
  0x46   :  { %s9824_s5 = sld [smem:[%s12359_s0 + %s9576_s22]]   ;;  %s9580_s22 = smov 44  }
  0x48   :  { %12441 = sst [smem:[#allocation80_spill]] %s9809_s4 }
  0x49   :  { %s9829_s4 = sld [smem:[%s12359_s0 + %s9577_s28]]   ;;  %s9581_s28 = smov 45  }
  0x4a   :  { %12442 = sst [smem:[#allocation81_spill]] %s9814_s9 }
  0x4b   :  { %12443 = sst [smem:[#allocation82_spill]] %s9819_s20 }
  0x4c   :  { %12444 = sst [smem:[#allocation83_spill]] %s9824_s5 }
  0x4d   :  { %s9834_s9 = sld [smem:[%s12359_s0 + %s9578_s7]]   ;;  %s9582_s7 = smov 46  }
  0x4e   :  { %s9839_s20 = sld [smem:[%s12359_s0 + %s9579_s15]]   ;;  %s9583_s15 = smov 47  }
  0x4f   :  { %12445 = sst [smem:[#allocation84_spill]] %s9829_s4 }
  0x50   :  { %s9844_s5 = sld [smem:[%s12359_s0 + %s9580_s22]]   ;;  %s9584_s22 = smov 48  }
  0x51   :  { %s9849_s4 = sld [smem:[%s12359_s0 + %s9581_s28]]   ;;  %s9585_s28 = smov 49  }
  0x53   :  { %12446 = sst [smem:[#allocation85_spill]] %s9834_s9 }
  0x54   :  { %12447 = sst [smem:[#allocation86_spill]] %s9839_s20 }
  0x55   :  { %s9854_s9 = sld [smem:[%s12359_s0 + %s9582_s7]]   ;;  %s9586_s7 = smov 50  }
  0x56   :  { %12448 = sst [smem:[#allocation87_spill]] %s9844_s5 }
  0x57   :  { %12449 = sst [smem:[#allocation88_spill]] %s9849_s4 }
  0x58   :  { %s9859_s20 = sld [smem:[%s12359_s0 + %s9583_s15]]   ;;  %s9587_s15 = smov 51  }
  0x59   :  { %s9864_s5 = sld [smem:[%s12359_s0 + %s9584_s22]]   ;;  %s9588_s22 = smov 52  }
  0x5a   :  { %s9869_s4 = sld [smem:[%s12359_s0 + %s9585_s28]]   ;;  %s9589_s28 = smov 53  }
  0x5b   :  { %12450 = sst [smem:[#allocation89_spill]] %s9854_s9 }
  0x5c   :  { %s9874_s9 = sld [smem:[%s12359_s0 + %s9586_s7]]   ;;  %s9590_s7 = smov 54  }
  0x5e   :  { %12451 = sst [smem:[#allocation90_spill]] %s9859_s20 }
  0x5f   :  { %12452 = sst [smem:[#allocation91_spill]] %s9864_s5 }
  0x60   :  { %12453 = sst [smem:[#allocation92_spill]] %s9869_s4 }
  0x61   :  { %s9879_s20 = sld [smem:[%s12359_s0 + %s9587_s15]]   ;;  %s9591_s15 = smov 55  }
  0x62   :  { %12454 = sst [smem:[#allocation93_spill]] %s9874_s9 }
  0x63   :  { %s9884_s5 = sld [smem:[%s12359_s0 + %s9588_s22]]   ;;  %s9592_s22 = smov 56  }
  0x64   :  { %s9889_s4 = sld [smem:[%s12359_s0 + %s9589_s28]]   ;;  %s9593_s28 = smov 57  }
  0x65   :  { %s9894_s9 = sld [smem:[%s12359_s0 + %s9590_s7]]  }
  0x67   :  { %12455 = sst [smem:[#allocation94_spill]] %s9879_s20 }
  0x68   :  { %s9899_s20 = sld [smem:[%s12359_s0 + %s9591_s15]]  }
  0x69   :  { %12456 = sst [smem:[#allocation95_spill]] %s9884_s5 }
  0x6a   :  { %12457 = sst [smem:[#allocation96_spill]] %s9889_s4 }
  0x6b   :  { %s9904_s5 = sld [smem:[%s12359_s0 + %s9592_s22]]  }
  0x6c   :  { %s9909_s4 = sld [smem:[%s12359_s0 + %s9593_s28]]  }
  0x71   :  { %12458 = sst [smem:[#allocation97_spill]] %s9904_s5 }
  0x72   :  { %12459 = sst [smem:[#allocation98_spill]] %s9909_s4 }
  0x73   :  { %120 = vsyncpa [#allocation17], 0 }
  0x74   :  { %121 = vsyncpa [#allocation20], 0 }
  0x75   :  { %122 = vsyncpa [#allocation23], 0 }
  0x76   :  { %123 = vsyncpa [#allocation26], 0 }
  0x77   :  { %124 = vsyncpa [#allocation29], 0 }
  0x78   :  { %125 = vsyncpa [#allocation32], 0 }
  0x79   :  { %126 = vsyncpa [#allocation35], 0 }
  0x7a   :  { %127 = vsyncpa [#allocation38], 0 }
  0x7b   :  { %128 = vsyncpa [#allocation41], 0 }
  0x7c   :  { %129 = vsyncpa [#allocation18], 0 }
  0x7d   :  { %131 = vsyncpa [#allocation18 + $0x1], 0  ;;  %s9911_s7 = smov 0   ;;  %s9913_s10 = smov 0  }
  0x7e   :  { %s9915_s11 = smov 0   ;;  %s9917_s15 = smov 0  }
  0x7f LB: > { %s12460_s4 = sld [smem:[#allocation98_spill]]  ;;  %s9932_s0 = sadd.s32 4294967295, %s9535_s15   ;;  %s9523_s7 = sphi %s9911_s7, %s12566_s7   ;;  %s9535_s15 = sphi %s9917_s15, %s12563_s15   ;;  %s9531_s11 = sphi %s9915_s11, %s12565_s11   ;;  %s9527_s10 = sphi %s9913_s10, %s12567_s10  }
  0x80   : > { %12461 = sst [smem:[#allocation99_spill]] %s9523_s7  ;;  %s7966_s16 = sadd.s32 4294967294, %s9535_s15  }
  0x81   : > { %12462 = sst [smem:[#allocation100_spill]] %s9531_s11  ;;  %s9936_s18 = sadd.s32 1, %s9535_s15  }
  0x82   : > { %12463 = sst [smem:[#allocation101_spill]] %s9535_s15  ;;  %s1346_s22 = sadd.s32 1, %s9531_s11 }
  0x83   : > { %12464 = sst [smem:[#allocation102_spill]] %s9936_s18  ;;  %s1343_s23 = ssub.s32 %s9535_s15, %s9936_s18 }
  0x84   : > { %p1356_p0 = scmp.ne.s32.totalorder %s9531_s11, %s9527_s10  ;;  %p1344_p1 = scmp.eq.s32.totalorder %s1343_s23, 0 }
  0x85   : > { %p1357_p2 = scmp.eq.s32.totalorder %s9932_s0, 1  ;;  %p1362_p3 = scmp.ne.s32.totalorder %s9527_s10, %s9523_s7 }
  0x86   : > { %p1363_p4 = scmp.eq.s32.totalorder %s7966_s16, 1  ;;  %p7967_p7 = scmp.ge.s32.totalorder %s9535_s15, 1 }
  0x87   : > { %s9947_s26 = scalar_select %p1344_p1, %s9531_s11, %s1346_s22  }
  0x88   : > { %p9949_p5 = por %p1357_p2, %p1356_p0  ;;  %p9953_p6 = por %p1363_p4, %p1362_p3 }
  0x89   : > { %12465 = sst [smem:[#allocation103_spill]] %s9947_s26  ;;  %p1370_p8 = scmp.lt.s32.totalorder %s9535_s15, 3 }
  0x8a   : > { %s12466_s28 = scalar_select %p9949_p5, 1, 0 }
  0x8b   : > { %s12467_s1 = scalar_select %p9953_p6, 1, 0 }
  0x8c   : > { %p12390_p9 = scmp.eq.s32.totalorder %s9932_s0, 0  ;;  %p9960_p10 = pnand %p7967_p7, %p1370_p8 }
  0x8d   : > { %12468 = sst [smem:[#allocation104_spill]] %s12467_s1  ;;  %s9594_s23 = smov [#allocation19]  }
  0x8e   : > { %s12469_s2 = scalar_select %p9960_p10, 1, 0 }
  0x8f   : > { %s1400_s16 = sshll.u32 %s9594_s23, 4  ;;  %p8663_p11 = pneg %p9960_p10  ;;  %s1401_s16 = int_to_ptr.vmem [resolvable:$true] %s1400_s16 }
  0x90   : > { %s9595_s22 = smov [#allocation22]   ;;  %s9596_s18 = smov [#allocation25]  }
  0x91   : > { %s1428_s26 = sshll.u32 %s9595_s22, 4  ;;  %p9968_p12 = pnand %p12390_p9, %p8663_p11  ;;  %s1429_s26 = int_to_ptr.vmem [resolvable:$true] %s1428_s26 }
  0x92   : > { %s1456_s1 = sshll.u32 %s9596_s18, 4  ;;  %s9034_s23 = scalar_lea.vmem %s1401_s16, 16  ;;  %s9972_s1 = int_to_ptr.vmem [resolvable:$true] %s1456_s1 }
  0x93   : > { %p9976_p13 = pneg %p9968_p12  ;;  %p9035_p0 = scmp.ne.s32.totalorder %s1401_s16, %s9034_s23 }
  0x94   : > { %s9041_s22 = scalar_lea.vmem %s1401_s16, 32  ;;  %p9042_p3 = scmp.lt.s32.totalorder %s1401_s16, %s1401_s16 }
  0x95   : > { %p9037_p1 = pnand %p9035_p0, %p9976_p13  ;;  %p9043_p4 = scmp.lt.s32.totalorder %s9041_s22, %s9034_s23 }
  0x97   : > { %p9038_p2 = pneg %p9037_p1  ;;  %p9044_p7 = por %p9043_p4, %p9042_p3 }
  0x99   : > { %p9045_p8 = pnand %p9044_p7, %p9038_p2 }
  0x9b   : > { %9048 = shalt.err (!%p9045_p8)
}
  0x9c   : > { %s12472_s21 = sld [smem:[#allocation56_spill]]  ;;  %s9060_s18 = scalar_lea.vmem %s1429_s26, 16 }
  0x9d   : > { %p9061_p11 = scmp.ne.s32.totalorder %s1429_s26, %s9060_s18  ;;  %s9067_s15 = scalar_lea.vmem %s1429_s26, 32 }
  0x9e   : > { %p9068_p5 = scmp.lt.s32.totalorder %s1429_s26, %s1429_s26  ;;  %p9069_p0 = scmp.lt.s32.totalorder %s9067_s15, %s9060_s18 }
  0x9f   : > { %p9063_p9 = pnand %p9061_p11, %p9976_p13 }
  0xa0   : > { %p9070_p1 = por %p9069_p0, %p9068_p5 }
  0xa1   : > { %p9064_p6 = pneg %p9063_p9 }
  0xa2   : > { %8669 = dma.hbm_to_vmem [thread:$0]  (!%p9968_p12), %s12472_s21, 16, %s1401_s16, [#allocation20]  }
  0xa3   : > { %p9071_p10 = pnand %p9070_p1, %p9064_p6 }
  0xa5   : > { %9074 = shalt.err (!%p9071_p10)
}
  0xa6   : > { %s12473_s8 = sld [smem:[#allocation59_spill]]  ;;  %s9086_s16 = scalar_lea.vmem %s9972_s1, 16 }
  0xa7   : > { %p9087_p2 = scmp.ne.s32.totalorder %s9972_s1, %s9086_s16  ;;  %s9093_s23 = scalar_lea.vmem %s9972_s1, 32 }
  0xa8   : > { %p9094_p4 = scmp.lt.s32.totalorder %s9972_s1, %s9972_s1  ;;  %p9095_p5 = scmp.lt.s32.totalorder %s9093_s23, %s9086_s16 }
  0xa9   : > { %p9089_p3 = pnand %p9087_p2, %p9976_p13 }
  0xaa   : > { %p9096_p6 = por %p9095_p5, %p9094_p4 }
  0xab   : > { %p9090_p9 = pneg %p9089_p3 }
  0xac   : > { %8675 = dma.hbm_to_vmem [thread:$0]  (!%p9968_p12), %s12473_s8, 16, %s1429_s26, [#allocation23]  }
  0xad   : > { %p9097_p10 = pnand %p9096_p6, %p9090_p9 }
  0xaf   : > { %9100 = shalt.err (!%p9097_p10)
}
  0xb0   : > { %8681 = dma.hbm_to_vmem [thread:$0]  (!%p9968_p12), %s9684_s30, 16, %s9972_s1, [#allocation26]  }
  0xb1   : > { %s9597_s15 = smov [#allocation28]   ;;  %s9598_s22 = smov [#allocation31]  }
  0xb2   : > { %s1484_s26 = sshll.u32 %s9597_s15, 4  ;;  %s1512_s18 = sshll.u32 %s9598_s22, 4  ;;  %s1485_s26 = int_to_ptr.vmem [resolvable:$true] %s1484_s26  ;;  %s1513_s18 = int_to_ptr.vmem [resolvable:$true] %s1512_s18 }
  0xb3   : > { %s9112_s8 = scalar_lea.vmem %s1485_s26, 16  ;;  %s9119_s16 = scalar_lea.vmem %s1485_s26, 32 }
  0xb4   : > { %p9113_p7 = scmp.ne.s32.totalorder %s1485_s26, %s9112_s8  ;;  %p9120_p0 = scmp.lt.s32.totalorder %s1485_s26, %s1485_s26 }
  0xb5   : > { %p9121_p1 = scmp.lt.s32.totalorder %s9119_s16, %s9112_s8 }
  0xb6   : > { %p9115_p8 = pnand %p9113_p7, %p9976_p13 }
  0xb7   : > { %p9122_p2 = por %p9121_p1, %p9120_p0 }
  0xb8   : > { %p9116_p11 = pneg %p9115_p8 }
  0xba   : > { %p9123_p3 = pnand %p9122_p2, %p9116_p11 }
  0xbc   : > { %9126 = shalt.err (!%p9123_p3)
}
  0xbd   : > { %8687 = dma.hbm_to_vmem [thread:$0]  (!%p9968_p12), %s9704_s27, 16, %s1485_s26, [#allocation29]  }
  0xbe   : > { %s9138_s1 = scalar_lea.vmem %s1513_s18, 16  ;;  %s9145_s23 = scalar_lea.vmem %s1513_s18, 32 }
  0xbf   : > { %p9139_p9 = scmp.ne.s32.totalorder %s1513_s18, %s9138_s1  ;;  %p9146_p6 = scmp.lt.s32.totalorder %s1513_s18, %s1513_s18 }
  0xc0   : > { %p9147_p10 = scmp.lt.s32.totalorder %s9145_s23, %s9138_s1 }
  0xc1   : > { %p9141_p4 = pnand %p9139_p9, %p9976_p13 }
  0xc2   : > { %p9148_p7 = por %p9147_p10, %p9146_p6 }
  0xc3   : > { %p9142_p5 = pneg %p9141_p4 }
  0xc5   : > { %p9149_p8 = pnand %p9148_p7, %p9142_p5 }
  0xc7   : > { %9152 = shalt.err (!%p9149_p8)
}
  0xc8   : > { %s12474_s6 = sld [smem:[#allocation66_spill]]  ;;  %s9599_s8 = smov [#allocation34]  }
  0xc9   : > { %s1540_s15 = sshll.u32 %s9599_s8, 4  ;;  %s9600_s26 = smov [#allocation37]   ;;  %s1541_s15 = int_to_ptr.vmem [resolvable:$true] %s1540_s15 }
  0xca   : > { %s1568_s22 = sshll.u32 %s9600_s26, 4  ;;  %s9164_s16 = scalar_lea.vmem %s1541_s15, 16  ;;  %s1569_s22 = int_to_ptr.vmem [resolvable:$true] %s1568_s22 }
  0xcb   : > { %p9165_p11 = scmp.ne.s32.totalorder %s1541_s15, %s9164_s16  ;;  %s9171_s21 = scalar_lea.vmem %s1541_s15, 32 }
  0xcc   : > { %p9172_p2 = scmp.lt.s32.totalorder %s1541_s15, %s1541_s15  ;;  %p9173_p3 = scmp.lt.s32.totalorder %s9171_s21, %s9164_s16 }
  0xcd   : > { %p9167_p0 = pnand %p9165_p11, %p9976_p13 }
  0xce   : > { %8693 = dma.hbm_to_vmem [thread:$0]  (!%p9968_p12), %s12474_s6, 16, %s1513_s18, [#allocation32]  }
  0xcf   : > { %p9168_p1 = pneg %p9167_p0  ;;  %p9174_p9 = por %p9173_p3, %p9172_p2 }
  0xd1   : > { %p9175_p4 = pnand %p9174_p9, %p9168_p1 }
  0xd3   : > { %9178 = shalt.err (!%p9175_p4)
}
  0xd4   : > { %8699 = dma.hbm_to_vmem [thread:$0]  (!%p9968_p12), %s9744_s14, 16, %s1541_s15, [#allocation35]  }
  0xd5   : > { %s9190_s18 = scalar_lea.vmem %s1569_s22, 16  ;;  %s9197_s1 = scalar_lea.vmem %s1569_s22, 32 }
  0xd6   : > { %p9191_p5 = scmp.ne.s32.totalorder %s1569_s22, %s9190_s18  ;;  %p9198_p7 = scmp.lt.s32.totalorder %s1569_s22, %s1569_s22 }
  0xd7   : > { %p9199_p8 = scmp.lt.s32.totalorder %s9197_s1, %s9190_s18 }
  0xd8   : > { %p9193_p6 = pnand %p9191_p5, %p9976_p13 }
  0xd9   : > { %p9200_p11 = por %p9199_p8, %p9198_p7 }
  0xda   : > { %p9194_p10 = pneg %p9193_p6 }
  0xdc   : > { %p9201_p0 = pnand %p9200_p11, %p9194_p10 }
  0xde   : > { %9204 = shalt.err (!%p9201_p0)
}
  0xdf   : > { %8705 = dma.hbm_to_vmem [thread:$0]  (!%p9968_p12), %s9764_s25, 16, %s1569_s22, [#allocation38]  }
  0xe0   : > { %s9601_s21 = smov [#allocation16]   ;;  %s9602_s8 = smov [#allocation21]  }
  0xe1   : > { %s1386_s23 = sshll.u32 %s9601_s21, 4  ;;  %s1414_s15 = sshll.u32 %s9602_s8, 4  ;;  %s1387_s23 = int_to_ptr.vmem [resolvable:$true] %s1386_s23  ;;  %s1415_s15 = int_to_ptr.vmem [resolvable:$true] %s1414_s15 }
  0xe2   : > { %s9216_s26 = scalar_lea.vmem %s1387_s23, 16  ;;  %s9223_s16 = scalar_lea.vmem %s1387_s23, 32 }
  0xe3   : > { %p9217_p1 = scmp.ne.s32.totalorder %s1387_s23, %s9216_s26  ;;  %p9224_p9 = scmp.lt.s32.totalorder %s1387_s23, %s1387_s23 }
  0xe4   : > { %p9225_p4 = scmp.lt.s32.totalorder %s9223_s16, %s9216_s26 }
  0xe5   : > { %p9219_p2 = pnand %p9217_p1, %p9976_p13 }
  0xe6   : > { %p9226_p5 = por %p9225_p4, %p9224_p9 }
  0xe7   : > { %p9220_p3 = pneg %p9219_p2 }
  0xe9   : > { %p9227_p6 = pnand %p9226_p5, %p9220_p3 }
  0xeb   : > { %9230 = shalt.err (!%p9227_p6)
}
  0xec   : > { %8666 = dma.hbm_to_vmem [thread:$0]  (!%p9968_p12), %s9634_s13, 16, %s1387_s23, [#allocation17]  }
  0xed   : > { %s9242_s22 = scalar_lea.vmem %s1415_s15, 16  ;;  %s9249_s18 = scalar_lea.vmem %s1415_s15, 32 }
  0xee   : > { %p9243_p10 = scmp.ne.s32.totalorder %s1415_s15, %s9242_s22  ;;  %p9250_p11 = scmp.lt.s32.totalorder %s1415_s15, %s1415_s15 }
  0xef   : > { %p9251_p0 = scmp.lt.s32.totalorder %s9249_s18, %s9242_s22 }
  0xf0   : > { %p9245_p7 = pnand %p9243_p10, %p9976_p13 }
  0xf1   : > { %p9252_p1 = por %p9251_p0, %p9250_p11 }
  0xf2   : > { %p9246_p8 = pneg %p9245_p7 }
  0xf4   : > { %p9253_p2 = pnand %p9252_p1, %p9246_p8 }
  0xf6   : > { %9256 = shalt.err (!%p9253_p2)
}
  0xf7   : > { %8672 = dma.hbm_to_vmem [thread:$0]  (!%p9968_p12), %s9654_s29, 16, %s1415_s15, [#allocation20]  }
  0xf8   : > { %s9603_s1 = smov [#allocation24]   ;;  %s9604_s23 = smov [#allocation27]  }
  0xf9   : > { %s1442_s21 = sshll.u32 %s9603_s1, 4  ;;  %s1470_s8 = sshll.u32 %s9604_s23, 4  ;;  %s1443_s21 = int_to_ptr.vmem [resolvable:$true] %s1442_s21  ;;  %s1471_s8 = int_to_ptr.vmem [resolvable:$true] %s1470_s8 }
  0xfa   : > { %s9268_s26 = scalar_lea.vmem %s1443_s21, 16  ;;  %s9275_s16 = scalar_lea.vmem %s1443_s21, 32 }
  0xfb   : > { %p9269_p3 = scmp.ne.s32.totalorder %s1443_s21, %s9268_s26  ;;  %p9276_p5 = scmp.lt.s32.totalorder %s1443_s21, %s1443_s21 }
  0xfc   : > { %p9277_p6 = scmp.lt.s32.totalorder %s9275_s16, %s9268_s26 }
  0xfd   : > { %p9271_p9 = pnand %p9269_p3, %p9976_p13 }
  0xfe   : > { %p9278_p10 = por %p9277_p6, %p9276_p5 }
  0xff   : > { %p9272_p4 = pneg %p9271_p9 }
 0x101   : > { %p9279_p7 = pnand %p9278_p10, %p9272_p4 }
 0x103   : > { %9282 = shalt.err (!%p9279_p7)
}
 0x104   : > { %8678 = dma.hbm_to_vmem [thread:$0]  (!%p9968_p12), %s9674_s19, 16, %s1443_s21, [#allocation23]  }
 0x105   : > { %s9294_s15 = scalar_lea.vmem %s1471_s8, 16  ;;  %s9301_s22 = scalar_lea.vmem %s1471_s8, 32 }
 0x106   : > { %p9295_p8 = scmp.ne.s32.totalorder %s1471_s8, %s9294_s15  ;;  %p9302_p1 = scmp.lt.s32.totalorder %s1471_s8, %s1471_s8 }
 0x107   : > { %p9303_p2 = scmp.lt.s32.totalorder %s9301_s22, %s9294_s15 }
 0x108   : > { %p9297_p11 = pnand %p9295_p8, %p9976_p13 }
 0x109   : > { %p9304_p3 = por %p9303_p2, %p9302_p1 }
 0x10a   : > { %p9298_p0 = pneg %p9297_p11 }
 0x10c   : > { %p9305_p9 = pnand %p9304_p3, %p9298_p0 }
 0x10e   : > { %9308 = shalt.err (!%p9305_p9)
}
 0x10f   : > { %8684 = dma.hbm_to_vmem [thread:$0]  (!%p9968_p12), %s9694_s12, 16, %s1471_s8, [#allocation26]  }
 0x110   : > { %s9605_s18 = smov [#allocation30]   ;;  %s9606_s21 = smov [#allocation33]  }
 0x111   : > { %s1498_s1 = sshll.u32 %s9605_s18, 4  ;;  %s1526_s23 = sshll.u32 %s9606_s21, 4  ;;  %s1499_s1 = int_to_ptr.vmem [resolvable:$true] %s1498_s1  ;;  %s1527_s23 = int_to_ptr.vmem [resolvable:$true] %s1526_s23 }
 0x112   : > { %s9320_s26 = scalar_lea.vmem %s1499_s1, 16  ;;  %s9327_s16 = scalar_lea.vmem %s1499_s1, 32 }
 0x113   : > { %p9321_p4 = scmp.ne.s32.totalorder %s1499_s1, %s9320_s26  ;;  %p9328_p10 = scmp.lt.s32.totalorder %s1499_s1, %s1499_s1 }
 0x114   : > { %p9329_p7 = scmp.lt.s32.totalorder %s9327_s16, %s9320_s26 }
 0x115   : > { %p9323_p5 = pnand %p9321_p4, %p9976_p13 }
 0x116   : > { %p9330_p8 = por %p9329_p7, %p9328_p10 }
 0x117   : > { %p9324_p6 = pneg %p9323_p5 }
 0x119   : > { %p9331_p11 = pnand %p9330_p8, %p9324_p6 }
 0x11b   : > { %9334 = shalt.err (!%p9331_p11)
}
 0x11c   : > { %8690 = dma.hbm_to_vmem [thread:$0]  (!%p9968_p12), %s9714_s24, 16, %s1499_s1, [#allocation29]  }
 0x11d   : > { %s9346_s8 = scalar_lea.vmem %s1527_s23, 16  ;;  %s9353_s15 = scalar_lea.vmem %s1527_s23, 32 }
 0x11e   : > { %p9347_p0 = scmp.ne.s32.totalorder %s1527_s23, %s9346_s8  ;;  %p9354_p3 = scmp.lt.s32.totalorder %s1527_s23, %s1527_s23 }
 0x11f   : > { %p9355_p9 = scmp.lt.s32.totalorder %s9353_s15, %s9346_s8 }
 0x120   : > { %p9349_p1 = pnand %p9347_p0, %p9976_p13 }
 0x121   : > { %p9356_p4 = por %p9355_p9, %p9354_p3 }
 0x122   : > { %p9350_p2 = pneg %p9349_p1 }
 0x124   : > { %p9357_p5 = pnand %p9356_p4, %p9350_p2 }
 0x126   : > { %9360 = shalt.err (!%p9357_p5)
}
 0x127   : > { %s12475_s3 = sld [smem:[#allocation68_spill]]  ;;  %s9607_s22 = smov [#allocation36]  }
 0x128   : > { %s1554_s18 = sshll.u32 %s9607_s22, 4  ;;  %s9608_s1 = smov [#allocation39]   ;;  %s1555_s18 = int_to_ptr.vmem [resolvable:$true] %s1554_s18 }
 0x129   : > { %s1582_s21 = sshll.u32 %s9608_s1, 4  ;;  %s9372_s26 = scalar_lea.vmem %s1555_s18, 16  ;;  %s1583_s21 = int_to_ptr.vmem [resolvable:$true] %s1582_s21 }
 0x12a   : > { %p9373_p6 = scmp.ne.s32.totalorder %s1555_s18, %s9372_s26  ;;  %s9379_s16 = scalar_lea.vmem %s1555_s18, 32 }
 0x12b   : > { %p9380_p8 = scmp.lt.s32.totalorder %s1555_s18, %s1555_s18  ;;  %p9381_p11 = scmp.lt.s32.totalorder %s9379_s16, %s9372_s26 }
 0x12c   : > { %p9375_p10 = pnand %p9373_p6, %p9976_p13 }
 0x12d   : > { %8696 = dma.hbm_to_vmem [thread:$0]  (!%p9968_p12), %s12475_s3, 16, %s1527_s23, [#allocation32]  }
 0x12e   : > { %p9376_p7 = pneg %p9375_p10  ;;  %p9382_p0 = por %p9381_p11, %p9380_p8 }
 0x130   : > { %p9383_p1 = pnand %p9382_p0, %p9376_p7 }
 0x132   : > { %9386 = shalt.err (!%p9383_p1)
}
 0x133   : > { %8702 = dma.hbm_to_vmem [thread:$0]  (!%p9968_p12), %s9754_s17, 16, %s1555_s18, [#allocation35]  }
 0x134   : > { %s9398_s23 = scalar_lea.vmem %s1583_s21, 16  ;;  %s9405_s8 = scalar_lea.vmem %s1583_s21, 32 }
 0x135   : > { %p9399_p2 = scmp.ne.s32.totalorder %s1583_s21, %s9398_s23  ;;  %p9406_p4 = scmp.lt.s32.totalorder %s1583_s21, %s1583_s21 }
 0x136   : > { %p9407_p5 = scmp.lt.s32.totalorder %s9405_s8, %s9398_s23 }
 0x137   : > { %p9401_p3 = pnand %p9399_p2, %p9976_p13 }
 0x138   : > { %p9408_p6 = por %p9407_p5, %p9406_p4 }
 0x139   : > { %p9402_p9 = pneg %p9401_p3 }
 0x13b   : > { %p9409_p10 = pnand %p9408_p6, %p9402_p9 }
 0x13d   : > { %9412 = shalt.err (!%p9409_p10)
}
 0x13e   : > { %s12476_s15 = sld [smem:[#allocation73_spill]]  ;;  %s9609_s22 = smov [#allocation40]  }
 0x13f   : > { %s1596_s1 = sshll.u32 %s9609_s22, 4  ;;  %s1597_s1 = int_to_ptr.vmem [resolvable:$true] %s1596_s1 }
 0x140   : > { %s9424_s18 = scalar_lea.vmem %s1597_s1, 16  ;;  %s9431_s26 = scalar_lea.vmem %s1597_s1, 32 }
 0x141   : > { %p9425_p7 = scmp.ne.s32.totalorder %s1597_s1, %s9424_s18  ;;  %p9432_p0 = scmp.lt.s32.totalorder %s1597_s1, %s1597_s1 }
 0x142   : > { %p9433_p1 = scmp.lt.s32.totalorder %s9431_s26, %s9424_s18 }
 0x143   : > { %p9427_p8 = pnand %p9425_p7, %p9976_p13 }
 0x144   : > { %8708 = dma.hbm_to_vmem [thread:$0]  (!%p9968_p12), %s12476_s15, 16, %s1583_s21, [#allocation38]  }
 0x145   : > { %p9428_p11 = pneg %p9427_p8  ;;  %p9434_p2 = por %p9433_p1, %p9432_p0 }
 0x147   : > { %p9435_p3 = pnand %p9434_p2, %p9428_p11 }
 0x149   : > { %9438 = shalt.err (!%p9435_p3)
}
 0x14a   : > { %s12477_s16 = sld [smem:[#allocation75_spill]]  ;;  %p12478_p9 = scmp.ne.s32.totalorder %s12469_s2, 0 }
 0x14b   : > { %p12479_p4 = scmp.eq.s32.totalorder (!%p12478_p9), %s9932_s0, 0 }
 0x14c   : > { %1689 = sbr.rel (%p12478_p9) target bundleno = 3989 (0xf95), region = 248 }
 0x150   : > { %8711 = dma.hbm_to_vmem [thread:$0]  (!%p9968_p12), %s12477_s16, 16, %s1597_s1, [#allocation41]  }
 0x151   : > { %9482 = dma.done.wait (%p12479_p4), [#allocation17], 16   ;;  %p12480_p5 = pmov %p12479_p4 }
 0x152   : > { %p12481_p13 = pmov %p12479_p4 }
 0x153   : > { %9484 = vsyncadd (%p12480_p5), [#allocation17], 4294967280 }
 0x154   : > { %9486 = dma.done.wait (%p12481_p13), [#allocation20], 32   ;;  %p12482_p6 = pmov %p12479_p4 }
 0x155   : > { %p12483_p10 = pmov %p12479_p4 }
 0x156   : > { %9488 = vsyncadd (%p12482_p6), [#allocation20], 4294967264 }
 0x157   : > { %9490 = dma.done.wait (%p12483_p10), [#allocation23], 32   ;;  %p12484_p12 = pmov %p12479_p4 }
 0x158   : > { %p12485_p7 = pmov %p12479_p4 }
 0x159   : > { %9492 = vsyncadd (%p12484_p12), [#allocation23], 4294967264 }
 0x15a   : > { %9494 = dma.done.wait (%p12485_p7), [#allocation26], 32   ;;  %p12486_p8 = pmov %p12479_p4 }
 0x15b   : > { %p12487_p11 = pmov %p12479_p4 }
 0x15c   : > { %9496 = vsyncadd (%p12486_p8), [#allocation26], 4294967264 }
 0x15d   : > { %9498 = dma.done.wait (%p12487_p11), [#allocation29], 32   ;;  %p12488_p0 = pmov %p12479_p4 }
 0x15f   : > { %9500 = vsyncadd (%p12488_p0), [#allocation29], 4294967264  ;;  %p12489_p1 = pmov %p12488_p0 }
 0x160   : > { %p12490_p2 = pmov %p12488_p0 }
 0x161   : > { %9502 = dma.done.wait (%p12489_p1), [#allocation32], 32  }
 0x162   : > { %9504 = vsyncadd (%p12490_p2), [#allocation32], 4294967264  ;;  %p12491_p3 = pmov %p12488_p0 }
 0x163   : > { %p12492_p9 = pmov %p12488_p0 }
 0x164   : > { %9506 = dma.done.wait (%p12491_p3), [#allocation35], 32  }
 0x165   : > { %9508 = vsyncadd (%p12492_p9), [#allocation35], 4294967264  ;;  %p12493_p4 = pmov %p12488_p0 }
 0x166   : > { %p12494_p5 = pmov %p12488_p0 }
 0x167   : > { %9510 = dma.done.wait (%p12493_p4), [#allocation38], 32  }
 0x168   : > { %9512 = vsyncadd (%p12494_p5), [#allocation38], 4294967264  ;;  %p12495_p13 = pmov %p12488_p0 }
 0x169   : > { %p12496_p6 = pmov %p12488_p0 }
 0x16a   : > { %9514 = dma.done.wait (%p12495_p13), [#allocation41], 16  }
 0x16b   : > { %9516 = vsyncadd (%p12496_p6), [#allocation41], 4294967280  ;;  %vm1942_vm0 = vcmask 130048   ;;  %vm1945_vm1 = vcmask 123904   ;;  %vm1998_vm2 = vcmask 261120   ;;  %vm2000_vm3 = vcmask 254976  }
 0x16c   : > { %v9610_v0 = vmov 0.0   ;;  %vm2321_vm4 = vcmask 1044480   ;;  %p1880_p10 = scmp.lt.s32.totalorder %s9932_s0, 1  ;;  %vm1886_vm5 = vcmask 64512   ;;  %vm2322_vm6 = vcmask 1045504   ;;  %s12497_s11 = sld [smem:[#allocation53_spill]] }
 0x16d   : > { %2112 = vst [vmem:[#allocation13 + $0x30] sm:$0xff] %v9610_v0  ;;  %1943 = vst.msk [vmem:[#allocation3] sm:$0xff] %vm1942_vm0, %v9610_v0  ;;  %v9611_v1 = vmov 65535   ;;  %s12498_s2 = sld [smem:[#allocation54_spill]]  ;;  %vm2272_vm7 = vcmask 220160   ;;  %vm1889_vm8 = vcmask 58368   ;;  %v2589_v25 = vlaneseq }
 0x16e   : > { %1944 = vst.msk [vmem:[#allocation3 + $0x8] sm:$0xff] %vm1942_vm0, %v9610_v0  ;;  %1947 = vst.msk [vmem:[#allocation3 + $0x18] sm:$0xff] %vm1942_vm0, %v9610_v0  ;;  %v2323_v2 = vsel %vm2321_vm4, 4294967295, %v9611_v1  ;;  %s10348_s7 = scalar_select %p1880_p10, %s9932_s0, 1  ;;  %vm3568_vm9 = vcmask 1043456   ;;  %vm4453_vm10 = vcmask 253952  }
 0x16f   : > { %1946 = vst.msk [vmem:[#allocation3 + $0x10] sm:$0x3] %vm1945_vm1, %v9610_v0  ;;  %1949 = vst.msk [vmem:[#allocation3 + $0x28] sm:$0x3] %vm1945_vm1, %v9610_v0  ;;  %v2324_v3 = vsel %vm2322_vm6, %v2323_v2, 0  ;;  %s12499_s8 = sld [smem:[#allocation57_spill]] }
 0x170   : > { %1948 = vst.msk [vmem:[#allocation3 + $0x20] sm:$0xff] %vm1942_vm0, %v9610_v0  ;;  %1950 = vst.msk [vmem:[#allocation3 + $0x30] sm:$0xff] %vm1942_vm0, %v9610_v0  ;;  %s8229_s21 = sshll.u32 %s10348_s7, 7  ;;  %s12500_s15 = sld [smem:[#allocation55_spill]]  ;;  %v10499_v26 = vshrl.u32 %v2589_v25, 7  ;;  %vm4462_vm11 = vcmask 256002  }
 0x171   : > { %1951 = vst.msk [vmem:[#allocation3 + $0x38] sm:$0xff] %vm1942_vm0, %v9610_v0  ;;  %1953 = vst.msk [vmem:[#allocation3 + $0x48] sm:$0xff] %vm1942_vm0, %v9610_v0  ;;  %v10508_v30 = vld [vmem:[#allocation16] ss:$0 sm:$0xff]  ;;  %s12502_s1 = sld [smem:[#allocation60_spill]]  ;;  %vm4471_vm12 = vcmask 258052  }
 0x172   : > { %1952 = vst.msk [vmem:[#allocation3 + $0x40] sm:$0x3] %vm1945_vm1, %v9610_v0  ;;  %1955 = vst.msk [vmem:[#allocation3 + $0x58] sm:$0x3] %vm1945_vm1, %v9610_v0  ;;  %s10425_s23 = scalar_lea.vmem %s12497_s11, %s8229_s21  ;;  %v10502_v27 = vsub.s32 0, %v10499_v26  ;;  %v10505_v28 = vsub.s32 1, %v10499_v26 }
 0x173   : > { %1954 = vst.msk [vmem:[#allocation3 + $0x50] sm:$0xff] %vm1942_vm0, %v9610_v0  ;;  %1956 = vst.msk [vmem:[#allocation3 + $0x60] sm:$0xff] %vm1942_vm0, %v9610_v0  ;;  %v8859_v4 = vld [vmem:[%s12498_s2 + $0x8] sm:$0x3f]   ;;  %v8860_v5 = vld [vmem:[%s12498_s2] sm:$0xff]   ;;  %v10517_v34 = vsub.s32 2, %v10499_v26 }
 0x174   : > { %1957 = vst.msk [vmem:[#allocation3 + $0x68] sm:$0xff] %vm1942_vm0, %v9610_v0  ;;  %1959 = vst.msk [vmem:[#allocation3 + $0x78] sm:$0xff] %vm1942_vm0, %v9610_v0  ;;  %v2326_v6 = vand.u32 %v8859_v4, %v2324_v3  ;;  %v8861_v7 = vld [vmem:[%s10425_s23] sm:$0xff]   ;;  %v8862_v8 = vld [vmem:[%s10425_s23 + $0x8] sm:$0xff]   ;;  %v10527_v47 = vsub.s32 6, %v10499_v26  ;;  %v10534_v55 = vsub.s32 3, %v10499_v26 }
 0x175   : > { %1958 = vst.msk [vmem:[#allocation3 + $0x70] sm:$0x3] %vm1945_vm1, %v9610_v0  ;;  %1961 = vst.msk [vmem:[#allocation3 + $0x88] sm:$0x3] %vm1945_vm1, %v9610_v0  ;;  %8366 = vmatprep.mubr.msk.bf16.mxu0 %vm2272_vm7, %v8861_v7  ;;  %v8863_v9 = vld [vmem:[%s10425_s23 + $0x10] sm:$0xff]   ;;  %v8864_v10 = vld [vmem:[%s10425_s23 + $0x18] sm:$0xff]  }
 0x176   : > { %1960 = vst.msk [vmem:[#allocation3 + $0x80] sm:$0xff] %vm1942_vm0, %v9610_v0  ;;  %1962 = vst.msk [vmem:[#allocation3 + $0x90] sm:$0xff] %vm1942_vm0, %v9610_v0  ;;  %8362 = vmatprep.subr.bf16.mxu0 %v2326_v6  ;;  %v8865_v11 = vld [vmem:[%s10425_s23 + $0x20] sm:$0xff]   ;;  %v8866_v12 = vld [vmem:[%s10425_s23 + $0x28] sm:$0xff]   ;;  %s12501_s22 = smov %s12500_s15  ;;  %v10537_v56 = vsub.s32 7, %v10499_v26  ;;  %v10542_v59 = vsub.s32 4, %v10499_v26 }
 0x177   : > { %1963 = vst.msk [vmem:[#allocation3 + $0x98] sm:$0xff] %vm1942_vm0, %v9610_v0  ;;  %1965 = vst.msk [vmem:[#allocation3 + $0xa8] sm:$0xff] %vm1942_vm0, %v9610_v0  ;;  %8363 = vmatpush3.bf16.msra.mxu0 %v2326_v6  ;;  %v8867_v13 = vld [vmem:[%s10425_s23 + $0x30] sm:$0xff]   ;;  %v8868_v14 = vld [vmem:[%s10425_s23 + $0x38] sm:$0xff]   ;;  %v10546_v63 = vsub.s32 5, %v10499_v26  ;;  %s12503_s18 = sld [smem:[#allocation58_spill]] }
 0x178   : > { %1964 = vst.msk [vmem:[#allocation3 + $0xa0] sm:$0x3] %vm1945_vm1, %v9610_v0  ;;  %1967 = vst.msk [vmem:[#allocation3 + $0xb8] sm:$0x3] %vm1945_vm1, %v9610_v0  ;;  %8364 = vmatprep.subr.bf16.mxu0 %v8860_v5  ;;  %v8869_v15 = vld [vmem:[%s10425_s23 + $0x40] sm:$0xff]   ;;  %v8870_v16 = vld [vmem:[%s10425_s23 + $0x48] sm:$0xff]  }
 0x179   : > { %1966 = vst.msk [vmem:[#allocation3 + $0xb0] sm:$0xff] %vm1942_vm0, %v9610_v0  ;;  %1968 = vst.msk [vmem:[#allocation3 + $0xc0] sm:$0xff] %vm1942_vm0, %v9610_v0  ;;  %v8871_v17 = vld [vmem:[%s10425_s23 + $0x50] sm:$0xff]   ;;  %v8872_v18 = vld [vmem:[%s10425_s23 + $0x58] sm:$0xff]   ;;  %s12504_s26 = sld [smem:[#allocation62_spill]]  ;;  %vm4480_vm13 = vcmask 260102  }
 0x17a   : > { %1969 = vst.msk [vmem:[#allocation3 + $0xc8] sm:$0xff] %vm1942_vm0, %v9610_v0  ;;  %1971 = vst.msk [vmem:[#allocation3 + $0xd8] sm:$0xff] %vm1942_vm0, %v9610_v0  ;;  %v8873_v19 = vld [vmem:[%s10425_s23 + $0x60] sm:$0xff]   ;;  %v8874_v20 = vld [vmem:[%s10425_s23 + $0x68] sm:$0xff]   ;;  %s12505_s16 = sld [smem:[#allocation61_spill]]  ;;  %vm2040_vm14 = vcmask 523264  }
 0x17b   : > { %1970 = vst.msk [vmem:[#allocation3 + $0xd0] sm:$0x3] %vm1945_vm1, %v9610_v0  ;;  %1973 = vst.msk [vmem:[#allocation3 + $0xe8] sm:$0x3] %vm1945_vm1, %v9610_v0  ;;  %8365 = vmatpush3.bf16.msra.mxu0 %v8860_v5  ;;  %v8875_v21 = vld [vmem:[%s10425_s23 + $0x70] sm:$0xff]   ;;  %v8876_v22 = vld [vmem:[%s10425_s23 + $0x78] sm:$0xff]  }
 0x17c   : > { %1972 = vst.msk [vmem:[#allocation3 + $0xe0] sm:$0xff] %vm1942_vm0, %v9610_v0  ;;  %1974 = vst.msk [vmem:[#allocation3 + $0xf0] sm:$0xff] %vm1942_vm0, %v9610_v0  ;;  %v3512_v23 = vld [vmem:[%s12499_s8] sm:$0xf]  ;;  %s12506_s7 = sld [smem:[#allocation64_spill]]  ;;  %vm2042_vm15 = vcmask 517120  }
 0x17d   : > { %1975 = vst.msk [vmem:[#allocation3 + $0xf8] sm:$0xff] %vm1942_vm0, %v9610_v0  ;;  %1977 = vst.msk [vmem:[#allocation3 + $0x108] sm:$0xff] %vm1942_vm0, %v9610_v0  ;;  %8596 = vmatprep.subr.msk.bf16.mxu1 %vm3568_vm9, %v3512_v23  ;;  %v3570_v24 = vsel %vm3568_vm9, %v3512_v23, 0  ;;  %v2554_v29 = vld [vmem:[%s12500_s15] sm:$0xff]  ;;  %s12508_s11 = sld [smem:[#allocation63_spill]]  ;;  %vm9612_vm4 = vmmov 0  }
 0x17e   : > { %1976 = vst.msk [vmem:[#allocation3 + $0x100] sm:$0x3] %vm1945_vm1, %v9610_v0  ;;  %1979 = vst.msk [vmem:[#allocation3 + $0x118] sm:$0x3] %vm1945_vm1, %v9610_v0  ;;  %8367 = vmatmul.mubr.msk.bf16.vlgmr.msra.gmra.mxu0 %vm2272_vm7, %v8862_v8  ;;  %8399 = vmatpush3.bf16.msra.mxu1 %v3570_v24  ;;  %v10511_v32 = vrot.slane %v2554_v29, %v10502_v27  ;;  %v10514_v33 = vrot.slane %v2554_v29, %v10505_v28  ;;  %s12510_s8 = sld [smem:[#allocation67_spill]]  ;;  %p12558_p7 = scmp.ne.s32.totalorder %s12466_s28, 0 }
 0x17f   : > { %1978 = vst.msk [vmem:[#allocation3 + $0x110] sm:$0xff] %vm1942_vm0, %v9610_v0  ;;  %1980 = vst.msk [vmem:[#allocation3 + $0x120] sm:$0xff] %vm1942_vm0, %v9610_v0  ;;  %8370 = vmatprep.mubr.msk.bf16.mxu0 %vm2272_vm7, %v8863_v9  ;;  %v10524_v46 = vrot.slane %v2554_v29, %v10517_v34  ;;  %v10555_v6 = vrot.slane %v2554_v29, %v10534_v55  ;;  %v10558_v7 = vrot.slane %v2554_v29, %v10537_v56  ;;  %s12511_s15 = sld [smem:[#allocation65_spill]] }
 0x180   : > { %1981 = vst.msk [vmem:[#allocation3 + $0x128] sm:$0xff] %vm1942_vm0, %v9610_v0  ;;  %1983 = vst.msk [vmem:[#allocation3 + $0x138] sm:$0xff] %vm1942_vm0, %v9610_v0  ;;  %s12557_s5 = sld [smem:[#allocation97_spill]] }
 0x181   : > { %1982 = vst.msk [vmem:[#allocation3 + $0x130] sm:$0x3] %vm1945_vm1, %v9610_v0  ;;  %1985 = vst.msk [vmem:[#allocation3 + $0x148] sm:$0x3] %vm1945_vm1, %v9610_v0 }
 0x182   : > { %1984 = vst.msk [vmem:[#allocation3 + $0x140] sm:$0xff] %vm1942_vm0, %v9610_v0  ;;  %1986 = vst.msk [vmem:[#allocation3 + $0x150] sm:$0xff] %vm1942_vm0, %v9610_v0  ;;  %s12507_s21 = smov %s12506_s7 }
 0x183   : > { %1987 = vst.msk [vmem:[#allocation3 + $0x158] sm:$0xff] %vm1942_vm0, %v9610_v0  ;;  %1989 = vst.msk [vmem:[#allocation3 + $0x168] sm:$0xff] %vm1942_vm0, %v9610_v0  ;;  %s12509_s23 = smov %s12508_s11 }
 0x184   : > { %1988 = vst.msk [vmem:[#allocation3 + $0x160] sm:$0x3] %vm1945_vm1, %v9610_v0  ;;  %1991 = vst.msk [vmem:[#allocation3 + $0x178] sm:$0x3] %vm1945_vm1, %v9610_v0 }
 0x185   : > { %1990 = vst.msk [vmem:[#allocation3 + $0x170] sm:$0xff] %vm1942_vm0, %v9610_v0  ;;  %1992 = vst.msk [vmem:[#allocation3 + $0x180] sm:$0xff] %vm1942_vm0, %v9610_v0 }
 0x186   : > { %1993 = vst.msk [vmem:[#allocation3 + $0x188] sm:$0xff] %vm1942_vm0, %v9610_v0  ;;  %2066 = vst [vmem:[#allocation8] sm:$0xff] %v9610_v0  ;;  %8371 = vmatmul.mubr.msk.bf16.gmra.mxu0 %vm2272_vm7, %v8864_v10  ;;  %v10563_v10 = vrot.slane %v2554_v29, %v10542_v59 }
 0x187   : > { %1994 = vst.msk [vmem:[#allocation3 + $0x190] sm:$0x3] %vm1945_vm1, %v9610_v0  ;;  %2067 = vst [vmem:[#allocation8 + $0x8] sm:$0x3] %v9610_v0  ;;  %8374 = vmatprep.mubr.msk.bf16.mxu0 %vm2272_vm7, %v8865_v11  ;;  %vm5160_vm1 = vcmask 518146  }
 0x188   : > { %1999 = vst.msk [vmem:[#allocation4] sm:$0xff] %vm1998_vm2, %v9610_v0  ;;  %2002 = vst.msk [vmem:[#allocation4 + $0x10] sm:$0xff] %vm1998_vm2, %v9610_v0 }
 0x189   : > { %2004 = vst.msk [vmem:[#allocation4 + $0x20] sm:$0xff] %vm1998_vm2, %v9610_v0  ;;  %2006 = vst.msk [vmem:[#allocation4 + $0x30] sm:$0xff] %vm1998_vm2, %v9610_v0 }
 0x18a   : > { %2008 = vst.msk [vmem:[#allocation4 + $0x40] sm:$0xff] %vm1998_vm2, %v9610_v0  ;;  %2010 = vst.msk [vmem:[#allocation4 + $0x50] sm:$0xff] %vm1998_vm2, %v9610_v0 }
 0x18b   : > { %2012 = vst.msk [vmem:[#allocation4 + $0x60] sm:$0xff] %vm1998_vm2, %v9610_v0  ;;  %2014 = vst.msk [vmem:[#allocation4 + $0x70] sm:$0xff] %vm1998_vm2, %v9610_v0 }
 0x18c   : > { %2016 = vst.msk [vmem:[#allocation4 + $0x80] sm:$0xff] %vm1998_vm2, %v9610_v0  ;;  %2018 = vst.msk [vmem:[#allocation4 + $0x90] sm:$0xff] %vm1998_vm2, %v9610_v0 }
 0x18d   : > { %2020 = vst.msk [vmem:[#allocation5] sm:$0xff] %vm1998_vm2, %v9610_v0  ;;  %2022 = vst.msk [vmem:[#allocation5 + $0x10] sm:$0xff] %vm1998_vm2, %v9610_v0 }
 0x18e   : > { %2024 = vst.msk [vmem:[#allocation5 + $0x20] sm:$0xff] %vm1998_vm2, %v9610_v0  ;;  %2026 = vst.msk [vmem:[#allocation5 + $0x30] sm:$0xff] %vm1998_vm2, %v9610_v0  ;;  %8375 = vmatmul.mubr.msk.bf16.gmra.mxu0 %vm2272_vm7, %v8866_v12 }
 0x18f   : > { %2028 = vst.msk [vmem:[#allocation5 + $0x40] sm:$0xff] %vm1998_vm2, %v9610_v0  ;;  %2030 = vst.msk [vmem:[#allocation5 + $0x50] sm:$0xff] %vm1998_vm2, %v9610_v0  ;;  %8378 = vmatprep.mubr.msk.bf16.mxu0 %vm2272_vm7, %v8867_v13  ;;  %v10566_v13 = vrot.slane %v2554_v29, %v10546_v63 }
 0x190   : > { %2032 = vst.msk [vmem:[#allocation5 + $0x60] sm:$0xff] %vm1998_vm2, %v9610_v0  ;;  %2034 = vst.msk [vmem:[#allocation5 + $0x70] sm:$0xff] %vm1998_vm2, %v9610_v0 }
 0x191   : > { %2036 = vst.msk [vmem:[#allocation5 + $0x80] sm:$0xff] %vm1998_vm2, %v9610_v0  ;;  %2068 = vst [vmem:[#allocation8 + $0x10] sm:$0xff] %v9610_v0 }
 0x192   : > { %2069 = vst [vmem:[#allocation8 + $0x18] sm:$0x3] %v9610_v0  ;;  %2070 = vst [vmem:[#allocation8 + $0x20] sm:$0xff] %v9610_v0 }
 0x193   : > { %2071 = vst [vmem:[#allocation8 + $0x28] sm:$0x3] %v9610_v0  ;;  %2072 = vst [vmem:[#allocation8 + $0x30] sm:$0xff] %v9610_v0 }
 0x194   : > { %2073 = vst [vmem:[#allocation8 + $0x38] sm:$0x3] %v9610_v0  ;;  %2074 = vst [vmem:[#allocation9] sm:$0xff] %v9610_v0 }
 0x195   : > { %2075 = vst [vmem:[#allocation9 + $0x8] sm:$0x3] %v9610_v0  ;;  %2076 = vst [vmem:[#allocation9 + $0x10] sm:$0xff] %v9610_v0 }
 0x196   : > { %2077 = vst [vmem:[#allocation9 + $0x18] sm:$0x3] %v9610_v0  ;;  %2078 = vst [vmem:[#allocation9 + $0x20] sm:$0xff] %v9610_v0  ;;  %8379 = vmatmul.mubr.msk.bf16.gmra.mxu0 %vm2272_vm7, %v8868_v14 }
 0x197   : > { %2079 = vst [vmem:[#allocation9 + $0x28] sm:$0x3] %v9610_v0  ;;  %2080 = vst [vmem:[#allocation9 + $0x30] sm:$0xff] %v9610_v0  ;;  %8382 = vmatprep.mubr.msk.bf16.mxu0 %vm2272_vm7, %v8869_v15 }
 0x198   : > { %2081 = vst [vmem:[#allocation9 + $0x38] sm:$0x3] %v9610_v0  ;;  %2082 = vst [vmem:[#allocation10] sm:$0xff] %v9610_v0 }
 0x199   : > { %2083 = vst [vmem:[#allocation10 + $0x8] sm:$0x3] %v9610_v0  ;;  %2084 = vst [vmem:[#allocation10 + $0x10] sm:$0xff] %v9610_v0 }
 0x19a   : > { %2085 = vst [vmem:[#allocation10 + $0x18] sm:$0x3] %v9610_v0  ;;  %2086 = vst [vmem:[#allocation10 + $0x20] sm:$0xff] %v9610_v0 }
 0x19b   : > { %2087 = vst [vmem:[#allocation10 + $0x28] sm:$0x3] %v9610_v0  ;;  %2088 = vst [vmem:[#allocation10 + $0x30] sm:$0xff] %v9610_v0 }
 0x19c   : > { %2089 = vst [vmem:[#allocation10 + $0x38] sm:$0x3] %v9610_v0  ;;  %2090 = vst [vmem:[#allocation11] sm:$0xff] %v9610_v0 }
 0x19d   : > { %2091 = vst [vmem:[#allocation11 + $0x8] sm:$0x3] %v9610_v0  ;;  %2092 = vst [vmem:[#allocation11 + $0x10] sm:$0xff] %v9610_v0 }
 0x19e   : > { %2093 = vst [vmem:[#allocation11 + $0x18] sm:$0x3] %v9610_v0  ;;  %2094 = vst [vmem:[#allocation11 + $0x20] sm:$0xff] %v9610_v0  ;;  %8383 = vmatmul.mubr.msk.bf16.gmra.mxu0 %vm2272_vm7, %v8870_v16 }
 0x19f   : > { %2095 = vst [vmem:[#allocation11 + $0x28] sm:$0x3] %v9610_v0  ;;  %2096 = vst [vmem:[#allocation11 + $0x30] sm:$0xff] %v9610_v0  ;;  %8386 = vmatprep.mubr.msk.bf16.mxu0 %vm2272_vm7, %v8871_v17 }
 0x1a0   : > { %2097 = vst [vmem:[#allocation11 + $0x38] sm:$0x3] %v9610_v0  ;;  %2098 = vst [vmem:[#allocation12] sm:$0xff] %v9610_v0 }
 0x1a1   : > { %2099 = vst [vmem:[#allocation12 + $0x8] sm:$0x3] %v9610_v0  ;;  %2100 = vst [vmem:[#allocation12 + $0x10] sm:$0xff] %v9610_v0 }
 0x1a2   : > { %2101 = vst [vmem:[#allocation12 + $0x18] sm:$0x3] %v9610_v0  ;;  %2102 = vst [vmem:[#allocation12 + $0x20] sm:$0xff] %v9610_v0 }
 0x1a3   : > { %2103 = vst [vmem:[#allocation12 + $0x28] sm:$0x3] %v9610_v0  ;;  %2104 = vst [vmem:[#allocation12 + $0x30] sm:$0xff] %v9610_v0 }
 0x1a4   : > { %2105 = vst [vmem:[#allocation12 + $0x38] sm:$0x3] %v9610_v0  ;;  %2106 = vst [vmem:[#allocation13] sm:$0xff] %v9610_v0 }
 0x1a5   : > { %2107 = vst [vmem:[#allocation13 + $0x8] sm:$0x3] %v9610_v0  ;;  %2108 = vst [vmem:[#allocation13 + $0x10] sm:$0xff] %v9610_v0 }
 0x1a6   : > { %2109 = vst [vmem:[#allocation13 + $0x18] sm:$0x3] %v9610_v0  ;;  %2110 = vst [vmem:[#allocation13 + $0x20] sm:$0xff] %v9610_v0  ;;  %8387 = vmatmul.mubr.msk.bf16.gmra.mxu0 %vm2272_vm7, %v8872_v18 }
 0x1a7   : > { %2111 = vst [vmem:[#allocation13 + $0x28] sm:$0x3] %v9610_v0  ;;  %2114 = vst [vmem:[#allocation14] sm:$0xff] %v9610_v0  ;;  %8390 = vmatprep.mubr.msk.bf16.mxu0 %vm2272_vm7, %v8873_v19 }
 0x1a8   : > { %2115 = vst [vmem:[#allocation14 + $0x8] sm:$0xff] %v9610_v0  ;;  %2116 = vst [vmem:[#allocation14 + $0x10] sm:$0x3] %v9610_v0 }
 0x1a9   : > { %2117 = vst [vmem:[#allocation14 + $0x18] sm:$0x3] %v9610_v0  ;;  %2118 = vst [vmem:[#allocation14 + $0x20] sm:$0xff] %v9610_v0 }
 0x1aa   : > { %2119 = vst [vmem:[#allocation14 + $0x28] sm:$0xff] %v9610_v0  ;;  %2120 = vst [vmem:[#allocation14 + $0x30] sm:$0x3] %v9610_v0 }
 0x1ab   : > { %2121 = vst [vmem:[#allocation14 + $0x38] sm:$0x3] %v9610_v0  ;;  %2122 = vst [vmem:[#allocation14 + $0x40] sm:$0xff] %v9610_v0 }
 0x1ac   : > { %2123 = vst [vmem:[#allocation14 + $0x48] sm:$0xff] %v9610_v0  ;;  %2124 = vst [vmem:[#allocation14 + $0x50] sm:$0x3] %v9610_v0 }
 0x1ad   : > { %2125 = vst [vmem:[#allocation14 + $0x58] sm:$0x3] %v9610_v0  ;;  %2130 = vst [vmem:[#allocation15 + $0x20] sm:$0xff] %v9610_v0 }
 0x1ae   : > { %2131 = vst [vmem:[#allocation15 + $0x28] sm:$0xff] %v9610_v0  ;;  %2001 = vst.msk [vmem:[#allocation4 + $0x8] sm:$0x3] %vm2000_vm3, %v9610_v0  ;;  %8391 = vmatmul.mubr.msk.bf16.gmra.mxu0 %vm2272_vm7, %v8874_v20 }
 0x1af   : > { %2003 = vst.msk [vmem:[#allocation4 + $0x18] sm:$0x3] %vm2000_vm3, %v9610_v0  ;;  %2005 = vst.msk [vmem:[#allocation4 + $0x28] sm:$0x3] %vm2000_vm3, %v9610_v0  ;;  %8394 = vmatprep.mubr.msk.bf16.mxu0 %vm2272_vm7, %v8875_v21 }
 0x1b0   : > { %2007 = vst.msk [vmem:[#allocation4 + $0x38] sm:$0x3] %vm2000_vm3, %v9610_v0  ;;  %2009 = vst.msk [vmem:[#allocation4 + $0x48] sm:$0x3] %vm2000_vm3, %v9610_v0 }
 0x1b1   : > { %2011 = vst.msk [vmem:[#allocation4 + $0x58] sm:$0x3] %vm2000_vm3, %v9610_v0  ;;  %2013 = vst.msk [vmem:[#allocation4 + $0x68] sm:$0x3] %vm2000_vm3, %v9610_v0 }
 0x1b2   : > { %2015 = vst.msk [vmem:[#allocation4 + $0x78] sm:$0x3] %vm2000_vm3, %v9610_v0  ;;  %2017 = vst.msk [vmem:[#allocation4 + $0x88] sm:$0x3] %vm2000_vm3, %v9610_v0 }
 0x1b3   : > { %2019 = vst.msk [vmem:[#allocation4 + $0x98] sm:$0x3] %vm2000_vm3, %v9610_v0  ;;  %2021 = vst.msk [vmem:[#allocation5 + $0x8] sm:$0x3] %vm2000_vm3, %v9610_v0 }
 0x1b4   : > { %2023 = vst.msk [vmem:[#allocation5 + $0x18] sm:$0x3] %vm2000_vm3, %v9610_v0  ;;  %2025 = vst.msk [vmem:[#allocation5 + $0x28] sm:$0x3] %vm2000_vm3, %v9610_v0 }
 0x1b5   : > { %2027 = vst.msk [vmem:[#allocation5 + $0x38] sm:$0x3] %vm2000_vm3, %v9610_v0  ;;  %2029 = vst.msk [vmem:[#allocation5 + $0x48] sm:$0x3] %vm2000_vm3, %v9610_v0 }
 0x1b6   : > { %2031 = vst.msk [vmem:[#allocation5 + $0x58] sm:$0x3] %vm2000_vm3, %v9610_v0  ;;  %2033 = vst.msk [vmem:[#allocation5 + $0x68] sm:$0x3] %vm2000_vm3, %v9610_v0  ;;  %8395 = vmatmul.mubr.msk.bf16.gmra.mxu0 %vm2272_vm7, %v8876_v22  ;;  %vm7021_vm7 = vcmask 1046528  }
 0x1b7   : > { %2035 = vst.msk [vmem:[#allocation5 + $0x78] sm:$0x3] %vm2000_vm3, %v9610_v0  ;;  %2037 = vst.msk [vmem:[#allocation5 + $0x88] sm:$0x3] %vm2000_vm3, %v9610_v0  ;;  %vm5170_vm3 = vcmask 522246  }
 0x1b8   : > { %1894 = vst.msk [vmem:[#allocation2 + $0x30] sm:$0xff] %vm1886_vm5, %v9610_v0  ;;  %1895 = vst.msk [vmem:[#allocation2 + $0x38] sm:$0xff] %vm1886_vm5, %v9610_v0 }
 0x1b9   : > { %1887 = vst.msk [vmem:[#allocation2] sm:$0xff] %vm1886_vm5, %v9610_v0  ;;  %1888 = vst.msk [vmem:[#allocation2 + $0x8] sm:$0xff] %vm1886_vm5, %v9610_v0 }
 0x1ba   : > { %1891 = vst.msk [vmem:[#allocation2 + $0x18] sm:$0xff] %vm1886_vm5, %v9610_v0  ;;  %1892 = vst.msk [vmem:[#allocation2 + $0x20] sm:$0xff] %vm1886_vm5, %v9610_v0 }
 0x1bb   : > { %1897 = vst.msk [vmem:[#allocation2 + $0x48] sm:$0xff] %vm1886_vm5, %v9610_v0  ;;  %1898 = vst.msk [vmem:[#allocation2 + $0x50] sm:$0xff] %vm1886_vm5, %v9610_v0 }
 0x1bc   : > { %1900 = vst.msk [vmem:[#allocation2 + $0x60] sm:$0xff] %vm1886_vm5, %v9610_v0  ;;  %1901 = vst.msk [vmem:[#allocation2 + $0x68] sm:$0xff] %vm1886_vm5, %v9610_v0 }
 0x1bd   : > { %1903 = vst.msk [vmem:[#allocation2 + $0x78] sm:$0xff] %vm1886_vm5, %v9610_v0  ;;  %1904 = vst.msk [vmem:[#allocation2 + $0x80] sm:$0xff] %vm1886_vm5, %v9610_v0 }
 0x1be   : > { %1906 = vst.msk [vmem:[#allocation2 + $0x90] sm:$0xff] %vm1886_vm5, %v9610_v0  ;;  %1907 = vst.msk [vmem:[#allocation2 + $0x98] sm:$0xff] %vm1886_vm5, %v9610_v0 }
 0x1bf   : > { %1909 = vst.msk [vmem:[#allocation2 + $0xa8] sm:$0xff] %vm1886_vm5, %v9610_v0  ;;  %1910 = vst.msk [vmem:[#allocation2 + $0xb0] sm:$0xff] %vm1886_vm5, %v9610_v0 }
 0x1c0   : > { %1912 = vst.msk [vmem:[#allocation2 + $0xc0] sm:$0xff] %vm1886_vm5, %v9610_v0  ;;  %1913 = vst.msk [vmem:[#allocation2 + $0xc8] sm:$0xff] %vm1886_vm5, %v9610_v0  ;;  %v2557_v36 = vld [vmem:[#allocation2] sm:$0xff]  ;;  %v2558_v39 = vld [vmem:[#allocation2 + $0x8] sm:$0xff] }
 0x1c1   : > { %1915 = vst.msk [vmem:[#allocation2 + $0xd8] sm:$0xff] %vm1886_vm5, %v9610_v0  ;;  %1916 = vst.msk [vmem:[#allocation2 + $0xe0] sm:$0xff] %vm1886_vm5, %v9610_v0  ;;  %v2625_v37 = vld [vmem:[#allocation2 + $0x1] sm:$0xff]  ;;  %v2593_v44 = vmul.f32 %v10511_v32, %v2557_v36  ;;  %v2594_v50 = vmul.f32 %v10511_v32, %v2558_v39 }
 0x1c2   : > { %1918 = vst.msk [vmem:[#allocation2 + $0xf0] sm:$0xff] %vm1886_vm5, %v9610_v0  ;;  %1919 = vst.msk [vmem:[#allocation2 + $0xf8] sm:$0xff] %vm1886_vm5, %v9610_v0  ;;  %v2661_v45 = vmul.f32 %v10514_v33, %v2625_v37  ;;  %v2725_v52 = vld [vmem:[#allocation2 + $0x2] sm:$0xff] }
 0x1c3   : > { %1921 = vst.msk [vmem:[#allocation2 + $0x108] sm:$0xff] %vm1886_vm5, %v9610_v0  ;;  %1922 = vst.msk [vmem:[#allocation2 + $0x110] sm:$0xff] %vm1886_vm5, %v9610_v0  ;;  %v2761_v62 = vmul.f32 %v10524_v46, %v2725_v52  ;;  %v10584_v37 = vld [vmem:[%s12501_s22 + $0x8] ss:$0 sm:$0xff] }
 0x1c4   : > { %1924 = vst.msk [vmem:[#allocation2 + $0x120] sm:$0xff] %vm1886_vm5, %v9610_v0  ;;  %1925 = vst.msk [vmem:[#allocation2 + $0x128] sm:$0xff] %vm1886_vm5, %v9610_v0  ;;  %v2693_v61 = vadd.f32 %v2661_v45, %v2593_v44 }
 0x1c5   : > { %1927 = vst.msk [vmem:[#allocation2 + $0x138] sm:$0xff] %vm1886_vm5, %v9610_v0  ;;  %1928 = vst.msk [vmem:[#allocation2 + $0x140] sm:$0xff] %vm1886_vm5, %v9610_v0 }
 0x1c6   : > { %1930 = vst.msk [vmem:[#allocation2 + $0x150] sm:$0xff] %vm1886_vm5, %v9610_v0  ;;  %1931 = vst.msk [vmem:[#allocation2 + $0x158] sm:$0xff] %vm1886_vm5, %v9610_v0  ;;  %v2793_v12 = vadd.f32 %v2761_v62, %v2693_v61 }
 0x1c7   : > { %1933 = vst.msk [vmem:[#allocation2 + $0x168] sm:$0xff] %vm1886_vm5, %v9610_v0  ;;  %1934 = vst.msk [vmem:[#allocation2 + $0x170] sm:$0xff] %vm1886_vm5, %v9610_v0 }
 0x1c8   : > { %1936 = vst.msk [vmem:[#allocation2 + $0x180] sm:$0xff] %vm1886_vm5, %v9610_v0  ;;  %1937 = vst.msk [vmem:[#allocation2 + $0x188] sm:$0xff] %vm1886_vm5, %v9610_v0 }
 0x1c9   : > { %1939 = vst.msk [vmem:[#allocation2 + $0x198] sm:$0xff] %vm1886_vm5, %v9610_v0  ;;  %1940 = vst.msk [vmem:[#allocation2 + $0x1a0] sm:$0xff] %vm1886_vm5, %v9610_v0 }
 0x1ca   : > { %1896 = vst.msk [vmem:[#allocation2 + $0x40] sm:$0x3] %vm1889_vm8, %v9610_v0  ;;  %1890 = vst.msk [vmem:[#allocation2 + $0x10] sm:$0x3] %vm1889_vm8, %v9610_v0 }
 0x1cb   : > { %1893 = vst.msk [vmem:[#allocation2 + $0x28] sm:$0x3] %vm1889_vm8, %v9610_v0  ;;  %1899 = vst.msk [vmem:[#allocation2 + $0x58] sm:$0x3] %vm1889_vm8, %v9610_v0 }
 0x1cc   : > { %1902 = vst.msk [vmem:[#allocation2 + $0x70] sm:$0x3] %vm1889_vm8, %v9610_v0  ;;  %1905 = vst.msk [vmem:[#allocation2 + $0x88] sm:$0x3] %vm1889_vm8, %v9610_v0 }
 0x1cd   : > { %1908 = vst.msk [vmem:[#allocation2 + $0xa0] sm:$0x3] %vm1889_vm8, %v9610_v0  ;;  %1911 = vst.msk [vmem:[#allocation2 + $0xb8] sm:$0x3] %vm1889_vm8, %v9610_v0 }
 0x1ce   : > { %1914 = vst.msk [vmem:[#allocation2 + $0xd0] sm:$0x3] %vm1889_vm8, %v9610_v0  ;;  %1917 = vst.msk [vmem:[#allocation2 + $0xe8] sm:$0x3] %vm1889_vm8, %v9610_v0 }
 0x1cf   : > { %1920 = vst.msk [vmem:[#allocation2 + $0x100] sm:$0x3] %vm1889_vm8, %v9610_v0  ;;  %1923 = vst.msk [vmem:[#allocation2 + $0x118] sm:$0x3] %vm1889_vm8, %v9610_v0 }
 0x1d0   : > { %1926 = vst.msk [vmem:[#allocation2 + $0x130] sm:$0x3] %vm1889_vm8, %v9610_v0  ;;  %1929 = vst.msk [vmem:[#allocation2 + $0x148] sm:$0x3] %vm1889_vm8, %v9610_v0 }
 0x1d1   : > { %1932 = vst.msk [vmem:[#allocation2 + $0x160] sm:$0x3] %vm1889_vm8, %v9610_v0  ;;  %1935 = vst.msk [vmem:[#allocation2 + $0x178] sm:$0x3] %vm1889_vm8, %v9610_v0  ;;  %v2626_v40 = vld [vmem:[#allocation2 + $0x9] sm:$0xff] }
 0x1d2   : > { %1938 = vst.msk [vmem:[#allocation2 + $0x190] sm:$0x3] %vm1889_vm8, %v9610_v0  ;;  %1941 = vst.msk [vmem:[#allocation2 + $0x1a8] sm:$0x3] %vm1889_vm8, %v9610_v0  ;;  %v2662_v51 = vmul.f32 %v10514_v33, %v2626_v40  ;;  %v2726_v54 = vld [vmem:[#allocation2 + $0xa] sm:$0xff]  ;;  %v10549_v0 = vrot.slane %v2554_v29, %v10527_v47  ;;  %vm12250_vm8 = vcmp.lt.s32.totalorder %v2589_v25, 256 }
 0x1d3   : > { %v2762_v4 = vmul.f32 %v10524_v46, %v2726_v54  ;;  %v7107_v25 = vld [vmem:[#allocation14 + $0x28] sm:$0xfc] }
 0x1d4   : > { %v2694_v3 = vadd.f32 %v2662_v51, %v2594_v50 }
 0x1d6   : > { %v2794_v18 = vadd.f32 %v2762_v4, %v2694_v3 }
 0x23e   : > { %v8368_v31 = vpop.f32.mrf.mxu0 }
 0x23f   : > { %v2371_v35 = vadd.f32 %v8368_v31, %v10508_v30 }
 0x240   : > { %v2362_v38 = vpop.f32.mrf.mxu0 }
 0x241   : > { %v2491_v41 = vmax.f32 %v2371_v35, 0.0  ;;  %v2363_v42 = vadd.f32 %v10508_v30, %v2362_v38 }
 0x242   : > { %v8369_v43 = vpop.f32.mrf.mxu0 }
 0x243   : > { %2524 = vst.msk [vmem:[#allocation2 + $0x31] sm:$0xff] %vm1886_vm5, %v2491_v41  ;;  %v2489_v48 = vmax.f32 %v2363_v42, 0.0  ;;  %v2374_v49 = vadd.f32 %v8369_v43, %v10508_v30 }
 0x244   : > { %v2365_v53 = vpop.f32.mrf.mxu0 }
 0x245   : > { %2522 = vst.msk [vmem:[#allocation2 + $0x19] sm:$0xff] %vm1886_vm5, %v2489_v48  ;;  %v2492_v57 = vmax.f32 %v2374_v49, 0.0  ;;  %v2366_v58 = vadd.f32 %v10508_v30, %v2365_v53 }
 0x246   : > { %v8372_v60 = vpop.f32.mrf.mxu0 }
 0x247   : > { %2525 = vst.msk [vmem:[#allocation2 + $0x39] sm:$0xff] %vm1886_vm5, %v2492_v57  ;;  %v2490_v1 = vmax.f32 %v2366_v58, 0.0  ;;  %v2387_v2 = vadd.f32 %v8372_v60, %v10508_v30 }
 0x248   : > { %v2378_v5 = vpop.f32.mrf.mxu0 }
 0x249   : > { %2523 = vst.msk [vmem:[#allocation2 + $0x21] sm:$0xff] %vm1886_vm5, %v2490_v1  ;;  %v2495_v8 = vmax.f32 %v2387_v2, 0.0  ;;  %v2379_v9 = vadd.f32 %v10508_v30, %v2378_v5 }
 0x24a   : > { %v8373_v11 = vpop.f32.mrf.mxu0  ;;  %v3126_v14 = vld [vmem:[#allocation2 + $0x30] sm:$0xff] }
 0x24b   : > { %v3226_v15 = vld [vmem:[#allocation2 + $0x31] sm:$0xff]  ;;  %2528 = vst.msk [vmem:[#allocation2 + $0x61] sm:$0xff] %vm1886_vm5, %v2495_v8  ;;  %v2493_v16 = vmax.f32 %v2379_v9, 0.0  ;;  %v2390_v17 = vadd.f32 %v8373_v11, %v10508_v30  ;;  %v10571_v19 = vmul.f32 %v10549_v0, %v3126_v14  ;;  %v10577_v24 = vmul.f32 %v3126_v14, %v10555_v6 }
 0x24c   : > { %v2381_v20 = vpop.f32.mrf.mxu0  ;;  %v2825_v21 = vld [vmem:[#allocation2 + $0x18] sm:$0xff]  ;;  %v10574_v23 = vmul.f32 %v10558_v7, %v3226_v15  ;;  %v2597_v29 = vmul.f32 %v3126_v14, %v10511_v32  ;;  %v2665_v31 = vmul.f32 %v3226_v15, %v10514_v33  ;;  %v10588_v39 = vmul.f32 %v3226_v15, %v10563_v10 }
 0x24d   : > { %v2925_v22 = vld [vmem:[#allocation2 + $0x19] sm:$0xff]  ;;  %2526 = vst.msk [vmem:[#allocation2 + $0x49] sm:$0xff] %vm1886_vm5, %v2493_v16  ;;  %v2496_v35 = vmax.f32 %v2390_v17, 0.0  ;;  %v2382_v36 = vadd.f32 %v10508_v30, %v2381_v20  ;;  %v2861_v38 = vmul.f32 %v10555_v6, %v2825_v21  ;;  %v2595_v45 = vmul.f32 %v2825_v21, %v10511_v32 }
 0x24e   : > { %v8376_v40 = vpop.f32.mrf.mxu0  ;;  %v2961_v41 = vmul.f32 %v10563_v10, %v2925_v22  ;;  %v10591_v42 = vld [vmem:[#allocation2 + $0x38] sm:$0xff]  ;;  %v2663_v48 = vmul.f32 %v2925_v22, %v10514_v33  ;;  %v10599_v49 = vadd.f32 %v2665_v31, %v2597_v29 }
 0x24f   : > { %v10593_v43 = vld [vmem:[#allocation2 + $0x39] sm:$0xff]  ;;  %2529 = vst.msk [vmem:[#allocation2 + $0x69] sm:$0xff] %vm1886_vm5, %v2496_v35  ;;  %v2494_v50 = vmax.f32 %v2382_v36, 0.0  ;;  %v2403_v51 = vadd.f32 %v8376_v40, %v10508_v30  ;;  %v2893_v52 = vadd.f32 %v2861_v38, %v2793_v12  ;;  %v3163_v53 = vmul.f32 %v10549_v0, %v10591_v42 }
 0x250   : > { %v10595_v44 = vld [vmem:[#allocation2 + $0x32] sm:$0xff]  ;;  %v10605_v54 = vld [vmem:[#allocation2 + $0x3a] sm:$0xff]  ;;  %v2394_v57 = vpop.f32.mrf.mxu0  ;;  %v10609_v62 = vmul.f32 %v10558_v7, %v10593_v43  ;;  %v2695_v3 = vadd.f32 %v2663_v48, %v2595_v45  ;;  %v3026_v11 = vld [vmem:[#allocation2 + $0x22] sm:$0xff]  ;;  %v2864_v40 = vmul.f32 %v10591_v42, %v10555_v6 }
 0x251   : > { %v2826_v58 = vld [vmem:[#allocation2 + $0x20] sm:$0xff]  ;;  %v3362_v1 = vmul.f32 %v10584_v37, %v10595_v44  ;;  %v10615_v2 = vmul.f32 %v10584_v37, %v10605_v54  ;;  %2527 = vst.msk [vmem:[#allocation2 + $0x51] sm:$0xff] %vm1886_vm5, %v2494_v50  ;;  %v2499_v4 = vmax.f32 %v2403_v51, 0.0  ;;  %v2395_v5 = vadd.f32 %v10508_v30, %v2394_v57 }
 0x252   : > { %v2926_v60 = vld [vmem:[#allocation2 + $0x21] sm:$0xff]  ;;  %v2862_v8 = vmul.f32 %v10555_v6, %v2826_v58  ;;  %v8377_v12 = vpop.f32.mrf.mxu0  ;;  %v2993_v14 = vadd.f32 %v2961_v41, %v2893_v52  ;;  %v3062_v16 = vmul.f32 %v10566_v13, %v3026_v11  ;;  %v2596_v17 = vmul.f32 %v2826_v58, %v10511_v32 }
 0x253   : > { %v3025_v61 = vld [vmem:[#allocation2 + $0x1a] sm:$0xff]  ;;  %v2962_v9 = vmul.f32 %v10563_v10, %v2926_v60  ;;  %2532 = vst.msk [vmem:[#allocation2 + $0x91] sm:$0xff] %vm1886_vm5, %v2499_v4  ;;  %v2497_v20 = vmax.f32 %v2395_v5, 0.0  ;;  %v2406_v21 = vadd.f32 %v8377_v12, %v10508_v30  ;;  %v2664_v29 = vmul.f32 %v2926_v60, %v10514_v33 }
 0x254   : > { %v3061_v15 = vmul.f32 %v10566_v13, %v3025_v61  ;;  %v2894_v22 = vadd.f32 %v2862_v8, %v2794_v18  ;;  %v2397_v31 = vpop.f32.mrf.mxu0  ;;  %v2763_v36 = vmul.f32 %v3025_v61, %v10524_v46  ;;  %v2764_v38 = vmul.f32 %v3026_v11, %v10524_v46  ;;  %v10633_v51 = vld [vmem:[#allocation2 + $0x48] sm:$0xff] }
 0x255   : > { %2530 = vst.msk [vmem:[#allocation2 + $0x79] sm:$0xff] %vm1886_vm5, %v2497_v20  ;;  %v2500_v41 = vmax.f32 %v2406_v21, 0.0  ;;  %v2398_v45 = vadd.f32 %v10508_v30, %v2397_v31  ;;  %v2696_v50 = vadd.f32 %v2664_v29, %v2596_v17  ;;  %v2964_v58 = vmul.f32 %v10593_v43, %v10563_v10  ;;  %v10654_v20 = vld [vmem:[#allocation19] ss:$0 sm:$0xff] }
 0x256   : > { %v3093_v35 = vadd.f32 %v3061_v15, %v2993_v14  ;;  %v2994_v48 = vadd.f32 %v2962_v9, %v2894_v22  ;;  %v8380_v18 = vpop.f32.mrf.mxu0  ;;  %v2795_v57 = vadd.f32 %v2763_v36, %v2695_v3  ;;  %v3063_v60 = vmul.f32 %v10595_v44, %v10566_v13  ;;  %v10642_v9 = vld [vmem:[#allocation2 + $0x49] sm:$0xff] }
 0x257   : > { %2533 = vst.msk [vmem:[#allocation2 + $0x99] sm:$0xff] %vm1886_vm5, %v2500_v41  ;;  %v2498_v61 = vmax.f32 %v2398_v45, 0.0  ;;  %v2419_v4 = vadd.f32 %v8380_v18, %v10508_v30  ;;  %v2796_v8 = vadd.f32 %v2764_v38, %v2696_v50  ;;  %v3064_v3 = vmul.f32 %v10605_v54, %v10566_v13 }
 0x258   : > { %v3194_v52 = vadd.f32 %v10571_v19, %v3093_v35  ;;  %v3094_v5 = vadd.f32 %v3062_v16, %v2994_v48  ;;  %v2410_v11 = vpop.f32.mrf.mxu0  ;;  %v2895_v19 = vadd.f32 %v10577_v24, %v2795_v57  ;;  %v10648_v14 = vld [vmem:[#allocation2 + $0x50] sm:$0xff]  ;;  %v3164_v15 = vmul.f32 %v10549_v0, %v10633_v51 }
 0x259   : > { %2531 = vst.msk [vmem:[#allocation2 + $0x81] sm:$0xff] %vm1886_vm5, %v2498_v61  ;;  %v2503_v17 = vmax.f32 %v2419_v4, 0.0  ;;  %v2411_v16 = vadd.f32 %v10508_v30, %v2410_v11  ;;  %v2896_v22 = vadd.f32 %v2864_v40, %v2796_v8  ;;  %v10658_v24 = vld [vmem:[#allocation2 + $0x4a] sm:$0xff]  ;;  %v3165_v36 = vmul.f32 %v10549_v0, %v10648_v14  ;;  %v10668_v48 = vld [vmem:[#allocation2 + $0x52] sm:$0xff] }
 0x25a   : > { %v3294_v12 = vadd.f32 %v10574_v23, %v3194_v52  ;;  %v3195_v21 = vadd.f32 %v3163_v53, %v3094_v5  ;;  %v10656_v23 = vld [vmem:[#allocation2 + $0x51] sm:$0xff]  ;;  %v8381_v29 = vpop.f32.mrf.mxu0  ;;  %v2995_v35 = vadd.f32 %v10588_v39, %v2895_v19  ;;  %v3264_v38 = vmul.f32 %v10558_v7, %v10642_v9 }
 0x25b   : > { %2536 = vst.msk [vmem:[#allocation2 + $0xc1] sm:$0xff] %vm1886_vm5, %v2503_v17  ;;  %v2501_v41 = vmax.f32 %v2411_v16, 0.0  ;;  %v2422_v53 = vadd.f32 %v8381_v29, %v10508_v30  ;;  %v2996_v45 = vadd.f32 %v2964_v58, %v2896_v22  ;;  %v3265_v18 = vmul.f32 %v10558_v7, %v10656_v23 }
 0x25c   : > { %v3394_v31 = vadd.f32 %v3362_v1, %v3294_v12  ;;  %v3295_v40 = vadd.f32 %v10609_v62, %v3195_v21  ;;  %v2413_v50 = vpop.f32.mrf.mxu0  ;;  %v3095_v39 = vadd.f32 %v3063_v60, %v2995_v35  ;;  %v3364_v52 = vmul.f32 %v10584_v37, %v10658_v24 }
 0x25d   : > { %2534 = vst.msk [vmem:[#allocation2 + $0xa9] sm:$0xff] %vm1886_vm5, %v2501_v41  ;;  %v2504_v57 = vmax.f32 %v2422_v53, 0.0  ;;  %v2414_v61 = vadd.f32 %v10508_v30, %v2413_v50  ;;  %v3096_v58 = vadd.f32 %v3064_v3, %v2996_v45  ;;  %v3365_v60 = vmul.f32 %v10584_v37, %v10668_v48 }
 0x25e   : > { %v3432_v1 = vadd.f32 %v10654_v20, %v3394_v31  ;;  %v3395_v62 = vadd.f32 %v10615_v2, %v3295_v40  ;;  %v8384_v4 = vpop.f32.mrf.mxu0  ;;  %v3196_v8 = vadd.f32 %v3164_v15, %v3095_v39  ;;  %v2598_v11 = vmul.f32 %v10591_v42, %v10511_v32 }
 0x25f   : > { %2537 = vst.msk [vmem:[#allocation2 + $0xc9] sm:$0xff] %vm1886_vm5, %v2504_v57  ;;  %v2502_v12 = vmax.f32 %v2414_v61, 0.0  ;;  %v2435_v19 = vadd.f32 %v8384_v4, %v10508_v30  ;;  %v3197_v16 = vadd.f32 %v3165_v36, %v3096_v58  ;;  %v2666_v3 = vmul.f32 %v10593_v43, %v10514_v33  ;;  %v10707_v58 = vld [vmem:[#allocation2 + $0x60] sm:$0xff]  ;;  %v10709_v4 = vld [vmem:[#allocation2 + $0x68] sm:$0xff] }
 0x260   : > { %v3464_v5 = vmax.f32 %v3432_v1, 0.0  ;;  %v3433_v17 = vadd.f32 %v10654_v20, %v3395_v62  ;;  %v2426_v21 = vpop.f32.mrf.mxu0  ;;  %v3296_v2 = vadd.f32 %v3264_v38, %v3196_v8  ;;  %v2765_v15 = vmul.f32 %v10595_v44, %v10524_v46 }
 0x261   : > { %v2766_v22 = vmul.f32 %v10605_v54, %v10524_v46  ;;  %2535 = vst.msk [vmem:[#allocation2 + $0xb1] sm:$0xff] %vm1886_vm5, %v2502_v12  ;;  %v2507_v42 = vmax.f32 %v2435_v19, 0.0  ;;  %v2427_v29 = vadd.f32 %v10508_v30, %v2426_v21  ;;  %v3297_v35 = vadd.f32 %v3265_v18, %v3197_v16 }
 0x262   : > { %v3465_v31 = vmax.f32 %v3433_v17, 0.0  ;;  %v8385_v41 = vpop.f32.mrf.mxu0  ;;  %v3396_v36 = vadd.f32 %v3364_v52, %v3296_v2  ;;  %v2698_v53 = vadd.f32 %v2666_v3, %v2598_v11  ;;  %v2797_v38 = vadd.f32 %v2765_v15, %v10599_v49  ;;  %v10717_v2 = vld [vmem:[#allocation2 + $0x61] sm:$0xff]  ;;  %v10719_v3 = vld [vmem:[#allocation2 + $0x69] sm:$0xff] }
 0x263   : > { %v2865_v43 = vmul.f32 %v10633_v51, %v10555_v6  ;;  %2540 = vst.msk [vmem:[#allocation2 + $0xf1] sm:$0xff] %vm1886_vm5, %v2507_v42  ;;  %v2505_v44 = vmax.f32 %v2427_v29, 0.0  ;;  %v2438_v54 = vadd.f32 %v8385_v41, %v10508_v30  ;;  %v3397_v45 = vadd.f32 %v3365_v60, %v3297_v35  ;;  %v10721_v15 = vld [vmem:[#allocation2 + $0x62] sm:$0xff]  ;;  %v10729_v41 = vld [vmem:[#allocation2 + $0x6a] sm:$0xff] }
 0x264   : > { %v3496_v40 = vpack.c.bf16 %v3465_v31, %v3464_v5  ;;  %v2429_v50 = vpop.f32.mrf.mxu0  ;;  %v3434_v1 = vadd.f32 %v10654_v20, %v3396_v36  ;;  %v2798_v39 = vadd.f32 %v2766_v22, %v2698_v53  ;;  %v2866_v18 = vmul.f32 %v10648_v14, %v10555_v6 }
 0x265   : > { %v2897_v52 = vadd.f32 %v2865_v43, %v2797_v38  ;;  %2538 = vst.msk [vmem:[#allocation2 + $0xd9] sm:$0xff] %vm1886_vm5, %v2505_v44  ;;  %v2508_v49 = vmax.f32 %v2438_v54, 0.0  ;;  %v2430_v57 = vadd.f32 %v10508_v30, %v2429_v50  ;;  %v3435_v61 = vadd.f32 %v10654_v20, %v3397_v45 }
 0x266   : > { %8400 = vmatprep.mubr.msk.bf16.mxu1 %vm1886_vm5, %v3496_v40  ;;  %v2965_v62 = vmul.f32 %v10642_v9, %v10563_v10  ;;  %v8388_v5 = vpop.f32.mrf.mxu0  ;;  %v3466_v8 = vmax.f32 %v3434_v1, 0.0  ;;  %v2898_v60 = vadd.f32 %v2866_v18, %v2798_v39  ;;  %v2966_v11 = vmul.f32 %v10656_v23, %v10563_v10 }
 0x267   : > { %v3065_v12 = vmul.f32 %v10658_v24, %v10566_v13  ;;  %2541 = vst.msk [vmem:[#allocation2 + $0xf9] sm:$0xff] %vm1886_vm5, %v2508_v49  ;;  %v2506_v19 = vmax.f32 %v2430_v57, 0.0  ;;  %v2451_v17 = vadd.f32 %v8388_v5, %v10508_v30  ;;  %v3467_v16 = vmax.f32 %v3435_v61, 0.0 }
 0x268   : > { %v2997_v21 = vadd.f32 %v2965_v62, %v2897_v52  ;;  %v2442_v22 = vpop.f32.mrf.mxu0  ;;  %v2998_v42 = vadd.f32 %v2966_v11, %v2898_v60  ;;  %v3066_v29 = vmul.f32 %v10668_v48, %v10566_v13  ;;  %v3166_v31 = vmul.f32 %v10549_v0, %v10707_v58 }
 0x269   : > { %v3167_v35 = vmul.f32 %v10549_v0, %v10709_v4  ;;  %2539 = vst.msk [vmem:[#allocation2 + $0xe1] sm:$0xff] %vm1886_vm5, %v2506_v19  ;;  %v2511_v36 = vmax.f32 %v2451_v17, 0.0  ;;  %v2443_v53 = vadd.f32 %v10508_v30, %v2442_v22  ;;  %v3497_v38 = vpack.c.bf16 %v3467_v16, %v3466_v8 }
 0x26a   : > { %v3097_v43 = vadd.f32 %v3065_v12, %v2997_v21  ;;  %v8389_v44 = vpop.f32.mrf.mxu0  ;;  %v3098_v54 = vadd.f32 %v3066_v29, %v2998_v42  ;;  %v3266_v40 = vmul.f32 %v10558_v7, %v10717_v2  ;;  %v3267_v45 = vmul.f32 %v10558_v7, %v10719_v3 }
 0x26b   : > { %v3366_v50 = vmul.f32 %v10584_v37, %v10721_v15  ;;  %2544 = vst.msk [vmem:[#allocation2 + $0x121] sm:$0xff] %vm1886_vm5, %v2511_v36  ;;  %v2509_v1 = vmax.f32 %v2443_v53, 0.0  ;;  %8401 = vmatmul.mubr.msk.bf16.vlgmr.msra.gmra.mxu1 %vm1886_vm5, %v3497_v38  ;;  %v2454_v39 = vadd.f32 %v8389_v44, %v10508_v30  ;;  %v3367_v52 = vmul.f32 %v10584_v37, %v10729_v41 }
 0x26c   : > { %v3198_v18 = vadd.f32 %v3166_v31, %v3097_v43  ;;  %v2445_v49 = vpop.f32.mrf.mxu0  ;;  %v3199_v57 = vadd.f32 %v3167_v35, %v3098_v54  ;;  %v2599_v61 = vmul.f32 %v10633_v51, %v10511_v32  ;;  %v2600_v62 = vmul.f32 %v10648_v14, %v10511_v32 }
 0x26d   : > { %v2667_v5 = vmul.f32 %v10642_v9, %v10514_v33  ;;  %2542 = vst.msk [vmem:[#allocation2 + $0x109] sm:$0xff] %vm1886_vm5, %v2509_v1  ;;  %v2512_v8 = vmax.f32 %v2454_v39, 0.0  ;;  %v2446_v60 = vadd.f32 %v10508_v30, %v2445_v49  ;;  %v2668_v12 = vmul.f32 %v10656_v23, %v10514_v33 }
 0x26e   : > { %v3298_v11 = vadd.f32 %v3266_v40, %v3198_v18  ;;  %v3299_v19 = vadd.f32 %v3267_v45, %v3199_v57  ;;  %v8392_v17 = vpop.f32.mrf.mxu0  ;;  %v2767_v51 = vmul.f32 %v10658_v24, %v10524_v46  ;;  %v2768_v14 = vmul.f32 %v10668_v48, %v10524_v46  ;;  %v10770_v40 = vld [vmem:[#allocation2 + $0x78] sm:$0xff]  ;;  %v10772_v45 = vld [vmem:[#allocation2 + $0x80] sm:$0xff] }
 0x26f   : > { %v2699_v16 = vadd.f32 %v2667_v5, %v2599_v61  ;;  %2545 = vst.msk [vmem:[#allocation2 + $0x129] sm:$0xff] %vm1886_vm5, %v2512_v8  ;;  %v2510_v9 = vmax.f32 %v2446_v60, 0.0  ;;  %v2467_v22 = vadd.f32 %v8392_v17, %v10508_v30  ;;  %v2700_v42 = vadd.f32 %v2668_v12, %v2600_v62  ;;  %v10779_v57 = vld [vmem:[#allocation2 + $0x81] sm:$0xff] }
 0x270   : > { %v3398_v21 = vadd.f32 %v3366_v50, %v3298_v11  ;;  %v3399_v29 = vadd.f32 %v3367_v52, %v3299_v19  ;;  %v2458_v31 = vpop.f32.mrf.mxu0  ;;  %v2867_v23 = vmul.f32 %v10707_v58, %v10555_v6  ;;  %v2868_v36 = vmul.f32 %v10709_v4, %v10555_v6  ;;  %v10774_v50 = vld [vmem:[#allocation2 + $0x79] sm:$0xff] }
 0x271   : > { %v2799_v35 = vadd.f32 %v2767_v51, %v2699_v16  ;;  %2543 = vst.msk [vmem:[#allocation2 + $0x111] sm:$0xff] %vm1886_vm5, %v2510_v9  ;;  %v2515_v48 = vmax.f32 %v2467_v22, 0.0  ;;  %v2459_v53 = vadd.f32 %v10508_v30, %v2458_v31  ;;  %v2800_v38 = vadd.f32 %v2768_v14, %v2700_v42  ;;  %v10781_v61 = vld [vmem:[#allocation2 + $0x7a] sm:$0xff] }
 0x272   : > { %v3436_v24 = vadd.f32 %v10654_v20, %v3398_v21  ;;  %v3437_v43 = vadd.f32 %v10654_v20, %v3399_v29  ;;  %v2967_v54 = vmul.f32 %v10717_v2, %v10563_v10  ;;  %v8393_v1 = vpop.f32.mrf.mxu0  ;;  %v2968_v49 = vmul.f32 %v10719_v3, %v10563_v10 }
 0x273   : > { %v2899_v44 = vadd.f32 %v2867_v23, %v2799_v35  ;;  %2548 = vst.msk [vmem:[#allocation2 + $0x151] sm:$0xff] %vm1886_vm5, %v2515_v48  ;;  %v2513_v18 = vmax.f32 %v2459_v53, 0.0  ;;  %v2900_v52 = vadd.f32 %v2868_v36, %v2800_v38  ;;  %v3067_v8 = vmul.f32 %v10721_v15, %v10566_v13  ;;  %v10803_v23 = vld [vmem:[#allocation2 + $0x82] sm:$0xff] }
 0x274   : > { %v3468_v39 = vmax.f32 %v3436_v24, 0.0  ;;  %v3469_v62 = vmax.f32 %v3437_v43, 0.0  ;;  %v3068_v60 = vmul.f32 %v10729_v41, %v10566_v13  ;;  %v2461_v11 = vpop.f32.mrf.mxu0  ;;  %v3168_v19 = vmul.f32 %v10549_v0, %v10770_v40 }
 0x275   : > { %v2999_v5 = vadd.f32 %v2967_v54, %v2899_v44  ;;  %2546 = vst.msk [vmem:[#allocation2 + $0x139] sm:$0xff] %vm1886_vm5, %v2513_v18  ;;  %v3000_v12 = vadd.f32 %v2968_v49, %v2900_v52  ;;  %v3169_v17 = vmul.f32 %v10549_v0, %v10772_v45  ;;  %v3268_v16 = vmul.f32 %v10558_v7, %v10774_v50  ;;  %v10823_v52 = vld [vmem:[#allocation2 + $0x90] sm:$0xff] }
 0x276   : > { %v3498_v51 = vpack.c.bf16 %v3469_v62, %v3468_v39  ;;  %v3269_v9 = vmul.f32 %v10558_v7, %v10779_v57  ;;  %v3368_v21 = vmul.f32 %v10584_v37, %v10781_v61  ;;  %v2470_v42 = vadd.f32 %v8393_v1, %v10508_v30  ;;  %v8396_v18 = vpop.f32.mrf.mxu0 }
 0x277   : > { %v3099_v14 = vadd.f32 %v3067_v8, %v2999_v5  ;;  %v3100_v22 = vadd.f32 %v3068_v60, %v3000_v12  ;;  %v2462_v29 = vadd.f32 %v10508_v30, %v2461_v11  ;;  %v2601_v31 = vmul.f32 %v10707_v58, %v10511_v32  ;;  %v10827_v8 = vld [vmem:[#allocation2 + $0x98] sm:$0xff] }
 0x278   : > { %8404 = vmatprep.mubr.msk.bf16.mxu1 %vm1886_vm5, %v3498_v51  ;;  %v2602_v36 = vmul.f32 %v10709_v4, %v10511_v32  ;;  %v2669_v24 = vmul.f32 %v10717_v2, %v10514_v33  ;;  %v2670_v48 = vmul.f32 %v10719_v3, %v10514_v33  ;;  %v2516_v38 = vmax.f32 %v2470_v42, 0.0  ;;  %v10829_v60 = vld [vmem:[#allocation2 + $0x91] sm:$0xff]  ;;  %v10831_v11 = vld [vmem:[#allocation2 + $0x99] sm:$0xff]  ;;  %v2474_v42 = vpop.f32.mrf.mxu0 }
 0x279   : > { %v3200_v35 = vadd.f32 %v3168_v19, %v3099_v14  ;;  %v3201_v53 = vadd.f32 %v3169_v17, %v3100_v22  ;;  %v2514_v43 = vmax.f32 %v2462_v29, 0.0  ;;  %v2769_v58 = vmul.f32 %v10721_v15, %v10524_v46  ;;  %v10839_v51 = vld [vmem:[#allocation2 + $0x92] sm:$0xff] }
 0x27a   : > { %v2701_v54 = vadd.f32 %v2669_v24, %v2601_v31  ;;  %v2702_v1 = vadd.f32 %v2670_v48, %v2602_v36  ;;  %v2770_v39 = vmul.f32 %v10729_v41, %v10524_v46  ;;  %v3369_v2 = vmul.f32 %v10584_v37, %v10803_v23  ;;  %2549 = vst.msk [vmem:[#allocation2 + $0x159] sm:$0xff] %vm1886_vm5, %v2516_v38 }
 0x27b   : > { %v3300_v44 = vadd.f32 %v3268_v16, %v3200_v35  ;;  %v3301_v4 = vadd.f32 %v3269_v9, %v3201_v53  ;;  %2547 = vst.msk [vmem:[#allocation2 + $0x141] sm:$0xff] %vm1886_vm5, %v2514_v43  ;;  %v2869_v3 = vmul.f32 %v10770_v40, %v10555_v6  ;;  %v2870_v15 = vmul.f32 %v10772_v45, %v10555_v6 }
 0x27c   : > { %v2801_v62 = vadd.f32 %v2769_v58, %v2701_v54  ;;  %v2802_v41 = vadd.f32 %v2770_v39, %v2702_v1  ;;  %v2969_v5 = vmul.f32 %v10774_v50, %v10563_v10  ;;  %v2970_v19 = vmul.f32 %v10779_v57, %v10563_v10 }
 0x27d   : > { %v3400_v49 = vadd.f32 %v3368_v21, %v3300_v44  ;;  %v3401_v12 = vadd.f32 %v3369_v2, %v3301_v4  ;;  %v3069_v17 = vmul.f32 %v10781_v61, %v10566_v13  ;;  %v3070_v16 = vmul.f32 %v10803_v23, %v10566_v13  ;;  %v10857_v4 = vld [vmem:[#allocation2 + $0x9a] sm:$0xff] }
 0x27e   : > { %v2901_v9 = vadd.f32 %v2869_v3, %v2801_v62  ;;  %v2902_v21 = vadd.f32 %v2870_v15, %v2802_v41  ;;  %v3170_v22 = vmul.f32 %v10549_v0, %v10823_v52  ;;  %v3171_v31 = vmul.f32 %v10549_v0, %v10827_v8 }
 0x27f   : > { %v3438_v14 = vadd.f32 %v10654_v20, %v3400_v49  ;;  %v3439_v29 = vadd.f32 %v10654_v20, %v3401_v12  ;;  %v3270_v35 = vmul.f32 %v10558_v7, %v10829_v60  ;;  %v3271_v36 = vmul.f32 %v10558_v7, %v10831_v11 }
 0x280   : > { %v3001_v48 = vadd.f32 %v2969_v5, %v2901_v9  ;;  %v3002_v53 = vadd.f32 %v2970_v19, %v2902_v21  ;;  %v3370_v38 = vmul.f32 %v10584_v37, %v10839_v51  ;;  %v2483_v58 = vadd.f32 %v8396_v18, %v10508_v30  ;;  %v8397_v19 = vpop.f32.mrf.mxu0  ;;  %v10878_v21 = vld [vmem:[#allocation2 + $0xa8] sm:$0xff] }
 0x281   : > { %v3470_v24 = vmax.f32 %v3438_v14, 0.0  ;;  %v3471_v43 = vmax.f32 %v3439_v29, 0.0  ;;  %v2475_v44 = vadd.f32 %v10508_v30, %v2474_v42  ;;  %v2603_v54 = vmul.f32 %v10770_v40, %v10511_v32  ;;  %v10882_v42 = vld [vmem:[#allocation2 + $0xa9] sm:$0xff] }
 0x282   : > { %v3101_v1 = vadd.f32 %v3069_v17, %v3001_v48  ;;  %v3102_v39 = vadd.f32 %v3070_v16, %v3002_v53  ;;  %v2604_v2 = vmul.f32 %v10772_v45, %v10511_v32  ;;  %v2671_v3 = vmul.f32 %v10774_v50, %v10514_v33 }
 0x283   : > { %v3499_v15 = vpack.c.bf16 %v3471_v43, %v3470_v24  ;;  %v2519_v49 = vmax.f32 %v2483_v58, 0.0  ;;  %v2517_v62 = vmax.f32 %v2475_v44, 0.0  ;;  %v2672_v18 = vmul.f32 %v10779_v57, %v10514_v33  ;;  %v10894_v58 = vld [vmem:[#allocation2 + $0xaa] sm:$0xff]  ;;  %v2477_v44 = vpop.f32.mrf.mxu0 }
 0x284   : > { %v3202_v41 = vadd.f32 %v3170_v22, %v3101_v1  ;;  %v3203_v5 = vadd.f32 %v3171_v31, %v3102_v39  ;;  %v2703_v12 = vadd.f32 %v2671_v3, %v2603_v54  ;;  %v2771_v40 = vmul.f32 %v10781_v61, %v10524_v46  ;;  %v10880_v22 = vld [vmem:[#allocation2 + $0xb0] sm:$0xff] }
 0x285   : > { %8405 = vmatmul.mubr.msk.bf16.gmra.mxu1 %vm1886_vm5, %v3499_v15  ;;  %v3371_v45 = vmul.f32 %v10584_v37, %v10857_v4  ;;  %2552 = vst.msk [vmem:[#allocation2 + $0x181] sm:$0xff] %vm1886_vm5, %v2519_v49  ;;  %2550 = vst.msk [vmem:[#allocation2 + $0x169] sm:$0xff] %vm1886_vm5, %v2517_v62  ;;  %v2704_v50 = vadd.f32 %v2672_v18, %v2604_v2  ;;  %v2772_v57 = vmul.f32 %v10803_v23, %v10524_v46 }
 0x286   : > { %v2871_v17 = vmul.f32 %v10823_v52, %v10555_v6  ;;  %v3302_v16 = vadd.f32 %v3270_v35, %v3202_v41  ;;  %v3303_v14 = vadd.f32 %v3271_v36, %v3203_v5  ;;  %v2803_v61 = vadd.f32 %v2771_v40, %v2703_v12  ;;  %v10890_v36 = vld [vmem:[#allocation2 + $0xb1] sm:$0xff] }
 0x287   : > { %v2872_v9 = vmul.f32 %v10827_v8, %v10555_v6  ;;  %v2804_v29 = vadd.f32 %v2772_v57, %v2704_v50  ;;  %v2971_v31 = vmul.f32 %v10829_v60, %v10563_v10  ;;  %v2972_v23 = vmul.f32 %v10831_v11, %v10563_v10 }
 0x288   : > { %v3071_v35 = vmul.f32 %v10839_v51, %v10566_v13  ;;  %v3402_v24 = vadd.f32 %v3370_v38, %v3302_v16  ;;  %v3403_v48 = vadd.f32 %v3371_v45, %v3303_v14  ;;  %v2903_v53 = vadd.f32 %v2871_v17, %v2803_v61 }
 0x289   : > { %v3072_v43 = vmul.f32 %v10857_v4, %v10566_v13  ;;  %v2904_v54 = vadd.f32 %v2872_v9, %v2804_v29  ;;  %v3172_v1 = vmul.f32 %v10549_v0, %v10878_v21  ;;  %v3173_v39 = vmul.f32 %v10549_v0, %v10880_v22  ;;  %v3337_v29 = vld [vmem:[#allocation2 + $0xb2] sm:$0xff] }
 0x28a   : > { %v3272_v2 = vmul.f32 %v10558_v7, %v10882_v42  ;;  %v3440_v38 = vadd.f32 %v10654_v20, %v3402_v24  ;;  %v3441_v3 = vadd.f32 %v10654_v20, %v3403_v48  ;;  %v3003_v15 = vadd.f32 %v2971_v31, %v2903_v53  ;;  %v10929_v48 = vld [vmem:[#allocation2 + $0xc0] sm:$0xff] }
 0x28b   : > { %v3273_v49 = vmul.f32 %v10558_v7, %v10890_v36  ;;  %v3004_v62 = vadd.f32 %v2972_v23, %v2904_v54  ;;  %v3372_v18 = vmul.f32 %v10584_v37, %v10894_v58  ;;  %v2486_v41 = vadd.f32 %v8397_v19, %v10508_v30 }
 0x28c   : > { %v2478_v5 = vadd.f32 %v10508_v30, %v2477_v44  ;;  %v3472_v12 = vmax.f32 %v3440_v38, 0.0  ;;  %v3473_v40 = vmax.f32 %v3441_v3, 0.0  ;;  %v3103_v45 = vadd.f32 %v3071_v35, %v3003_v15  ;;  %v10940_v38 = vld [vmem:[#allocation2 + $0xc9] sm:$0xff] }
 0x28d   : > { %v2605_v50 = vmul.f32 %v10823_v52, %v10511_v32  ;;  %v3104_v57 = vadd.f32 %v3072_v43, %v3004_v62  ;;  %v2520_v17 = vmax.f32 %v2486_v41, 0.0  ;;  %v2606_v14 = vmul.f32 %v10827_v8, %v10511_v32 }
 0x28e   : > { %v2518_v16 = vmax.f32 %v2478_v5, 0.0  ;;  %v3500_v61 = vpack.c.bf16 %v3473_v40, %v3472_v12  ;;  %v3204_v9 = vadd.f32 %v3172_v1, %v3103_v45  ;;  %v2673_v19 = vmul.f32 %v10829_v60, %v10514_v33 }
 0x28f   : > { %v2674_v30 = vmul.f32 %v10831_v11, %v10514_v33  ;;  %v3205_v31 = vadd.f32 %v3173_v39, %v3104_v57  ;;  %2553 = vst.msk [vmem:[#allocation2 + $0x189] sm:$0xff] %vm1886_vm5, %v2520_v17  ;;  %v2773_v52 = vmul.f32 %v10839_v51, %v10524_v46  ;;  %v2774_v8 = vmul.f32 %v10857_v4, %v10524_v46  ;;  %v10934_v4 = vld [vmem:[#allocation2 + $0xc8] sm:$0xff] }
 0x290   : > { %2551 = vst.msk [vmem:[#allocation2 + $0x171] sm:$0xff] %vm1886_vm5, %v2518_v16  ;;  %v2873_v23 = vmul.f32 %v10878_v21, %v10555_v6  ;;  %8408 = vmatprep.mubr.msk.bf16.mxu1 %vm1886_vm5, %v3500_v61  ;;  %v3304_v60 = vadd.f32 %v3272_v2, %v3204_v9  ;;  %v2705_v35 = vadd.f32 %v2673_v19, %v2605_v50  ;;  %v10938_v2 = vld [vmem:[#allocation2 + $0xc1] sm:$0xff]  ;;  %v3339_v17 = vld [vmem:[#allocation2 + $0xca] sm:$0xff] }
 0x291   : > { %v2706_v24 = vadd.f32 %v2674_v30, %v2606_v14  ;;  %v2874_v11 = vmul.f32 %v10880_v22, %v10555_v6  ;;  %v3305_v53 = vadd.f32 %v3273_v49, %v3205_v31  ;;  %v3373_v43 = vmul.f32 %v10584_v37, %v3337_v29  ;;  %v3338_v57 = vld [vmem:[#allocation2 + $0xc2] sm:$0xff] }
 0x292   : > { %v2973_v51 = vmul.f32 %v10882_v42, %v10563_v10  ;;  %v3404_v44 = vadd.f32 %v3372_v18, %v3304_v60  ;;  %v2805_v54 = vadd.f32 %v2773_v52, %v2705_v35  ;;  %v2974_v39 = vmul.f32 %v10890_v36, %v10563_v10 }
 0x293   : > { %v2806_v1 = vadd.f32 %v2774_v8, %v2706_v24  ;;  %v3405_v3 = vadd.f32 %v3373_v43, %v3305_v53  ;;  %v3073_v15 = vmul.f32 %v10894_v58, %v10566_v13  ;;  %v3074_v49 = vmul.f32 %v3337_v29, %v10566_v13 }
 0x294   : > { %v3174_v62 = vmul.f32 %v10549_v0, %v10929_v48  ;;  %v3442_v18 = vadd.f32 %v10654_v20, %v3404_v44  ;;  %v2905_v41 = vadd.f32 %v2873_v23, %v2805_v54  ;;  %v3175_v12 = vmul.f32 %v10549_v0, %v10934_v4  ;;  %v10974_v44 = vld [vmem:[#allocation2 + $0xe0] sm:$0xff] }
 0x295   : > { %v2906_v5 = vadd.f32 %v2874_v11, %v2806_v1  ;;  %v3443_v40 = vadd.f32 %v10654_v20, %v3405_v3  ;;  %v3274_v45 = vmul.f32 %v10558_v7, %v10938_v2  ;;  %v3275_v50 = vmul.f32 %v10558_v7, %v10940_v38  ;;  %v10981_v3 = vld [vmem:[#allocation2 + $0xd9] sm:$0xff] }
 0x296   : > { %v2607_v16 = vmul.f32 %v10878_v21, %v10511_v32  ;;  %v3474_v14 = vmax.f32 %v3442_v18, 0.0  ;;  %v3005_v61 = vadd.f32 %v2973_v51, %v2905_v41  ;;  %v2608_v19 = vmul.f32 %v10880_v22, %v10511_v32 }
 0x297   : > { %v3006_v9 = vadd.f32 %v2974_v39, %v2906_v5  ;;  %v3475_v30 = vmax.f32 %v3443_v40, 0.0  ;;  %v2675_v31 = vmul.f32 %v10882_v42, %v10514_v33  ;;  %v2676_v52 = vmul.f32 %v10890_v36, %v10514_v33 }
 0x298   : > { %v2775_v8 = vmul.f32 %v10894_v58, %v10524_v46  ;;  %v3105_v23 = vadd.f32 %v3073_v15, %v3005_v61  ;;  %v3374_v21 = vmul.f32 %v10584_v37, %v3338_v57  ;;  %v3375_v35 = vmul.f32 %v10584_v37, %v3339_v17  ;;  %v10972_v58 = vld [vmem:[#allocation2 + $0xd8] sm:$0xff]  ;;  %v10983_v15 = vld [vmem:[#allocation2 + $0xe1] sm:$0xff] }
 0x299   : > { %v3106_v60 = vadd.f32 %v3074_v49, %v3006_v9  ;;  %v3501_v24 = vpack.c.bf16 %v3475_v30, %v3474_v14  ;;  %v2707_v11 = vadd.f32 %v2675_v31, %v2607_v16  ;;  %v2708_v53 = vadd.f32 %v2676_v52, %v2608_v19 }
 0x29a   : > { %v2776_v22 = vmul.f32 %v3337_v29, %v10524_v46  ;;  %v3206_v43 = vadd.f32 %v3174_v62, %v3105_v23  ;;  %v2875_v42 = vmul.f32 %v10929_v48, %v10555_v6  ;;  %v2876_v36 = vmul.f32 %v10934_v4, %v10555_v6 }
 0x29b   : > { %v3207_v51 = vadd.f32 %v3175_v12, %v3106_v60  ;;  %8409 = vmatmul.mubr.msk.bf16.gmra.mxu1 %vm1886_vm5, %v3501_v24  ;;  %v2807_v54 = vadd.f32 %v2775_v8, %v2707_v11  ;;  %v2975_v39 = vmul.f32 %v10938_v2, %v10563_v10  ;;  %v2976_v29 = vmul.f32 %v10940_v38, %v10563_v10  ;;  %v3340_v24 = vld [vmem:[#allocation2 + $0xda] sm:$0xff] }
 0x29c   : > { %v2808_v1 = vadd.f32 %v2776_v22, %v2708_v53  ;;  %v3306_v49 = vadd.f32 %v3274_v45, %v3206_v43  ;;  %v3075_v18 = vmul.f32 %v3338_v57, %v10566_v13  ;;  %v3076_v41 = vmul.f32 %v3339_v17, %v10566_v13 }
 0x29d   : > { %v3307_v62 = vadd.f32 %v3275_v50, %v3207_v51  ;;  %v2907_v5 = vadd.f32 %v2875_v42, %v2807_v54  ;;  %v3176_v40 = vmul.f32 %v10549_v0, %v10972_v58  ;;  %v3177_v16 = vmul.f32 %v10549_v0, %v10974_v44 }
 0x29e   : > { %v2908_v12 = vadd.f32 %v2876_v36, %v2808_v1  ;;  %v3406_v14 = vadd.f32 %v3374_v21, %v3306_v49  ;;  %v3276_v9 = vmul.f32 %v10558_v7, %v10981_v3  ;;  %v3277_v45 = vmul.f32 %v10558_v7, %v10983_v15 }
 0x29f   : > { %v3407_v61 = vadd.f32 %v3375_v35, %v3307_v62  ;;  %v3007_v50 = vadd.f32 %v2975_v39, %v2907_v5  ;;  %v2609_v30 = vmul.f32 %v10929_v48, %v10511_v32  ;;  %v2610_v31 = vmul.f32 %v10934_v4, %v10511_v32  ;;  %v3341_v4 = vld [vmem:[#allocation2 + $0xe2] sm:$0xff]  ;;  %v11019_v5 = vld [vmem:[#allocation2 + $0xf1] sm:$0xff] }
 0x2a0   : > { %v3008_v19 = vadd.f32 %v2976_v29, %v2908_v12  ;;  %v3444_v52 = vadd.f32 %v10654_v20, %v3406_v14  ;;  %v2677_v23 = vmul.f32 %v10938_v2, %v10514_v33  ;;  %v2678_v60 = vmul.f32 %v10940_v38, %v10514_v33  ;;  %v11012_v29 = vld [vmem:[#allocation2 + $0xf0] sm:$0xff] }
 0x2a1   : > { %v3445_v8 = vadd.f32 %v10654_v20, %v3407_v61  ;;  %v3107_v21 = vadd.f32 %v3075_v18, %v3007_v50  ;;  %v2777_v11 = vmul.f32 %v3338_v57, %v10524_v46  ;;  %v2778_v48 = vmul.f32 %v3339_v17, %v10524_v46  ;;  %v11025_v61 = vld [vmem:[#allocation2 + $0xf9] sm:$0xff] }
 0x2a2   : > { %v3108_v35 = vadd.f32 %v3076_v41, %v3008_v19  ;;  %v3476_v53 = vmax.f32 %v3444_v52, 0.0  ;;  %v2709_v43 = vadd.f32 %v2677_v23, %v2609_v30  ;;  %v2710_v51 = vadd.f32 %v2678_v60, %v2610_v31  ;;  %v11017_v41 = vld [vmem:[#allocation2 + $0xf8] sm:$0xff] }
 0x2a3   : > { %v3477_v22 = vmax.f32 %v3445_v8, 0.0  ;;  %v3208_v42 = vadd.f32 %v3176_v40, %v3107_v21  ;;  %v2877_v2 = vmul.f32 %v10972_v58, %v10555_v6  ;;  %v2878_v38 = vmul.f32 %v10974_v44, %v10555_v6 }
 0x2a4   : > { %v3209_v36 = vadd.f32 %v3177_v16, %v3108_v35  ;;  %v3376_v1 = vmul.f32 %v10584_v37, %v3340_v24  ;;  %v2809_v39 = vadd.f32 %v2777_v11, %v2709_v43  ;;  %v2810_v57 = vadd.f32 %v2778_v48, %v2710_v51  ;;  %v3342_v35 = vld [vmem:[#allocation2 + $0xf2] sm:$0xff] }
 0x2a5   : > { %v3502_v54 = vpack.c.bf16 %v3477_v22, %v3476_v53  ;;  %v3308_v17 = vadd.f32 %v3276_v9, %v3208_v42  ;;  %v3377_v62 = vmul.f32 %v10584_v37, %v3341_v4  ;;  %v2977_v18 = vmul.f32 %v10981_v3, %v10563_v10  ;;  %v3343_v22 = vld [vmem:[#allocation2 + $0xfa] sm:$0xff] }
 0x2a6   : > { %v3309_v49 = vadd.f32 %v3277_v45, %v3209_v36  ;;  %v2909_v12 = vadd.f32 %v2877_v2, %v2809_v39  ;;  %v2910_v40 = vadd.f32 %v2878_v38, %v2810_v57  ;;  %v2978_v16 = vmul.f32 %v10983_v15, %v10563_v10 }
 0x2a7   : > { %8412 = vmatprep.mubr.msk.bf16.mxu1 %vm1886_vm5, %v3502_v54  ;;  %v3077_v14 = vmul.f32 %v3340_v24, %v10566_v13  ;;  %v3408_v9 = vadd.f32 %v3376_v1, %v3308_v17  ;;  %v3078_v50 = vmul.f32 %v3341_v4, %v10566_v13  ;;  %v3178_v19 = vmul.f32 %v10549_v0, %v11012_v29 }
 0x2a8   : > { %v3409_v45 = vadd.f32 %v3377_v62, %v3309_v49  ;;  %v3009_v30 = vadd.f32 %v2977_v18, %v2909_v12  ;;  %v3010_v31 = vadd.f32 %v2978_v16, %v2910_v40  ;;  %v3179_v52 = vmul.f32 %v10549_v0, %v11017_v41 }
 0x2a9   : > { %v3278_v8 = vmul.f32 %v10558_v7, %v11019_v5  ;;  %v3446_v23 = vadd.f32 %v10654_v20, %v3408_v9  ;;  %v3279_v21 = vmul.f32 %v10558_v7, %v11025_v61  ;;  %v2611_v11 = vmul.f32 %v10972_v58, %v10511_v32 }
 0x2aa   : > { %v3447_v60 = vadd.f32 %v10654_v20, %v3409_v45  ;;  %v3109_v48 = vadd.f32 %v3077_v14, %v3009_v30  ;;  %v3110_v53 = vadd.f32 %v3078_v50, %v3010_v31  ;;  %v2612_v43 = vmul.f32 %v10974_v44, %v10511_v32  ;;  %v11063_v14 = vld [vmem:[#allocation2 + $0x109] sm:$0xff]  ;;  %v11066_v30 = vld [vmem:[#allocation2 + $0x111] sm:$0xff] }
 0x2ab   : > { %v2679_v51 = vmul.f32 %v10981_v3, %v10514_v33  ;;  %v3478_v42 = vmax.f32 %v3446_v23, 0.0  ;;  %v2680_v2 = vmul.f32 %v10983_v15, %v10514_v33  ;;  %v2779_v38 = vmul.f32 %v3340_v24, %v10524_v46  ;;  %v11052_v15 = vld [vmem:[#allocation2 + $0x108] sm:$0xff]  ;;  %v11054_v24 = vld [vmem:[#allocation2 + $0x110] sm:$0xff] }
 0x2ac   : > { %v3479_v36 = vmax.f32 %v3447_v60, 0.0  ;;  %v3210_v54 = vadd.f32 %v3178_v19, %v3109_v48  ;;  %v3211_v1 = vadd.f32 %v3179_v52, %v3110_v53  ;;  %v3378_v58 = vmul.f32 %v10584_v37, %v3342_v35  ;;  %v3344_v53 = vld [vmem:[#allocation2 + $0x10a] sm:$0xff] }
 0x2ad   : > { %v2711_v39 = vadd.f32 %v2679_v51, %v2611_v11  ;;  %v3379_v17 = vmul.f32 %v10584_v37, %v3343_v22  ;;  %v2712_v49 = vadd.f32 %v2680_v2, %v2612_v43  ;;  %v2780_v44 = vmul.f32 %v3341_v4, %v10524_v46 }
 0x2ae   : > { %v3503_v57 = vpack.c.bf16 %v3479_v36, %v3478_v42  ;;  %v3310_v62 = vadd.f32 %v3278_v8, %v3210_v54  ;;  %v3311_v3 = vadd.f32 %v3279_v21, %v3211_v1  ;;  %v2879_v12 = vmul.f32 %v11012_v29, %v10555_v6 }
 0x2af   : > { %v2811_v18 = vadd.f32 %v2779_v38, %v2711_v39  ;;  %v2812_v40 = vadd.f32 %v2780_v44, %v2712_v49  ;;  %v2880_v16 = vmul.f32 %v11017_v41, %v10555_v6  ;;  %v2979_v37 = vmul.f32 %v11019_v5, %v10563_v10  ;;  %v3345_v39 = vld [vmem:[#allocation2 + $0x112] sm:$0xff] }
 0x2b0   : > { %8413 = vmatmul.mubr.msk.bf16.gmra.mxu1 %vm1886_vm5, %v3503_v57  ;;  %v2980_v4 = vmul.f32 %v11025_v61, %v10563_v10  ;;  %v3410_v9 = vadd.f32 %v3378_v58, %v3310_v62  ;;  %v3411_v45 = vadd.f32 %v3379_v17, %v3311_v3  ;;  %v3079_v19 = vmul.f32 %v3342_v35, %v10566_v13  ;;  %v11086_v57 = vld [vmem:[%s12501_s22 + $0x8] ss:$0 sm:$0xff] }
 0x2b1   : > { %v2911_v50 = vadd.f32 %v2879_v12, %v2811_v18  ;;  %v2912_v31 = vadd.f32 %v2880_v16, %v2812_v40  ;;  %v3080_v52 = vmul.f32 %v3343_v22, %v10566_v13  ;;  %v3180_v8 = vmul.f32 %v10549_v0, %v11052_v15  ;;  %v11097_v16 = vld [vmem:[#allocation2 + $0x120] sm:$0xff] }
 0x2b2   : > { %v3181_v23 = vmul.f32 %v10549_v0, %v11054_v24  ;;  %v3448_v60 = vadd.f32 %v10654_v20, %v3410_v9  ;;  %v3449_v21 = vadd.f32 %v10654_v20, %v3411_v45  ;;  %v3280_v48 = vmul.f32 %v10558_v7, %v11063_v14  ;;  %v11103_v9 = vld [vmem:[#allocation2 + $0x128] sm:$0xff] }
 0x2b3   : > { %v3011_v11 = vadd.f32 %v2979_v37, %v2911_v50  ;;  %v3012_v43 = vadd.f32 %v2980_v4, %v2912_v31  ;;  %v3281_v51 = vmul.f32 %v10558_v7, %v11066_v30  ;;  %v2613_v42 = vmul.f32 %v11012_v29, %v10511_v32  ;;  %v11105_v45 = vld [vmem:[#allocation2 + $0x121] sm:$0xff] }
 0x2b4   : > { %v2614_v36 = vmul.f32 %v11017_v41, %v10511_v32  ;;  %v3480_v2 = vmax.f32 %v3448_v60, 0.0  ;;  %v3481_v38 = vmax.f32 %v3449_v21, 0.0  ;;  %v2681_v1 = vmul.f32 %v11019_v5, %v10514_v33 }
 0x2b5   : > { %v3111_v54 = vadd.f32 %v3079_v19, %v3011_v11  ;;  %v3112_v58 = vadd.f32 %v3080_v52, %v3012_v43  ;;  %v3380_v17 = vmul.f32 %v11086_v57, %v3344_v53  ;;  %v2682_v49 = vmul.f32 %v11025_v61, %v10514_v33  ;;  %v11110_v52 = vld [vmem:[#allocation2 + $0x129] sm:$0xff] }
 0x2b6   : > { %v2781_v29 = vmul.f32 %v3342_v35, %v10524_v46  ;;  %v3504_v44 = vpack.c.bf16 %v3481_v38, %v3480_v2  ;;  %v2713_v41 = vadd.f32 %v2681_v1, %v2613_v42  ;;  %v2881_v3 = vmul.f32 %v11052_v15, %v10555_v6  ;;  %v3346_v42 = vld [vmem:[#allocation2 + $0x122] sm:$0xff] }
 0x2b7   : > { %v3212_v62 = vadd.f32 %v3180_v8, %v3111_v54  ;;  %v3213_v18 = vadd.f32 %v3181_v23, %v3112_v58  ;;  %v2714_v12 = vadd.f32 %v2682_v49, %v2614_v36  ;;  %v2782_v5 = vmul.f32 %v3343_v22, %v10524_v46 }
 0x2b8   : > { %v2882_v40 = vmul.f32 %v11054_v24, %v10555_v6  ;;  %8416 = vmatprep.mubr.msk.bf16.mxu1 %vm1886_vm5, %v3504_v44  ;;  %v3381_v35 = vmul.f32 %v11086_v57, %v3345_v39  ;;  %v2813_v37 = vadd.f32 %v2781_v29, %v2713_v41  ;;  %v2981_v4 = vmul.f32 %v11063_v14, %v10563_v10 }
 0x2b9   : > { %v3312_v61 = vadd.f32 %v3280_v48, %v3212_v62  ;;  %v3313_v50 = vadd.f32 %v3281_v51, %v3213_v18  ;;  %v2814_v22 = vadd.f32 %v2782_v5, %v2714_v12  ;;  %v2982_v19 = vmul.f32 %v11066_v30, %v10563_v10 }
 0x2ba   : > { %v3081_v31 = vmul.f32 %v3344_v53, %v10566_v13  ;;  %v2913_v23 = vadd.f32 %v2881_v3, %v2813_v37  ;;  %v3082_v60 = vmul.f32 %v3345_v39, %v10566_v13  ;;  %v3182_v21 = vmul.f32 %v10549_v0, %v11097_v16 }
 0x2bb   : > { %v3412_v8 = vadd.f32 %v3380_v17, %v3312_v61  ;;  %v3413_v11 = vadd.f32 %v3381_v35, %v3313_v50  ;;  %v2914_v48 = vadd.f32 %v2882_v40, %v2814_v22  ;;  %v3183_v43 = vmul.f32 %v10549_v0, %v11103_v9  ;;  %v3347_v17 = vld [vmem:[#allocation2 + $0x12a] sm:$0xff]  ;;  %v11137_v50 = vld [vmem:[#allocation2 + $0x138] sm:$0xff] }
 0x2bc   : > { %v3282_v51 = vmul.f32 %v10558_v7, %v11105_v45  ;;  %v3013_v2 = vadd.f32 %v2981_v4, %v2913_v23  ;;  %v3283_v38 = vmul.f32 %v10558_v7, %v11110_v52  ;;  %v2615_v54 = vmul.f32 %v11052_v15, %v10511_v32 }
 0x2bd   : > { %v3450_v36 = vadd.f32 %v10654_v20, %v3412_v8  ;;  %v3451_v1 = vadd.f32 %v10654_v20, %v3413_v11  ;;  %v3014_v58 = vadd.f32 %v2982_v19, %v2914_v48  ;;  %v2616_v49 = vmul.f32 %v11054_v24, %v10511_v32  ;;  %v11145_v8 = vld [vmem:[#allocation2 + $0x139] sm:$0xff]  ;;  %v11151_v11 = vld [vmem:[#allocation2 + $0x141] sm:$0xff] }
 0x2be   : > { %v2683_v29 = vmul.f32 %v11063_v14, %v10514_v33  ;;  %v3113_v44 = vadd.f32 %v3081_v31, %v3013_v2  ;;  %v3382_v62 = vmul.f32 %v11086_v57, %v3346_v42  ;;  %v2684_v41 = vmul.f32 %v11066_v30, %v10514_v33  ;;  %v11143_v31 = vld [vmem:[#allocation2 + $0x140] sm:$0xff] }
 0x2bf   : > { %v2783_v3 = vmul.f32 %v3344_v53, %v10524_v46  ;;  %v3482_v18 = vmax.f32 %v3450_v36, 0.0  ;;  %v3483_v15 = vmax.f32 %v3451_v1, 0.0  ;;  %v3114_v12 = vadd.f32 %v3082_v60, %v3014_v58  ;;  %v11160_v58 = vld [vmem:[#allocation19] ss:$0 sm:$0xff] }
 0x2c0   : > { %v2715_v20 = vadd.f32 %v2683_v29, %v2615_v54  ;;  %v3214_v5 = vadd.f32 %v3182_v21, %v3113_v44  ;;  %v3383_v40 = vmul.f32 %v11086_v57, %v3347_v17  ;;  %v2716_v61 = vadd.f32 %v2684_v41, %v2616_v49 }
 0x2c1   : > { %v2784_v24 = vmul.f32 %v3345_v39, %v10524_v46  ;;  %v3505_v35 = vpack.c.bf16 %v3483_v15, %v3482_v18  ;;  %v3215_v14 = vadd.f32 %v3183_v43, %v3114_v12  ;;  %v2883_v4 = vmul.f32 %v11097_v16, %v10555_v6 }
 0x2c2   : > { %v2815_v37 = vadd.f32 %v2783_v3, %v2715_v20  ;;  %v3314_v30 = vadd.f32 %v3282_v51, %v3214_v5  ;;  %v2884_v22 = vmul.f32 %v11103_v9, %v10555_v6  ;;  %v2983_v19 = vmul.f32 %v11105_v45, %v10563_v10  ;;  %v3348_v5 = vld [vmem:[#allocation2 + $0x13a] sm:$0xff] }
 0x2c3   : > { %v2816_v53 = vadd.f32 %v2784_v24, %v2716_v61  ;;  %8417 = vmatmul.mubr.msk.bf16.gmra.mxu1 %vm1886_vm5, %v3505_v35  ;;  %v3315_v39 = vadd.f32 %v3283_v38, %v3215_v14  ;;  %v2984_v60 = vmul.f32 %v11110_v52, %v10563_v10  ;;  %v3083_v21 = vmul.f32 %v3346_v42, %v10566_v13 }
 0x2c4   : > { %v2915_v23 = vadd.f32 %v2883_v4, %v2815_v37  ;;  %v3414_v48 = vadd.f32 %v3382_v62, %v3314_v30  ;;  %v3084_v51 = vmul.f32 %v3347_v17, %v10566_v13  ;;  %v3184_v36 = vmul.f32 %v10549_v0, %v11137_v50 }
 0x2c5   : > { %v2916_v43 = vadd.f32 %v2884_v22, %v2816_v53  ;;  %v3415_v2 = vadd.f32 %v3383_v40, %v3315_v39  ;;  %v3185_v38 = vmul.f32 %v10549_v0, %v11143_v31  ;;  %v3284_v1 = vmul.f32 %v10558_v7, %v11145_v8 }
 0x2c6   : > { %v3015_v54 = vadd.f32 %v2983_v19, %v2915_v23  ;;  %v3452_v49 = vadd.f32 %v11160_v58, %v3414_v48  ;;  %v3285_v44 = vmul.f32 %v10558_v7, %v11151_v11  ;;  %v2617_v62 = vmul.f32 %v11097_v16, %v10511_v32  ;;  %v3349_v16 = vld [vmem:[#allocation2 + $0x142] sm:$0xff]  ;;  %v11188_v48 = vld [vmem:[#allocation2 + $0x151] sm:$0xff] }
 0x2c7   : > { %v3016_v29 = vadd.f32 %v2984_v60, %v2916_v43  ;;  %v3453_v41 = vadd.f32 %v11160_v58, %v3415_v2  ;;  %v2618_v18 = vmul.f32 %v11103_v9, %v10511_v32  ;;  %v2685_v15 = vmul.f32 %v11105_v45, %v10514_v33 }
 0x2c8   : > { %v3115_v3 = vadd.f32 %v3083_v21, %v3015_v54  ;;  %v3484_v12 = vmax.f32 %v3452_v49, 0.0  ;;  %v2686_v40 = vmul.f32 %v11110_v52, %v10514_v33  ;;  %v2785_v61 = vmul.f32 %v3346_v42, %v10524_v46  ;;  %v11181_v42 = vld [vmem:[#allocation2 + $0x150] sm:$0xff]  ;;  %v11186_v21 = vld [vmem:[#allocation2 + $0x158] sm:$0xff] }
 0x2c9   : > { %v3116_v20 = vadd.f32 %v3084_v51, %v3016_v29  ;;  %v3485_v24 = vmax.f32 %v3453_v41, 0.0  ;;  %v2717_v14 = vadd.f32 %v2685_v15, %v2617_v62  ;;  %v2786_v37 = vmul.f32 %v3347_v17, %v10524_v46  ;;  %v11194_v54 = vld [vmem:[#allocation2 + $0x159] sm:$0xff] }
 0x2ca   : > { %v3216_v35 = vadd.f32 %v3184_v36, %v3115_v3  ;;  %v2718_v30 = vadd.f32 %v2686_v40, %v2618_v18  ;;  %v2885_v9 = vmul.f32 %v11137_v50, %v10555_v6  ;;  %v2886_v45 = vmul.f32 %v11143_v31, %v10555_v6  ;;  %v3351_v40 = vld [vmem:[#allocation2 + $0x15a] sm:$0xff] }
 0x2cb   : > { %v3217_v4 = vadd.f32 %v3185_v38, %v3116_v20  ;;  %v3506_v53 = vpack.c.bf16 %v3485_v24, %v3484_v12  ;;  %v3384_v52 = vmul.f32 %v11086_v57, %v3348_v5  ;;  %v2817_v19 = vadd.f32 %v2785_v61, %v2717_v14  ;;  %v3350_v20 = vld [vmem:[#allocation2 + $0x152] sm:$0xff]  ;;  %v8877_v24 = vld [vmem:[%s12502_s1] sm:$0xff]   ;;  %s12512_s1 = smov %s12511_s15 }
 0x2cc   : > { %v3316_v22 = vadd.f32 %v3284_v1, %v3216_v35  ;;  %v3385_v23 = vmul.f32 %v11086_v57, %v3349_v16  ;;  %v2818_v60 = vadd.f32 %v2786_v37, %v2718_v30  ;;  %v2985_v17 = vmul.f32 %v11145_v8, %v10563_v10  ;;  %8432 = vmatprep.subr.bf16.mxu0 %v8877_v24 }
 0x2cd   : > { %v3317_v39 = vadd.f32 %v3285_v44, %v3217_v4  ;;  %8420 = vmatprep.mubr.msk.bf16.mxu1 %vm1886_vm5, %v3506_v53  ;;  %v2917_v51 = vadd.f32 %v2885_v9, %v2817_v19  ;;  %v2986_v36 = vmul.f32 %v11151_v11, %v10563_v10  ;;  %v3085_v2 = vmul.f32 %v3348_v5, %v10566_v13 }
 0x2ce   : > { %v3416_v43 = vadd.f32 %v3384_v52, %v3316_v22  ;;  %v2918_v1 = vadd.f32 %v2886_v45, %v2818_v60  ;;  %v3086_v49 = vmul.f32 %v3349_v16, %v10566_v13  ;;  %v3186_v29 = vmul.f32 %v10549_v0, %v11181_v42  ;;  %8594 = vmatprep.subr.bf16.mxu1 %v8877_v24 }
 0x2cf   : > { %v3417_v38 = vadd.f32 %v3385_v23, %v3317_v39  ;;  %v3017_v62 = vadd.f32 %v2985_v17, %v2917_v51  ;;  %v3187_v41 = vmul.f32 %v10549_v0, %v11186_v21  ;;  %v3286_v3 = vmul.f32 %v10558_v7, %v11188_v48  ;;  %8433 = vmatpush3.bf16.msra.mxu0 %v8877_v24  ;;  %v11226_v51 = vld [vmem:[#allocation2 + $0x170] sm:$0xff] }
 0x2d0   : > { %v3454_v44 = vadd.f32 %v11160_v58, %v3416_v43  ;;  %v3018_v15 = vadd.f32 %v2986_v36, %v2918_v1  ;;  %v3287_v12 = vmul.f32 %v10558_v7, %v11194_v54  ;;  %v2619_v61 = vmul.f32 %v11137_v50, %v10511_v32  ;;  %8595 = vmatpush3.bf16.msra.mxu1 %v8877_v24  ;;  %v11224_v43 = vld [vmem:[#allocation2 + $0x168] sm:$0xff] }
 0x2d1   : > { %v3455_v18 = vadd.f32 %v11160_v58, %v3417_v38  ;;  %v3117_v14 = vadd.f32 %v3085_v2, %v3017_v62  ;;  %v2620_v37 = vmul.f32 %v11143_v31, %v10511_v32  ;;  %v2687_v4 = vmul.f32 %v11145_v8, %v10514_v33  ;;  %v11233_v1 = vld [vmem:[#allocation2 + $0x169] sm:$0xff] }
 0x2d2   : > { %v3486_v35 = vmax.f32 %v3454_v44, 0.0  ;;  %v3118_v9 = vadd.f32 %v3086_v49, %v3018_v15  ;;  %v2688_v45 = vmul.f32 %v11151_v11, %v10514_v33  ;;  %v2787_v53 = vmul.f32 %v3348_v5, %v10524_v46  ;;  %v11235_v49 = vld [vmem:[#allocation2 + $0x171] sm:$0xff] }
 0x2d3   : > { %v3487_v30 = vmax.f32 %v3455_v18, 0.0  ;;  %v3218_v22 = vadd.f32 %v3186_v29, %v3117_v14  ;;  %v3386_v50 = vmul.f32 %v11086_v57, %v3350_v20  ;;  %v3387_v52 = vmul.f32 %v11086_v57, %v3351_v40 }
 0x2d4   : > { %v2719_v19 = vadd.f32 %v2687_v4, %v2619_v61  ;;  %v3219_v39 = vadd.f32 %v3187_v41, %v3118_v9  ;;  %v2720_v23 = vadd.f32 %v2688_v45, %v2620_v37  ;;  %v2788_v8 = vmul.f32 %v3349_v16, %v10524_v46 }
 0x2d5   : > { %v3507_v31 = vpack.c.bf16 %v3487_v30, %v3486_v35  ;;  %v3318_v60 = vadd.f32 %v3286_v3, %v3218_v22  ;;  %v2887_v11 = vmul.f32 %v11181_v42, %v10555_v6  ;;  %v2888_v5 = vmul.f32 %v11186_v21, %v10555_v6  ;;  %v3352_v22 = vld [vmem:[#allocation2 + $0x16a] sm:$0xff] }
 0x2d6   : > { %v2819_v17 = vadd.f32 %v2787_v53, %v2719_v19  ;;  %v3319_v36 = vadd.f32 %v3287_v12, %v3219_v39  ;;  %v2820_v2 = vadd.f32 %v2788_v8, %v2720_v23  ;;  %v2987_v16 = vmul.f32 %v11188_v48, %v10563_v10  ;;  %v3353_v39 = vld [vmem:[#allocation2 + $0x172] sm:$0xff] }
 0x2d7   : > { %8421 = vmatmul.mubr.msk.bf16.gmra.mxu1 %vm1886_vm5, %v3507_v31  ;;  %v2988_v38 = vmul.f32 %v11194_v54, %v10563_v10  ;;  %v3418_v29 = vadd.f32 %v3386_v50, %v3318_v60  ;;  %v3087_v62 = vmul.f32 %v3350_v20, %v10566_v13  ;;  %v3088_v41 = vmul.f32 %v3351_v40, %v10566_v13 }
 0x2d8   : > { %v2919_v44 = vadd.f32 %v2887_v11, %v2819_v17  ;;  %v3419_v3 = vadd.f32 %v3387_v52, %v3319_v36  ;;  %v2920_v18 = vadd.f32 %v2888_v5, %v2820_v2  ;;  %v3188_v15 = vmul.f32 %v10549_v0, %v11224_v43 }
 0x2d9   : > { %v3189_v12 = vmul.f32 %v10549_v0, %v11226_v51  ;;  %v3456_v61 = vadd.f32 %v11160_v58, %v3418_v29  ;;  %v3288_v35 = vmul.f32 %v10558_v7, %v11233_v1  ;;  %v3289_v14 = vmul.f32 %v10558_v7, %v11235_v49  ;;  %v3254_v29 = vld [vmem:[#allocation2 + $0x181] sm:$0xff] }
 0x2da   : > { %v3019_v24 = vadd.f32 %v2987_v16, %v2919_v44  ;;  %v3457_v37 = vadd.f32 %v11160_v58, %v3419_v3  ;;  %v3020_v4 = vadd.f32 %v2988_v38, %v2920_v18  ;;  %v2621_v30 = vmul.f32 %v11181_v42, %v10511_v32  ;;  %v3154_v38 = vld [vmem:[#allocation2 + $0x180] sm:$0xff]  ;;  %v3255_v18 = vld [vmem:[#allocation2 + $0x189] sm:$0xff] }
 0x2db   : > { %v2622_v9 = vmul.f32 %v11186_v21, %v10511_v32  ;;  %v3488_v45 = vmax.f32 %v3456_v61, 0.0  ;;  %v2689_v50 = vmul.f32 %v11188_v48, %v10514_v33  ;;  %v2690_v52 = vmul.f32 %v11194_v54, %v10514_v33 }
 0x2dc   : > { %v3119_v53 = vadd.f32 %v3087_v62, %v3019_v24  ;;  %v3489_v19 = vmax.f32 %v3457_v37, 0.0  ;;  %v3120_v31 = vadd.f32 %v3088_v41, %v3020_v4  ;;  %v2789_v23 = vmul.f32 %v3350_v20, %v10524_v46 }
 0x2dd   : > { %v2790_v8 = vmul.f32 %v3351_v40, %v10524_v46  ;;  %v2721_v60 = vadd.f32 %v2689_v50, %v2621_v30  ;;  %v2722_v17 = vadd.f32 %v2690_v52, %v2622_v9  ;;  %v2889_v21 = vmul.f32 %v11224_v43, %v10555_v6  ;;  %v3155_v40 = vld [vmem:[#allocation2 + $0x188] sm:$0xff] }
 0x2de   : > { %v3220_v42 = vadd.f32 %v3188_v15, %v3119_v53  ;;  %v3508_v11 = vpack.c.bf16 %v3489_v19, %v3488_v45  ;;  %v3221_v5 = vadd.f32 %v3189_v12, %v3120_v31  ;;  %v3388_v48 = vmul.f32 %v11086_v57, %v3352_v22  ;;  %v3354_v30 = vld [vmem:[#allocation2 + $0x182] sm:$0xff] }
 0x2df   : > { %v2890_v54 = vmul.f32 %v11226_v51, %v10555_v6  ;;  %v3389_v2 = vmul.f32 %v11086_v57, %v3353_v39  ;;  %v2821_v16 = vadd.f32 %v2789_v23, %v2721_v60  ;;  %v2822_v20 = vadd.f32 %v2790_v8, %v2722_v17  ;;  %v3355_v60 = vld [vmem:[#allocation2 + $0x18a] sm:$0xff] }
 0x2e0   : > { %v3320_v36 = vadd.f32 %v3288_v35, %v3220_v42  ;;  %8424 = vmatprep.mubr.msk.bf16.mxu1 %vm1886_vm5, %v3508_v11  ;;  %v3321_v44 = vadd.f32 %v3289_v14, %v3221_v5  ;;  %v2989_v62 = vmul.f32 %v11233_v1, %v10563_v10  ;;  %v2990_v41 = vmul.f32 %v11235_v49, %v10563_v10 }
 0x2e1   : > { %v3089_v3 = vmul.f32 %v3352_v22, %v10566_v13  ;;  %v2921_v12 = vadd.f32 %v2889_v21, %v2821_v16  ;;  %v2922_v61 = vadd.f32 %v2890_v54, %v2822_v20  ;;  %v3090_v24 = vmul.f32 %v3353_v39, %v10566_v13 }
 0x2e2   : > { %v3420_v15 = vadd.f32 %v3388_v48, %v3320_v36  ;;  %v3421_v35 = vadd.f32 %v3389_v2, %v3321_v44  ;;  %v3190_v37 = vmul.f32 %v10549_v0, %v3154_v38  ;;  %v3191_v4 = vmul.f32 %v10549_v0, %v3155_v40 }
 0x2e3   : > { %v3290_v14 = vmul.f32 %v10558_v7, %v3254_v29  ;;  %v3021_v45 = vadd.f32 %v2989_v62, %v2921_v12  ;;  %v3022_v53 = vadd.f32 %v2990_v41, %v2922_v61  ;;  %v3291_v50 = vmul.f32 %v10558_v7, %v3255_v18 }
 0x2e4   : > { %v3458_v9 = vadd.f32 %v11160_v58, %v3420_v15  ;;  %v3459_v52 = vadd.f32 %v11160_v58, %v3421_v35  ;;  %v2623_v19 = vmul.f32 %v11224_v43, %v10511_v32  ;;  %v2624_v31 = vmul.f32 %v11226_v51, %v10511_v32  ;;  %v3157_v15 = vld [vmem:[#allocation2 + $0x1a0] sm:$0xff] }
 0x2e5   : > { %v2691_v23 = vmul.f32 %v11233_v1, %v10514_v33  ;;  %v3121_v8 = vadd.f32 %v3089_v3, %v3021_v45  ;;  %v3122_v42 = vadd.f32 %v3090_v24, %v3022_v53  ;;  %v3390_v17 = vmul.f32 %v11086_v57, %v3354_v30  ;;  %v3256_v24 = vld [vmem:[#allocation2 + $0x199] sm:$0xff] }
 0x2e6   : > { %v2692_v21 = vmul.f32 %v11235_v49, %v10514_v33  ;;  %v3490_v11 = vmax.f32 %v3458_v9, 0.0  ;;  %v3491_v5 = vmax.f32 %v3459_v52, 0.0  ;;  %v2791_v54 = vmul.f32 %v3352_v22, %v10524_v46  ;;  %v3156_v49 = vld [vmem:[#allocation2 + $0x198] sm:$0xff] }
 0x2e7   : > { %v2723_v48 = vadd.f32 %v2691_v23, %v2623_v19  ;;  %v3222_v43 = vadd.f32 %v3190_v37, %v3121_v8  ;;  %v3223_v36 = vadd.f32 %v3191_v4, %v3122_v42  ;;  %v2792_v32 = vmul.f32 %v3353_v39, %v10524_v46  ;;  %v3356_v45 = vld [vmem:[#allocation2 + $0x19a] sm:$0xff] }
 0x2e8   : > { %v2724_v2 = vadd.f32 %v2692_v21, %v2624_v31  ;;  %v3509_v51 = vpack.c.bf16 %v3491_v5, %v3490_v11  ;;  %v3391_v1 = vmul.f32 %v11086_v57, %v3355_v60  ;;  %v2891_v20 = vmul.f32 %v3154_v38, %v10555_v6 }
 0x2e9   : > { %v2823_v16 = vadd.f32 %v2791_v54, %v2723_v48  ;;  %v3322_v44 = vadd.f32 %v3290_v14, %v3222_v43  ;;  %v3323_v62 = vadd.f32 %v3291_v50, %v3223_v36  ;;  %v2892_v33 = vmul.f32 %v3155_v40, %v10555_v6  ;;  %v3257_v40 = vld [vmem:[#allocation2 + $0x1a1] sm:$0xff] }
 0x2ea   : > { %v2824_v41 = vadd.f32 %v2792_v32, %v2724_v2  ;;  %8425 = vmatmul.mubr.msk.bf16.gmra.mxu1 %vm1886_vm5, %v3509_v51  ;;  %v2991_v3 = vmul.f32 %v3254_v29, %v10563_v10  ;;  %v2992_v61 = vmul.f32 %v3255_v18, %v10563_v10  ;;  %v3091_v38 = vmul.f32 %v3354_v30, %v10566_v13  ;;  %v3357_v18 = vld [vmem:[#allocation2 + $0x1a2] sm:$0xff] }
 0x2eb   : > { %v2923_v22 = vadd.f32 %v2891_v20, %v2823_v16  ;;  %v3422_v12 = vadd.f32 %v3390_v17, %v3322_v44  ;;  %v3423_v46 = vadd.f32 %v3391_v1, %v3323_v62  ;;  %v3092_v37 = vmul.f32 %v3355_v60, %v10566_v13  ;;  %v11309_v43 = vld [vmem:[#allocation21] ss:$0 sm:$0xff]  ;;  %v3801_v16 = vld [vmem:[#allocation3] sm:$0xff] }
 0x2ec   : > { %v2924_v39 = vadd.f32 %v2892_v33, %v2824_v41  ;;  %v3192_v6 = vmul.f32 %v10549_v0, %v3156_v49  ;;  %v3193_v9 = vmul.f32 %v10549_v0, %v3157_v15  ;;  %v3292_v10 = vmul.f32 %v10558_v7, %v3256_v24  ;;  %v3798_v36 = vld [vmem:[%s12503_s18] sm:$0xff] }
 0x2ed   : > { %v3023_v35 = vadd.f32 %v2991_v3, %v2923_v22  ;;  %v3460_v4 = vadd.f32 %v11160_v58, %v3422_v12  ;;  %v3461_v14 = vadd.f32 %v11160_v58, %v3423_v46  ;;  %v3293_v13 = vmul.f32 %v10558_v7, %v3257_v40  ;;  %v3802_v22 = vld [vmem:[#allocation3 + $0x8] sm:$0xff] }
 0x2ee   : > { %v3024_v29 = vadd.f32 %v2992_v61, %v2924_v39  ;;  %v3392_v31 = vmul.f32 %v11086_v57, %v3356_v45  ;;  %v3393_v42 = vmul.f32 %v11086_v57, %v3357_v18  ;;  %v11314_v32 = vrot.slane %v3798_v36, %v10502_v27  ;;  %v3838_v46 = vld [vmem:[#allocation3 + $0x9] sm:$0xff] }
 0x2ef   : > { %v3123_v53 = vadd.f32 %v3091_v38, %v3023_v35  ;;  %v3492_v50 = vmax.f32 %v3460_v4, 0.0  ;;  %v3493_v52 = vmax.f32 %v3461_v14, 0.0  ;;  %v11317_v51 = vrot.slane %v3798_v36, %v10505_v28  ;;  %v3889_v39 = vld [vmem:[#allocation3 + $0x2] sm:$0xff]  ;;  %v3890_v4 = vld [vmem:[#allocation3 + $0xa] sm:$0xff] }
 0x2f0   : > { %v3124_v30 = vadd.f32 %v3092_v37, %v3024_v29  ;;  %v11321_v41 = vrot.slane %v3798_v36, %v10517_v34  ;;  %v3821_v3 = vmul.f32 %v11314_v32, %v3801_v16  ;;  %v3822_v35 = vmul.f32 %v11314_v32, %v3802_v22 }
 0x2f1   : > { %v3224_v19 = vadd.f32 %v3192_v6, %v3123_v53  ;;  %v3510_v23 = vpack.c.bf16 %v3493_v52, %v3492_v50  ;;  %v3858_v37 = vmul.f32 %v11317_v51, %v3838_v46  ;;  %v11335_v14 = vrot.slane %v3798_v36, %v10534_v55 }
 0x2f2   : > { %v3225_v8 = vadd.f32 %v3193_v9, %v3124_v30  ;;  %v3909_v40 = vmul.f32 %v11321_v41, %v3889_v39  ;;  %v3910_v9 = vmul.f32 %v11321_v41, %v3890_v4  ;;  %v11339_v53 = vrot.slane %v3798_v36, %v10542_v59 }
 0x2f3   : > { %v3324_v60 = vadd.f32 %v3292_v10, %v3224_v19  ;;  %8428 = vmatprep.mubr.msk.bf16.mxu1 %vm1886_vm5, %v3510_v23  ;;  %v3874_v29 = vadd.f32 %v3858_v37, %v3822_v35  ;;  %v11343_v52 = vrot.slane %v3798_v36, %v10546_v63  ;;  %v11347_v23 = vrot.slane %v3798_v36, %v10527_v47  ;;  %v11365_v37 = vld [vmem:[#allocation22] ss:$0 sm:$0xff] }
 0x2f4   : > { %v3325_v0 = vadd.f32 %v3293_v13, %v3225_v8 }
 0x2f5   : > { %v3424_v17 = vadd.f32 %v3392_v31, %v3324_v60  ;;  %v3926_v30 = vadd.f32 %v3910_v9, %v3874_v29 }
 0x2f6   : > { %v3425_v21 = vadd.f32 %v3393_v42, %v3325_v0 }
 0x2f7   : > { %v3462_v11 = vadd.f32 %v11160_v58, %v3424_v17 }
 0x2f8   : > { %v3463_v5 = vadd.f32 %v11160_v58, %v3425_v21  ;;  %v3837_v58 = vld [vmem:[#allocation3 + $0x1] sm:$0xff] }
 0x2f9   : > { %v3494_v48 = vmax.f32 %v3462_v11, 0.0  ;;  %v3857_v15 = vmul.f32 %v11317_v51, %v3837_v58  ;;  %v11352_v11 = vrot.slane %v3798_v36, %v10537_v56 }
 0x2fa   : > { %v3495_v7 = vmax.f32 %v3463_v5, 0.0 }
 0x2fb   : > { %v3873_v6 = vadd.f32 %v3857_v15, %v3821_v3 }
 0x2fc   : > { %v3511_v54 = vpack.c.bf16 %v3495_v7, %v3494_v48 }
 0x2fd   : > { %v3925_v45 = vadd.f32 %v3909_v40, %v3873_v6 }
 0x2fe   : > { %8429 = vmatmul.mubr.msk.bf16.gmra.mxu1 %vm1886_vm5, %v3511_v54  ;;  %vm5434_vm5 = vcmask 519168  }
 0x32b   : > { %v8402_v2 = vpop.f32.mrf.mxu1 }
 0x32c   : > { %v3615_v57 = vadd.f32 %v8402_v2, %v11309_v43 }
 0x32d   : > { %v3606_v1 = vpop.f32.mrf.mxu1 }
 0x32e   : > { %v3735_v20 = vmax.f32 %v3615_v57, 0.0  ;;  %v3607_v44 = vadd.f32 %v11309_v43, %v3606_v1  ;;  %v11357_v1 = vld [vmem:[%s12503_s18 + $0x8] ss:$0 sm:$0xff] }
 0x32f   : > { %v8403_v62 = vpop.f32.mrf.mxu1 }
 0x330   : > { %3768 = vst.msk [vmem:[#allocation3 + $0x31] sm:$0xff] %vm1942_vm0, %v3735_v20  ;;  %v3733_v33 = vmax.f32 %v3607_v44, 0.0  ;;  %v3618_v49 = vadd.f32 %v8403_v62, %v11309_v43 }
 0x331   : > { %v3609_v12 = vpop.f32.mrf.mxu1 }
 0x332   : > { %3766 = vst.msk [vmem:[#allocation3 + $0x19] sm:$0xff] %vm1942_vm0, %v3733_v33  ;;  %v3736_v61 = vmax.f32 %v3618_v49, 0.0  ;;  %v3610_v24 = vadd.f32 %v11309_v43, %v3609_v12 }
 0x334   : > { %3769 = vst.msk [vmem:[#allocation3 + $0x39] sm:$0xff] %vm1942_vm0, %v3736_v61  ;;  %v3734_v38 = vmax.f32 %v3610_v24, 0.0 }
 0x336   : > { %3767 = vst.msk [vmem:[#allocation3 + $0x21] sm:$0xff] %vm1942_vm0, %v3734_v38 }
 0x337   : > { %v4098_v31 = vld [vmem:[#allocation3 + $0x30] sm:$0xff] }
 0x338   : > { %v4150_v48 = vld [vmem:[#allocation3 + $0x31] sm:$0xff]  ;;  %v4118_v57 = vmul.f32 %v11347_v23, %v4098_v31 }
 0x339   : > { %v3941_v10 = vld [vmem:[#allocation3 + $0x18] sm:$0xff]  ;;  %v4170_v33 = vmul.f32 %v11352_v11, %v4150_v48 }
 0x33a   : > { %v3993_v18 = vld [vmem:[#allocation3 + $0x19] sm:$0xff]  ;;  %v3961_v50 = vmul.f32 %v11335_v14, %v3941_v10 }
 0x33b   : > { %v4013_v19 = vmul.f32 %v11339_v53, %v3993_v18  ;;  %v4099_v16 = vld [vmem:[#allocation3 + $0x38] sm:$0xff] }
 0x33c   : > { %v3977_v13 = vadd.f32 %v3961_v50, %v3925_v45  ;;  %v4202_v58 = vld [vmem:[#allocation3 + $0x32] sm:$0xff]  ;;  %v4119_v22 = vmul.f32 %v11347_v23, %v4099_v16  ;;  %v4203_v46 = vld [vmem:[#allocation3 + $0x3a] sm:$0xff] }
 0x33d   : > { %v3942_v8 = vld [vmem:[#allocation3 + $0x20] sm:$0xff]  ;;  %v4222_v15 = vmul.f32 %v11357_v1, %v4202_v58  ;;  %v4223_v29 = vmul.f32 %v11357_v1, %v4203_v46 }
 0x33e   : > { %v3994_v42 = vld [vmem:[#allocation3 + $0x21] sm:$0xff]  ;;  %v3962_v0 = vmul.f32 %v11335_v14, %v3942_v8  ;;  %v4029_v17 = vadd.f32 %v4013_v19, %v3977_v13  ;;  %v4151_v36 = vld [vmem:[#allocation3 + $0x39] sm:$0xff] }
 0x33f   : > { %v4045_v60 = vld [vmem:[#allocation3 + $0x1a] sm:$0xff]  ;;  %v4046_v5 = vld [vmem:[#allocation3 + $0x22] sm:$0xff]  ;;  %v4014_v54 = vmul.f32 %v11339_v53, %v3994_v42  ;;  %v4171_v24 = vmul.f32 %v11352_v11, %v4151_v36  ;;  %v3823_v42 = vmul.f32 %v4098_v31, %v11314_v32 }
 0x340   : > { %v4065_v21 = vmul.f32 %v11343_v52, %v4045_v60  ;;  %v3978_v7 = vadd.f32 %v3962_v0, %v3926_v30  ;;  %v4066_v44 = vmul.f32 %v11343_v52, %v4046_v5 }
 0x342   : > { %v4081_v2 = vadd.f32 %v4065_v21, %v4029_v17  ;;  %v4030_v20 = vadd.f32 %v4014_v54, %v3978_v7  ;;  %v3859_v21 = vmul.f32 %v4150_v48, %v11317_v51  ;;  %v3824_v7 = vmul.f32 %v4099_v16, %v11314_v32 }
 0x343   : > { %v3860_v54 = vmul.f32 %v4151_v36, %v11317_v51  ;;  %v3912_v48 = vmul.f32 %v4203_v46, %v11321_v41 }
 0x344   : > { %v4134_v62 = vadd.f32 %v4118_v57, %v4081_v2  ;;  %v4082_v49 = vadd.f32 %v4066_v44, %v4030_v20  ;;  %v3911_v2 = vmul.f32 %v4202_v58, %v11321_v41  ;;  %v3875_v57 = vadd.f32 %v3859_v21, %v3823_v42 }
 0x345   : > { %v8406_v12 = vpop.f32.mrf.mxu1  ;;  %v3876_v44 = vadd.f32 %v3860_v54, %v3824_v7 }
 0x346   : > { %v4186_v3 = vadd.f32 %v4170_v33, %v4134_v62  ;;  %v3631_v39 = vadd.f32 %v8406_v12, %v11309_v43  ;;  %v4135_v61 = vadd.f32 %v4119_v22, %v4082_v49  ;;  %v3927_v62 = vadd.f32 %v3911_v2, %v3875_v57 }
 0x347   : > { %v3622_v38 = vpop.f32.mrf.mxu1  ;;  %v3928_v12 = vadd.f32 %v3912_v48, %v3876_v44 }
 0x348   : > { %v4238_v35 = vadd.f32 %v4222_v15, %v4186_v3  ;;  %v3739_v6 = vmax.f32 %v3631_v39, 0.0  ;;  %v3623_v40 = vadd.f32 %v11309_v43, %v3622_v38  ;;  %v4187_v4 = vadd.f32 %v4171_v24, %v4135_v61 }
 0x349   : > { %v8407_v9 = vpop.f32.mrf.mxu1 }
 0x34a   : > { %3772 = vst.msk [vmem:[#allocation3 + $0x61] sm:$0xff] %vm1942_vm0, %v3739_v6  ;;  %v3737_v45 = vmax.f32 %v3623_v40, 0.0  ;;  %v3634_v10 = vadd.f32 %v8407_v9, %v11309_v43  ;;  %v4239_v18 = vadd.f32 %v4223_v29, %v4187_v4  ;;  %v4260_v50 = vadd.f32 %v11365_v37, %v4238_v35 }
 0x34b   : > { %v3625_v30 = vpop.f32.mrf.mxu1 }
 0x34c   : > { %3770 = vst.msk [vmem:[#allocation3 + $0x49] sm:$0xff] %vm1942_vm0, %v3737_v45  ;;  %v3740_v13 = vmax.f32 %v3634_v10, 0.0  ;;  %v3626_v19 = vadd.f32 %v11309_v43, %v3625_v30  ;;  %v4261_v8 = vadd.f32 %v11365_v37, %v4239_v18  ;;  %v4276_v0 = vmax.f32 %v4260_v50, 0.0 }
 0x34e   : > { %3773 = vst.msk [vmem:[#allocation3 + $0x69] sm:$0xff] %vm1942_vm0, %v3740_v13  ;;  %v3738_v60 = vmax.f32 %v3626_v19, 0.0  ;;  %v4277_v17 = vmax.f32 %v4261_v8, 0.0 }
 0x350   : > { %3771 = vst.msk [vmem:[#allocation3 + $0x51] sm:$0xff] %vm1942_vm0, %v3738_v60  ;;  %v4292_v5 = vpack.c.bf16 %v4277_v17, %v4276_v0 }
 0x351   : > { %v4100_v3 = vld [vmem:[#allocation3 + $0x60] sm:$0xff] }
 0x352   : > { %8434 = vmatprep.mubr.msk.bf16.mxu0 %vm1942_vm0, %v4292_v5  ;;  %v4152_v24 = vld [vmem:[#allocation3 + $0x61] sm:$0xff]  ;;  %v4120_v4 = vmul.f32 %v11347_v23, %v4100_v3 }
 0x353   : > { %v3943_v31 = vld [vmem:[#allocation3 + $0x48] sm:$0xff]  ;;  %v4172_v45 = vmul.f32 %v11352_v11, %v4152_v24 }
 0x354   : > { %v3995_v20 = vld [vmem:[#allocation3 + $0x49] sm:$0xff]  ;;  %v3963_v33 = vmul.f32 %v11335_v14, %v3943_v31 }
 0x355   : > { %v4015_v22 = vmul.f32 %v11339_v53, %v3995_v20  ;;  %v4101_v46 = vld [vmem:[#allocation3 + $0x68] sm:$0xff] }
 0x356   : > { %v3979_v49 = vadd.f32 %v3963_v33, %v3927_v62  ;;  %v4204_v29 = vld [vmem:[#allocation3 + $0x62] sm:$0xff]  ;;  %v4121_v8 = vmul.f32 %v11347_v23, %v4101_v46  ;;  %v4205_v54 = vld [vmem:[#allocation3 + $0x6a] sm:$0xff] }
 0x357   : > { %v3944_v16 = vld [vmem:[#allocation3 + $0x50] sm:$0xff]  ;;  %v4224_v42 = vmul.f32 %v11357_v1, %v4204_v29 }
 0x358   : > { %v3996_v15 = vld [vmem:[#allocation3 + $0x51] sm:$0xff]  ;;  %v3964_v58 = vmul.f32 %v11335_v14, %v3944_v16  ;;  %v4031_v39 = vadd.f32 %v4015_v22, %v3979_v49  ;;  %v4153_v13 = vld [vmem:[#allocation3 + $0x69] sm:$0xff]  ;;  %v4225_v49 = vmul.f32 %v11357_v1, %v4205_v54  ;;  %v3825_v22 = vmul.f32 %v4100_v3, %v11314_v32 }
 0x359   : > { %v4047_v36 = vld [vmem:[#allocation3 + $0x4a] sm:$0xff]  ;;  %v4048_v35 = vld [vmem:[#allocation3 + $0x52] sm:$0xff]  ;;  %v4016_v6 = vmul.f32 %v11339_v53, %v3996_v15  ;;  %v4173_v7 = vmul.f32 %v11352_v11, %v4153_v13 }
 0x35a   : > { %v4067_v61 = vmul.f32 %v11343_v52, %v4047_v36  ;;  %v3980_v38 = vadd.f32 %v3964_v58, %v3928_v12  ;;  %v4068_v50 = vmul.f32 %v11343_v52, %v4048_v35  ;;  %v3861_v12 = vmul.f32 %v4152_v24, %v11317_v51 }
 0x35b   : > { %v8410_v9 = vpop.f32.mrf.mxu1  ;;  %v3913_v35 = vmul.f32 %v4204_v29, %v11321_v41 }
 0x35c   : > { %v4083_v40 = vadd.f32 %v4067_v61, %v4031_v39  ;;  %v3647_v10 = vadd.f32 %v8410_v9, %v11309_v43  ;;  %v4032_v18 = vadd.f32 %v4016_v6, %v3980_v38  ;;  %v3826_v39 = vmul.f32 %v4101_v46, %v11314_v32 }
 0x35d   : > { %v3638_v19 = vpop.f32.mrf.mxu1  ;;  %v3862_v61 = vmul.f32 %v4153_v13, %v11317_v51  ;;  %v3877_v6 = vadd.f32 %v3861_v12, %v3825_v22 }
 0x35e   : > { %v4136_v30 = vadd.f32 %v4120_v4, %v4083_v40  ;;  %v3743_v60 = vmax.f32 %v3647_v10, 0.0  ;;  %v3639_v0 = vadd.f32 %v11309_v43, %v3638_v19  ;;  %v4084_v17 = vadd.f32 %v4068_v50, %v4032_v18 }
 0x35f   : > { %v8411_v5 = vpop.f32.mrf.mxu1  ;;  %v3929_v10 = vadd.f32 %v3913_v35, %v3877_v6  ;;  %v3914_v18 = vmul.f32 %v4205_v54, %v11321_v41 }
 0x360   : > { %v4188_v21 = vadd.f32 %v4172_v45, %v4136_v30  ;;  %3776 = vst.msk [vmem:[#allocation3 + $0x91] sm:$0xff] %vm1942_vm0, %v3743_v60  ;;  %v3741_v2 = vmax.f32 %v3639_v0, 0.0  ;;  %v3650_v57 = vadd.f32 %v8411_v5, %v11309_v43  ;;  %v4137_v31 = vadd.f32 %v4121_v8, %v4084_v17 }
 0x361   : > { %v3641_v44 = vpop.f32.mrf.mxu1  ;;  %v3878_v45 = vadd.f32 %v3862_v61, %v3826_v39 }
 0x362   : > { %v4240_v20 = vadd.f32 %v4224_v42, %v4188_v21  ;;  %3774 = vst.msk [vmem:[#allocation3 + $0x79] sm:$0xff] %vm1942_vm0, %v3741_v2  ;;  %v3744_v62 = vmax.f32 %v3650_v57, 0.0  ;;  %v3642_v33 = vadd.f32 %v11309_v43, %v3641_v44  ;;  %v4189_v48 = vadd.f32 %v4173_v7, %v4137_v31 }
 0x363   : > { %v3930_v8 = vadd.f32 %v3914_v18, %v3878_v45 }
 0x364   : > { %3777 = vst.msk [vmem:[#allocation3 + $0x99] sm:$0xff] %vm1942_vm0, %v3744_v62  ;;  %v3742_v16 = vmax.f32 %v3642_v33, 0.0  ;;  %v4241_v15 = vadd.f32 %v4225_v49, %v4189_v48  ;;  %v4262_v36 = vadd.f32 %v11365_v37, %v4240_v20 }
 0x366   : > { %3775 = vst.msk [vmem:[#allocation3 + $0x81] sm:$0xff] %vm1942_vm0, %v3742_v16  ;;  %v4263_v58 = vadd.f32 %v11365_v37, %v4241_v15  ;;  %v4278_v38 = vmax.f32 %v4262_v36, 0.0 }
 0x367   : > { %v4102_v30 = vld [vmem:[#allocation3 + $0x90] sm:$0xff] }
 0x368   : > { %v4279_v3 = vmax.f32 %v4263_v58, 0.0  ;;  %v4154_v21 = vld [vmem:[#allocation3 + $0x91] sm:$0xff]  ;;  %v4122_v7 = vmul.f32 %v11347_v23, %v4102_v30  ;;  %v3827_v18 = vmul.f32 %v4102_v30, %v11314_v32 }
 0x369   : > { %v3945_v40 = vld [vmem:[#allocation3 + $0x78] sm:$0xff]  ;;  %v4174_v48 = vmul.f32 %v11352_v11, %v4154_v21 }
 0x36a   : > { %v3997_v4 = vld [vmem:[#allocation3 + $0x79] sm:$0xff]  ;;  %v4293_v9 = vpack.c.bf16 %v4279_v3, %v4278_v38  ;;  %v3965_v24 = vmul.f32 %v11335_v14, %v3945_v40 }
 0x36b   : > { %v4017_v46 = vmul.f32 %v11339_v53, %v3997_v4  ;;  %v4103_v20 = vld [vmem:[#allocation3 + $0x98] sm:$0xff] }
 0x36c   : > { %8435 = vmatmul.mubr.msk.bf16.vlgmr.msra.gmra.mxu0 %vm1942_vm0, %v4293_v9  ;;  %v3981_v50 = vadd.f32 %v3965_v24, %v3929_v10  ;;  %v4206_v44 = vld [vmem:[#allocation3 + $0x92] sm:$0xff]  ;;  %v4123_v58 = vmul.f32 %v11347_v23, %v4103_v20  ;;  %v4207_v4 = vld [vmem:[#allocation3 + $0x9a] sm:$0xff] }
 0x36d   : > { %v3946_v13 = vld [vmem:[#allocation3 + $0x80] sm:$0xff]  ;;  %v4226_v39 = vmul.f32 %v11357_v1, %v4206_v44 }
 0x36e   : > { %v3998_v29 = vld [vmem:[#allocation3 + $0x81] sm:$0xff]  ;;  %v3966_v42 = vmul.f32 %v11335_v14, %v3946_v13  ;;  %v4033_v60 = vadd.f32 %v4017_v46, %v3981_v50  ;;  %v4155_v36 = vld [vmem:[#allocation3 + $0x99] sm:$0xff]  ;;  %v4227_v13 = vmul.f32 %v11357_v1, %v4207_v4 }
 0x36f   : > { %v4049_v19 = vld [vmem:[#allocation3 + $0x7a] sm:$0xff]  ;;  %v4050_v0 = vld [vmem:[#allocation3 + $0x82] sm:$0xff]  ;;  %v4018_v57 = vmul.f32 %v11339_v53, %v3998_v29  ;;  %v4175_v40 = vmul.f32 %v11352_v11, %v4155_v36  ;;  %v3863_v29 = vmul.f32 %v4154_v21, %v11317_v51 }
 0x370   : > { %v4069_v17 = vmul.f32 %v11343_v52, %v4049_v19  ;;  %v8414_v5 = vpop.f32.mrf.mxu1  ;;  %v3982_v2 = vadd.f32 %v3966_v42, %v3930_v8  ;;  %v4070_v33 = vmul.f32 %v11343_v52, %v4050_v0  ;;  %v3828_v19 = vmul.f32 %v4103_v20, %v11314_v32 }
 0x371   : > { %v3663_v54 = vadd.f32 %v8414_v5, %v11309_v43  ;;  %v3864_v8 = vmul.f32 %v4155_v36, %v11317_v51  ;;  %v3915_v0 = vmul.f32 %v4206_v44, %v11321_v41 }
 0x372   : > { %v4085_v31 = vadd.f32 %v4069_v17, %v4033_v60  ;;  %v3654_v62 = vpop.f32.mrf.mxu1  ;;  %v4034_v16 = vadd.f32 %v4018_v57, %v3982_v2  ;;  %v3879_v17 = vadd.f32 %v3863_v29, %v3827_v18 }
 0x373   : > { %v3747_v49 = vmax.f32 %v3663_v54, 0.0  ;;  %v3655_v22 = vadd.f32 %v11309_v43, %v3654_v62  ;;  %v3880_v5 = vadd.f32 %v3864_v8, %v3828_v19  ;;  %v3916_v62 = vmul.f32 %v4207_v4, %v11321_v41 }
 0x374   : > { %v4138_v15 = vadd.f32 %v4122_v7, %v4085_v31  ;;  %v8415_v12 = vpop.f32.mrf.mxu1  ;;  %v4086_v38 = vadd.f32 %v4070_v33, %v4034_v16  ;;  %v3931_v21 = vadd.f32 %v3915_v0, %v3879_v17 }
 0x375   : > { %3780 = vst.msk [vmem:[#allocation3 + $0xc1] sm:$0xff] %vm1942_vm0, %v3747_v49  ;;  %v3745_v61 = vmax.f32 %v3655_v22, 0.0  ;;  %v3666_v35 = vadd.f32 %v8415_v12, %v11309_v43 }
 0x376   : > { %v4190_v3 = vadd.f32 %v4174_v48, %v4138_v15  ;;  %v3657_v6 = vpop.f32.mrf.mxu1  ;;  %v4139_v10 = vadd.f32 %v4123_v58, %v4086_v38  ;;  %v3932_v15 = vadd.f32 %v3916_v62, %v3880_v5 }
 0x377   : > { %3778 = vst.msk [vmem:[#allocation3 + $0xa9] sm:$0xff] %vm1942_vm0, %v3745_v61  ;;  %v3748_v9 = vmax.f32 %v3666_v35, 0.0  ;;  %v3658_v45 = vadd.f32 %v11309_v43, %v3657_v6 }
 0x378   : > { %v4242_v24 = vadd.f32 %v4226_v39, %v4190_v3  ;;  %v4191_v46 = vadd.f32 %v4175_v40, %v4139_v10 }
 0x379   : > { %3781 = vst.msk [vmem:[#allocation3 + $0xc9] sm:$0xff] %vm1942_vm0, %v3748_v9  ;;  %v3746_v50 = vmax.f32 %v3658_v45, 0.0 }
 0x37a   : > { %v4243_v42 = vadd.f32 %v4227_v13, %v4191_v46  ;;  %v4264_v60 = vadd.f32 %v11365_v37, %v4242_v24 }
 0x37b   : > { %3779 = vst.msk [vmem:[#allocation3 + $0xb1] sm:$0xff] %vm1942_vm0, %v3746_v50 }
 0x37c   : > { %v4265_v30 = vadd.f32 %v11365_v37, %v4243_v42  ;;  %v4280_v2 = vmax.f32 %v4264_v60, 0.0  ;;  %v4104_v49 = vld [vmem:[#allocation3 + $0xc0] sm:$0xff] }
 0x37d   : > { %v4156_v61 = vld [vmem:[#allocation3 + $0xc1] sm:$0xff]  ;;  %v4124_v38 = vmul.f32 %v11347_v23, %v4104_v49  ;;  %v3829_v62 = vmul.f32 %v4104_v49, %v11314_v32 }
 0x37e   : > { %v3947_v7 = vld [vmem:[#allocation3 + $0xa8] sm:$0xff]  ;;  %v4281_v57 = vmax.f32 %v4265_v30, 0.0  ;;  %v4176_v18 = vmul.f32 %v11352_v11, %v4156_v61 }
 0x37f   : > { %v3999_v54 = vld [vmem:[#allocation3 + $0xa9] sm:$0xff]  ;;  %v3967_v31 = vmul.f32 %v11335_v14, %v3947_v7 }
 0x380   : > { %v4294_v20 = vpack.c.bf16 %v4281_v57, %v4280_v2  ;;  %v4019_v48 = vmul.f32 %v11339_v53, %v3999_v54  ;;  %v4105_v9 = vld [vmem:[#allocation3 + $0xc8] sm:$0xff] }
 0x381   : > { %v3983_v33 = vadd.f32 %v3967_v31, %v3931_v21  ;;  %v4208_v45 = vld [vmem:[#allocation3 + $0xc2] sm:$0xff]  ;;  %v4125_v42 = vmul.f32 %v11347_v23, %v4105_v9  ;;  %v4209_v2 = vld [vmem:[#allocation3 + $0xca] sm:$0xff] }
 0x382   : > { %v3948_v22 = vld [vmem:[#allocation3 + $0xb0] sm:$0xff]  ;;  %8438 = vmatprep.mubr.msk.bf16.mxu0 %vm1942_vm0, %v4294_v20  ;;  %v4228_v60 = vmul.f32 %v11357_v1, %v4208_v45 }
 0x383   : > { %v4000_v44 = vld [vmem:[#allocation3 + $0xb1] sm:$0xff]  ;;  %v3968_v36 = vmul.f32 %v11335_v14, %v3948_v22  ;;  %v4035_v12 = vadd.f32 %v4019_v48, %v3983_v33  ;;  %v8418_v35 = vpop.f32.mrf.mxu1  ;;  %v4157_v19 = vld [vmem:[#allocation3 + $0xc9] sm:$0xff]  ;;  %v4229_v22 = vmul.f32 %v11357_v1, %v4209_v2 }
 0x384   : > { %v4051_v16 = vld [vmem:[#allocation3 + $0xaa] sm:$0xff]  ;;  %v4052_v58 = vld [vmem:[#allocation3 + $0xb2] sm:$0xff]  ;;  %v3679_v3 = vadd.f32 %v8418_v35, %v11309_v43  ;;  %v4020_v40 = vmul.f32 %v11339_v53, %v4000_v44  ;;  %v4177_v54 = vmul.f32 %v11352_v11, %v4157_v19  ;;  %v3865_v44 = vmul.f32 %v4156_v61, %v11317_v51 }
 0x385   : > { %v4071_v39 = vmul.f32 %v11343_v52, %v4051_v16  ;;  %v3984_v6 = vadd.f32 %v3968_v36, %v3932_v15  ;;  %v3670_v10 = vpop.f32.mrf.mxu1  ;;  %v4072_v24 = vmul.f32 %v11343_v52, %v4052_v58  ;;  %v3830_v16 = vmul.f32 %v4105_v9, %v11314_v32 }
 0x386   : > { %v3751_v50 = vmax.f32 %v3679_v3, 0.0  ;;  %v3671_v46 = vadd.f32 %v11309_v43, %v3670_v10  ;;  %v3866_v15 = vmul.f32 %v4157_v19, %v11317_v51  ;;  %v3917_v58 = vmul.f32 %v4208_v45, %v11321_v41 }
 0x387   : > { %v4087_v4 = vadd.f32 %v4071_v39, %v4035_v12  ;;  %v4036_v13 = vadd.f32 %v4020_v40, %v3984_v6  ;;  %v8419_v8 = vpop.f32.mrf.mxu1  ;;  %v3881_v39 = vadd.f32 %v3865_v44, %v3829_v62  ;;  %v3918_v10 = vmul.f32 %v4209_v2, %v11321_v41 }
 0x388   : > { %3784 = vst.msk [vmem:[#allocation3 + $0xf1] sm:$0xff] %vm1942_vm0, %v3751_v50  ;;  %v3749_v0 = vmax.f32 %v3671_v46, 0.0  ;;  %v3682_v30 = vadd.f32 %v8419_v8, %v11309_v43  ;;  %v3882_v35 = vadd.f32 %v3866_v15, %v3830_v16 }
 0x389   : > { %v4140_v29 = vadd.f32 %v4124_v38, %v4087_v4  ;;  %v4088_v17 = vadd.f32 %v4072_v24, %v4036_v13  ;;  %v3673_v7 = vpop.f32.mrf.mxu1  ;;  %v3933_v61 = vadd.f32 %v3917_v58, %v3881_v39 }
 0x38a   : > { %3782 = vst.msk [vmem:[#allocation3 + $0xd9] sm:$0xff] %vm1942_vm0, %v3749_v0  ;;  %v3752_v57 = vmax.f32 %v3682_v30, 0.0  ;;  %v3674_v21 = vadd.f32 %v11309_v43, %v3673_v7  ;;  %v3934_v19 = vadd.f32 %v3918_v10, %v3882_v35 }
 0x38b   : > { %v4192_v5 = vadd.f32 %v4176_v18, %v4140_v29  ;;  %v4141_v31 = vadd.f32 %v4125_v42, %v4088_v17 }
 0x38c   : > { %3785 = vst.msk [vmem:[#allocation3 + $0xf9] sm:$0xff] %vm1942_vm0, %v3752_v57  ;;  %v3750_v33 = vmax.f32 %v3674_v21, 0.0 }
 0x38d   : > { %v4244_v20 = vadd.f32 %v4228_v60, %v4192_v5  ;;  %v4193_v48 = vadd.f32 %v4177_v54, %v4141_v31 }
 0x38e   : > { %3783 = vst.msk [vmem:[#allocation3 + $0xe1] sm:$0xff] %vm1942_vm0, %v3750_v33 }
 0x38f   : > { %v4245_v36 = vadd.f32 %v4229_v22, %v4193_v48  ;;  %v4266_v12 = vadd.f32 %v11365_v37, %v4244_v20  ;;  %v4106_v50 = vld [vmem:[#allocation3 + $0xf0] sm:$0xff] }
 0x390   : > { %v4158_v17 = vld [vmem:[#allocation3 + $0xf1] sm:$0xff]  ;;  %v4126_v57 = vmul.f32 %v11347_v23, %v4106_v50 }
 0x391   : > { %v4267_v49 = vadd.f32 %v11365_v37, %v4245_v36  ;;  %v3949_v38 = vld [vmem:[#allocation3 + $0xd8] sm:$0xff]  ;;  %v4282_v6 = vmax.f32 %v4266_v12, 0.0  ;;  %v4178_v16 = vmul.f32 %v11352_v11, %v4158_v17 }
 0x392   : > { %v4001_v3 = vld [vmem:[#allocation3 + $0xd9] sm:$0xff]  ;;  %v3969_v4 = vmul.f32 %v11335_v14, %v3949_v38 }
 0x393   : > { %v4283_v40 = vmax.f32 %v4267_v49, 0.0  ;;  %v4021_v18 = vmul.f32 %v11339_v53, %v4001_v3  ;;  %v4107_v20 = vld [vmem:[#allocation3 + $0xf8] sm:$0xff] }
 0x394   : > { %v3985_v24 = vadd.f32 %v3969_v4, %v3933_v61  ;;  %v4210_v62 = vld [vmem:[#allocation3 + $0xf2] sm:$0xff]  ;;  %v4127_v39 = vmul.f32 %v11347_v23, %v4107_v20 }
 0x395   : > { %v4295_v9 = vpack.c.bf16 %v4283_v40, %v4282_v6  ;;  %v3950_v46 = vld [vmem:[#allocation3 + $0xe0] sm:$0xff]  ;;  %v4230_v38 = vmul.f32 %v11357_v1, %v4210_v62 }
 0x396   : > { %v4002_v45 = vld [vmem:[#allocation3 + $0xe1] sm:$0xff]  ;;  %v3970_v8 = vmul.f32 %v11335_v14, %v3950_v46  ;;  %v4037_v42 = vadd.f32 %v4021_v18, %v3985_v24  ;;  %v4159_v12 = vld [vmem:[#allocation3 + $0xf9] sm:$0xff]  ;;  %v3831_v24 = vmul.f32 %v4106_v50, %v11314_v32  ;;  %v3867_v18 = vmul.f32 %v4158_v17, %v11317_v51 }
 0x397   : > { %v4053_v13 = vld [vmem:[#allocation3 + $0xda] sm:$0xff]  ;;  %v8422_v29 = vpop.f32.mrf.mxu1  ;;  %8439 = vmatmul.mubr.msk.bf16.gmra.mxu0 %vm1942_vm0, %v4295_v9  ;;  %v4054_v30 = vld [vmem:[#allocation3 + $0xe2] sm:$0xff]  ;;  %v4022_v54 = vmul.f32 %v11339_v53, %v4002_v45  ;;  %v4179_v4 = vmul.f32 %v11352_v11, %v4159_v12 }
 0x398   : > { %v4073_v60 = vmul.f32 %v11343_v52, %v4053_v13  ;;  %v3695_v0 = vadd.f32 %v8422_v29, %v11309_v43  ;;  %v3986_v7 = vadd.f32 %v3970_v8, %v3934_v19  ;;  %v4074_v22 = vmul.f32 %v11343_v52, %v4054_v30  ;;  %v4211_v40 = vld [vmem:[#allocation3 + $0xfa] sm:$0xff] }
 0x399   : > { %v3686_v5 = vpop.f32.mrf.mxu1  ;;  %v4231_v45 = vmul.f32 %v11357_v1, %v4211_v40  ;;  %v3832_v13 = vmul.f32 %v4107_v20, %v11314_v32  ;;  %v3868_v29 = vmul.f32 %v4159_v12, %v11317_v51  ;;  %v3919_v19 = vmul.f32 %v4210_v62, %v11321_v41 }
 0x39a   : > { %v4089_v2 = vadd.f32 %v4073_v60, %v4037_v42  ;;  %v3755_v21 = vmax.f32 %v3695_v0, 0.0  ;;  %v3687_v31 = vadd.f32 %v11309_v43, %v3686_v5  ;;  %v4038_v48 = vadd.f32 %v4022_v54, %v3986_v7 }
 0x39b   : > { %v8423_v33 = vpop.f32.mrf.mxu1  ;;  %v3883_v60 = vadd.f32 %v3867_v18, %v3831_v24  ;;  %v3884_v17 = vadd.f32 %v3868_v29, %v3832_v13 }
 0x39c   : > { %v4142_v44 = vadd.f32 %v4126_v57, %v4089_v2  ;;  %3788 = vst.msk [vmem:[#allocation3 + $0x121] sm:$0xff] %vm1942_vm0, %v3755_v21  ;;  %v3753_v15 = vmax.f32 %v3687_v31, 0.0  ;;  %v3698_v36 = vadd.f32 %v8423_v33, %v11309_v43  ;;  %v4090_v49 = vadd.f32 %v4074_v22, %v4038_v48 }
 0x39d   : > { %v3689_v58 = vpop.f32.mrf.mxu1  ;;  %v3935_v5 = vadd.f32 %v3919_v19, %v3883_v60  ;;  %v3920_v57 = vmul.f32 %v4211_v40, %v11321_v41 }
 0x39e   : > { %v4194_v35 = vadd.f32 %v4178_v16, %v4142_v44  ;;  %3786 = vst.msk [vmem:[#allocation3 + $0x109] sm:$0xff] %vm1942_vm0, %v3753_v15  ;;  %v3756_v3 = vmax.f32 %v3698_v36, 0.0  ;;  %v3690_v6 = vadd.f32 %v11309_v43, %v3689_v58  ;;  %v4143_v61 = vadd.f32 %v4127_v39, %v4090_v49 }
 0x39f   : > { %v3936_v44 = vadd.f32 %v3920_v57, %v3884_v17 }
 0x3a0   : > { %v4246_v9 = vadd.f32 %v4230_v38, %v4194_v35  ;;  %3789 = vst.msk [vmem:[#allocation3 + $0x129] sm:$0xff] %vm1942_vm0, %v3756_v3  ;;  %v3754_v10 = vmax.f32 %v3690_v6, 0.0  ;;  %v4195_v46 = vadd.f32 %v4179_v4, %v4143_v61 }
 0x3a2   : > { %3787 = vst.msk [vmem:[#allocation3 + $0x111] sm:$0xff] %vm1942_vm0, %v3754_v10  ;;  %v4247_v8 = vadd.f32 %v4231_v45, %v4195_v46  ;;  %v4268_v42 = vadd.f32 %v11365_v37, %v4246_v9 }
 0x3a3   : > { %v4108_v20 = vld [vmem:[#allocation3 + $0x120] sm:$0xff] }
 0x3a4   : > { %v4269_v0 = vadd.f32 %v11365_v37, %v4247_v8  ;;  %v4284_v54 = vmax.f32 %v4268_v42, 0.0  ;;  %v4160_v58 = vld [vmem:[#allocation3 + $0x121] sm:$0xff]  ;;  %v4128_v39 = vmul.f32 %v11347_v23, %v4108_v20 }
 0x3a5   : > { %v3951_v50 = vld [vmem:[#allocation3 + $0x108] sm:$0xff]  ;;  %v4180_v10 = vmul.f32 %v11352_v11, %v4160_v58 }
 0x3a6   : > { %v4003_v30 = vld [vmem:[#allocation3 + $0x109] sm:$0xff]  ;;  %v3971_v7 = vmul.f32 %v11335_v14, %v3951_v50  ;;  %v4285_v2 = vmax.f32 %v4269_v0, 0.0 }
 0x3a7   : > { %v4023_v31 = vmul.f32 %v11339_v53, %v4003_v30  ;;  %v4109_v40 = vld [vmem:[#allocation3 + $0x128] sm:$0xff] }
 0x3a8   : > { %v3987_v21 = vadd.f32 %v3971_v7, %v3935_v5  ;;  %v4296_v62 = vpack.c.bf16 %v4285_v2, %v4284_v54  ;;  %v4212_v61 = vld [vmem:[#allocation3 + $0x122] sm:$0xff]  ;;  %v4129_v19 = vmul.f32 %v11347_v23, %v4109_v40  ;;  %v4213_v5 = vld [vmem:[#allocation3 + $0x12a] sm:$0xff] }
 0x3a9   : > { %v3952_v33 = vld [vmem:[#allocation3 + $0x110] sm:$0xff]  ;;  %v4232_v8 = vmul.f32 %v11357_v1, %v4212_v61 }
 0x3aa   : > { %v4004_v48 = vld [vmem:[#allocation3 + $0x111] sm:$0xff]  ;;  %v3972_v16 = vmul.f32 %v11335_v14, %v3952_v33  ;;  %v4039_v15 = vadd.f32 %v4023_v31, %v3987_v21  ;;  %v8426_v49 = vpop.f32.mrf.mxu1  ;;  %8442 = vmatprep.mubr.msk.bf16.mxu1 %vm1942_vm0, %v4296_v62  ;;  %v4161_v13 = vld [vmem:[#allocation3 + $0x129] sm:$0xff]  ;;  %v3833_v21 = vmul.f32 %v4108_v20, %v11314_v32  ;;  %v4233_v33 = vmul.f32 %v11357_v1, %v4213_v5 }
 0x3ab   : > { %v4055_v22 = vld [vmem:[#allocation3 + $0x10a] sm:$0xff]  ;;  %v4056_v36 = vld [vmem:[#allocation3 + $0x112] sm:$0xff]  ;;  %v3711_v35 = vadd.f32 %v8426_v49, %v11309_v43  ;;  %v4024_v3 = vmul.f32 %v11339_v53, %v4004_v48  ;;  %v4181_v17 = vmul.f32 %v11352_v11, %v4161_v13  ;;  %v3869_v48 = vmul.f32 %v4160_v58, %v11317_v51 }
 0x3ac   : > { %v4075_v12 = vmul.f32 %v11343_v52, %v4055_v22  ;;  %v3988_v38 = vadd.f32 %v3972_v16, %v3936_v44  ;;  %v3702_v4 = vpop.f32.mrf.mxu1  ;;  %v4076_v9 = vmul.f32 %v11343_v52, %v4056_v36  ;;  %v3834_v22 = vmul.f32 %v4109_v40, %v11314_v32 }
 0x3ad   : > { %v3759_v24 = vmax.f32 %v3711_v35, 0.0  ;;  %v3703_v18 = vadd.f32 %v11309_v43, %v3702_v4  ;;  %v3870_v44 = vmul.f32 %v4161_v13, %v11317_v51  ;;  %v3921_v36 = vmul.f32 %v4212_v61, %v11321_v41 }
 0x3ae   : > { %v4091_v6 = vadd.f32 %v4075_v12, %v4039_v15  ;;  %v4040_v46 = vadd.f32 %v4024_v3, %v3988_v38  ;;  %v8427_v29 = vpop.f32.mrf.mxu1  ;;  %v3885_v12 = vadd.f32 %v3869_v48, %v3833_v21  ;;  %v3922_v4 = vmul.f32 %v4213_v5, %v11321_v41 }
 0x3af   : > { %3792 = vst.msk [vmem:[#allocation3 + $0x151] sm:$0xff] %vm1942_vm0, %v3759_v24  ;;  %v3757_v42 = vmax.f32 %v3703_v18, 0.0  ;;  %v3714_v60 = vadd.f32 %v8427_v29, %v11309_v43  ;;  %v3886_v49 = vadd.f32 %v3870_v44, %v3834_v22 }
 0x3b0   : > { %v4144_v45 = vadd.f32 %v4128_v39, %v4091_v6  ;;  %v4092_v0 = vadd.f32 %v4076_v9, %v4040_v46  ;;  %v3705_v30 = vpop.f32.mrf.mxu1  ;;  %v3937_v58 = vadd.f32 %v3921_v36, %v3885_v12 }
 0x3b1   : > { %3790 = vst.msk [vmem:[#allocation3 + $0x139] sm:$0xff] %vm1942_vm0, %v3757_v42  ;;  %v3760_v7 = vmax.f32 %v3714_v60, 0.0  ;;  %v3706_v54 = vadd.f32 %v11309_v43, %v3705_v30  ;;  %v3938_v13 = vadd.f32 %v3922_v4, %v3886_v49 }
 0x3b2   : > { %v4196_v50 = vadd.f32 %v4180_v10, %v4144_v45  ;;  %v4145_v2 = vadd.f32 %v4129_v19, %v4092_v0 }
 0x3b3   : > { %3793 = vst.msk [vmem:[#allocation3 + $0x159] sm:$0xff] %vm1942_vm0, %v3760_v7  ;;  %v3758_v31 = vmax.f32 %v3706_v54, 0.0 }
 0x3b4   : > { %v4248_v57 = vadd.f32 %v4232_v8, %v4196_v50  ;;  %v4197_v62 = vadd.f32 %v4181_v17, %v4145_v2 }
 0x3b5   : > { %3791 = vst.msk [vmem:[#allocation3 + $0x141] sm:$0xff] %vm1942_vm0, %v3758_v31 }
 0x3b6   : > { %v4249_v16 = vadd.f32 %v4233_v33, %v4197_v62  ;;  %v4270_v15 = vadd.f32 %v11365_v37, %v4248_v57  ;;  %v4110_v24 = vld [vmem:[#allocation3 + $0x150] sm:$0xff] }
 0x3b7   : > { %v4162_v0 = vld [vmem:[#allocation3 + $0x151] sm:$0xff]  ;;  %v4130_v7 = vmul.f32 %v11347_v23, %v4110_v24 }
 0x3b8   : > { %v4271_v20 = vadd.f32 %v11365_v37, %v4249_v16  ;;  %v3953_v39 = vld [vmem:[#allocation3 + $0x138] sm:$0xff]  ;;  %v4286_v38 = vmax.f32 %v4270_v15, 0.0  ;;  %v4182_v22 = vmul.f32 %v11352_v11, %v4162_v0 }
 0x3b9   : > { %v4005_v35 = vld [vmem:[#allocation3 + $0x139] sm:$0xff]  ;;  %v3973_v6 = vmul.f32 %v11335_v14, %v3953_v39 }
 0x3ba   : > { %v4287_v3 = vmax.f32 %v4271_v20, 0.0  ;;  %v4025_v10 = vmul.f32 %v11339_v53, %v4005_v35  ;;  %v4111_v57 = vld [vmem:[#allocation3 + $0x158] sm:$0xff] }
 0x3bb   : > { %v3989_v9 = vadd.f32 %v3973_v6, %v3937_v58  ;;  %v4214_v21 = vld [vmem:[#allocation3 + $0x152] sm:$0xff]  ;;  %v4131_v12 = vmul.f32 %v11347_v23, %v4111_v57 }
 0x3bc   : > { %v4297_v40 = vpack.c.bf16 %v4287_v3, %v4286_v38  ;;  %v3954_v18 = vld [vmem:[#allocation3 + $0x140] sm:$0xff]  ;;  %v4234_v39 = vmul.f32 %v11357_v1, %v4214_v21 }
 0x3bd   : > { %v4006_v61 = vld [vmem:[#allocation3 + $0x141] sm:$0xff]  ;;  %v3974_v29 = vmul.f32 %v11335_v14, %v3954_v18  ;;  %v4041_v19 = vadd.f32 %v4025_v10, %v3989_v9  ;;  %v4163_v15 = vld [vmem:[#allocation3 + $0x159] sm:$0xff]  ;;  %v3835_v9 = vmul.f32 %v4110_v24, %v11314_v32  ;;  %v3871_v10 = vmul.f32 %v4162_v0, %v11317_v51 }
 0x3be   : > { %v4057_v46 = vld [vmem:[#allocation3 + $0x13a] sm:$0xff]  ;;  %v8430_v45 = vpop.f32.mrf.mxu1  ;;  %8443 = vmatmul.mubr.msk.bf16.vlgmr.msra.gmra.mxu1 %vm1942_vm0, %v4297_v40  ;;  %v4058_v60 = vld [vmem:[#allocation3 + $0x142] sm:$0xff]  ;;  %v4026_v17 = vmul.f32 %v11339_v53, %v4006_v61  ;;  %v4183_v6 = vmul.f32 %v11352_v11, %v4163_v15 }
 0x3bf   : > { %v4077_v8 = vmul.f32 %v11343_v52, %v4057_v46  ;;  %v3727_v42 = vadd.f32 %v8430_v45, %v11309_v43  ;;  %v3990_v30 = vadd.f32 %v3974_v29, %v3938_v13  ;;  %v4078_v33 = vmul.f32 %v11343_v52, %v4058_v60  ;;  %v4215_v3 = vld [vmem:[#allocation3 + $0x15a] sm:$0xff] }
 0x3c0   : > { %v3718_v50 = vpop.f32.mrf.mxu1  ;;  %v4235_v61 = vmul.f32 %v11357_v1, %v4215_v3  ;;  %v3836_v46 = vmul.f32 %v4111_v57, %v11314_v32  ;;  %v3923_v45 = vmul.f32 %v4214_v21, %v11321_v41  ;;  %v3924_v32 = vmul.f32 %v4215_v3, %v11321_v41 }
 0x3c1   : > { %v4093_v5 = vadd.f32 %v4077_v8, %v4041_v19  ;;  %v3763_v54 = vmax.f32 %v3727_v42, 0.0  ;;  %v3719_v2 = vadd.f32 %v11309_v43, %v3718_v50  ;;  %v4042_v62 = vadd.f32 %v4026_v17, %v3990_v30 }
 0x3c2   : > { %v8431_v31 = vpop.f32.mrf.mxu1  ;;  %v3887_v19 = vadd.f32 %v3871_v10, %v3835_v9 }
 0x3c3   : > { %v4146_v48 = vadd.f32 %v4130_v7, %v4093_v5  ;;  %3796 = vst.msk [vmem:[#allocation3 + $0x181] sm:$0xff] %vm1942_vm0, %v3763_v54  ;;  %v3761_v44 = vmax.f32 %v3719_v2, 0.0  ;;  %v3730_v16 = vadd.f32 %v8431_v31, %v11309_v43  ;;  %v4094_v20 = vadd.f32 %v4078_v33, %v4042_v62 }
 0x3c4   : > { %v3721_v36 = vpop.f32.mrf.mxu1  ;;  %v3939_v0 = vadd.f32 %v3923_v45, %v3887_v19 }
 0x3c5   : > { %v4198_v49 = vadd.f32 %v4182_v22, %v4146_v48  ;;  %3794 = vst.msk [vmem:[#allocation3 + $0x169] sm:$0xff] %vm1942_vm0, %v3761_v44  ;;  %v3764_v35 = vmax.f32 %v3730_v16, 0.0  ;;  %v3722_v38 = vadd.f32 %v11309_v43, %v3721_v36  ;;  %v4147_v58 = vadd.f32 %v4131_v12, %v4094_v20 }
 0x3c6   : > { %v3872_v43 = vmul.f32 %v4163_v15, %v11317_v51 }
 0x3c7   : > { %v4250_v40 = vadd.f32 %v4234_v39, %v4198_v49  ;;  %3797 = vst.msk [vmem:[#allocation3 + $0x189] sm:$0xff] %vm1942_vm0, %v3764_v35  ;;  %v3762_v4 = vmax.f32 %v3722_v38, 0.0  ;;  %v4199_v18 = vadd.f32 %v4183_v6, %v4147_v58 }
 0x3c8   : > { %v3888_v60 = vadd.f32 %v3872_v43, %v3836_v46 }
 0x3c9   : > { %3795 = vst.msk [vmem:[#allocation3 + $0x171] sm:$0xff] %vm1942_vm0, %v3762_v4  ;;  %v4251_v13 = vadd.f32 %v4235_v61, %v4199_v18  ;;  %v4272_v29 = vadd.f32 %v11365_v37, %v4250_v40 }
 0x3ca   : > { %v4112_v7 = vld [vmem:[#allocation3 + $0x180] sm:$0xff]  ;;  %v3940_v31 = vadd.f32 %v3924_v32, %v3888_v60 }
 0x3cb   : > { %v4273_v8 = vadd.f32 %v11365_v37, %v4251_v13  ;;  %v4288_v30 = vmax.f32 %v4272_v29, 0.0  ;;  %v4164_v44 = vld [vmem:[#allocation3 + $0x181] sm:$0xff]  ;;  %v4132_v36 = vmul.f32 %v11347_v23, %v4112_v7  ;;  %v11573_v29 = vld [vmem:[#allocation24] ss:$0 sm:$0xff] }
 0x3cc   : > { %v3955_v24 = vld [vmem:[#allocation3 + $0x168] sm:$0xff] }
 0x3cd   : > { %v4007_v42 = vld [vmem:[#allocation3 + $0x169] sm:$0xff]  ;;  %v3975_v50 = vmul.f32 %v11335_v14, %v3955_v24  ;;  %v4289_v17 = vmax.f32 %v4273_v8, 0.0 }
 0x3ce   : > { %v4027_v51 = vmul.f32 %v11339_v53, %v4007_v42  ;;  %v4113_v20 = vld [vmem:[#allocation3 + $0x188] sm:$0xff]  ;;  %v8879_v42 = vld [vmem:[%s12504_s26] sm:$0xff]  }
 0x3cf   : > { %v3991_v5 = vadd.f32 %v3975_v50, %v3939_v0  ;;  %v4298_v54 = vpack.c.bf16 %v4289_v17, %v4288_v30  ;;  %v4216_v12 = vld [vmem:[#allocation3 + $0x182] sm:$0xff]  ;;  %v4133_v58 = vmul.f32 %v11347_v23, %v4113_v20  ;;  %v4217_v4 = vld [vmem:[#allocation3 + $0x18a] sm:$0xff] }
 0x3d0   : > { %v3956_v2 = vld [vmem:[#allocation3 + $0x170] sm:$0xff]  ;;  %v4236_v40 = vmul.f32 %v11357_v1, %v4216_v12  ;;  %v4237_v61 = vmul.f32 %v11357_v1, %v4217_v4 }
 0x3d1   : > { %v4008_v57 = vld [vmem:[#allocation3 + $0x171] sm:$0xff]  ;;  %v3976_v62 = vmul.f32 %v11335_v14, %v3956_v2  ;;  %v4043_v33 = vadd.f32 %v4027_v51, %v3991_v5  ;;  %8446 = vmatprep.mubr.msk.bf16.mxu1 %vm1942_vm0, %v4298_v54  ;;  %v4184_v14 = vmul.f32 %v11352_v11, %v4164_v44  ;;  %v4165_v38 = vld [vmem:[#allocation3 + $0x189] sm:$0xff] }
 0x3d2   : > { %v4059_v21 = vld [vmem:[#allocation3 + $0x16a] sm:$0xff]  ;;  %v4060_v22 = vld [vmem:[#allocation3 + $0x172] sm:$0xff]  ;;  %v4028_v41 = vmul.f32 %v11339_v53, %v4008_v57  ;;  %v4185_v9 = vmul.f32 %v11352_v11, %v4165_v38 }
 0x3d3   : > { %v4079_v48 = vmul.f32 %v11343_v52, %v4059_v21  ;;  %v3992_v16 = vadd.f32 %v3976_v62, %v3940_v31  ;;  %v4080_v39 = vmul.f32 %v11343_v52, %v4060_v22  ;;  %v11598_v51 = vld [vmem:[%s12505_s16] sm:$0xff] }
 0x3d4   : > { %v11602_v7 = vrot.slane %v11598_v51, %v10502_v27  ;;  %v11606_v54 = vrot.slane %v11598_v51, %v10505_v28  ;;  %v4524_v2 = vld [vmem:[#allocation4] sm:$0xff]  ;;  %v11612_v62 = vrot.slane %v11598_v51, %v10517_v34 }
 0x3d5   : > { %v4095_v15 = vadd.f32 %v4079_v48, %v4043_v33  ;;  %v4044_v49 = vadd.f32 %v4028_v41, %v3992_v16  ;;  %v4544_v57 = vld [vmem:[#allocation4 + $0x1] sm:$0xff]  ;;  %v11617_v16 = vrot.slane %v11598_v51, %v10534_v55 }
 0x3d6   : > { %v4536_v21 = vmul.f32 %v11602_v7, %v4524_v2  ;;  %v4556_v31 = vmul.f32 %v11606_v54, %v4544_v57  ;;  %v4572_v33 = vld [vmem:[#allocation4 + $0x2] sm:$0xff] }
 0x3d7   : > { %v4148_v35 = vadd.f32 %v4132_v36, %v4095_v15  ;;  %v4096_v3 = vadd.f32 %v4080_v39, %v4044_v49  ;;  %v4584_v22 = vmul.f32 %v11612_v62, %v4572_v33  ;;  %v11666_v2 = vld [vmem:[%s12505_s16 + $0x8] ss:$0 sm:$0xff] }
 0x3d8   : > { %v4564_v48 = vadd.f32 %v4556_v31, %v4536_v21 }
 0x3d9   : > { %v4200_v6 = vadd.f32 %v4184_v14, %v4148_v35  ;;  %v4149_v53 = vadd.f32 %v4133_v58, %v4096_v3  ;;  %v11625_v14 = vrot.slane %v11598_v51, %v10542_v59 }
 0x3da   : > { %v4592_v15 = vadd.f32 %v4584_v22, %v4564_v48 }
 0x3db   : > { %v4252_v10 = vadd.f32 %v4236_v40, %v4200_v6  ;;  %v4201_v18 = vadd.f32 %v4185_v9, %v4149_v53  ;;  %v11631_v9 = vrot.slane %v11598_v51, %v10546_v63 }
 0x3dd   : > { %v4253_v46 = vadd.f32 %v4237_v61, %v4201_v18  ;;  %v4274_v52 = vadd.f32 %v11365_v37, %v4252_v10 }
 0x3df   : > { %v4275_v43 = vadd.f32 %v11365_v37, %v4253_v46  ;;  %v4290_v45 = vmax.f32 %v4274_v52, 0.0  ;;  %v8878_v37 = vld [vmem:[%s12504_s26 + $0x8] sm:$0xff]  }
 0x3e0   : > { %8450 = vmatprep.subr.bf16.mxu0 %v8878_v37 }
 0x3e1   : > { %v4291_v23 = vmax.f32 %v4275_v43, 0.0  ;;  %8451 = vmatpush3.bf16.msra.mxu0 %v8878_v37 }
 0x3e2   : > { %8452 = vmatprep.subr.bf16.mxu0 %v8879_v42 }
 0x3e3   : > { %v4299_v13 = vpack.c.bf16 %v4291_v23, %v4290_v45  ;;  %v11641_v45 = vrot.slane %v11598_v51, %v10527_v47 }
 0x3e5   : > { %8447 = vmatmul.mubr.msk.bf16.gmra.mxu1 %vm1942_vm0, %v4299_v13  ;;  %8453 = vmatpush3.bf16.msra.mxu0 %v8879_v42  ;;  %vm5155_vm0 = vcmask 516096  }
 0x42c   : > { %v8436_v19 = vpop.f32.mrf.mxu0 }
 0x42d   : > { %v4382_v11 = vadd.f32 %v8436_v19, %v11573_v29 }
 0x42e   : > { %v4373_v1 = vpop.f32.mrf.mxu0 }
 0x42f   : > { %v4438_v8 = vmax.f32 %v4382_v11, 0.0  ;;  %v4374_v24 = vadd.f32 %v11573_v29, %v4373_v1 }
 0x430   : > { %v8437_v60 = vpop.f32.mrf.mxu0 }
 0x431   : > { %4455 = vst.msk [vmem:[#allocation4 + $0x21] sm:$0x1] %vm4453_vm10, %v4438_v8  ;;  %v4436_v0 = vmax.f32 %v4374_v24, 0.0  ;;  %v4385_v50 = vadd.f32 %v8437_v60, %v11573_v29 }
 0x432   : > { %4464 = vst.msk [vmem:[#allocation4 + $0x20] sm:$0x4] %vm4462_vm11, %v4438_v8  ;;  %v4376_v30 = vpop.f32.mrf.mxu0 }
 0x433   : > { %4473 = vst.msk [vmem:[#allocation4 + $0x1f] sm:$0x10] %vm4471_vm12, %v4438_v8  ;;  %4472 = vst.msk [vmem:[#allocation4 + $0xf] sm:$0x10] %vm4471_vm12, %v4436_v0  ;;  %v4439_v17 = vmax.f32 %v4385_v50, 0.0  ;;  %v4377_v32 = vadd.f32 %v11573_v29, %v4376_v30 }
 0x434   : > { %4482 = vst.msk [vmem:[#allocation4 + $0x1e] sm:$0x40] %vm4480_vm13, %v4438_v8  ;;  %4481 = vst.msk [vmem:[#allocation4 + $0xe] sm:$0x40] %vm4480_vm13, %v4436_v0 }
 0x435   : > { %4454 = vst.msk [vmem:[#allocation4 + $0x11] sm:$0x1] %vm4453_vm10, %v4436_v0  ;;  %4490 = vst.msk [vmem:[#allocation4 + $0x25] sm:$0x1] %vm4453_vm10, %v4439_v17  ;;  %v4437_v5 = vmax.f32 %v4377_v32, 0.0 }
 0x436   : > { %4463 = vst.msk [vmem:[#allocation4 + $0x10] sm:$0x4] %vm4462_vm11, %v4436_v0  ;;  %4498 = vst.msk [vmem:[#allocation4 + $0x24] sm:$0x4] %vm4462_vm11, %v4439_v17  ;;  %v11661_v0 = vrot.slane %v11598_v51, %v10537_v56 }
 0x437   : > { %4506 = vst.msk [vmem:[#allocation4 + $0x23] sm:$0x10] %vm4471_vm12, %v4439_v17  ;;  %4505 = vst.msk [vmem:[#allocation4 + $0x13] sm:$0x10] %vm4471_vm12, %v4437_v5 }
 0x438   : > { %4514 = vst.msk [vmem:[#allocation4 + $0x22] sm:$0x40] %vm4480_vm13, %v4439_v17  ;;  %4513 = vst.msk [vmem:[#allocation4 + $0x12] sm:$0x40] %vm4480_vm13, %v4437_v5 }
 0x439   : > { %4489 = vst.msk [vmem:[#allocation4 + $0x15] sm:$0x1] %vm4453_vm10, %v4437_v5 }
 0x43a   : > { %4497 = vst.msk [vmem:[#allocation4 + $0x14] sm:$0x4] %vm4462_vm11, %v4437_v5 }
 0x43e   : > { %v4601_v43 = vld [vmem:[#allocation4 + $0x20] sm:$0xff] }
 0x43f   : > { %v4613_v8 = vmul.f32 %v11617_v16, %v4601_v43  ;;  %v4629_v37 = vld [vmem:[#allocation4 + $0x21] sm:$0xff]  ;;  %v4697_v60 = vmul.f32 %v11641_v45, %v4601_v43 }
 0x440   : > { %v4641_v50 = vmul.f32 %v11625_v14, %v4629_v37  ;;  %v4657_v17 = vld [vmem:[#allocation4 + $0x22] sm:$0xff]  ;;  %v4725_v5 = vmul.f32 %v11661_v0, %v4629_v37 }
 0x441   : > { %v4525_v44 = vld [vmem:[#allocation4 + $0x10] sm:$0xff]  ;;  %v4669_v57 = vmul.f32 %v11631_v9, %v4657_v17  ;;  %v4753_v51 = vmul.f32 %v11666_v2, %v4657_v17 }
 0x442   : > { %v4545_v41 = vld [vmem:[#allocation4 + $0x11] sm:$0xff]  ;;  %v4612_v36 = vmul.f32 %v11617_v16, %v4525_v44  ;;  %v4537_v20 = vmul.f32 %v11602_v7, %v4525_v44 }
 0x443   : > { %v4557_v12 = vmul.f32 %v11606_v54, %v4545_v41  ;;  %v4573_v3 = vld [vmem:[#allocation4 + $0x12] sm:$0xff]  ;;  %v4640_v4 = vmul.f32 %v11625_v14, %v4545_v41 }
 0x444   : > { %v4620_v35 = vadd.f32 %v4612_v36, %v4592_v15  ;;  %v4585_v61 = vmul.f32 %v11612_v62, %v4573_v3  ;;  %v4668_v11 = vmul.f32 %v11631_v9, %v4573_v3 }
 0x445   : > { %v4565_v40 = vadd.f32 %v4557_v12, %v4537_v20  ;;  %v11672_v20 = vld [vmem:[#allocation25] ss:$0 sm:$0xff] }
 0x446   : > { %v4648_v46 = vadd.f32 %v4640_v4, %v4620_v35 }
 0x447   : > { %v4593_v19 = vadd.f32 %v4585_v61, %v4565_v40  ;;  %v4558_v40 = vmul.f32 %v4629_v37, %v11606_v54 }
 0x448   : > { %v4676_v24 = vadd.f32 %v4668_v11, %v4648_v46 }
 0x449   : > { %v4621_v42 = vadd.f32 %v4613_v8, %v4593_v19 }
 0x44a   : > { %v4705_v30 = vadd.f32 %v4697_v60, %v4676_v24 }
 0x44b   : > { %v4649_v32 = vadd.f32 %v4641_v50, %v4621_v42 }
 0x44c   : > { %v4733_v21 = vadd.f32 %v4725_v5, %v4705_v30 }
 0x44d   : > { %v4677_v48 = vadd.f32 %v4669_v57, %v4649_v32 }
 0x44e   : > { %v4761_v36 = vadd.f32 %v4753_v51, %v4733_v21 }
 0x450   : > { %v4775_v35 = vadd.f32 %v11672_v20, %v4761_v36 }
 0x452   : > { %v4783_v3 = vmax.f32 %v4775_v35, 0.0 }
 0x457   : > { %v8440_v49 = vpop.f32.mrf.mxu0 }
 0x458   : > { %v4398_v39 = vadd.f32 %v8440_v49, %v11573_v29 }
 0x459   : > { %v4389_v38 = vpop.f32.mrf.mxu0 }
 0x45a   : > { %v4442_v58 = vmax.f32 %v4398_v39, 0.0  ;;  %v4390_v6 = vadd.f32 %v11573_v29, %v4389_v38 }
 0x45b   : > { %v8441_v53 = vpop.f32.mrf.mxu0 }
 0x45c   : > { %4457 = vst.msk [vmem:[#allocation4 + $0x41] sm:$0x1] %vm4453_vm10, %v4442_v58  ;;  %v4440_v10 = vmax.f32 %v4390_v6, 0.0  ;;  %v4401_v18 = vadd.f32 %v8441_v53, %v11573_v29  ;;  %v4538_v6 = vmul.f32 %v4601_v43, %v11602_v7 }
 0x45d   : > { %4466 = vst.msk [vmem:[#allocation4 + $0x40] sm:$0x4] %vm4462_vm11, %v4442_v58  ;;  %v4392_v52 = vpop.f32.mrf.mxu0 }
 0x45e   : > { %4475 = vst.msk [vmem:[#allocation4 + $0x3f] sm:$0x10] %vm4471_vm12, %v4442_v58  ;;  %4474 = vst.msk [vmem:[#allocation4 + $0x2f] sm:$0x10] %vm4471_vm12, %v4440_v10  ;;  %v4443_v23 = vmax.f32 %v4401_v18, 0.0  ;;  %v4393_v13 = vadd.f32 %v11573_v29, %v4392_v52  ;;  %v4566_v53 = vadd.f32 %v4558_v40, %v4538_v6 }
 0x45f   : > { %4484 = vst.msk [vmem:[#allocation4 + $0x3e] sm:$0x40] %vm4480_vm13, %v4442_v58  ;;  %4483 = vst.msk [vmem:[#allocation4 + $0x2e] sm:$0x40] %vm4480_vm13, %v4440_v10 }
 0x460   : > { %4456 = vst.msk [vmem:[#allocation4 + $0x31] sm:$0x1] %vm4453_vm10, %v4440_v10  ;;  %4492 = vst.msk [vmem:[#allocation4 + $0x45] sm:$0x1] %vm4453_vm10, %v4443_v23  ;;  %v4441_v1 = vmax.f32 %v4393_v13, 0.0 }
 0x461   : > { %4465 = vst.msk [vmem:[#allocation4 + $0x30] sm:$0x4] %vm4462_vm11, %v4440_v10  ;;  %4500 = vst.msk [vmem:[#allocation4 + $0x44] sm:$0x4] %vm4462_vm11, %v4443_v23  ;;  %v4586_v10 = vmul.f32 %v4657_v17, %v11612_v62 }
 0x462   : > { %4508 = vst.msk [vmem:[#allocation4 + $0x43] sm:$0x10] %vm4471_vm12, %v4443_v23  ;;  %4507 = vst.msk [vmem:[#allocation4 + $0x33] sm:$0x10] %vm4471_vm12, %v4441_v1 }
 0x463   : > { %4516 = vst.msk [vmem:[#allocation4 + $0x42] sm:$0x40] %vm4480_vm13, %v4443_v23  ;;  %4515 = vst.msk [vmem:[#allocation4 + $0x32] sm:$0x40] %vm4480_vm13, %v4441_v1  ;;  %v4594_v52 = vadd.f32 %v4586_v10, %v4566_v53 }
 0x464   : > { %4491 = vst.msk [vmem:[#allocation4 + $0x35] sm:$0x1] %vm4453_vm10, %v4441_v1 }
 0x465   : > { %4499 = vst.msk [vmem:[#allocation4 + $0x34] sm:$0x4] %vm4462_vm11, %v4441_v1 }
 0x469   : > { %v4603_v32 = vld [vmem:[#allocation4 + $0x40] sm:$0xff] }
 0x46a   : > { %v4631_v51 = vld [vmem:[#allocation4 + $0x41] sm:$0xff] }
 0x46c   : > { %v4686_v31 = vld [vmem:[#allocation4 + $0x30] sm:$0xff] }
 0x46d   : > { %v4714_v33 = vld [vmem:[#allocation4 + $0x31] sm:$0xff]  ;;  %v4698_v22 = vmul.f32 %v11641_v45, %v4686_v31  ;;  %v4614_v18 = vmul.f32 %v4686_v31, %v11617_v16  ;;  %v4539_v61 = vmul.f32 %v4686_v31, %v11602_v7 }
 0x46e   : > { %v4742_v44 = vld [vmem:[#allocation4 + $0x32] sm:$0xff]  ;;  %v4726_v15 = vmul.f32 %v11661_v0, %v4714_v33  ;;  %v4559_v46 = vmul.f32 %v4714_v33, %v11606_v54  ;;  %v4642_v24 = vmul.f32 %v4714_v33, %v11625_v14 }
 0x46f   : > { %v4706_v41 = vadd.f32 %v4698_v22, %v4677_v48  ;;  %v4754_v49 = vmul.f32 %v11666_v2, %v4742_v44  ;;  %v4622_v19 = vadd.f32 %v4614_v18, %v4594_v52  ;;  %v4587_v50 = vmul.f32 %v4742_v44, %v11612_v62 }
 0x470   : > { %v4567_v8 = vadd.f32 %v4559_v46, %v4539_v61  ;;  %v4670_v31 = vmul.f32 %v4742_v44, %v11631_v9  ;;  %v4615_v48 = vmul.f32 %v11617_v16, %v4603_v32 }
 0x471   : > { %v4734_v12 = vadd.f32 %v4726_v15, %v4706_v41  ;;  %v4650_v30 = vadd.f32 %v4642_v24, %v4622_v19  ;;  %v4699_v41 = vmul.f32 %v11641_v45, %v4603_v32  ;;  %v4643_v15 = vmul.f32 %v11625_v14, %v4631_v51 }
 0x472   : > { %v4595_v21 = vadd.f32 %v4587_v50, %v4567_v8  ;;  %v4560_v8 = vmul.f32 %v4631_v51, %v11606_v54 }
 0x473   : > { %v4762_v39 = vadd.f32 %v4754_v49, %v4734_v12  ;;  %v4678_v22 = vadd.f32 %v4670_v31, %v4650_v30  ;;  %v4659_v12 = vld [vmem:[#allocation4 + $0x42] sm:$0xff] }
 0x474   : > { %v4623_v44 = vadd.f32 %v4615_v48, %v4595_v21  ;;  %v4671_v35 = vmul.f32 %v11631_v9, %v4659_v12 }
 0x475   : > { %v4776_v38 = vadd.f32 %v11672_v20, %v4762_v39  ;;  %v4707_v36 = vadd.f32 %v4699_v41, %v4678_v22  ;;  %v4727_v39 = vmul.f32 %v11661_v0, %v4631_v51 }
 0x476   : > { %v4651_v49 = vadd.f32 %v4643_v15, %v4623_v44 }
 0x477   : > { %v4784_v58 = vmax.f32 %v4776_v38, 0.0  ;;  %v4735_v38 = vadd.f32 %v4727_v39, %v4707_v36 }
 0x478   : > { %v4679_v6 = vadd.f32 %v4671_v35, %v4651_v49 }
 0x479   : > { %v4791_v4 = vpack.c.bf16 %v4784_v58, %v4783_v3 }
 0x47b   : > { %8454 = vmatprep.mubr.msk.bf16.mxu0 %vm1998_vm2, %v4791_v4  ;;  %v4755_v4 = vmul.f32 %v11666_v2, %v4659_v12 }
 0x47d   : > { %v4763_v61 = vadd.f32 %v4755_v4, %v4735_v38 }
 0x47e   : > { %v8444_v23 = vpop.f32.mrf.mxu1 }
 0x47f   : > { %v4414_v13 = vadd.f32 %v8444_v23, %v11573_v29 }
 0x480   : > { %v4405_v43 = vpop.f32.mrf.mxu1 }
 0x481   : > { %v4446_v11 = vmax.f32 %v4414_v13, 0.0  ;;  %v4406_v1 = vadd.f32 %v11573_v29, %v4405_v43  ;;  %v4777_v13 = vadd.f32 %v11672_v20, %v4763_v61 }
 0x482   : > { %v8445_v37 = vpop.f32.mrf.mxu1 }
 0x483   : > { %4459 = vst.msk [vmem:[#allocation4 + $0x61] sm:$0x1] %vm4453_vm10, %v4446_v11  ;;  %v4444_v42 = vmax.f32 %v4406_v1, 0.0  ;;  %v4417_v60 = vadd.f32 %v8445_v37, %v11573_v29  ;;  %v4785_v43 = vmax.f32 %v4777_v13, 0.0  ;;  %v4540_v1 = vmul.f32 %v4603_v32, %v11602_v7 }
 0x484   : > { %4468 = vst.msk [vmem:[#allocation4 + $0x60] sm:$0x4] %vm4462_vm11, %v4446_v11  ;;  %v4408_v17 = vpop.f32.mrf.mxu1 }
 0x485   : > { %4477 = vst.msk [vmem:[#allocation4 + $0x5f] sm:$0x10] %vm4471_vm12, %v4446_v11  ;;  %4476 = vst.msk [vmem:[#allocation4 + $0x4f] sm:$0x10] %vm4471_vm12, %v4444_v42  ;;  %v4447_v5 = vmax.f32 %v4417_v60, 0.0  ;;  %v4409_v57 = vadd.f32 %v11573_v29, %v4408_v17  ;;  %v4568_v37 = vadd.f32 %v4560_v8, %v4540_v1 }
 0x486   : > { %4486 = vst.msk [vmem:[#allocation4 + $0x5e] sm:$0x40] %vm4480_vm13, %v4446_v11  ;;  %4485 = vst.msk [vmem:[#allocation4 + $0x4e] sm:$0x40] %vm4480_vm13, %v4444_v42 }
 0x487   : > { %4458 = vst.msk [vmem:[#allocation4 + $0x51] sm:$0x1] %vm4453_vm10, %v4444_v42  ;;  %4494 = vst.msk [vmem:[#allocation4 + $0x65] sm:$0x1] %vm4453_vm10, %v4447_v5  ;;  %v4445_v33 = vmax.f32 %v4409_v57, 0.0 }
 0x488   : > { %4467 = vst.msk [vmem:[#allocation4 + $0x50] sm:$0x4] %vm4462_vm11, %v4444_v42  ;;  %4502 = vst.msk [vmem:[#allocation4 + $0x64] sm:$0x4] %vm4462_vm11, %v4447_v5  ;;  %v4588_v42 = vmul.f32 %v4659_v12, %v11612_v62 }
 0x489   : > { %4510 = vst.msk [vmem:[#allocation4 + $0x63] sm:$0x10] %vm4471_vm12, %v4447_v5  ;;  %4509 = vst.msk [vmem:[#allocation4 + $0x53] sm:$0x10] %vm4471_vm12, %v4445_v33 }
 0x48a   : > { %4518 = vst.msk [vmem:[#allocation4 + $0x62] sm:$0x40] %vm4480_vm13, %v4447_v5  ;;  %4517 = vst.msk [vmem:[#allocation4 + $0x52] sm:$0x40] %vm4480_vm13, %v4445_v33  ;;  %v4596_v17 = vadd.f32 %v4588_v42, %v4568_v37 }
 0x48b   : > { %4493 = vst.msk [vmem:[#allocation4 + $0x55] sm:$0x1] %vm4453_vm10, %v4445_v33 }
 0x48c   : > { %4501 = vst.msk [vmem:[#allocation4 + $0x54] sm:$0x4] %vm4462_vm11, %v4445_v33 }
 0x490   : > { %v4605_v49 = vld [vmem:[#allocation4 + $0x60] sm:$0xff] }
 0x493   : > { %v4688_v3 = vld [vmem:[#allocation4 + $0x50] sm:$0xff] }
 0x494   : > { %v4716_v58 = vld [vmem:[#allocation4 + $0x51] sm:$0xff]  ;;  %v4700_v40 = vmul.f32 %v11641_v45, %v4688_v3  ;;  %v4616_v60 = vmul.f32 %v4688_v3, %v11617_v16  ;;  %v4541_v50 = vmul.f32 %v4688_v3, %v11602_v7 }
 0x495   : > { %v4744_v53 = vld [vmem:[#allocation4 + $0x52] sm:$0xff]  ;;  %v4728_v18 = vmul.f32 %v11661_v0, %v4716_v58  ;;  %v4561_v30 = vmul.f32 %v4716_v58, %v11606_v54  ;;  %v4644_v22 = vmul.f32 %v4716_v58, %v11625_v14 }
 0x496   : > { %v4708_v10 = vadd.f32 %v4700_v40, %v4679_v6  ;;  %v4756_v52 = vmul.f32 %v11666_v2, %v4744_v53  ;;  %v4624_v21 = vadd.f32 %v4616_v60, %v4596_v17  ;;  %v4589_v15 = vmul.f32 %v4744_v53, %v11612_v62  ;;  %v4633_v40 = vld [vmem:[#allocation4 + $0x61] sm:$0xff] }
 0x497   : > { %v4569_v48 = vadd.f32 %v4561_v30, %v4541_v50  ;;  %v4672_v3 = vmul.f32 %v4744_v53, %v11631_v9  ;;  %v4617_v6 = vmul.f32 %v11617_v16, %v4605_v49  ;;  %v4701_v53 = vmul.f32 %v11641_v45, %v4605_v49 }
 0x498   : > { %v4736_v46 = vadd.f32 %v4728_v18, %v4708_v10  ;;  %v4652_v36 = vadd.f32 %v4644_v22, %v4624_v21  ;;  %v4542_v10 = vmul.f32 %v4605_v49, %v11602_v7  ;;  %v4562_v18 = vmul.f32 %v4633_v40, %v11606_v54 }
 0x499   : > { %v4597_v38 = vadd.f32 %v4589_v15, %v4569_v48  ;;  %v4645_v61 = vmul.f32 %v11625_v14, %v4633_v40  ;;  %v4729_v13 = vmul.f32 %v11661_v0, %v4633_v40 }
 0x49a   : > { %v4764_v23 = vadd.f32 %v4756_v52, %v4736_v46  ;;  %v4680_v4 = vadd.f32 %v4672_v3, %v4652_v36  ;;  %v4661_v52 = vld [vmem:[#allocation4 + $0x62] sm:$0xff] }
 0x49b   : > { %v4757_v50 = vmul.f32 %v11666_v2, %v4661_v52 }
 0x49c   : > { %v4778_v19 = vadd.f32 %v11672_v20, %v4764_v23  ;;  %v4709_v46 = vadd.f32 %v4701_v53, %v4680_v4  ;;  %v4720_v53 = vld [vmem:[#allocation4 + $0x91] sm:$0xff] }
 0x49e   : > { %v4786_v11 = vmax.f32 %v4778_v19, 0.0  ;;  %v4570_v19 = vadd.f32 %v4562_v18, %v4542_v10 }
 0x4a0   : > { %v4792_v24 = vpack.c.bf16 %v4786_v11, %v4785_v43  ;;  %v4673_v43 = vmul.f32 %v11631_v9, %v4661_v52  ;;  %v4737_v11 = vadd.f32 %v4729_v13, %v4709_v46 }
 0x4a2   : > { %8455 = vmatmul.mubr.msk.bf16.vlgmr.msra.gmra.mxu0 %vm1998_vm2, %v4792_v24  ;;  %v4590_v24 = vmul.f32 %v4661_v52, %v11612_v62 }
 0x4a5   : > { %v8448_v5 = vpop.f32.mrf.mxu1 }
 0x4a6   : > { %v4430_v57 = vadd.f32 %v8448_v5, %v11573_v29  ;;  %v4598_v5 = vadd.f32 %v4590_v24, %v4570_v19 }
 0x4a7   : > { %v4421_v32 = vpop.f32.mrf.mxu1 }
 0x4a8   : > { %v4450_v31 = vmax.f32 %v4430_v57, 0.0  ;;  %v4422_v33 = vadd.f32 %v11573_v29, %v4421_v32 }
 0x4a9   : > { %v8449_v51 = vpop.f32.mrf.mxu1 }
 0x4aa   : > { %4461 = vst.msk [vmem:[#allocation4 + $0x81] sm:$0x1] %vm4453_vm10, %v4450_v31  ;;  %v4448_v44 = vmax.f32 %v4422_v33, 0.0  ;;  %v4433_v41 = vadd.f32 %v8449_v51, %v11573_v29 }
 0x4ab   : > { %4470 = vst.msk [vmem:[#allocation4 + $0x80] sm:$0x4] %vm4462_vm11, %v4450_v31  ;;  %v4424_v12 = vpop.f32.mrf.mxu1 }
 0x4ac   : > { %4479 = vst.msk [vmem:[#allocation4 + $0x7f] sm:$0x10] %vm4471_vm12, %v4450_v31  ;;  %4478 = vst.msk [vmem:[#allocation4 + $0x6f] sm:$0x10] %vm4471_vm12, %v4448_v44  ;;  %v4451_v39 = vmax.f32 %v4433_v41, 0.0  ;;  %v4425_v35 = vadd.f32 %v11573_v29, %v4424_v12  ;;  %v4625_v29 = vadd.f32 %v4617_v6, %v4597_v38 }
 0x4ad   : > { %4488 = vst.msk [vmem:[#allocation4 + $0x7e] sm:$0x40] %vm4480_vm13, %v4450_v31  ;;  %4487 = vst.msk [vmem:[#allocation4 + $0x6e] sm:$0x40] %vm4480_vm13, %v4448_v44  ;;  %v4765_v31 = vadd.f32 %v4757_v50, %v4737_v11 }
 0x4ae   : > { %4460 = vst.msk [vmem:[#allocation4 + $0x71] sm:$0x1] %vm4453_vm10, %v4448_v44  ;;  %4496 = vst.msk [vmem:[#allocation4 + $0x85] sm:$0x1] %vm4453_vm10, %v4451_v39  ;;  %v4449_v58 = vmax.f32 %v4425_v35, 0.0  ;;  %v4653_v23 = vadd.f32 %v4645_v61, %v4625_v29 }
 0x4af   : > { %4469 = vst.msk [vmem:[#allocation4 + $0x70] sm:$0x4] %vm4462_vm11, %v4448_v44  ;;  %4504 = vst.msk [vmem:[#allocation4 + $0x84] sm:$0x4] %vm4462_vm11, %v4451_v39  ;;  %v4779_v38 = vadd.f32 %v11672_v20, %v4765_v31  ;;  %v4915_v31 = vld [vmem:[#allocation5] sm:$0xff] }
 0x4b0   : > { %4512 = vst.msk [vmem:[#allocation4 + $0x83] sm:$0x10] %vm4471_vm12, %v4451_v39  ;;  %4511 = vst.msk [vmem:[#allocation4 + $0x73] sm:$0x10] %vm4471_vm12, %v4449_v58  ;;  %v4681_v37 = vadd.f32 %v4673_v43, %v4653_v23  ;;  %v4748_v23 = vld [vmem:[#allocation4 + $0x92] sm:$0xff] }
 0x4b1   : > { %4520 = vst.msk [vmem:[#allocation4 + $0x82] sm:$0x40] %vm4480_vm13, %v4451_v39  ;;  %4519 = vst.msk [vmem:[#allocation4 + $0x72] sm:$0x40] %vm4480_vm13, %v4449_v58  ;;  %v4692_v39 = vld [vmem:[#allocation4 + $0x90] sm:$0xff]  ;;  %v4787_v46 = vmax.f32 %v4779_v38, 0.0 }
 0x4b2   : > { %4495 = vst.msk [vmem:[#allocation4 + $0x75] sm:$0x1] %vm4453_vm10, %v4449_v58  ;;  %v4704_v29 = vmul.f32 %v11641_v45, %v4692_v39  ;;  %v4943_v39 = vld [vmem:[#allocation5 + $0x2] sm:$0xff] }
 0x4b3   : > { %4503 = vst.msk [vmem:[#allocation4 + $0x74] sm:$0x4] %vm4462_vm11, %v4449_v58 }
 0x4b7   : > { %v4607_v33 = vld [vmem:[#allocation4 + $0x80] sm:$0xff] }
 0x4b8   : > { %v4663_v3 = vld [vmem:[#allocation4 + $0x82] sm:$0xff]  ;;  %v4703_v40 = vmul.f32 %v11641_v45, %v4607_v33 }
 0x4b9   : > { %v4675_v10 = vmul.f32 %v11631_v9, %v4663_v3  ;;  %v4759_v43 = vmul.f32 %v11666_v2, %v4663_v3 }
 0x4ba   : > { %v4690_v1 = vld [vmem:[#allocation4 + $0x70] sm:$0xff] }
 0x4bb   : > { %v4718_v8 = vld [vmem:[#allocation4 + $0x71] sm:$0xff]  ;;  %v4702_v42 = vmul.f32 %v11641_v45, %v4690_v1  ;;  %v4543_v30 = vmul.f32 %v4690_v1, %v11602_v7  ;;  %v4618_v57 = vmul.f32 %v4690_v1, %v11617_v16  ;;  %v4635_v7 = vld [vmem:[#allocation4 + $0x81] sm:$0xff]  ;;  %v4760_v1 = vmul.f32 %v11666_v2, %v4748_v23 }
 0x4bc   : > { %v4746_v60 = vld [vmem:[#allocation4 + $0x72] sm:$0xff]  ;;  %v4563_v17 = vmul.f32 %v4718_v8, %v11606_v54  ;;  %v4730_v32 = vmul.f32 %v11661_v0, %v4718_v8  ;;  %v4646_v44 = vmul.f32 %v4718_v8, %v11625_v14  ;;  %v4619_v54 = vmul.f32 %v11617_v16, %v4607_v33 }
 0x4bd   : > { %v4710_v21 = vadd.f32 %v4702_v42, %v4681_v37  ;;  %v4591_v22 = vmul.f32 %v4746_v60, %v11612_v62  ;;  %v4626_v51 = vadd.f32 %v4618_v57, %v4598_v5  ;;  %v4758_v15 = vmul.f32 %v11666_v2, %v4746_v60  ;;  %v11783_v2 = vld [vmem:[#allocation13 + $0x30] sm:$0xff]  ;;  %v11809_v5 = vld [vmem:[#allocation27] ss:$0 sm:$0xff] }
 0x4be   : > { %v4571_v48 = vadd.f32 %v4563_v17, %v4543_v30  ;;  %v4674_v49 = vmul.f32 %v4746_v60, %v11631_v9  ;;  %v4647_v62 = vmul.f32 %v11625_v14, %v4635_v7  ;;  %v4731_v61 = vmul.f32 %v11661_v0, %v4635_v7  ;;  %v8880_v30 = vld [vmem:[%s12506_s7 + $0x8] sm:$0xff]   ;;  %v8881_v17 = vld [vmem:[%s12507_s21] sm:$0xff]   ;;  %2048 = vst.msk [vmem:[#allocation6 + $0x30] sm:$0xff] %vm2040_vm14, %v11783_v2  ;;  %s12513_s7 = sld [smem:[#allocation70_spill]] }
 0x4bf   : > { %v4738_v41 = vadd.f32 %v4730_v32, %v4710_v21  ;;  %v4654_v12 = vadd.f32 %v4646_v44, %v4626_v51  ;;  %v4732_v14 = vmul.f32 %v11661_v0, %v4720_v53  ;;  %8462 = vmatprep.subr.bf16.mxu0 %v8880_v30  ;;  %2041 = vst.msk [vmem:[#allocation6] sm:$0xff] %vm2040_vm14, %v11783_v2  ;;  %2044 = vst.msk [vmem:[#allocation6 + $0x10] sm:$0xff] %vm2040_vm14, %v11783_v2 }
 0x4c0   : > { %v4599_v36 = vadd.f32 %v4591_v22, %v4571_v48  ;;  %8463 = vmatpush3.bf16.msra.mxu0 %v8880_v30  ;;  %2046 = vst.msk [vmem:[#allocation6 + $0x20] sm:$0xff] %vm2040_vm14, %v11783_v2  ;;  %2050 = vst.msk [vmem:[#allocation6 + $0x40] sm:$0xff] %vm2040_vm14, %v11783_v2  ;;  %v4927_v22 = vld [vmem:[#allocation5 + $0x1] sm:$0xff] }
 0x4c1   : > { %v4766_v35 = vadd.f32 %v4758_v15, %v4738_v41  ;;  %v4682_v6 = vadd.f32 %v4674_v49, %v4654_v12  ;;  %8464 = vmatprep.subr.bf16.mxu0 %v8881_v17  ;;  %2052 = vst.msk [vmem:[#allocation6 + $0x50] sm:$0xff] %vm2040_vm14, %v11783_v2  ;;  %2054 = vst.msk [vmem:[#allocation7] sm:$0xff] %vm2040_vm14, %v11783_v2 }
 0x4c2   : > { %v4627_v58 = vadd.f32 %v4619_v54, %v4599_v36  ;;  %2056 = vst.msk [vmem:[#allocation7 + $0x10] sm:$0xff] %vm2040_vm14, %v11783_v2  ;;  %2058 = vst.msk [vmem:[#allocation7 + $0x20] sm:$0xff] %vm2040_vm14, %v11783_v2 }
 0x4c3   : > { %v4780_v4 = vadd.f32 %v11672_v20, %v4766_v35  ;;  %v4711_v18 = vadd.f32 %v4703_v40, %v4682_v6  ;;  %2060 = vst.msk [vmem:[#allocation7 + $0x30] sm:$0xff] %vm2040_vm14, %v11783_v2  ;;  %2062 = vst.msk [vmem:[#allocation7 + $0x40] sm:$0xff] %vm2040_vm14, %v11783_v2 }
 0x4c4   : > { %v4655_v16 = vadd.f32 %v4647_v62, %v4627_v58  ;;  %8465 = vmatpush3.bf16.msra.mxu0 %v8881_v17  ;;  %2043 = vst.msk [vmem:[#allocation6 + $0x8] sm:$0x3] %vm2042_vm15, %v11783_v2  ;;  %2045 = vst.msk [vmem:[#allocation6 + $0x18] sm:$0x3] %vm2042_vm15, %v11783_v2 }
 0x4c5   : > { %v4788_v52 = vmax.f32 %v4780_v4, 0.0  ;;  %v4739_v19 = vadd.f32 %v4731_v61, %v4711_v18  ;;  %8482 = vmatprep.subr.bf16.mxu0 %v11783_v2  ;;  %2047 = vst.msk [vmem:[#allocation6 + $0x28] sm:$0x3] %vm2042_vm15, %v11783_v2  ;;  %2049 = vst.msk [vmem:[#allocation6 + $0x38] sm:$0x3] %vm2042_vm15, %v11783_v2 }
 0x4c6   : > { %v4683_v13 = vadd.f32 %v4675_v10, %v4655_v16  ;;  %2051 = vst.msk [vmem:[#allocation6 + $0x48] sm:$0x3] %vm2042_vm15, %v11783_v2  ;;  %2053 = vst.msk [vmem:[#allocation6 + $0x58] sm:$0x3] %vm2042_vm15, %v11783_v2 }
 0x4c7   : > { %v4793_v11 = vpack.c.bf16 %v4788_v52, %v4787_v46  ;;  %v4767_v8 = vadd.f32 %v4759_v43, %v4739_v19  ;;  %2055 = vst.msk [vmem:[#allocation7 + $0x8] sm:$0x3] %vm2042_vm15, %v11783_v2  ;;  %2057 = vst.msk [vmem:[#allocation7 + $0x18] sm:$0x3] %vm2042_vm15, %v11783_v2 }
 0x4c8   : > { %v4712_v45 = vadd.f32 %v4704_v29, %v4683_v13  ;;  %2059 = vst.msk [vmem:[#allocation7 + $0x28] sm:$0x3] %vm2042_vm15, %v11783_v2  ;;  %2061 = vst.msk [vmem:[#allocation7 + $0x38] sm:$0x3] %vm2042_vm15, %v11783_v2 }
 0x4c9   : > { %8458 = vmatprep.mubr.msk.bf16.mxu0 %vm1998_vm2, %v4793_v11  ;;  %v4781_v37 = vadd.f32 %v11672_v20, %v4767_v8  ;;  %2063 = vst.msk [vmem:[#allocation7 + $0x48] sm:$0x3] %vm2042_vm15, %v11783_v2 }
 0x4ca   : > { %v4740_v9 = vadd.f32 %v4732_v14, %v4712_v45 }
 0x4cb   : > { %v4789_v60 = vmax.f32 %v4781_v37, 0.0 }
 0x4cc   : > { %v4768_v24 = vadd.f32 %v4760_v1, %v4740_v9 }
 0x4ce   : > { %v4782_v42 = vadd.f32 %v11672_v20, %v4768_v24  ;;  %v4912_v20 = vld [vmem:[%s12508_s11] sm:$0xff]  ;;  %s12515_s11 = sld [smem:[#allocation69_spill]] }
 0x4cf   : > { %v11812_v21 = vrot.slane %v4912_v20, %v10502_v27  ;;  %v11816_v33 = vrot.slane %v4912_v20, %v10505_v28  ;;  %v11824_v12 = vrot.slane %v4912_v20, %v10517_v34  ;;  %v11832_v40 = vrot.slane %v4912_v20, %v10534_v55 }
 0x4d0   : > { %v4790_v0 = vmax.f32 %v4782_v42, 0.0  ;;  %v11836_v16 = vrot.slane %v4912_v20, %v10542_v59  ;;  %v11840_v13 = vrot.slane %v4912_v20, %v10546_v63  ;;  %v11846_v1 = vrot.slane %v4912_v20, %v10527_v47 }
 0x4d1   : > { %v4923_v15 = vmul.f32 %v11812_v21, %v4915_v31  ;;  %v4935_v54 = vmul.f32 %v11816_v33, %v4927_v22  ;;  %v4951_v62 = vmul.f32 %v11824_v12, %v4943_v39 }
 0x4d2   : > { %v4794_v50 = vpack.c.bf16 %v4790_v0, %v4789_v60 }
 0x4d3   : > { %v4939_v58 = vadd.f32 %v4935_v54, %v4923_v15 }
 0x4d4   : > { %8459 = vmatmul.mubr.msk.bf16.gmra.mxu0 %vm1998_vm2, %v4794_v50  ;;  %v11852_v50 = vrot.slane %v4912_v20, %v10537_v56  ;;  %s12516_s2 = smov %s12515_s11 }
 0x4d5   : > { %v4955_v6 = vadd.f32 %v4951_v62, %v4939_v58 }
 0x562   : > { %v8456_v57 = vpop.f32.mrf.mxu0 }
 0x563   : > { %v4873_v32 = vadd.f32 %v8456_v57, %v11809_v5 }
 0x564   : > { %v4864_v48 = vpop.f32.mrf.mxu0 }
 0x565   : > { %v4897_v51 = vmax.f32 %v4873_v32, 0.0  ;;  %v4865_v44 = vadd.f32 %v11809_v5, %v4864_v48 }
 0x566   : > { %v8457_v41 = vpop.f32.mrf.mxu0 }
 0x567   : > { %4906 = vst.msk [vmem:[#allocation5 + $0x31] sm:$0xff] %vm1998_vm2, %v4897_v51  ;;  %v4895_v7 = vmax.f32 %v4865_v44, 0.0  ;;  %v4876_v36 = vadd.f32 %v8457_v41, %v11809_v5  ;;  %v11858_v41 = vld [vmem:[%s12509_s23 + $0x8] ss:$0 sm:$0xff] }
 0x568   : > { %v4867_v49 = vpop.f32.mrf.mxu0 }
 0x569   : > { %4904 = vst.msk [vmem:[#allocation5 + $0x11] sm:$0xff] %vm1998_vm2, %v4895_v7  ;;  %v4898_v35 = vmax.f32 %v4876_v36, 0.0  ;;  %v4868_v38 = vadd.f32 %v11809_v5, %v4867_v49 }
 0x56b   : > { %4907 = vst.msk [vmem:[#allocation5 + $0x41] sm:$0xff] %vm1998_vm2, %v4898_v35  ;;  %v4896_v3 = vmax.f32 %v4868_v38, 0.0  ;;  %v11863_v38 = vld [vmem:[#allocation28] ss:$0 sm:$0xff] }
 0x56d   : > { %4905 = vst.msk [vmem:[#allocation5 + $0x21] sm:$0xff] %vm1998_vm2, %v4896_v3 }
 0x56e   : > { %v4960_v43 = vld [vmem:[#allocation5 + $0x30] sm:$0xff] }
 0x56f   : > { %v4976_v24 = vld [vmem:[#allocation5 + $0x31] sm:$0xff]  ;;  %v4968_v0 = vmul.f32 %v11832_v40, %v4960_v43 }
 0x570   : > { %v4959_v4 = vld [vmem:[#allocation5 + $0x10] sm:$0xff]  ;;  %v4984_v32 = vmul.f32 %v11836_v16, %v4976_v24 }
 0x571   : > { %v4967_v29 = vmul.f32 %v11832_v40, %v4959_v4  ;;  %v4975_v53 = vld [vmem:[#allocation5 + $0x11] sm:$0xff] }
 0x572   : > { %v4991_v18 = vld [vmem:[#allocation5 + $0x12] sm:$0xff]  ;;  %v4983_v23 = vmul.f32 %v11836_v16, %v4975_v53  ;;  %v4917_v48 = vld [vmem:[#allocation5 + $0x40] sm:$0xff] }
 0x573   : > { %v4971_v10 = vadd.f32 %v4967_v29, %v4955_v6  ;;  %v4999_v45 = vmul.f32 %v11840_v13, %v4991_v18  ;;  %v4992_v30 = vld [vmem:[#allocation5 + $0x32] sm:$0xff]  ;;  %v4929_v15 = vld [vmem:[#allocation5 + $0x41] sm:$0xff]  ;;  %v5017_v36 = vmul.f32 %v11846_v1, %v4917_v48 }
 0x574   : > { %v4916_v61 = vld [vmem:[#allocation5 + $0x20] sm:$0xff]  ;;  %v5000_v51 = vmul.f32 %v11840_v13, %v4992_v30  ;;  %v5033_v39 = vmul.f32 %v11852_v50, %v4929_v15  ;;  %v4937_v24 = vmul.f32 %v11816_v33, %v4929_v15 }
 0x575   : > { %v4928_v46 = vld [vmem:[#allocation5 + $0x21] sm:$0xff]  ;;  %v4924_v14 = vmul.f32 %v11812_v21, %v4916_v61  ;;  %v4987_v11 = vadd.f32 %v4983_v23, %v4971_v10  ;;  %v5016_v42 = vmul.f32 %v11846_v1, %v4916_v61 }
 0x576   : > { %v4944_v52 = vld [vmem:[#allocation5 + $0x22] sm:$0xff]  ;;  %v4936_v19 = vmul.f32 %v11816_v33, %v4928_v46  ;;  %v5032_v31 = vmul.f32 %v11852_v50, %v4928_v46 }
 0x577   : > { %v4952_v9 = vmul.f32 %v11824_v12, %v4944_v52  ;;  %v5003_v37 = vadd.f32 %v4999_v45, %v4987_v11  ;;  %v5048_v20 = vmul.f32 %v11858_v41, %v4944_v52  ;;  %v4945_v54 = vld [vmem:[#allocation5 + $0x42] sm:$0xff] }
 0x578   : > { %v4940_v8 = vadd.f32 %v4936_v19, %v4924_v14  ;;  %v5049_v58 = vmul.f32 %v11858_v41, %v4945_v54 }
 0x579   : > { %v5020_v17 = vadd.f32 %v5016_v42, %v5003_v37 }
 0x57a   : > { %v4956_v60 = vadd.f32 %v4952_v9, %v4940_v8  ;;  %v4925_v9 = vmul.f32 %v11812_v21, %v4917_v48 }
 0x57b   : > { %v5036_v44 = vadd.f32 %v5032_v31, %v5020_v17 }
 0x57c   : > { %v4972_v57 = vadd.f32 %v4968_v0, %v4956_v60  ;;  %v4941_v42 = vadd.f32 %v4937_v24, %v4925_v9  ;;  %v4953_v60 = vmul.f32 %v11824_v12, %v4945_v54 }
 0x57d   : > { %v5052_v35 = vadd.f32 %v5048_v20, %v5036_v44 }
 0x57e   : > { %v4988_v22 = vadd.f32 %v4984_v32, %v4972_v57  ;;  %v4957_v17 = vadd.f32 %v4953_v60, %v4941_v42  ;;  %v8883_v42 = vld [vmem:[%s12510_s8 + $0x10] sm:$0xff]   ;;  %v11915_v60 = vld [vmem:[%s12511_s15] sm:$0xff]  ;;  %s12517_s15 = sld [smem:[#allocation72_spill]] }
 0x57f   : > { %v5062_v6 = vadd.f32 %v11863_v38, %v5052_v35 }
 0x580   : > { %v5004_v7 = vadd.f32 %v5000_v51, %v4988_v22 }
 0x581   : > { %v5066_v29 = vmax.f32 %v5062_v6, 0.0 }
 0x582   : > { %v5021_v49 = vadd.f32 %v5017_v36, %v5004_v7 }
 0x584   : > { %v5037_v3 = vadd.f32 %v5033_v39, %v5021_v49 }
 0x586   : > { %v5053_v62 = vadd.f32 %v5049_v58, %v5037_v3 }
 0x588   : > { %v5063_v4 = vadd.f32 %v11863_v38, %v5053_v62 }
 0x58a   : > { %v5067_v53 = vmax.f32 %v5063_v4, 0.0 }
 0x58c   : > { %v5070_v10 = vpack.c.bf16 %v5067_v53, %v5066_v29 }
 0x58e   : > { %8466 = vmatprep.mubr.msk.bf16.mxu0 %vm1998_vm2, %v5070_v10 }
 0x594   : > { %v8460_v18 = vpop.f32.mrf.mxu0 }
 0x595   : > { %v4889_v61 = vadd.f32 %v8460_v18, %v11809_v5 }
 0x596   : > { %v4880_v46 = vpop.f32.mrf.mxu0 }
 0x597   : > { %v4901_v52 = vmax.f32 %v4889_v61, 0.0  ;;  %v4881_v23 = vadd.f32 %v11809_v5, %v4880_v46 }
 0x598   : > { %v8461_v14 = vpop.f32.mrf.mxu0 }
 0x599   : > { %4910 = vst.msk [vmem:[#allocation5 + $0x71] sm:$0xff] %vm1998_vm2, %v4901_v52  ;;  %v4899_v19 = vmax.f32 %v4881_v23, 0.0  ;;  %v4892_v43 = vadd.f32 %v8461_v14, %v11809_v5 }
 0x59a   : > { %v4883_v11 = vpop.f32.mrf.mxu0 }
 0x59b   : > { %4908 = vst.msk [vmem:[#allocation5 + $0x51] sm:$0xff] %vm1998_vm2, %v4899_v19  ;;  %v4902_v45 = vmax.f32 %v4892_v43, 0.0  ;;  %v4884_v8 = vadd.f32 %v11809_v5, %v4883_v11 }
 0x59d   : > { %4911 = vst.msk [vmem:[#allocation5 + $0x81] sm:$0xff] %vm1998_vm2, %v4902_v45  ;;  %v4900_v37 = vmax.f32 %v4884_v8, 0.0 }
 0x59f   : > { %4909 = vst.msk [vmem:[#allocation5 + $0x61] sm:$0xff] %vm1998_vm2, %v4900_v37  ;;  %v8882_v37 = vld [vmem:[%s12510_s8 + $0x18] sm:$0xff]  }
 0x5a0   : > { %v4962_v20 = vld [vmem:[#allocation5 + $0x70] sm:$0xff]  ;;  %8470 = vmatprep.subr.bf16.mxu1 %v8882_v37 }
 0x5a1   : > { %v4978_v3 = vld [vmem:[#allocation5 + $0x71] sm:$0xff]  ;;  %v4970_v62 = vmul.f32 %v11832_v40, %v4962_v20  ;;  %8471 = vmatpush3.bf16.msra.mxu1 %v8882_v37 }
 0x5a2   : > { %v4961_v0 = vld [vmem:[#allocation5 + $0x50] sm:$0xff]  ;;  %8472 = vmatprep.subr.bf16.mxu1 %v8883_v42 }
 0x5a3   : > { %v4977_v30 = vld [vmem:[#allocation5 + $0x51] sm:$0xff]  ;;  %v4969_v57 = vmul.f32 %v11832_v40, %v4961_v0 }
 0x5a4   : > { %v4993_v32 = vld [vmem:[#allocation5 + $0x52] sm:$0xff]  ;;  %v4985_v5 = vmul.f32 %v11836_v16, %v4977_v30  ;;  %v5011_v53 = vld [vmem:[#allocation5 + $0x80] sm:$0xff] }
 0x5a5   : > { %v4973_v31 = vadd.f32 %v4969_v57, %v4957_v17  ;;  %v5001_v36 = vmul.f32 %v11840_v13, %v4993_v32  ;;  %v4994_v4 = vld [vmem:[#allocation5 + $0x72] sm:$0xff]  ;;  %v5019_v52 = vmul.f32 %v11846_v1, %v5011_v53  ;;  %v5043_v40 = vld [vmem:[#allocation5 + $0x82] sm:$0xff]  ;;  %8473 = vmatpush3.bf16.msra.mxu1 %v8883_v42  ;;  %v11919_v57 = vrot.slane %v11915_v60, %v10502_v27 }
 0x5a6   : > { %v4918_v48 = vld [vmem:[#allocation5 + $0x60] sm:$0xff]  ;;  %v5002_v18 = vmul.f32 %v11840_v13, %v4994_v4  ;;  %v5051_v11 = vmul.f32 %v11858_v41, %v5043_v40  ;;  %v11923_v32 = vrot.slane %v11915_v60, %v10505_v28 }
 0x5a7   : > { %v4930_v22 = vld [vmem:[#allocation5 + $0x61] sm:$0xff]  ;;  %v4926_v44 = vmul.f32 %v11812_v21, %v4918_v48  ;;  %v4989_v7 = vadd.f32 %v4985_v5, %v4973_v31  ;;  %v5018_v35 = vmul.f32 %v11846_v1, %v4918_v48  ;;  %v4986_v21 = vmul.f32 %v11836_v16, %v4978_v3 }
 0x5a8   : > { %v4946_v51 = vld [vmem:[#allocation5 + $0x62] sm:$0xff]  ;;  %v4938_v15 = vmul.f32 %v11816_v33, %v4930_v22  ;;  %v5034_v33 = vmul.f32 %v11852_v50, %v4930_v22 }
 0x5a9   : > { %v4954_v49 = vmul.f32 %v11824_v12, %v4946_v51  ;;  %v5005_v39 = vadd.f32 %v5001_v36, %v4989_v7  ;;  %v5027_v12 = vld [vmem:[#allocation5 + $0x81] sm:$0xff]  ;;  %v5050_v23 = vmul.f32 %v11858_v41, %v4946_v51 }
 0x5aa   : > { %v4942_v54 = vadd.f32 %v4938_v15, %v4926_v44  ;;  %v5035_v19 = vmul.f32 %v11852_v50, %v5027_v12  ;;  %v8884_v50 = vld [vmem:[%s12510_s8 + $0x8] sm:$0xff]   ;;  %v8885_v41 = vld [vmem:[%s12510_s8] sm:$0xff]   ;;  %v5229_v12 = vrot.slane %v11915_v60, %v10534_v55 }
 0x5ab   : > { %v5022_v6 = vadd.f32 %v5018_v35, %v5005_v39  ;;  %8474 = vmatprep.subr.bf16.mxu1 %v8884_v50  ;;  %v5178_v48 = vld [vmem:[#allocation6] sm:$0xff] }
 0x5ac   : > { %v4958_v58 = vadd.f32 %v4954_v49, %v4942_v54  ;;  %8475 = vmatpush3.bf16.msra.mxu1 %v8884_v50  ;;  %v5190_v22 = vld [vmem:[#allocation6 + $0x1] sm:$0xff]  ;;  %v5186_v36 = vmul.f32 %v11919_v57, %v5178_v48  ;;  %v5213_v54 = vrot.slane %v11915_v60, %v10517_v34 }
 0x5ad   : > { %v5038_v61 = vadd.f32 %v5034_v33, %v5022_v6  ;;  %8476 = vmatprep.subr.bf16.mxu1 %v8885_v41  ;;  %v5198_v20 = vmul.f32 %v11923_v32, %v5190_v22  ;;  %v5206_v35 = vld [vmem:[#allocation6 + $0x2] sm:$0xff] }
 0x5ae   : > { %v4974_v29 = vadd.f32 %v4970_v62, %v4958_v58  ;;  %v5214_v62 = vmul.f32 %v5213_v54, %v5206_v35 }
 0x5af   : > { %v5054_v16 = vadd.f32 %v5050_v23, %v5038_v61  ;;  %v5202_v58 = vadd.f32 %v5198_v20, %v5186_v36  ;;  %v5290_v36 = vld [vmem:[#allocation6 + $0x51] sm:$0xff] }
 0x5b0   : > { %v4990_v10 = vadd.f32 %v4986_v21, %v4974_v29  ;;  %8477 = vmatpush3.bf16.msra.mxu1 %v8885_v41 }
 0x5b1   : > { %v5064_v13 = vadd.f32 %v11863_v38, %v5054_v16  ;;  %8494 = vmatprep.subr.bf16.mxu1 %v11783_v2  ;;  %v5218_v61 = vadd.f32 %v5214_v62, %v5202_v58 }
 0x5b2   : > { %v5006_v46 = vadd.f32 %v5002_v18, %v4990_v10 }
 0x5b3   : > { %v5068_v9 = vmax.f32 %v5064_v13, 0.0 }
 0x5b4   : > { %v5023_v14 = vadd.f32 %v5019_v52, %v5006_v46 }
 0x5b6   : > { %v5039_v43 = vadd.f32 %v5035_v19, %v5023_v14  ;;  %v5274_v14 = vld [vmem:[#allocation6 + $0x50] sm:$0xff] }
 0x5b8   : > { %v5055_v45 = vadd.f32 %v5051_v11, %v5039_v43  ;;  %v5245_v43 = vrot.slane %v11915_v60, %v10542_v59  ;;  %v5261_v11 = vrot.slane %v11915_v60, %v10546_v63 }
 0x5ba   : > { %v5065_v8 = vadd.f32 %v11863_v38, %v5055_v45  ;;  %v8081_v38 = vld [vmem:[#allocation30] ss:$0 sm:$0xff]  ;;  %v5278_v45 = vrot.slane %v11915_v60, %v10527_v47 }
 0x5bc   : > { %v5069_v24 = vmax.f32 %v5065_v8, 0.0 }
 0x5be   : > { %v5071_v1 = vpack.c.bf16 %v5069_v24, %v5068_v9 }
 0x5c0   : > { %8467 = vmatmul.mubr.msk.bf16.vlgmr.msra.gmra.mxu0 %vm1998_vm2, %v5071_v1  ;;  %vm5165_vm2 = vcmask 520196  }
 0x5c1   : > { %8490 = vmatprep.mubr.msk.bf16.mxu0 %vm9612_vm4, %v11783_v2 }
 0x680   : > { %v8468_v0 = vpop.f32.mrf.mxu0 }
 0x681   : > { %v5144_v30 = vadd.f32 %v8468_v0, %v8081_v38 }
 0x682   : > { %v5135_v17 = vpop.f32.mrf.mxu0 }
 0x683   : > { %v5152_v31 = vmax.f32 %v5144_v30, 0.0  ;;  %v5136_v5 = vadd.f32 %v8081_v38, %v5135_v17  ;;  %v5282_v30 = vmul.f32 %v5278_v45, %v5274_v14  ;;  %v5294_v17 = vrot.slane %v11915_v60, %v10537_v56 }
 0x684   : > { %v8469_v51 = vpop.f32.mrf.mxu0 }
 0x685   : > { %5158 = vst.msk [vmem:[#allocation6 + $0x31] sm:$0x1] %vm5155_vm0, %v5152_v31  ;;  %v5150_v44 = vmax.f32 %v5136_v5, 0.0  ;;  %v5147_v15 = vadd.f32 %v8469_v51, %v8081_v38 }
 0x686   : > { %5163 = vst.msk [vmem:[#allocation6 + $0x30] sm:$0x4] %vm5160_vm1, %v5152_v31  ;;  %v5138_v7 = vpop.f32.mrf.mxu0 }
 0x687   : > { %5168 = vst.msk [vmem:[#allocation6 + $0x2f] sm:$0x10] %vm5165_vm2, %v5152_v31  ;;  %5166 = vst.msk [vmem:[#allocation6 + $0xf] sm:$0x10] %vm5165_vm2, %v5150_v44  ;;  %v5153_v49 = vmax.f32 %v5147_v15, 0.0  ;;  %v5139_v39 = vadd.f32 %v8081_v38, %v5138_v7 }
 0x688   : > { %5173 = vst.msk [vmem:[#allocation6 + $0x2e] sm:$0x40] %vm5170_vm3, %v5152_v31  ;;  %5171 = vst.msk [vmem:[#allocation6 + $0xe] sm:$0x40] %vm5170_vm3, %v5150_v44 }
 0x689   : > { %5156 = vst.msk [vmem:[#allocation6 + $0x11] sm:$0x1] %vm5155_vm0, %v5150_v44  ;;  %5159 = vst.msk [vmem:[#allocation6 + $0x41] sm:$0x1] %vm5155_vm0, %v5153_v49  ;;  %v5151_v3 = vmax.f32 %v5139_v39, 0.0 }
 0x68a   : > { %5161 = vst.msk [vmem:[#allocation6 + $0x10] sm:$0x4] %vm5160_vm1, %v5150_v44  ;;  %5164 = vst.msk [vmem:[#allocation6 + $0x40] sm:$0x4] %vm5160_vm1, %v5153_v49 }
 0x68b   : > { %5169 = vst.msk [vmem:[#allocation6 + $0x3f] sm:$0x10] %vm5165_vm2, %v5153_v49  ;;  %5167 = vst.msk [vmem:[#allocation6 + $0x1f] sm:$0x10] %vm5165_vm2, %v5151_v3 }
 0x68c   : > { %5174 = vst.msk [vmem:[#allocation6 + $0x3e] sm:$0x40] %vm5170_vm3, %v5153_v49  ;;  %5172 = vst.msk [vmem:[#allocation6 + $0x1e] sm:$0x40] %vm5170_vm3, %v5151_v3 }
 0x68d   : > { %5157 = vst.msk [vmem:[#allocation6 + $0x21] sm:$0x1] %vm5155_vm0, %v5151_v3 }
 0x68e   : > { %5162 = vst.msk [vmem:[#allocation6 + $0x20] sm:$0x4] %vm5160_vm1, %v5151_v3 }
 0x68f   : > { %v5181_v6 = vld [vmem:[#allocation6 + $0x30] sm:$0xff] }
 0x690   : > { %v11945_v4 = vld [vmem:[#allocation6 + $0x31] sm:$0xff]  ;;  %v5189_v21 = vmul.f32 %v11919_v57, %v5181_v6 }
 0x691   : > { %v11947_v29 = vld [vmem:[#allocation6 + $0x32] sm:$0xff]  ;;  %v5201_v33 = vmul.f32 %v11923_v32, %v11945_v4 }
 0x692   : > { %v5179_v53 = vld [vmem:[#allocation6 + $0x10] sm:$0xff]  ;;  %v5217_v40 = vmul.f32 %v5213_v54, %v11947_v29 }
 0x693   : > { %v5191_v10 = vld [vmem:[#allocation6 + $0x11] sm:$0xff]  ;;  %v5187_v46 = vmul.f32 %v11919_v57, %v5179_v53  ;;  %v5205_v23 = vadd.f32 %v5201_v33, %v5189_v21  ;;  %v5225_v19 = vld [vmem:[#allocation6 + $0x40] sm:$0xff]  ;;  %v5230_v16 = vmul.f32 %v5229_v12, %v5179_v53 }
 0x694   : > { %v5207_v18 = vld [vmem:[#allocation6 + $0x12] sm:$0xff]  ;;  %v5199_v52 = vmul.f32 %v11923_v32, %v5191_v10  ;;  %v5233_v24 = vmul.f32 %v5229_v12, %v5225_v19  ;;  %v5241_v1 = vld [vmem:[#allocation6 + $0x41] sm:$0xff]  ;;  %v5246_v0 = vmul.f32 %v5245_v43, %v5191_v10 }
 0x695   : > { %v5215_v8 = vmul.f32 %v5213_v54, %v5207_v18  ;;  %v5221_v9 = vadd.f32 %v5217_v40, %v5205_v23  ;;  %v5257_v37 = vld [vmem:[#allocation6 + $0x42] sm:$0xff]  ;;  %v5234_v38 = vadd.f32 %v5230_v16, %v5218_v61  ;;  %v5262_v22 = vmul.f32 %v5261_v11, %v5207_v18 }
 0x696   : > { %v5203_v13 = vadd.f32 %v5199_v52, %v5187_v46  ;;  %v5180_v42 = vld [vmem:[#allocation6 + $0x20] sm:$0xff]  ;;  %v5249_v15 = vmul.f32 %v5245_v43, %v5241_v1  ;;  %v5265_v35 = vmul.f32 %v5261_v11, %v5257_v37  ;;  %v5306_v46 = vld [vmem:[#allocation6 + $0x52] sm:$0xff]  ;;  %v8086_v52 = vld [vmem:[%s12512_s1 + $0x8] ss:$0 sm:$0xff]  ;;  %v5280_v40 = vmul.f32 %v5278_v45, %v5181_v6  ;;  %s12514_s1 = smov %s12513_s7 }
 0x697   : > { %v5192_v50 = vld [vmem:[#allocation6 + $0x21] sm:$0xff]  ;;  %v5188_v31 = vmul.f32 %v11919_v57, %v5180_v42  ;;  %v5231_v51 = vmul.f32 %v5229_v12, %v5180_v42  ;;  %v5237_v44 = vadd.f32 %v5233_v24, %v5221_v9  ;;  %v5250_v7 = vadd.f32 %v5246_v0, %v5234_v38 }
 0x698   : > { %v5208_v41 = vld [vmem:[#allocation6 + $0x22] sm:$0xff]  ;;  %v5200_v5 = vmul.f32 %v11923_v32, %v5192_v50  ;;  %v5219_v48 = vadd.f32 %v5215_v8, %v5203_v13  ;;  %v5247_v39 = vmul.f32 %v5245_v43, %v5192_v50  ;;  %v5279_v60 = vmul.f32 %v5278_v45, %v5180_v42 }
 0x699   : > { %v5216_v49 = vmul.f32 %v5213_v54, %v5208_v41  ;;  %v5253_v58 = vadd.f32 %v5249_v15, %v5237_v44  ;;  %v5266_v62 = vadd.f32 %v5262_v22, %v5250_v7  ;;  %v5232_v57 = vmul.f32 %v5229_v12, %v5181_v6 }
 0x69a   : > { %v5204_v20 = vadd.f32 %v5200_v5, %v5188_v31  ;;  %v5235_v3 = vadd.f32 %v5231_v51, %v5219_v48  ;;  %v5263_v33 = vmul.f32 %v5261_v11, %v5208_v41  ;;  %v5298_v32 = vmul.f32 %v5294_v17, %v5290_v36 }
 0x69b   : > { %v5269_v10 = vadd.f32 %v5265_v35, %v5253_v58  ;;  %v5283_v18 = vadd.f32 %v5279_v60, %v5266_v62  ;;  %v5295_v61 = vmul.f32 %v5294_v17, %v5192_v50  ;;  %v5248_v54 = vmul.f32 %v5245_v43, %v11945_v4  ;;  %v8087_v50 = vld [vmem:[#allocation31] ss:$0 sm:$0xff]  ;;  %v8888_v35 = vld [vmem:[%s12514_s1 + $0x8] sm:$0xff]   ;;  %v5439_v58 = vld [vmem:[%s12515_s11] sm:$0xff]  ;;  %s12521_s11 = sld [smem:[#allocation76_spill]] }
 0x69c   : > { %v5220_v21 = vadd.f32 %v5216_v49, %v5204_v20  ;;  %v5251_v53 = vadd.f32 %v5247_v39, %v5235_v3  ;;  %v5311_v8 = vmul.f32 %v8086_v52, %v5208_v41  ;;  %v5264_v24 = vmul.f32 %v5261_v11, %v11947_v29  ;;  %v8889_v3 = vld [vmem:[%s12514_s1] sm:$0xff]   ;;  %v8088_v62 = vld [vmem:[#allocation33] ss:$0 sm:$0xff] }
 0x69d   : > { %v5286_v16 = vadd.f32 %v5282_v30, %v5269_v10  ;;  %v5299_v13 = vadd.f32 %v5295_v61, %v5283_v18  ;;  %v5314_v12 = vmul.f32 %v8086_v52, %v5306_v46  ;;  %v5296_v38 = vmul.f32 %v5294_v17, %v11945_v4  ;;  %v5450_v10 = vld [vmem:[#allocation7 + $0x1] sm:$0xff] }
 0x69e   : > { %v5236_v23 = vadd.f32 %v5232_v57, %v5220_v21  ;;  %v5267_v14 = vadd.f32 %v5263_v33, %v5251_v53  ;;  %v5281_v48 = vmul.f32 %v5278_v45, %v5225_v19  ;;  %v5312_v43 = vmul.f32 %v8086_v52, %v11947_v29  ;;  %v5442_v33 = vld [vmem:[#allocation7] sm:$0xff] }
 0x69f   : > { %v5302_v0 = vadd.f32 %v5298_v32, %v5286_v16  ;;  %v5315_v31 = vadd.f32 %v5311_v8, %v5299_v13  ;;  %v5297_v51 = vmul.f32 %v5294_v17, %v5241_v1  ;;  %v5313_v11 = vmul.f32 %v8086_v52, %v5257_v37  ;;  %v8886_v17 = vld [vmem:[%s12513_s7 + $0x18] sm:$0xff]   ;;  %v8887_v37 = vld [vmem:[%s12514_s1 + $0x10] sm:$0xff]   ;;  %v5460_v13 = vld [vmem:[#allocation7 + $0x2] sm:$0xff]  ;;  %s12518_s1 = smov %s12517_s15  ;;  %s12519_s7 = sld [smem:[#allocation71_spill]] }
 0x6a0   : > { %v5252_v9 = vadd.f32 %v5248_v54, %v5236_v23  ;;  %v5284_v42 = vadd.f32 %v5280_v40, %v5267_v14  ;;  %8483 = vmatpush3.bf16.msra.mxu0 %v8886_v17  ;;  %v5447_v21 = vrot.slane %v5439_v58, %v10502_v27  ;;  %v5455_v32 = vrot.slane %v5439_v58, %v10505_v28 }
 0x6a1   : > { %v5318_v30 = vadd.f32 %v5314_v12, %v5302_v0  ;;  %v5325_v41 = vadd.f32 %v8087_v50, %v5315_v31  ;;  %8484 = vmatprep.subr.bf16.mxu0 %v11783_v2  ;;  %v5465_v14 = vrot.slane %v5439_v58, %v10517_v34  ;;  %v5475_v0 = vrot.slane %v5439_v58, %v10534_v55 }
 0x6a2   : > { %v5268_v5 = vadd.f32 %v5264_v24, %v5252_v9  ;;  %v5300_v22 = vadd.f32 %v5296_v38, %v5284_v42  ;;  %v5448_v52 = vmul.f32 %v5447_v21, %v5442_v33  ;;  %v5456_v40 = vmul.f32 %v5455_v32, %v5450_v10  ;;  %v8095_v10 = vld [vmem:[%s12516_s2 + $0x8] ss:$0 sm:$0xff] }
 0x6a3   : > { %v5328_v4 = vadd.f32 %v8087_v50, %v5318_v30  ;;  %v5329_v20 = vmax.f32 %v5325_v41, 0.0  ;;  %v5466_v42 = vmul.f32 %v5465_v14, %v5460_v13 }
 0x6a4   : > { %v5285_v6 = vadd.f32 %v5281_v48, %v5268_v5  ;;  %v5316_v44 = vadd.f32 %v5312_v43, %v5300_v22  ;;  %8485 = vmatpush3.bf16.msra.mxu0 %v8887_v37  ;;  %v5458_v12 = vadd.f32 %v5456_v40, %v5448_v52  ;;  %v5485_v48 = vrot.slane %v5439_v58, %v10542_v59 }
 0x6a5   : > { %v5332_v29 = vmax.f32 %v5328_v4, 0.0  ;;  %8486 = vmatprep.subr.bf16.mxu0 %v11783_v2  ;;  %s12520_s2 = smov %s12519_s7 }
 0x6a6   : > { %v5301_v15 = vadd.f32 %v5297_v51, %v5285_v6  ;;  %v5326_v7 = vadd.f32 %v8087_v50, %v5316_v44  ;;  %v5468_v38 = vadd.f32 %v5466_v42, %v5458_v12  ;;  %v5495_v51 = vrot.slane %v5439_v58, %v10546_v63 }
 0x6a8   : > { %v5317_v36 = vadd.f32 %v5313_v11, %v5301_v15  ;;  %v5330_v49 = vmax.f32 %v5326_v7, 0.0  ;;  %8487 = vmatpush3.bf16.msra.mxu0 %v8888_v35  ;;  %v5506_v15 = vrot.slane %v5439_v58, %v10527_v47  ;;  %v5516_v35 = vrot.slane %v5439_v58, %v10537_v56  ;;  %v8096_v58 = vld [vmem:[#allocation34] ss:$0 sm:$0xff] }
 0x6a9   : > { %8488 = vmatprep.subr.bf16.mxu0 %v11783_v2 }
 0x6aa   : > { %v5327_v39 = vadd.f32 %v8087_v50, %v5317_v36  ;;  %v5333_v19 = vpack.c.bf16 %v5330_v49, %v5329_v20 }
 0x6ac   : > { %v5331_v45 = vmax.f32 %v5327_v39, 0.0  ;;  %8478 = vmatprep.mubr.msk.bf16.mxu1 %vm2040_vm14, %v5333_v19  ;;  %8489 = vmatpush3.bf16.msra.mxu0 %v8889_v3 }
 0x6ad   : > { %8514 = vmatprep.subr.bf16.mxu0 %v11783_v2 }
 0x6ae   : > { %v5334_v1 = vpack.c.bf16 %v5332_v29, %v5331_v45 }
 0x6b0   : > { %8479 = vmatmul.mubr.msk.bf16.vlgmr.msra.gmra.mxu1 %vm2040_vm14, %v5334_v1 }
 0x6b1   : > { %8510 = vmatprep.mubr.msk.bf16.mxu1 %vm9612_vm4, %v11783_v2 }
 0x770   : > { %v8480_v60 = vpop.f32.mrf.mxu1 }
 0x771   : > { %v5423_v57 = vadd.f32 %v8480_v60, %v8088_v62 }
 0x772   : > { %v5414_v53 = vpop.f32.mrf.mxu1 }
 0x773   : > { %v5431_v18 = vmax.f32 %v5423_v57, 0.0  ;;  %v5415_v61 = vadd.f32 %v8088_v62, %v5414_v53 }
 0x774   : > { %v8481_v46 = vpop.f32.mrf.mxu1 }
 0x775   : > { %5437 = vst.msk [vmem:[#allocation7 + $0x31] sm:$0xf] %vm5434_vm5, %v5431_v18  ;;  %v5429_v23 = vmax.f32 %v5415_v61, 0.0  ;;  %v5426_v54 = vadd.f32 %v8481_v46, %v8088_v62 }
 0x776   : > { %v5417_v16 = vpop.f32.mrf.mxu1 }
 0x777   : > { %5435 = vst.msk [vmem:[#allocation7 + $0x11] sm:$0xf] %vm5434_vm5, %v5429_v23  ;;  %v5432_v8 = vmax.f32 %v5426_v54, 0.0  ;;  %v5418_v9 = vadd.f32 %v8088_v62, %v5417_v16 }
 0x779   : > { %5438 = vst.msk [vmem:[#allocation7 + $0x41] sm:$0xf] %vm5434_vm5, %v5432_v8  ;;  %v5430_v24 = vmax.f32 %v5418_v9, 0.0 }
 0x77b   : > { %5436 = vst.msk [vmem:[#allocation7 + $0x21] sm:$0xf] %vm5434_vm5, %v5430_v24 }
 0x77c   : > { %v5471_v20 = vld [vmem:[#allocation7 + $0x30] sm:$0xff] }
 0x77d   : > { %v5481_v29 = vld [vmem:[#allocation7 + $0x31] sm:$0xff]  ;;  %v5477_v17 = vmul.f32 %v5475_v0, %v5471_v20 }
 0x77e   : > { %v5470_v31 = vld [vmem:[#allocation7 + $0x10] sm:$0xff]  ;;  %v5487_v60 = vmul.f32 %v5485_v48, %v5481_v29 }
 0x77f   : > { %v5480_v50 = vld [vmem:[#allocation7 + $0x11] sm:$0xff]  ;;  %v5476_v5 = vmul.f32 %v5475_v0, %v5470_v31 }
 0x780   : > { %v5490_v22 = vld [vmem:[#allocation7 + $0x12] sm:$0xff]  ;;  %v5486_v6 = vmul.f32 %v5485_v48, %v5480_v50  ;;  %v5512_v18 = vld [vmem:[#allocation7 + $0x41] sm:$0xff] }
 0x781   : > { %v5478_v43 = vadd.f32 %v5476_v5, %v5468_v38  ;;  %v5496_v4 = vmul.f32 %v5495_v51, %v5490_v22  ;;  %v5491_v3 = vld [vmem:[#allocation7 + $0x32] sm:$0xff]  ;;  %v5522_v23 = vld [vmem:[#allocation7 + $0x42] sm:$0xff]  ;;  %v5518_v40 = vmul.f32 %v5516_v35, %v5512_v18 }
 0x782   : > { %v5443_v30 = vld [vmem:[#allocation7 + $0x20] sm:$0xff]  ;;  %v5528_v13 = vmul.f32 %v8095_v10, %v5522_v23  ;;  %v8890_v0 = vld [vmem:[%s12517_s15 + $0x38] sm:$0xff]   ;;  %v8891_v31 = vld [vmem:[%s12518_s1 + $0x30] sm:$0xff]   ;;  %s12523_s15 = sld [smem:[#allocation74_spill]] }
 0x783   : > { %v5451_v44 = vld [vmem:[#allocation7 + $0x21] sm:$0xff]  ;;  %v5449_v11 = vmul.f32 %v5447_v21, %v5443_v30  ;;  %v5488_v36 = vadd.f32 %v5486_v6, %v5478_v43  ;;  %v5507_v45 = vmul.f32 %v5506_v15, %v5443_v30  ;;  %8495 = vmatpush3.bf16.msra.mxu1 %v8890_v0  ;;  %v8894_v48 = vld [vmem:[%s12518_s1 + $0x18] sm:$0xff]   ;;  %v8895_v22 = vld [vmem:[%s12518_s1 + $0x10] sm:$0xff]  }
 0x784   : > { %v5461_v41 = vld [vmem:[#allocation7 + $0x22] sm:$0xff]  ;;  %v5457_v7 = vmul.f32 %v5455_v32, %v5451_v44  ;;  %v5517_v57 = vmul.f32 %v5516_v35, %v5451_v44  ;;  %v5497_v32 = vmul.f32 %v5495_v51, %v5491_v3  ;;  %8496 = vmatprep.subr.bf16.mxu1 %v11783_v2  ;;  %v8097_v30 = vld [vmem:[#allocation36] ss:$0 sm:$0xff] }
 0x785   : > { %v5467_v39 = vmul.f32 %v5465_v14, %v5461_v41  ;;  %v5498_v19 = vadd.f32 %v5496_v4, %v5488_v36  ;;  %v5502_v21 = vld [vmem:[#allocation7 + $0x40] sm:$0xff]  ;;  %v5527_v52 = vmul.f32 %v8095_v10, %v5461_v41  ;;  %v8892_v50 = vld [vmem:[%s12518_s1 + $0x28] sm:$0xff]  }
 0x786   : > { %v5459_v49 = vadd.f32 %v5457_v7, %v5449_v11  ;;  %v5508_v46 = vmul.f32 %v5506_v15, %v5502_v21  ;;  %v8893_v5 = vld [vmem:[%s12518_s1 + $0x20] sm:$0xff]   ;;  %v8896_v43 = vld [vmem:[%s12518_s1 + $0x8] sm:$0xff]  }
 0x787   : > { %v5509_v37 = vadd.f32 %v5507_v45, %v5498_v19  ;;  %8497 = vmatpush3.bf16.msra.mxu1 %v8891_v31  ;;  %v8897_v6 = vld [vmem:[%s12518_s1] sm:$0xff]   ;;  %v8103_v31 = vld [vmem:[%s12520_s2 + $0x8] ss:$0 sm:$0xff]  ;;  %s12522_s1 = smov %s12521_s11 }
 0x788   : > { %v5469_v1 = vadd.f32 %v5467_v39, %v5459_v49  ;;  %8498 = vmatprep.subr.bf16.mxu1 %v11783_v2  ;;  %v5632_v51 = vld [vmem:[%s12519_s7] sm:$0xff]  ;;  %s12524_s2 = smov %s12523_s15  ;;  %s12525_s7 = sld [smem:[#allocation80_spill]] }
 0x789   : > { %v5519_v53 = vadd.f32 %v5517_v57, %v5509_v37  ;;  %v5640_v44 = vrot.slane %v5632_v51, %v10502_v27  ;;  %v5648_v41 = vrot.slane %v5632_v51, %v10505_v28  ;;  %v5643_v11 = vld [vmem:[#allocation8 + $0x1] sm:$0xff]  ;;  %v5658_v39 = vrot.slane %v5632_v51, %v10517_v34 }
 0x78a   : > { %v5479_v62 = vadd.f32 %v5477_v17, %v5469_v1  ;;  %v5653_v45 = vld [vmem:[#allocation8 + $0x2] sm:$0xff]  ;;  %v5668_v3 = vrot.slane %v5632_v51, %v10534_v55  ;;  %v5688_v18 = vrot.slane %v5632_v51, %v10546_v63 }
 0x78b   : > { %v5529_v14 = vadd.f32 %v5527_v52, %v5519_v53  ;;  %8499 = vmatpush3.bf16.msra.mxu1 %v8892_v50  ;;  %v5641_v20 = vmul.f32 %v11783_v2, %v5640_v44  ;;  %v5649_v49 = vmul.f32 %v5648_v41, %v5643_v11  ;;  %v5659_v35 = vmul.f32 %v5658_v39, %v5653_v45 }
 0x78c   : > { %v5489_v33 = vadd.f32 %v5487_v60, %v5479_v62  ;;  %8500 = vmatprep.subr.bf16.mxu1 %v11783_v2  ;;  %v5678_v60 = vrot.slane %v5632_v51, %v10542_v59 }
 0x78d   : > { %v5537_v9 = vadd.f32 %v8096_v58, %v5529_v14  ;;  %v5651_v37 = vadd.f32 %v5649_v49, %v5641_v20 }
 0x78e   : > { %v5499_v61 = vadd.f32 %v5497_v32, %v5489_v33 }
 0x78f   : > { %v5539_v12 = vmax.f32 %v5537_v9, 0.0  ;;  %8501 = vmatpush3.bf16.msra.mxu1 %v8893_v5  ;;  %v5661_v62 = vadd.f32 %v5659_v35, %v5651_v37  ;;  %v5705_v5 = vld [vmem:[#allocation8 + $0x31] sm:$0xff]  ;;  %v8900_v35 = vld [vmem:[%s12522_s1 + $0x28] sm:$0xff]  }
 0x790   : > { %v5510_v54 = vadd.f32 %v5508_v46, %v5499_v61  ;;  %8502 = vmatprep.subr.bf16.mxu1 %v11783_v2  ;;  %v5699_v61 = vrot.slane %v5632_v51, %v10527_v47  ;;  %v8899_v37 = vld [vmem:[%s12522_s1 + $0x30] sm:$0xff]  }
 0x792   : > { %v5520_v16 = vadd.f32 %v5518_v40, %v5510_v54  ;;  %v5701_v50 = vmul.f32 %v11783_v2, %v5699_v61 }
 0x793   : > { %8503 = vmatpush3.bf16.msra.mxu1 %v8894_v48 }
 0x794   : > { %v5530_v8 = vadd.f32 %v5528_v13, %v5520_v16  ;;  %8504 = vmatprep.subr.bf16.mxu1 %v11783_v2 }
 0x796   : > { %v5538_v24 = vadd.f32 %v8096_v58, %v5530_v8  ;;  %v5709_v58 = vrot.slane %v5632_v51, %v10537_v56 }
 0x797   : > { %8505 = vmatpush3.bf16.msra.mxu1 %v8895_v22 }
 0x798   : > { %v5540_v42 = vmax.f32 %v5538_v24, 0.0  ;;  %8506 = vmatprep.subr.bf16.mxu1 %v11783_v2  ;;  %v5711_v51 = vmul.f32 %v5709_v58, %v5705_v5 }
 0x79a   : > { %v5541_v38 = vpack.c.bf16 %v5540_v42, %v5539_v12 }
 0x79b   : > { %8507 = vmatpush3.bf16.msra.mxu1 %v8896_v43 }
 0x79c   : > { %8491 = vmatmul.mubr.msk.bf16.vlgmr.msra.gmra.mxu0 %vm2040_vm14, %v5541_v38  ;;  %8508 = vmatprep.subr.bf16.mxu1 %v11783_v2 }
 0x79d   : > { %8530 = vmatprep.mubr.msk.bf16.mxu0 %vm9612_vm4, %v11783_v2 }
 0x79f   : > { %8509 = vmatpush3.bf16.msra.mxu1 %v8897_v6 }
 0x7a0   : > { %8534 = vmatprep.subr.bf16.mxu1 %v11783_v2 }
 0x85c   : > { %v5618_v15 = vpop.f32.mrf.mxu0 }
 0x85d   : > { %v5619_v7 = vadd.f32 %v8097_v30, %v5618_v15 }
 0x85e   : > { %v8492_v36 = vpop.f32.mrf.mxu0 }
 0x85f   : > { %v5625_v4 = vmax.f32 %v5619_v7, 0.0 }
 0x860   : > { %v5621_v19 = vpop.f32.mrf.mxu0 }
 0x861   : > { %5628 = vst [vmem:[#allocation8 + $0x11] sm:$0x1] %v5625_v4  ;;  %5630 = vst [vmem:[#allocation8 + $0x10] sm:$0x4] %v5625_v4  ;;  %v5622_v29 = vadd.f32 %v8097_v30, %v5621_v19  ;;  %v5715_v30 = vld [vmem:[#allocation8 + $0x32] sm:$0xff] }
 0x862   : > { %v8493_v1 = vpop.f32.mrf.mxu0  ;;  %v5721_v7 = vmul.f32 %v8103_v31, %v5715_v30  ;;  %v8104_v4 = vld [vmem:[#allocation37] ss:$0 sm:$0xff] }
 0x863   : > { %v5626_v17 = vmax.f32 %v5622_v29, 0.0  ;;  %v12031_v1 = vld [vmem:[#allocation13 + $0x30] sm:$0xff] }
 0x865   : > { %5629 = vst [vmem:[#allocation8 + $0x21] sm:$0x1] %v5626_v17  ;;  %5631 = vst [vmem:[#allocation8 + $0x20] sm:$0x4] %v5626_v17  ;;  %v8898_v17 = vld [vmem:[%s12521_s11 + $0x38] sm:$0xff]   ;;  %s12527_s11 = sld [smem:[#allocation78_spill]] }
 0x866   : > { %8515 = vmatpush3.bf16.msra.mxu0 %v8898_v17 }
 0x867   : > { %8516 = vmatprep.subr.bf16.mxu0 %v12031_v1 }
 0x868   : > { %v5636_v57 = vld [vmem:[#allocation8 + $0x10] sm:$0xff] }
 0x869   : > { %v5644_v21 = vld [vmem:[#allocation8 + $0x11] sm:$0xff]  ;;  %v5642_v32 = vmul.f32 %v5640_v44, %v5636_v57  ;;  %v5669_v10 = vmul.f32 %v5668_v3, %v5636_v57  ;;  %v8904_v57 = vld [vmem:[%s12522_s1 + $0x8] sm:$0xff]  }
 0x86a   : > { %v5654_v33 = vld [vmem:[#allocation8 + $0x12] sm:$0xff]  ;;  %v5650_v53 = vmul.f32 %v5648_v41, %v5644_v21  ;;  %v5679_v54 = vmul.f32 %v5678_v60, %v5644_v21  ;;  %8517 = vmatpush3.bf16.msra.mxu0 %v8899_v37  ;;  %v8905_v21 = vld [vmem:[%s12522_s1] sm:$0xff]   ;;  %v8114_v37 = vld [vmem:[%s12524_s2 + $0x8] ss:$0 sm:$0xff] }
 0x86b   : > { %v5660_v52 = vmul.f32 %v5658_v39, %v5654_v33  ;;  %v5671_v23 = vadd.f32 %v5669_v10, %v5661_v62  ;;  %v5689_v9 = vmul.f32 %v5688_v18, %v5654_v33  ;;  %8518 = vmatprep.subr.bf16.mxu0 %v12031_v1  ;;  %v8902_v62 = vld [vmem:[%s12522_s1 + $0x18] sm:$0xff]   ;;  %v5852_v33 = vld [vmem:[%s12523_s15] sm:$0xff]  ;;  %s12528_s2 = smov %s12527_s11  ;;  %s12529_s15 = sld [smem:[#allocation77_spill]] }
 0x86c   : > { %v5652_v46 = vadd.f32 %v5650_v53, %v5642_v32  ;;  %v5664_v40 = vld [vmem:[#allocation8 + $0x20] sm:$0xff]  ;;  %v8105_v32 = vld [vmem:[#allocation39] ss:$0 sm:$0xff]  ;;  %v5860_v53 = vrot.slane %v5852_v33, %v10502_v27  ;;  %v5868_v10 = vrot.slane %v5852_v33, %v10505_v28  ;;  %v5919_v30 = vrot.slane %v5852_v33, %v10527_v47 }
 0x86d   : > { %v5674_v14 = vld [vmem:[#allocation8 + $0x21] sm:$0xff]  ;;  %v5670_v13 = vmul.f32 %v5668_v3, %v5664_v40  ;;  %v5681_v8 = vadd.f32 %v5679_v54, %v5671_v23  ;;  %v5700_v0 = vmul.f32 %v5699_v61, %v5664_v40 }
 0x86e   : > { %v5662_v16 = vadd.f32 %v5660_v52, %v5652_v46  ;;  %v5684_v24 = vld [vmem:[#allocation8 + $0x22] sm:$0xff]  ;;  %v5680_v42 = vmul.f32 %v5678_v60, %v5674_v14  ;;  %v5710_v6 = vmul.f32 %v5709_v58, %v5674_v14  ;;  %8519 = vmatpush3.bf16.msra.mxu0 %v8900_v35  ;;  %v8903_v60 = vld [vmem:[%s12522_s1 + $0x10] sm:$0xff]   ;;  %v5861_v54 = vmul.f32 %v12031_v1, %v5860_v53 }
 0x86f   : > { %v5691_v38 = vadd.f32 %v5689_v9, %v5681_v8  ;;  %v5690_v22 = vmul.f32 %v5688_v18, %v5684_v24  ;;  %v5720_v15 = vmul.f32 %v8103_v31, %v5684_v24  ;;  %v8901_v3 = vld [vmem:[%s12522_s1 + $0x20] sm:$0xff]   ;;  %8520 = vmatprep.subr.bf16.mxu0 %v12031_v1  ;;  %v5878_v14 = vrot.slane %v5852_v33, %v10517_v34  ;;  %s12526_s1 = smov %s12525_s7 }
 0x870   : > { %v5672_v12 = vadd.f32 %v5670_v13, %v5662_v16  ;;  %v5863_v61 = vld [vmem:[#allocation9 + $0x1] sm:$0xff]  ;;  %v5921_v35 = vmul.f32 %v12031_v1, %v5919_v30 }
 0x871   : > { %v5702_v43 = vadd.f32 %v5700_v0, %v5691_v38  ;;  %v5869_v40 = vmul.f32 %v5868_v10, %v5863_v61  ;;  %v5873_v16 = vld [vmem:[#allocation9 + $0x2] sm:$0xff]  ;;  %v5898_v0 = vrot.slane %v5852_v33, %v10542_v59 }
 0x872   : > { %v5682_v48 = vadd.f32 %v5680_v42, %v5672_v12  ;;  %8521 = vmatpush3.bf16.msra.mxu0 %v8901_v3  ;;  %v5879_v12 = vmul.f32 %v5878_v14, %v5873_v16  ;;  %v5888_v42 = vrot.slane %v5852_v33, %v10534_v55  ;;  %v5925_v3 = vld [vmem:[#allocation9 + $0x31] sm:$0xff] }
 0x873   : > { %v5712_v41 = vadd.f32 %v5710_v6, %v5702_v43  ;;  %8522 = vmatprep.subr.bf16.mxu0 %v12031_v1  ;;  %v5871_v24 = vadd.f32 %v5869_v40, %v5861_v54  ;;  %v5908_v6 = vrot.slane %v5852_v33, %v10546_v63 }
 0x874   : > { %v5692_v44 = vadd.f32 %v5690_v22, %v5682_v48 }
 0x875   : > { %v5722_v36 = vadd.f32 %v5720_v15, %v5712_v41  ;;  %v5881_v38 = vadd.f32 %v5879_v12, %v5871_v24  ;;  %v8907_v24 = vld [vmem:[%s12526_s1 + $0x30] sm:$0xff]   ;;  %v8908_v12 = vld [vmem:[%s12526_s1 + $0x28] sm:$0xff]  }
 0x876   : > { %v5703_v11 = vadd.f32 %v5701_v50, %v5692_v44  ;;  %8523 = vmatpush3.bf16.msra.mxu0 %v8902_v62 }
 0x877   : > { %v5730_v2 = vadd.f32 %v8104_v4, %v5722_v36  ;;  %8524 = vmatprep.subr.bf16.mxu0 %v12031_v1  ;;  %v5929_v36 = vrot.slane %v5852_v33, %v10537_v56 }
 0x878   : > { %v5713_v20 = vadd.f32 %v5711_v51, %v5703_v11 }
 0x879   : > { %v5732_v19 = vmax.f32 %v5730_v2, 0.0  ;;  %v5931_v33 = vmul.f32 %v5929_v36, %v5925_v3 }
 0x87a   : > { %v5723_v49 = vadd.f32 %v5721_v7, %v5713_v20  ;;  %8525 = vmatpush3.bf16.msra.mxu0 %v8903_v60 }
 0x87b   : > { %8526 = vmatprep.subr.bf16.mxu0 %v12031_v1 }
 0x87c   : > { %v5731_v39 = vadd.f32 %v8104_v4, %v5723_v49 }
 0x87e   : > { %v5733_v45 = vmax.f32 %v5731_v39, 0.0  ;;  %8527 = vmatpush3.bf16.msra.mxu0 %v8904_v57 }
 0x87f   : > { %8528 = vmatprep.subr.bf16.mxu0 %v12031_v1 }
 0x880   : > { %v5734_v29 = vpack.c.bf16 %v5733_v45, %v5732_v19 }
 0x882   : > { %8511 = vmatmul.mubr.bf16.vlgmr.msra.gmra.mxu1 %v5734_v29  ;;  %8529 = vmatpush3.bf16.msra.mxu0 %v8905_v21 }
 0x883   : > { %8550 = vmatprep.mubr.msk.bf16.mxu1 %vm9612_vm4, %v12031_v1  ;;  %8554 = vmatprep.subr.bf16.mxu0 %v12031_v1 }
 0x942   : > { %v5840_v18 = vpop.f32.mrf.mxu1 }
 0x943   : > { %v5841_v46 = vadd.f32 %v8105_v32, %v5840_v18 }
 0x944   : > { %v8512_v52 = vpop.f32.mrf.mxu1 }
 0x945   : > { %v5847_v23 = vmax.f32 %v5841_v46, 0.0 }
 0x946   : > { %v5843_v58 = vpop.f32.mrf.mxu1 }
 0x947   : > { %5850 = vst [vmem:[#allocation9 + $0x11] sm:$0x3] %v5847_v23  ;;  %v5844_v13 = vadd.f32 %v8105_v32, %v5843_v58  ;;  %v5935_v32 = vld [vmem:[#allocation9 + $0x32] sm:$0xff]  ;;  %v8115_v23 = vld [vmem:[#allocation40] ss:$0 sm:$0xff] }
 0x948   : > { %v8513_v8 = vpop.f32.mrf.mxu1  ;;  %v5941_v46 = vmul.f32 %v8114_v37, %v5935_v32 }
 0x949   : > { %v5848_v9 = vmax.f32 %v5844_v13, 0.0 }
 0x94b   : > { %5851 = vst [vmem:[#allocation9 + $0x21] sm:$0x3] %v5848_v9  ;;  %v8906_v9 = vld [vmem:[%s12525_s7 + $0x38] sm:$0xff]   ;;  %s12530_s7 = sld [smem:[#allocation79_spill]] }
 0x94c   : > { %8535 = vmatpush3.bf16.msra.mxu1 %v8906_v9 }
 0x94d   : > { %8536 = vmatprep.subr.bf16.mxu1 %v12031_v1 }
 0x94e   : > { %v5856_v31 = vld [vmem:[#allocation9 + $0x10] sm:$0xff] }
 0x94f   : > { %v5864_v50 = vld [vmem:[#allocation9 + $0x11] sm:$0xff]  ;;  %v5862_v48 = vmul.f32 %v5860_v53, %v5856_v31  ;;  %v5889_v43 = vmul.f32 %v5888_v42, %v5856_v31  ;;  %v8912_v31 = vld [vmem:[%s12526_s1 + $0x8] sm:$0xff]  }
 0x950   : > { %v5874_v5 = vld [vmem:[#allocation9 + $0x12] sm:$0xff]  ;;  %v5870_v22 = vmul.f32 %v5868_v10, %v5864_v50  ;;  %v5899_v15 = vmul.f32 %v5898_v0, %v5864_v50  ;;  %8537 = vmatpush3.bf16.msra.mxu1 %v8907_v24  ;;  %v8913_v50 = vld [vmem:[%s12526_s1] sm:$0xff]   ;;  %v8125_v24 = vld [vmem:[%s12528_s2 + $0x8] ss:$0 sm:$0xff] }
 0x951   : > { %v5880_v51 = vmul.f32 %v5878_v14, %v5874_v5  ;;  %v5891_v41 = vadd.f32 %v5889_v43, %v5881_v38  ;;  %v5909_v2 = vmul.f32 %v5908_v6, %v5874_v5  ;;  %8538 = vmatprep.subr.bf16.mxu1 %v12031_v1  ;;  %v8910_v38 = vld [vmem:[%s12526_s1 + $0x18] sm:$0xff]   ;;  %v6072_v5 = vld [vmem:[%s12527_s11] sm:$0xff]  ;;  %s12531_s11 = sld [smem:[#allocation84_spill]] }
 0x952   : > { %v5872_v44 = vadd.f32 %v5870_v22, %v5862_v48  ;;  %v5884_v11 = vld [vmem:[#allocation9 + $0x20] sm:$0xff]  ;;  %v6080_v22 = vrot.slane %v6072_v5, %v10502_v27  ;;  %v6088_v43 = vrot.slane %v6072_v5, %v10505_v28  ;;  %v6139_v32 = vrot.slane %v6072_v5, %v10527_v47 }
 0x953   : > { %v5894_v7 = vld [vmem:[#allocation9 + $0x21] sm:$0xff]  ;;  %v5890_v20 = vmul.f32 %v5888_v42, %v5884_v11  ;;  %v5901_v49 = vadd.f32 %v5899_v15, %v5891_v41  ;;  %v5920_v17 = vmul.f32 %v5919_v30, %v5884_v11  ;;  %v8116_v48 = vld [vmem:[%s12529_s15] ss:$0 sm:$0xff]  ;;  %s12533_s15 = sld [smem:[#allocation82_spill]] }
 0x954   : > { %v5882_v4 = vadd.f32 %v5880_v51, %v5872_v44  ;;  %v5904_v39 = vld [vmem:[#allocation9 + $0x22] sm:$0xff]  ;;  %v5900_v45 = vmul.f32 %v5898_v0, %v5894_v7  ;;  %v5930_v21 = vmul.f32 %v5929_v36, %v5894_v7  ;;  %8539 = vmatpush3.bf16.msra.mxu1 %v8908_v12  ;;  %v8911_v0 = vld [vmem:[%s12526_s1 + $0x10] sm:$0xff]   ;;  %v6081_v15 = vmul.f32 %v12031_v1, %v6080_v22 }
 0x955   : > { %v5911_v29 = vadd.f32 %v5909_v2, %v5901_v49  ;;  %v5910_v60 = vmul.f32 %v5908_v6, %v5904_v39  ;;  %v5940_v18 = vmul.f32 %v8114_v37, %v5904_v39  ;;  %v8909_v42 = vld [vmem:[%s12526_s1 + $0x20] sm:$0xff]   ;;  %8540 = vmatprep.subr.bf16.mxu1 %v12031_v1  ;;  %v6098_v7 = vrot.slane %v6072_v5, %v10517_v34 }
 0x956   : > { %v5892_v19 = vadd.f32 %v5890_v20, %v5882_v4  ;;  %v6083_v30 = vld [vmem:[#allocation10 + $0x1] sm:$0xff]  ;;  %v6141_v12 = vmul.f32 %v12031_v1, %v6139_v32 }
 0x957   : > { %v5922_v57 = vadd.f32 %v5920_v17, %v5911_v29  ;;  %v6089_v11 = vmul.f32 %v6088_v43, %v6083_v30  ;;  %v6093_v4 = vld [vmem:[#allocation10 + $0x2] sm:$0xff]  ;;  %v6118_v17 = vrot.slane %v6072_v5, %v10542_v59  ;;  %s12532_s1 = smov %s12531_s11 }
 0x958   : > { %v5902_v62 = vadd.f32 %v5900_v45, %v5892_v19  ;;  %8541 = vmatpush3.bf16.msra.mxu1 %v8909_v42  ;;  %v6099_v19 = vmul.f32 %v6098_v7, %v6093_v4  ;;  %v6108_v45 = vrot.slane %v6072_v5, %v10534_v55  ;;  %v6145_v42 = vld [vmem:[#allocation10 + $0x31] sm:$0xff] }
 0x959   : > { %v5932_v10 = vadd.f32 %v5930_v21, %v5922_v57  ;;  %8542 = vmatprep.subr.bf16.mxu1 %v12031_v1  ;;  %v6091_v39 = vadd.f32 %v6089_v11, %v6081_v15  ;;  %v6128_v21 = vrot.slane %v6072_v5, %v10546_v63  ;;  %s12534_s2 = smov %s12533_s15 }
 0x95a   : > { %v5912_v53 = vadd.f32 %v5910_v60, %v5902_v62 }
 0x95b   : > { %v5942_v52 = vadd.f32 %v5940_v18, %v5932_v10  ;;  %v6101_v29 = vadd.f32 %v6099_v19, %v6091_v39  ;;  %v8915_v39 = vld [vmem:[%s12532_s1 + $0x30] sm:$0xff]   ;;  %v8916_v19 = vld [vmem:[%s12532_s1 + $0x28] sm:$0xff]  }
 0x95c   : > { %v5923_v61 = vadd.f32 %v5921_v35, %v5912_v53  ;;  %8543 = vmatpush3.bf16.msra.mxu1 %v8910_v38 }
 0x95d   : > { %v5950_v14 = vadd.f32 %v8115_v23, %v5942_v52  ;;  %8544 = vmatprep.subr.bf16.mxu1 %v12031_v1  ;;  %v6149_v52 = vrot.slane %v6072_v5, %v10537_v56 }
 0x95e   : > { %v5933_v54 = vadd.f32 %v5931_v33, %v5923_v61 }
 0x95f   : > { %v5952_v16 = vmax.f32 %v5950_v14, 0.0 }
 0x960   : > { %v5943_v40 = vadd.f32 %v5941_v46, %v5933_v54  ;;  %8545 = vmatpush3.bf16.msra.mxu1 %v8911_v0 }
 0x961   : > { %8546 = vmatprep.subr.bf16.mxu1 %v12031_v1 }
 0x962   : > { %v5951_v58 = vadd.f32 %v8115_v23, %v5943_v40 }
 0x964   : > { %v5953_v13 = vmax.f32 %v5951_v58, 0.0  ;;  %8547 = vmatpush3.bf16.msra.mxu1 %v8912_v31 }
 0x965   : > { %8548 = vmatprep.subr.bf16.mxu1 %v12031_v1 }
 0x966   : > { %v5954_v8 = vpack.c.bf16 %v5953_v13, %v5952_v16 }
 0x968   : > { %8531 = vmatmul.mubr.bf16.vlgmr.msra.gmra.mxu0 %v5954_v8  ;;  %8549 = vmatpush3.bf16.msra.mxu1 %v8913_v50 }
 0x969   : > { %8570 = vmatprep.mubr.msk.bf16.mxu0 %vm9612_vm4, %v12031_v1  ;;  %8574 = vmatprep.subr.bf16.mxu1 %v12031_v1 }
 0xa28   : > { %v6060_v6 = vpop.f32.mrf.mxu0 }
 0xa29   : > { %v6061_v44 = vadd.f32 %v8116_v48, %v6060_v6 }
 0xa2a   : > { %v8532_v51 = vpop.f32.mrf.mxu0 }
 0xa2b   : > { %v6067_v41 = vmax.f32 %v6061_v44, 0.0 }
 0xa2c   : > { %v6063_v36 = vpop.f32.mrf.mxu0 }
 0xa2d   : > { %6070 = vst [vmem:[#allocation10 + $0x11] sm:$0x3] %v6067_v41  ;;  %v6064_v20 = vadd.f32 %v8116_v48, %v6063_v36  ;;  %v6155_v48 = vld [vmem:[#allocation10 + $0x32] sm:$0xff]  ;;  %v8126_v41 = vld [vmem:[%s12530_s7] ss:$0 sm:$0xff]  ;;  %s12535_s7 = sld [smem:[#allocation81_spill]] }
 0xa2e   : > { %v8533_v49 = vpop.f32.mrf.mxu0  ;;  %v6161_v44 = vmul.f32 %v8125_v24, %v6155_v48 }
 0xa2f   : > { %v6068_v2 = vmax.f32 %v6064_v20, 0.0 }
 0xa31   : > { %6071 = vst [vmem:[#allocation10 + $0x21] sm:$0x3] %v6068_v2  ;;  %v8914_v2 = vld [vmem:[%s12531_s11 + $0x38] sm:$0xff]   ;;  %s12536_s11 = sld [smem:[#allocation83_spill]] }
 0xa32   : > { %8555 = vmatpush3.bf16.msra.mxu0 %v8914_v2 }
 0xa33   : > { %8556 = vmatprep.subr.bf16.mxu0 %v12031_v1 }
 0xa34   : > { %v6076_v37 = vld [vmem:[#allocation10 + $0x10] sm:$0xff] }
 0xa35   : > { %v6084_v35 = vld [vmem:[#allocation10 + $0x11] sm:$0xff]  ;;  %v6082_v62 = vmul.f32 %v6080_v22, %v6076_v37  ;;  %v6109_v57 = vmul.f32 %v6108_v45, %v6076_v37  ;;  %v6151_v22 = vmul.f32 %v6149_v52, %v6145_v42  ;;  %v8920_v37 = vld [vmem:[%s12532_s1 + $0x8] sm:$0xff]  }
 0xa36   : > { %v6094_v3 = vld [vmem:[#allocation10 + $0x12] sm:$0xff]  ;;  %v6090_v60 = vmul.f32 %v6088_v43, %v6084_v35  ;;  %v6119_v18 = vmul.f32 %v6118_v17, %v6084_v35  ;;  %8557 = vmatpush3.bf16.msra.mxu0 %v8915_v39  ;;  %v8921_v35 = vld [vmem:[%s12532_s1] sm:$0xff]   ;;  %v8136_v39 = vld [vmem:[%s12534_s2 + $0x8] ss:$0 sm:$0xff] }
 0xa37   : > { %v6100_v33 = vmul.f32 %v6098_v7, %v6094_v3  ;;  %v6111_v10 = vadd.f32 %v6109_v57, %v6101_v29  ;;  %v6129_v14 = vmul.f32 %v6128_v21, %v6094_v3  ;;  %8558 = vmatprep.subr.bf16.mxu0 %v12031_v1  ;;  %v8918_v29 = vld [vmem:[%s12532_s1 + $0x18] sm:$0xff]   ;;  %v6292_v3 = vld [vmem:[%s12533_s15] sm:$0xff]  ;;  %s12537_s15 = sld [smem:[#allocation88_spill]] }
 0xa38   : > { %v6092_v53 = vadd.f32 %v6090_v60, %v6082_v62  ;;  %v6104_v61 = vld [vmem:[#allocation10 + $0x20] sm:$0xff]  ;;  %v6300_v60 = vrot.slane %v6292_v3, %v10502_v27  ;;  %v6308_v57 = vrot.slane %v6292_v3, %v10505_v28  ;;  %v6359_v48 = vrot.slane %v6292_v3, %v10527_v47 }
 0xa39   : > { %v6114_v46 = vld [vmem:[#allocation10 + $0x21] sm:$0xff]  ;;  %v6110_v54 = vmul.f32 %v6108_v45, %v6104_v61  ;;  %v6121_v40 = vadd.f32 %v6119_v18, %v6111_v10  ;;  %v6140_v9 = vmul.f32 %v6139_v32, %v6104_v61  ;;  %v8127_v62 = vld [vmem:[%s12535_s7] ss:$0 sm:$0xff]  ;;  %s12539_s7 = sld [smem:[#allocation86_spill]] }
 0xa3a   : > { %v6102_v23 = vadd.f32 %v6100_v33, %v6092_v53  ;;  %v6124_v58 = vld [vmem:[#allocation10 + $0x22] sm:$0xff]  ;;  %v6120_v13 = vmul.f32 %v6118_v17, %v6114_v46  ;;  %v6150_v50 = vmul.f32 %v6149_v52, %v6114_v46  ;;  %8559 = vmatpush3.bf16.msra.mxu0 %v8916_v19  ;;  %v8919_v17 = vld [vmem:[%s12532_s1 + $0x10] sm:$0xff]   ;;  %v6301_v18 = vmul.f32 %v12031_v1, %v6300_v60 }
 0xa3b   : > { %v6131_v8 = vadd.f32 %v6129_v14, %v6121_v40  ;;  %v6130_v0 = vmul.f32 %v6128_v21, %v6124_v58  ;;  %v6160_v6 = vmul.f32 %v8125_v24, %v6124_v58  ;;  %v8917_v45 = vld [vmem:[%s12532_s1 + $0x20] sm:$0xff]   ;;  %8560 = vmatprep.subr.bf16.mxu0 %v12031_v1  ;;  %v6318_v46 = vrot.slane %v6292_v3, %v10517_v34 }
 0xa3c   : > { %v6112_v16 = vadd.f32 %v6110_v54, %v6102_v23  ;;  %v6303_v32 = vld [vmem:[#allocation11 + $0x1] sm:$0xff]  ;;  %v6361_v19 = vmul.f32 %v12031_v1, %v6359_v48 }
 0xa3d   : > { %v6142_v31 = vadd.f32 %v6140_v9, %v6131_v8  ;;  %v6309_v61 = vmul.f32 %v6308_v57, %v6303_v32  ;;  %v6313_v23 = vld [vmem:[#allocation11 + $0x2] sm:$0xff]  ;;  %v6338_v9 = vrot.slane %v6292_v3, %v10542_v59  ;;  %s12538_s1 = smov %s12537_s15 }
 0xa3e   : > { %v6122_v38 = vadd.f32 %v6120_v13, %v6112_v16  ;;  %8561 = vmatpush3.bf16.msra.mxu0 %v8917_v45  ;;  %v6319_v16 = vmul.f32 %v6318_v46, %v6313_v23  ;;  %v6328_v13 = vrot.slane %v6292_v3, %v10534_v55  ;;  %v6365_v45 = vld [vmem:[#allocation11 + $0x31] sm:$0xff] }
 0xa3f   : > { %v6152_v43 = vadd.f32 %v6150_v50, %v6142_v31  ;;  %8562 = vmatprep.subr.bf16.mxu0 %v12031_v1  ;;  %v6311_v58 = vadd.f32 %v6309_v61, %v6301_v18  ;;  %v6348_v50 = vrot.slane %v6292_v3, %v10546_v63  ;;  %s12540_s2 = smov %s12539_s7 }
 0xa40   : > { %v6132_v5 = vadd.f32 %v6130_v0, %v6122_v38 }
 0xa41   : > { %v6162_v51 = vadd.f32 %v6160_v6, %v6152_v43  ;;  %v6321_v8 = vadd.f32 %v6319_v16, %v6311_v58  ;;  %v8923_v58 = vld [vmem:[%s12538_s1 + $0x30] sm:$0xff]   ;;  %v8924_v16 = vld [vmem:[%s12538_s1 + $0x28] sm:$0xff]  }
 0xa42   : > { %v6143_v30 = vadd.f32 %v6141_v12, %v6132_v5  ;;  %8563 = vmatpush3.bf16.msra.mxu0 %v8918_v29 }
 0xa43   : > { %v6170_v7 = vadd.f32 %v8126_v41, %v6162_v51  ;;  %8564 = vmatprep.subr.bf16.mxu0 %v12031_v1  ;;  %v6369_v51 = vrot.slane %v6292_v3, %v10537_v56 }
 0xa44   : > { %v6153_v15 = vadd.f32 %v6151_v22, %v6143_v30 }
 0xa45   : > { %v6172_v4 = vmax.f32 %v6170_v7, 0.0 }
 0xa46   : > { %v6163_v11 = vadd.f32 %v6161_v44, %v6153_v15  ;;  %8565 = vmatpush3.bf16.msra.mxu0 %v8919_v17 }
 0xa47   : > { %8566 = vmatprep.subr.bf16.mxu0 %v12031_v1 }
 0xa48   : > { %v6171_v36 = vadd.f32 %v8126_v41, %v6163_v11 }
 0xa4a   : > { %v6173_v20 = vmax.f32 %v6171_v36, 0.0  ;;  %8567 = vmatpush3.bf16.msra.mxu0 %v8920_v37 }
 0xa4b   : > { %8568 = vmatprep.subr.bf16.mxu0 %v12031_v1 }
 0xa4c   : > { %v6174_v49 = vpack.c.bf16 %v6173_v20, %v6172_v4 }
 0xa4e   : > { %8551 = vmatmul.mubr.bf16.vlgmr.msra.gmra.mxu1 %v6174_v49  ;;  %8569 = vmatpush3.bf16.msra.mxu0 %v8921_v35 }
 0xa4f   : > { %8590 = vmatprep.mubr.msk.bf16.mxu1 %vm9612_vm4, %v12031_v1 }
 0xb0e   : > { %v6280_v21 = vpop.f32.mrf.mxu1 }
 0xb0f   : > { %v6281_v53 = vadd.f32 %v8127_v62, %v6280_v21 }
 0xb10   : > { %v8552_v33 = vpop.f32.mrf.mxu1 }
 0xb11   : > { %v6287_v10 = vmax.f32 %v6281_v53, 0.0 }
 0xb12   : > { %v6283_v52 = vpop.f32.mrf.mxu1 }
 0xb13   : > { %6290 = vst [vmem:[#allocation11 + $0x11] sm:$0x3] %v6287_v10  ;;  %v6284_v54 = vadd.f32 %v8127_v62, %v6283_v52  ;;  %v6375_v62 = vld [vmem:[#allocation11 + $0x32] sm:$0xff]  ;;  %v8137_v10 = vld [vmem:[%s12536_s11] ss:$0 sm:$0xff]  ;;  %s12541_s11 = sld [smem:[#allocation85_spill]] }
 0xb14   : > { %v8553_v40 = vpop.f32.mrf.mxu1  ;;  %v6381_v53 = vmul.f32 %v8136_v39, %v6375_v62 }
 0xb15   : > { %v6288_v14 = vmax.f32 %v6284_v54, 0.0 }
 0xb17   : > { %6291 = vst [vmem:[#allocation11 + $0x21] sm:$0x3] %v6288_v14  ;;  %v8922_v14 = vld [vmem:[%s12537_s15 + $0x38] sm:$0xff]   ;;  %s12542_s15 = sld [smem:[#allocation87_spill]] }
 0xb18   : > { %8575 = vmatpush3.bf16.msra.mxu1 %v8922_v14 }
 0xb19   : > { %8576 = vmatprep.subr.bf16.mxu1 %v12031_v1 }
 0xb1a   : > { %v6296_v24 = vld [vmem:[#allocation11 + $0x10] sm:$0xff] }
 0xb1b   : > { %v6304_v12 = vld [vmem:[#allocation11 + $0x11] sm:$0xff]  ;;  %v6302_v38 = vmul.f32 %v6300_v60, %v6296_v24  ;;  %v6329_v31 = vmul.f32 %v6328_v13, %v6296_v24  ;;  %v6371_v60 = vmul.f32 %v6369_v51, %v6365_v45  ;;  %v8928_v24 = vld [vmem:[%s12538_s1 + $0x8] sm:$0xff]  }
 0xb1c   : > { %v6314_v42 = vld [vmem:[#allocation11 + $0x12] sm:$0xff]  ;;  %v6310_v0 = vmul.f32 %v6308_v57, %v6304_v12  ;;  %v6339_v6 = vmul.f32 %v6338_v9, %v6304_v12  ;;  %8577 = vmatpush3.bf16.msra.mxu1 %v8923_v58  ;;  %v8929_v12 = vld [vmem:[%s12538_s1] sm:$0xff]   ;;  %v8147_v58 = vld [vmem:[%s12540_s2 + $0x8] ss:$0 sm:$0xff] }
 0xb1d   : > { %v6320_v22 = vmul.f32 %v6318_v46, %v6314_v42  ;;  %v6331_v43 = vadd.f32 %v6329_v31, %v6321_v8  ;;  %v6349_v7 = vmul.f32 %v6348_v50, %v6314_v42  ;;  %8578 = vmatprep.subr.bf16.mxu1 %v12031_v1  ;;  %v8926_v8 = vld [vmem:[%s12538_s1 + $0x18] sm:$0xff]   ;;  %v6512_v42 = vld [vmem:[%s12539_s7] sm:$0xff]  ;;  %s12543_s7 = sld [smem:[#allocation92_spill]] }
 0xb1e   : > { %v6312_v5 = vadd.f32 %v6310_v0, %v6302_v38  ;;  %v6324_v30 = vld [vmem:[#allocation11 + $0x20] sm:$0xff]  ;;  %v6520_v0 = vrot.slane %v6512_v42, %v10502_v27  ;;  %v6528_v31 = vrot.slane %v6512_v42, %v10505_v28  ;;  %v6579_v62 = vrot.slane %v6512_v42, %v10527_v47 }
 0xb1f   : > { %v6334_v44 = vld [vmem:[#allocation11 + $0x21] sm:$0xff]  ;;  %v6330_v15 = vmul.f32 %v6328_v13, %v6324_v30  ;;  %v6341_v11 = vadd.f32 %v6339_v6, %v6331_v43  ;;  %v6360_v2 = vmul.f32 %v6359_v48, %v6324_v30  ;;  %v8138_v38 = vld [vmem:[%s12541_s11] ss:$0 sm:$0xff]  ;;  %s12545_s11 = sld [smem:[#allocation96_spill]] }
 0xb20   : > { %v6322_v41 = vadd.f32 %v6320_v22, %v6312_v5  ;;  %v6344_v36 = vld [vmem:[#allocation11 + $0x22] sm:$0xff]  ;;  %v6340_v20 = vmul.f32 %v6338_v9, %v6334_v44  ;;  %v6370_v35 = vmul.f32 %v6369_v51, %v6334_v44  ;;  %8579 = vmatpush3.bf16.msra.mxu1 %v8924_v16  ;;  %v8927_v9 = vld [vmem:[%s12538_s1 + $0x10] sm:$0xff]   ;;  %v6521_v6 = vmul.f32 %v12031_v1, %v6520_v0 }
 0xb21   : > { %v6351_v49 = vadd.f32 %v6349_v7, %v6341_v11  ;;  %v6350_v17 = vmul.f32 %v6348_v50, %v6344_v36  ;;  %v6380_v21 = vmul.f32 %v8136_v39, %v6344_v36  ;;  %v8925_v13 = vld [vmem:[%s12538_s1 + $0x20] sm:$0xff]   ;;  %8580 = vmatprep.subr.bf16.mxu1 %v12031_v1  ;;  %v6538_v44 = vrot.slane %v6512_v42, %v10517_v34 }
 0xb22   : > { %v6332_v4 = vadd.f32 %v6330_v15, %v6322_v41  ;;  %v6523_v48 = vld [vmem:[#allocation12 + $0x1] sm:$0xff]  ;;  %v6581_v16 = vmul.f32 %v12031_v1, %v6579_v62 }
 0xb23   : > { %v6362_v37 = vadd.f32 %v6360_v2, %v6351_v49  ;;  %v6529_v30 = vmul.f32 %v6528_v31, %v6523_v48  ;;  %v6533_v41 = vld [vmem:[#allocation12 + $0x2] sm:$0xff]  ;;  %v6558_v2 = vrot.slane %v6512_v42, %v10542_v59  ;;  %s12544_s1 = smov %s12543_s7 }
 0xb24   : > { %v6342_v29 = vadd.f32 %v6340_v20, %v6332_v4  ;;  %8581 = vmatpush3.bf16.msra.mxu1 %v8925_v13  ;;  %v6539_v4 = vmul.f32 %v6538_v44, %v6533_v41  ;;  %v6548_v20 = vrot.slane %v6512_v42, %v10534_v55  ;;  %v6585_v13 = vld [vmem:[#allocation12 + $0x31] sm:$0xff] }
 0xb25   : > { %v6372_v57 = vadd.f32 %v6370_v35, %v6362_v37  ;;  %8582 = vmatprep.subr.bf16.mxu1 %v12031_v1  ;;  %v6531_v36 = vadd.f32 %v6529_v30, %v6521_v6  ;;  %v6568_v35 = vrot.slane %v6512_v42, %v10546_v63  ;;  %s12546_s2 = smov %s12545_s11 }
 0xb26   : > { %v6352_v3 = vadd.f32 %v6350_v17, %v6342_v29 }
 0xb27   : > { %v6382_v33 = vadd.f32 %v6380_v21, %v6372_v57  ;;  %v6541_v49 = vadd.f32 %v6539_v4, %v6531_v36  ;;  %v8932_v36 = vld [vmem:[%s12544_s1 + $0x74] ss:$8 sps:$4 sm:$0xff]   ;;  %v8933_v4 = vld [vmem:[%s12544_s1 + $0x60] ss:$8 sps:$4 sm:$0xff]  }
 0xb28   : > { %v6363_v32 = vadd.f32 %v6361_v19, %v6352_v3  ;;  %8583 = vmatpush3.bf16.msra.mxu1 %v8926_v8  ;;  %6915 = vmatprep.subr.bf16.mxu0 %v8932_v36 }
 0xb29   : > { %v6390_v46 = vadd.f32 %v8137_v10, %v6382_v33  ;;  %8584 = vmatprep.subr.bf16.mxu1 %v12031_v1  ;;  %v6589_v33 = vrot.slane %v6512_v42, %v10537_v56 }
 0xb2a   : > { %v6373_v18 = vadd.f32 %v6371_v60, %v6363_v32 }
 0xb2b   : > { %v6392_v23 = vmax.f32 %v6390_v46, 0.0 }
 0xb2c   : > { %v6383_v61 = vadd.f32 %v6381_v53, %v6373_v18  ;;  %8585 = vmatpush3.bf16.msra.mxu1 %v8927_v9 }
 0xb2d   : > { %8586 = vmatprep.subr.bf16.mxu1 %v12031_v1 }
 0xb2e   : > { %v6391_v52 = vadd.f32 %v8137_v10, %v6383_v61 }
 0xb30   : > { %v6393_v54 = vmax.f32 %v6391_v52, 0.0  ;;  %8587 = vmatpush3.bf16.msra.mxu1 %v8928_v24 }
 0xb31   : > { %8588 = vmatprep.subr.bf16.mxu1 %v12031_v1 }
 0xb32   : > { %v6394_v40 = vpack.c.bf16 %v6393_v54, %v6392_v23 }
 0xb34   : > { %8571 = vmatmul.mubr.bf16.vlgmr.msra.gmra.mxu0 %v6394_v40  ;;  %8589 = vmatpush3.bf16.msra.mxu1 %v8929_v12 }
 0xbf4   : > { %v6500_v50 = vpop.f32.mrf.mxu0 }
 0xbf5   : > { %v6501_v5 = vadd.f32 %v8138_v38, %v6500_v50 }
 0xbf6   : > { %v8572_v22 = vpop.f32.mrf.mxu0 }
 0xbf7   : > { %v6507_v43 = vmax.f32 %v6501_v5, 0.0 }
 0xbf8   : > { %v6503_v51 = vpop.f32.mrf.mxu0 }
 0xbf9   : > { %6510 = vst [vmem:[#allocation12 + $0x11] sm:$0x3] %v6507_v43  ;;  %v6504_v15 = vadd.f32 %v8138_v38, %v6503_v51  ;;  %v6595_v38 = vld [vmem:[#allocation12 + $0x32] sm:$0xff]  ;;  %v8148_v43 = vld [vmem:[%s12542_s15] ss:$0 sm:$0xff]  ;;  %s12547_s15 = sld [smem:[#allocation90_spill]] }
 0xbfa   : > { %v8573_v11 = vpop.f32.mrf.mxu0  ;;  %v6601_v5 = vmul.f32 %v8147_v58, %v6595_v38 }
 0xbfb   : > { %v6508_v7 = vmax.f32 %v6504_v15, 0.0 }
 0xbfd   : > { %6511 = vst [vmem:[#allocation12 + $0x21] sm:$0x3] %v6508_v7  ;;  %v8930_v7 = vld [vmem:[%s12543_s7 + $0x70] ss:$8 sps:$4 sm:$0xff]   ;;  %s12549_s7 = sld [smem:[#allocation89_spill]] }
 0xbfe   : > { %6916 = vmatpush1.bf16.msra.mxu0 %v8930_v7 }
 0xbff   : > { %s12548_s3 = smov %s12547_s15 }
 0xc00   : > { %v6516_v39 = vld [vmem:[#allocation12 + $0x10] sm:$0xff] }
 0xc01   : > { %v6524_v19 = vld [vmem:[#allocation12 + $0x11] sm:$0xff]  ;;  %v6522_v29 = vmul.f32 %v6520_v0, %v6516_v39  ;;  %v6549_v37 = vmul.f32 %v6548_v20, %v6516_v39  ;;  %v6591_v0 = vmul.f32 %v6589_v33, %v6585_v13  ;;  %v8941_v39 = vld [vmem:[%s12544_s1 + $0x44] ss:$8 sps:$4 sm:$0xff]  }
 0xc02   : > { %v6534_v45 = vld [vmem:[#allocation12 + $0x12] sm:$0xff]  ;;  %v6530_v17 = vmul.f32 %v6528_v31, %v6524_v19  ;;  %v6559_v21 = vmul.f32 %v6558_v2, %v6524_v19  ;;  %v9613_v19 = vmov 0  }
 0xc03   : > { %v6540_v60 = vmul.f32 %v6538_v44, %v6534_v45  ;;  %v6551_v57 = vadd.f32 %v6549_v37, %v6541_v49  ;;  %v6569_v46 = vmul.f32 %v6568_v35, %v6534_v45  ;;  %v8938_v49 = vld [vmem:[%s12544_s1 + $0x54] ss:$8 sps:$4 sm:$0xff]   ;;  %6947 = vmatprep.mubr.bf16.mxu0 %v9613_v19  ;;  %v8939_v45 = vld [vmem:[%s12544_s1 + $0x40] ss:$8 sps:$4 sm:$0xff]   ;;  %v8947_v37 = vld [vmem:[%s12544_s1 + $0x24] ss:$8 sps:$4 sm:$0xff]  }
 0xc04   : > { %v6532_v3 = vadd.f32 %v6530_v17, %v6522_v29  ;;  %v6544_v32 = vld [vmem:[#allocation12 + $0x20] sm:$0xff]  ;;  %v8944_v29 = vld [vmem:[%s12544_s1 + $0x34] ss:$8 sps:$4 sm:$0xff]   ;;  %v8942_v17 = vld [vmem:[%s12544_s1 + $0x30] ss:$8 sps:$4 sm:$0xff]  }
 0xc05   : > { %v6554_v53 = vld [vmem:[#allocation12 + $0x21] sm:$0xff]  ;;  %v6550_v18 = vmul.f32 %v6548_v20, %v6544_v32  ;;  %v6561_v61 = vadd.f32 %v6559_v21, %v6551_v57  ;;  %v6580_v14 = vmul.f32 %v6579_v62, %v6544_v32  ;;  %v8950_v62 = vld [vmem:[%s12544_s1 + $0x14] ss:$8 sps:$4 sm:$0xff]   ;;  %v8954_v21 = vld [vmem:[%s12545_s11 + $0x70] ss:$8 sps:$4 sm:$0xff]   ;;  %s12550_s11 = sld [smem:[#allocation91_spill]] }
 0xc06   : > { %v6542_v10 = vadd.f32 %v6540_v60, %v6532_v3  ;;  %v6564_v52 = vld [vmem:[#allocation12 + $0x22] sm:$0xff]  ;;  %v6560_v54 = vmul.f32 %v6558_v2, %v6554_v53  ;;  %v6590_v12 = vmul.f32 %v6589_v33, %v6554_v53  ;;  %v8936_v2 = vld [vmem:[%s12544_s1 + $0x50] ss:$8 sps:$4 sm:$0xff]   ;;  %v8956_v32 = vld [vmem:[%s12546_s2 + $0x74] ss:$8 sps:$4 sm:$0xff]  }
 0xc07   : > { %v6571_v40 = vadd.f32 %v6569_v46, %v6561_v61  ;;  %v6570_v9 = vmul.f32 %v6568_v35, %v6564_v52  ;;  %v6600_v50 = vmul.f32 %v8147_v58, %v6564_v52  ;;  %v8935_v20 = vld [vmem:[%s12544_s1 + $0x64] ss:$8 sps:$4 sm:$0xff]   ;;  %v8945_v35 = vld [vmem:[%s12544_s1 + $0x20] ss:$8 sps:$4 sm:$0xff]   ;;  %v8948_v3 = vld [vmem:[%s12544_s1 + $0x10] ss:$8 sps:$4 sm:$0xff]   ;;  %7432 = vmatprep.subr.bf16.mxu1 %v8956_v32 }
 0xc08   : > { %v6552_v23 = vadd.f32 %v6550_v18, %v6542_v10  ;;  %6917 = vmatprep.subr.bf16.mxu0 %v8935_v20  ;;  %v8953_v60 = vld [vmem:[%s12544_s1 + $0x4] ss:$8 sps:$4 sm:$0xff]   ;;  %v8951_v57 = vld [vmem:[%s12544_s1] ss:$8 sps:$4 sm:$0xff]   ;;  %v8962_v10 = vld [vmem:[%s12546_s2 + $0x54] ss:$8 sps:$4 sm:$0xff]  }
 0xc09   : > { %v6582_v24 = vadd.f32 %v6580_v14, %v6571_v40  ;;  %6918 = vmatpush1.bf16.msra.mxu0 %v8933_v4  ;;  %v8959_v53 = vld [vmem:[%s12546_s2 + $0x64] ss:$8 sps:$4 sm:$0xff]   ;;  %v8957_v33 = vld [vmem:[%s12546_s2 + $0x60] ss:$8 sps:$4 sm:$0xff]   ;;  %v8960_v18 = vld [vmem:[%s12546_s2 + $0x50] ss:$8 sps:$4 sm:$0xff]  }
 0xc0a   : > { %v6562_v8 = vadd.f32 %v6560_v54, %v6552_v23  ;;  %6919 = vmatprep.subr.bf16.mxu0 %v8938_v49  ;;  %v8965_v61 = vld [vmem:[%s12546_s2 + $0x44] ss:$8 sps:$4 sm:$0xff]   ;;  %v8963_v46 = vld [vmem:[%s12546_s2 + $0x40] ss:$8 sps:$4 sm:$0xff]   ;;  %v8968_v52 = vld [vmem:[%s12546_s2 + $0x34] ss:$8 sps:$4 sm:$0xff]  }
 0xc0b   : > { %v6592_v31 = vadd.f32 %v6590_v12, %v6582_v24  ;;  %v8966_v23 = vld [vmem:[%s12546_s2 + $0x30] ss:$8 sps:$4 sm:$0xff]   ;;  %v8971_v54 = vld [vmem:[%s12546_s2 + $0x24] ss:$8 sps:$4 sm:$0xff]   ;;  %v8969_v40 = vld [vmem:[%s12546_s2 + $0x20] ss:$8 sps:$4 sm:$0xff]  }
 0xc0c   : > { %v6572_v42 = vadd.f32 %v6570_v9, %v6562_v8  ;;  %v6732_v14 = vld [vmem:[%s12547_s15] sm:$0xff]  ;;  %s12551_s15 = sld [smem:[#allocation93_spill]] }
 0xc0d   : > { %v6602_v22 = vadd.f32 %v6600_v50, %v6592_v31  ;;  %6920 = vmatpush1.bf16.msra.mxu0 %v8936_v2  ;;  %v8149_v58 = vld [vmem:[%s12549_s7] ss:$0 sm:$0xff]  ;;  %v6745_v13 = vrot.slane %v6732_v14, %v10505_v28  ;;  %v6741_v9 = vld [vmem:[#allocation13 + $0x1] sm:$0xff]  ;;  %v6752_v31 = vrot.slane %v6732_v14, %v10517_v34  ;;  %v6773_v7 = vrot.slane %v6732_v14, %v10546_v63  ;;  %s12552_s7 = sld [smem:[#allocation94_spill]] }
 0xc0e   : > { %v6583_v48 = vadd.f32 %v6581_v16, %v6572_v42  ;;  %6921 = vmatprep.subr.bf16.mxu0 %v8941_v39  ;;  %v6739_v16 = vrot.slane %v6732_v14, %v10502_v27  ;;  %v6781_v49 = vrot.slane %v6732_v14, %v10527_v47  ;;  %v8159_v32 = vld [vmem:[%s12550_s11] ss:$0 sm:$0xff]  ;;  %s12556_s11 = sld [smem:[#allocation95_spill]] }
 0xc0f   : > { %v6610_v44 = vadd.f32 %v8148_v43, %v6602_v22 }
 0xc10   : > { %v6593_v6 = vadd.f32 %v6591_v0, %v6583_v48  ;;  %v6740_v42 = vmul.f32 %v12031_v1, %v6739_v16  ;;  %v6746_v0 = vmul.f32 %v6745_v13, %v6741_v9  ;;  %v6748_v48 = vld [vmem:[#allocation13 + $0x2] sm:$0xff]  ;;  %v8986_v16 = vld [vmem:[%s12546_s2 + $0xd4] ss:$8 sps:$4 sm:$0xff]   ;;  %v8984_v13 = vld [vmem:[%s12546_s2 + $0xd0] ss:$8 sps:$4 sm:$0xff]  }
 0xc11   : > { %v6612_v41 = vmax.f32 %v6610_v44, 0.0  ;;  %6922 = vmatpush1.bf16.msra.mxu0 %v8939_v45  ;;  %v6759_v44 = vrot.slane %v6732_v14, %v10534_v55  ;;  %v6788_v45 = vrot.slane %v6732_v14, %v10537_v56  ;;  %v8987_v9 = vld [vmem:[%s12546_s2 + $0xc0] ss:$8 sps:$4 sm:$0xff]  }
 0xc12   : > { %v6603_v30 = vadd.f32 %v6601_v5, %v6593_v6  ;;  %6923 = vmatprep.subr.bf16.mxu0 %v8944_v29  ;;  %v6747_v6 = vadd.f32 %v6746_v0, %v6740_v42  ;;  %v8993_v42 = vld [vmem:[%s12546_s2 + $0xa0] ss:$8 sps:$4 sm:$0xff]   ;;  %v8998_v0 = vld [vmem:[%s12546_s2 + $0x94] ss:$8 sps:$4 sm:$0xff]  }
 0xc13   : > { %s12553_s1 = smov %s12552_s7 }
 0xc14   : > { %v6611_v51 = vadd.f32 %v8148_v43, %v6603_v30  ;;  %v6753_v30 = vmul.f32 %v6752_v31, %v6748_v48  ;;  %v8996_v31 = vld [vmem:[%s12546_s2 + $0x90] ss:$8 sps:$4 sm:$0xff]  }
 0xc15   : > { %6924 = vmatpush1.bf16.msra.mxu0 %v8942_v17  ;;  %v9002_v48 = vld [vmem:[%s9899_s20 + $0x78] sm:$0xff]  }
 0xc16   : > { %v6613_v15 = vmax.f32 %v6611_v51, 0.0  ;;  %6925 = vmatprep.subr.bf16.mxu0 %v8947_v37  ;;  %v6754_v51 = vadd.f32 %v6753_v30, %v6747_v6  ;;  %v9005_v6 = vld [vmem:[%s9899_s20 + $0x30] sm:$0xff]   ;;  %v6823_v30 = vld [vmem:[%s12551_s15] sm:$0x3]  ;;  %s1878_s15 = sand.u32 1, %s9527_s10  }
 0xc18   : > { %v6614_v11 = vpack.c.bf16 %v6613_v15, %v6612_v41  ;;  %v6766_v41 = vrot.slane %v6732_v14, %v10542_v59  ;;  %v8983_v14 = vld [vmem:[%s12546_s2 + $0xe4] ss:$8 sps:$4 sm:$0xff]  }
 0xc19   : > { %6926 = vmatpush1.bf16.msra.mxu0 %v8945_v35  ;;  %v8158_v35 = vld [vmem:[%s12548_s3 + $0x8] ss:$0 sm:$0xff]  ;;  %s7685_s3 = scalar_lea.sflag [#allocation18], %s1878_s15 }
 0xc1a   : > { %8591 = vmatmul.mubr.bf16.vlgmr.msra.gmra.mxu1 %v6614_v11  ;;  %6927 = vmatprep.subr.bf16.mxu0 %v8950_v62 }
 0xc1b   : > { %7433 = vmatpush1.bf16.msra.mxu1 %v8954_v21 }
 0xc1c   : > { %7434 = vmatprep.subr.bf16.mxu1 %v8959_v53 }
 0xc1d   : > { %6928 = vmatpush1.bf16.msra.mxu0 %v8948_v3 }
 0xc1e   : > { %6929 = vmatprep.subr.bf16.mxu0 %v8953_v60 }
 0xc1f   : > { %7435 = vmatpush1.bf16.msra.mxu1 %v8957_v33 }
 0xc20   : > { %7436 = vmatprep.subr.bf16.mxu1 %v8962_v10 }
 0xc21   : > { %6930 = vmatpush1.bf16.msra.mxu0 %v8951_v57 }
 0xc22   : > { %8340 = vmatprep.subr.bf16.mxu0 %v9002_v48 }
 0xc23   : > { %7437 = vmatpush1.bf16.msra.mxu1 %v8960_v18 }
 0xc24   : > { %7438 = vmatprep.subr.bf16.mxu1 %v8965_v61  ;;  %v8974_v61 = vld [vmem:[%s12546_s2 + $0x14] ss:$8 sps:$4 sm:$0xff]  }
 0xc27   : > { %7439 = vmatpush1.bf16.msra.mxu1 %v8963_v46  ;;  %v8972_v46 = vld [vmem:[%s12546_s2 + $0x10] ss:$8 sps:$4 sm:$0xff]  }
 0xc28   : > { %7440 = vmatprep.subr.bf16.mxu1 %v8968_v52  ;;  %v8975_v52 = vld [vmem:[%s12546_s2] ss:$8 sps:$4 sm:$0xff]  }
 0xc2b   : > { %7441 = vmatpush1.bf16.msra.mxu1 %v8966_v23  ;;  %v8977_v23 = vld [vmem:[%s12546_s2 + $0x4] ss:$8 sps:$4 sm:$0xff]  }
 0xc2c   : > { %7442 = vmatprep.subr.bf16.mxu1 %v8971_v54  ;;  %v8980_v54 = vld [vmem:[%s12546_s2 + $0xf4] ss:$8 sps:$4 sm:$0xff]  }
 0xc2f   : > { %7443 = vmatpush1.bf16.msra.mxu1 %v8969_v40  ;;  %v8978_v40 = vld [vmem:[%s12546_s2 + $0xf0] ss:$8 sps:$4 sm:$0xff]  }
 0xc30   : > { %7444 = vmatprep.subr.bf16.mxu1 %v8974_v61  ;;  %v7032_v61 = vld [vmem:[#allocation14] sm:$0xfc] }
 0xc33   : > { %7445 = vmatpush1.bf16.msra.mxu1 %v8972_v46  ;;  %v7034_v46 = vld [vmem:[#allocation14 + $0x10] sm:$0x3] }
 0xc34   : > { %7446 = vmatprep.subr.bf16.mxu1 %v8977_v23 }
 0xc37   : > { %7447 = vmatpush1.bf16.msra.mxu1 %v8975_v52 }
 0xc38   : > { %7448 = vmatprep.subr.bf16.mxu1 %v8980_v54 }
 0xc3b   : > { %7449 = vmatpush2.bf16.msra.mxu1 %v8978_v40 }
 0xc3c   : > { %7450 = vmatprep.subr.bf16.mxu1 %v8983_v14 }
 0xcda   : > { %v6720_v8 = vpop.f32.mrf.mxu1 }
 0xcdb   : > { %v6721_v24 = vadd.f32 %v8149_v58, %v6720_v8  ;;  %v8989_v8 = vld [vmem:[%s12546_s2 + $0xc4] ss:$8 sps:$4 sm:$0xff]  }
 0xcdc   : > { %v8592_v12 = vpop.f32.mrf.mxu1 }
 0xcdd   : > { %v6727_v38 = vmax.f32 %v6721_v24, 0.0  ;;  %v8992_v24 = vld [vmem:[%s12546_s2 + $0xb4] ss:$8 sps:$4 sm:$0xff]   ;;  %v8990_v12 = vld [vmem:[%s12546_s2 + $0xb0] ss:$8 sps:$4 sm:$0xff]  }
 0xcde   : > { %v6723_v50 = vpop.f32.mrf.mxu1 }
 0xcdf   : > { %6730 = vst [vmem:[#allocation13 + $0x11] sm:$0x3] %v6727_v38  ;;  %v6724_v5 = vadd.f32 %v8149_v58, %v6723_v50  ;;  %v8981_v58 = vld [vmem:[%s12546_s2 + $0xe0] ss:$8 sps:$4 sm:$0xff]   ;;  %v8995_v38 = vld [vmem:[%s12546_s2 + $0xa4] ss:$8 sps:$4 sm:$0xff]  }
 0xce0   : > { %v8593_v22 = vpop.f32.mrf.mxu1  ;;  %7451 = vmatpush2.bf16.msra.mxu1 %v8981_v58  ;;  %v9001_v50 = vld [vmem:[%s12546_s2 + $0x84] ss:$8 sps:$4 sm:$0xff]  }
 0xce1   : > { %v6728_v43 = vmax.f32 %v6724_v5, 0.0  ;;  %7452 = vmatprep.subr.bf16.mxu1 %v8986_v16  ;;  %v9003_v5 = vld [vmem:[%s9899_s20 + $0x38] sm:$0xff]   ;;  %v9004_v22 = vld [vmem:[%s9899_s20 + $0x70] sm:$0xff]  }
 0xce3   : > { %6731 = vst [vmem:[#allocation13 + $0x21] sm:$0x3] %v6728_v43  ;;  %v8999_v43 = vld [vmem:[%s12546_s2 + $0x80] ss:$8 sps:$4 sm:$0xff]  }
 0xce4   : > { %7453 = vmatpush2.bf16.msra.mxu1 %v8984_v13 }
 0xce5   : > { %7454 = vmatprep.subr.bf16.mxu1 %v8989_v8 }
 0xce6   : > { %v6755_v15 = vld [vmem:[#allocation13 + $0x10] sm:$0xff] }
 0xce7   : > { %v6762_v1 = vld [vmem:[#allocation13 + $0x11] sm:$0xff]  ;;  %v6760_v11 = vmul.f32 %v6759_v44, %v6755_v15  ;;  %v12222_v44 = vld [vmem:[%s12552_s7 + $0x8] sm:$0xff]  ;;  %s8226_s7 = sshll.u32 %s9932_s0, 4 }
 0xce8   : > { %v6769_v36 = vld [vmem:[#allocation13 + $0x12] sm:$0xff]  ;;  %v6767_v20 = vmul.f32 %v6766_v41, %v6762_v1  ;;  %7455 = vmatpush2.bf16.msra.mxu1 %v8987_v9  ;;  %v9614_v41 = vmov 1966171168   ;;  %v12226_v1 = vld [vmem:[%s12553_s1] sm:$0xff]  ;;  %v6998_v23 = vrot.slane %v12222_v44, %v10502_v27  ;;  %v12244_v14 = vrot.slane %v12222_v44, %v10542_v59  ;;  %s12328_s2 = scalar_lea.hbm %s12460_s4, %s8226_s7 }
 0xce9   : > { %v6761_v4 = vadd.f32 %v6760_v11, %v6754_v51  ;;  %v6774_v19 = vmul.f32 %v6773_v7, %v6769_v36  ;;  %7456 = vmatprep.subr.bf16.mxu1 %v8992_v24  ;;  %v6828_v51 = vrot.slane %v6823_v30, %v10502_v27  ;;  %v6962_v15 = vunpack.c.l.s4 %v9614_v41 }
 0xcea   : > { %v6777_v2 = vld [vmem:[#allocation13 + $0x20] sm:$0xff]  ;;  %v6832_v11 = vrot.slane %v6823_v30, %v10505_v28  ;;  %v7012_v7 = vrot.slane %v12222_v44, %v10505_v28  ;;  %v6994_v13 = vrot.slane %v12226_v1, %v10502_v27  ;;  %v7109_v30 = vld [vmem:[#allocation14 + $0x38] sm:$0x3] }
 0xceb   : > { %v6768_v39 = vadd.f32 %v6767_v20, %v6761_v4  ;;  %v6784_v29 = vld [vmem:[#allocation13 + $0x21] sm:$0xff]  ;;  %v6782_v37 = vmul.f32 %v6781_v49, %v6777_v2  ;;  %v7002_v4 = vld [vmem:[#allocation14 + $0x8] sm:$0xfe]  ;;  %v7004_v20 = vld [vmem:[#allocation14 + $0x18] sm:$0x1]  ;;  %v7008_v49 = vrot.slane %v12226_v1, %v10505_v28 }
 0xcec   : > { %v6791_v62 = vld [vmem:[#allocation13 + $0x22] sm:$0xff]  ;;  %v6789_v60 = vmul.f32 %v6788_v45, %v6784_v29  ;;  %7457 = vmatpush2.bf16.msra.mxu1 %v8990_v12  ;;  %v7003_v45 = vld [vmem:[#allocation14 + $0x10] sm:$0x1] }
 0xced   : > { %v6775_v17 = vadd.f32 %v6774_v19, %v6768_v39  ;;  %v6796_v21 = vmul.f32 %v8158_v35, %v6791_v62  ;;  %7458 = vmatprep.subr.bf16.mxu1 %v8995_v38  ;;  %v6963_v39 = vunpack.c.0.s8 %v6962_v15  ;;  %v7001_v19 = vld [vmem:[#allocation14] sm:$0xfe]  ;;  %v7014_v35 = vmul.f32 %v7012_v7, %v7002_v4 }
 0xcee   : > { %v7016_v62 = vmul.f32 %v7012_v7, %v7004_v20  ;;  %v7113_v7 = vrot.slane %v12226_v1, %v10546_v63 }
 0xcef   : > { %v6783_v3 = vadd.f32 %v6782_v37, %v6775_v17  ;;  %v7043_v17 = vrot.slane %v12222_v44, %v10517_v34  ;;  %v7025_v16 = vrot.slane %v7014_v35, 1 }
 0xcf0   : > { %7459 = vmatpush2.bf16.msra.mxu1 %v8993_v42 }
 0xcf1   : > { %v6790_v57 = vadd.f32 %v6789_v60, %v6783_v3  ;;  %7460 = vmatprep.subr.bf16.mxu1 %v8998_v0  ;;  %v7033_v3 = vld [vmem:[#allocation14 + $0x8] sm:$0xfc]  ;;  %v7035_v60 = vld [vmem:[#allocation14 + $0x18] sm:$0x3]  ;;  %v12254_v0 = vld [vmem:[#allocation13 + $0x30] sm:$0xff] }
 0xcf2   : > { %v7045_v54 = vmul.f32 %v7043_v17, %v7033_v3  ;;  %v7047_v40 = vmul.f32 %v7043_v17, %v7035_v60  ;;  %v7078_v17 = vld [vmem:[#allocation14 + $0x30] sm:$0x1]  ;;  %v7071_v60 = vrot.slane %v12222_v44, %v10534_v55 }
 0xcf3   : > { %v6797_v53 = vadd.f32 %v6796_v21, %v6790_v57  ;;  %v7013_v21 = vmul.f32 %v7008_v49, %v7001_v19  ;;  %v7146_v19 = vrot.slane %v12222_v44, %v10527_v47 }
 0xcf4   : > { %7461 = vmatpush2.bf16.msra.mxu1 %v8996_v31  ;;  %v7000_v31 = vmul.f32 %v12254_v0, %v6998_v23  ;;  %v7056_v48 = vrot.slane %v7047_v40, 2  ;;  %v7158_v23 = vrot.slane %v12226_v1, %v10537_v56 }
 0xcf5   : > { %v6804_v33 = vadd.f32 %v8159_v32, %v6797_v53  ;;  %7462 = vmatprep.subr.bf16.mxu1 %v9001_v50  ;;  %v7015_v32 = vmul.f32 %v7008_v49, %v7003_v45  ;;  %v7039_v53 = vrot.slane %v12226_v1, %v10517_v34  ;;  %v7026_v34 = vrot.slane %v7016_v62, 1  ;;  %v7152_v62 = vld [vmem:[#allocation14 + $0x48] sm:$0xfe] }
 0xcf6   : > { %v7022_v8 = vrot.slane %v7013_v21, 1  ;;  %v7055_v50 = vrot.slane %v7045_v54, 2  ;;  %v7083_v49 = vrot.slane %v12226_v1, %v10542_v59  ;;  %v7162_v45 = vrot.slane %v12222_v44, %v10537_v56  ;;  %v7182_v21 = vld [vmem:[#allocation14 + $0x48] sm:$0xfc] }
 0xcf7   : > { %v6805_v10 = vmax.f32 %v6804_v33, 0.0  ;;  %v7023_v9 = vrot.slane %v7015_v32, 1  ;;  %v7044_v24 = vmul.f32 %v7039_v53, %v7032_v61  ;;  %v7046_v12 = vmul.f32 %v7039_v53, %v7034_v46  ;;  %v7184_v32 = vld [vmem:[#allocation14 + $0x58] sm:$0x3] }
 0xcf8   : > { %7463 = vmatpush2.bf16.msra.mxu1 %v8999_v43  ;;  %v7027_v43 = vsel %vm7021_vm7, %v7025_v16, %v7026_v34  ;;  %v7067_v53 = vrot.slane %v12226_v1, %v10534_v55  ;;  %v7090_v46 = vmul.f32 %v7083_v49, %v7078_v17  ;;  %v7148_v40 = vmul.f32 %v12254_v0, %v7146_v19  ;;  %v8176_v16 = vld [vmem:[%s12553_s1 + $0x10] ss:$0 sm:$0xff] }
 0xcf9   : > { %v6806_v18 = vpack.c.bf16 %v6805_v10, %v6805_v10  ;;  %v7024_v41 = vsel %vm7021_vm7, %v7022_v8, %v7023_v9  ;;  %v7052_v15 = vrot.slane %v7044_v24, 2  ;;  %v7153_v34 = vld [vmem:[#allocation14 + $0x50] sm:$0x1] }
 0xcfb   : > { %6948 = vmatmul.mubr.bf16.vlgmr.msra.gmra.mxu0 %v6806_v18  ;;  %v12238_v18 = vsub.s32 %v6963_v39, %v10499_v26  ;;  %v7079_v26 = vld [vmem:[#allocation14 + $0x38] sm:$0x1]  ;;  %v7031_v39 = vadd.f32 %v7027_v43, %v7000_v31 }
 0xcfc   : > { %8341 = vmatpush3.bf16.msra.mxu0 %v9003_v5  ;;  %v7117_v5 = vrot.slane %v12222_v44, %v10546_v63  ;;  %v8177_v63 = vld [vmem:[%s12553_s1 + $0x18] ss:$0 sm:$0xff] }
 0xcfd   : > { %8342 = vmatprep.subr.bf16.mxu0 %v9004_v22  ;;  %v7194_v55 = vmul.f32 %v8177_v63, %v7182_v21  ;;  %v7196_v24 = vmul.f32 %v8177_v63, %v7184_v32 }
 0xcfe   : > { %v7119_v4 = vmul.f32 %v7117_v5, %v7107_v25  ;;  %v7121_v20 = vmul.f32 %v7117_v5, %v7109_v30  ;;  %v7165_v30 = vmul.f32 %v7158_v23, %v7153_v34 }
 0xcff   : > { %v7204_v63 = vrot.slane %v7194_v55, 2  ;;  %v9009_v55 = vld [vmem:[%s9899_s20 + $0x20] sm:$0xff]  }
 0xd00   : > { %8343 = vmatpush3.bf16.msra.mxu0 %v9005_v6  ;;  %v12262_v6 = vmul.f32 %v12244_v14, %v7079_v26  ;;  %v7130_v61 = vrot.slane %v7121_v20, 2  ;;  %v7172_v17 = vrot.slane %v7165_v30, 1 }
 0xd02   : > { %v7100_v35 = vrot.slane %v12262_v6, 1  ;;  %v7097_v6 = vrot.slane %v7090_v46, 1 }
 0xdbb   : > { %v6949_v36 = vpop.f32.mrf.mxu0 }
 0xdbc   : > { %v6950_v2 = vadd.f32 %v6949_v36, %v6828_v51  ;;  %v6999_v51 = vmul.f32 %v12254_v0, %v6994_v13  ;;  %v7106_v36 = vld [vmem:[#allocation14 + $0x20] sm:$0xfc] }
 0xdbd   : > { %v6951_v29 = vpop.f32.mrf.mxu0  ;;  %v7118_v59 = vmul.f32 %v7113_v7, %v7106_v36  ;;  %v7181_v13 = vld [vmem:[#allocation14 + $0x40] sm:$0xfc] }
 0xdbe   : > { %v6952_v37 = vadd.f32 %v6951_v29, %v6832_v11  ;;  %v6956_v33 = vmax.f32 %v6950_v2, 0.0  ;;  %v7053_v11 = vrot.slane %v7046_v12, 2  ;;  %v7108_v2 = vld [vmem:[#allocation14 + $0x30] sm:$0x3]  ;;  %v7030_v29 = vadd.f32 %v7024_v41, %v6999_v51 }
 0xdbf   : > { %v6953_v57 = vpop.f32.mrf.mxu0 }
 0xdc0   : > { %v6957_v10 = vmax.f32 %v6952_v37, 0.0  ;;  %v7057_v37 = vsel %vm2322_vm6, %v7055_v50, %v7056_v48  ;;  %v7054_v3 = vsel %vm2322_vm6, %v7052_v15, %v7053_v11  ;;  %v7154_v57 = vld [vmem:[#allocation14 + $0x58] sm:$0x1]  ;;  %v7142_v11 = vrot.slane %v12226_v1, %v10527_v47 }
 0xdc1   : > { %v6954_v52 = vpop.f32.mrf.mxu0  ;;  %v7061_v54 = vadd.f32 %v7057_v37, %v7031_v39  ;;  %v7060_v44 = vadd.f32 %v7054_v3, %v7030_v29  ;;  %v7166_v9 = vmul.f32 %v7162_v45, %v7154_v57  ;;  %v7205_v37 = vrot.slane %v7196_v24, 2  ;;  %v9010_v24 = vld [vmem:[%s9899_s20 + $0x58] sm:$0xff]  }
 0xdc2   : > { %v6960_v58 = vcombine.low %v6956_v33, %v6957_v10  ;;  %v7120_v33 = vmul.f32 %v7113_v7, %v7108_v2  ;;  %v7129_v10 = vrot.slane %v7119_v4, 2  ;;  %v7151_v52 = vld [vmem:[#allocation14 + $0x40] sm:$0xfe]  ;;  %v7193_v4 = vmul.f32 %v8176_v16, %v7181_v13 }
 0xdc3   : > { %v7163_v25 = vmul.f32 %v7158_v23, %v7151_v52  ;;  %v7175_v39 = vrot.slane %v7166_v9, 1  ;;  %v7147_v1 = vmul.f32 %v12254_v0, %v7142_v11  ;;  %v9008_v9 = vld [vmem:[%s9899_s20 + $0x60] sm:$0xff]  }
 0xdc4   : > { %v6967_v38 = vrot.slane %v6960_v58, %v12238_v18  ;;  %v7164_v58 = vmul.f32 %v7162_v45, %v7152_v62  ;;  %v7127_v5 = vrot.slane %v7120_v33, 2  ;;  %v7131_v7 = vsel %vm2322_vm6, %v7129_v10, %v7130_v61 }
 0xdc5   : > { %v7171_v29 = vrot.slane %v7163_v25, 1  ;;  %v7201_v3 = vrot.slane %v7193_v4, 2 }
 0xdc6   : > { %v6974_v22 = vrot.slane %v6967_v38, %v12238_v18  ;;  %v7126_v38 = vrot.slane %v7118_v59, 2  ;;  %v7174_v2 = vrot.slane %v7164_v58, 1 }
 0xdc7   : > { %v7173_v32 = vsel %vm7021_vm7, %v7171_v29, %v7172_v17  ;;  %v7545_v17 = vld [vmem:[%s12557_s5] sm:$0x1]  ;;  %s9615_s5 = smov [#allocation42]  }
 0xdc8   : > { %6982 = vst.msk [vmem:[#allocation14 + $0x21] ss:$8 sm:$0x3] %vm12250_vm8, %v6974_v22  ;;  %v7183_v22 = vld [vmem:[#allocation14 + $0x50] sm:$0x3]  ;;  %s9443_s8 = sshll.u32 %s9615_s5, 4  ;;  %s9444_s8 = int_to_ptr.vmem [resolvable:$false] %s9443_s8 }
 0xdc9   : > { %v7195_v20 = vmul.f32 %v8176_v16, %v7183_v22  ;;  %v7260_v22 = vld [vmem:[%s9894_s9] sm:$0x3]  ;;  %s9445_s0 = scalar_lea.vmem %s9444_s8, 32 }
 0xdcb   : > { %v7202_v59 = vrot.slane %v7195_v20, 2 }
 0xdcd   : > { %v7203_v0 = vsel %vm2322_vm6, %v7201_v3, %v7202_v59 }
 0xdcf   : > { %v7063_v26 = vld [vmem:[#allocation14 + $0x28] sm:$0xff]  ;;  %v7062_v12 = vld [vmem:[#allocation14 + $0x20] sm:$0xff] }
 0xdd0   : > { %v7077_v8 = vld [vmem:[#allocation14 + $0x28] sm:$0xfe]  ;;  %v7073_v31 = vmul.f32 %v7071_v60, %v7063_v26  ;;  %v7072_v48 = vmul.f32 %v7067_v53, %v7062_v12  ;;  %v7076_v56 = vld [vmem:[#allocation14 + $0x20] sm:$0xfe]  ;;  %v7206_v53 = vsel %vm2322_vm6, %v7204_v63, %v7205_v37  ;;  %v9011_v12 = vld [vmem:[%s9899_s20 + $0x18] sm:$0xff]  }
 0xdd1   : > { %v7089_v50 = vmul.f32 %v12244_v14, %v7077_v8  ;;  %v7088_v43 = vmul.f32 %v7083_v49, %v7076_v56  ;;  %v7128_v49 = vsel %vm2322_vm6, %v7126_v38, %v7127_v5  ;;  %v6988_v60 = vld [vmem:[%s12556_s11] sm:$0x3]  ;;  %v9006_v26 = vld [vmem:[%s9899_s20 + $0x68] sm:$0xff]   ;;  %v9012_v38 = vld [vmem:[%s9899_s20 + $0x50] sm:$0xff]   ;;  %s1879_s11 = scalar_lea.vmem [#allocation42], %s1878_s15  ;;  %vm7682_vm6 = vcmask 73728  }
 0xdd2   : > { %v7075_v51 = vadd.f32 %v7073_v31, %v7061_v54  ;;  %v7074_v15 = vadd.f32 %v7072_v48, %v7060_v44  ;;  %v7219_v61 = vrot.slane %v6988_v60, %v10505_v28  ;;  %v7215_v46 = vrot.slane %v6988_v60, %v10502_v27  ;;  %v9007_v8 = vld [vmem:[%s9899_s20 + $0x28] sm:$0xff]   ;;  %8344 = vmatprep.subr.bf16.mxu0 %v9006_v26  ;;  %v9013_v31 = vld [vmem:[%s9899_s20 + $0x10] sm:$0xff]   ;;  %v9016_v56 = vld [vmem:[%s9899_s20 + $0x40] sm:$0xff]   ;;  %s7697_s1 = sshll.u32 %s1879_s11, 4  ;;  %s7698_s1 = int_to_ptr.vmem [resolvable:$true] %s7697_s1 }
 0xdd3   : > { %v7099_v41 = vrot.slane %v7089_v50, 1  ;;  %v7096_v36 = vrot.slane %v7088_v43, 1  ;;  %8345 = vmatpush3.bf16.msra.mxu0 %v9007_v8  ;;  %v9014_v50 = vld [vmem:[%s9899_s20 + $0x48] sm:$0xff]   ;;  %v9017_v5 = vld [vmem:[%s9899_s20] sm:$0xff]   ;;  %v7265_v43 = vrot.slane %v7260_v22, %v10502_v27  ;;  %s9439_s6 = scalar_lea.vmem %s7698_s1, 16  ;;  %p9446_p0 = scmp.lt.s32.totalorder %s7698_s1, %s9444_s8 }
 0xdd4   : > { %8346 = vmatprep.subr.bf16.mxu0 %v9008_v9  ;;  %v9015_v48 = vld [vmem:[%s9899_s20 + $0x8] sm:$0xff]   ;;  %p9440_p12 = scmp.ne.s32.totalorder %s7698_s1, %s9439_s6  ;;  %p9447_p1 = scmp.lt.s32.totalorder %s9445_s0, %s9439_s6 }
 0xdd5   : > { %v7101_v14 = vsel %vm7021_vm7, %v7099_v41, %v7100_v35  ;;  %v7098_v45 = vsel %vm7021_vm7, %v7096_v36, %v7097_v6  ;;  %v7176_v35 = vsel %vm7021_vm7, %v7174_v2, %v7175_v39  ;;  %v7269_v6 = vrot.slane %v7260_v22, %v10505_v28 }
 0xdd6   : > { %v7105_v19 = vadd.f32 %v7101_v14, %v7075_v51  ;;  %v7104_v47 = vadd.f32 %v7098_v45, %v7074_v15  ;;  %p9441_p8 = pnand %p9440_p12, %p12558_p7  ;;  %p9448_p2 = por %p9447_p1, %p9446_p0 }
 0xdd7   : > { %8347 = vmatpush3.bf16.msra.mxu0 %v9009_v55 }
 0xdd8   : > { %v7135_v62 = vadd.f32 %v7131_v7, %v7105_v19  ;;  %v7134_v57 = vadd.f32 %v7128_v49, %v7104_v47  ;;  %8348 = vmatprep.subr.bf16.mxu0 %v9010_v24  ;;  %p9442_p11 = pneg %p9441_p8 }
 0xdda   : > { %v7150_v21 = vadd.f32 %v7148_v40, %v7135_v62  ;;  %v7149_v33 = vadd.f32 %v7147_v1, %v7134_v57  ;;  %p9449_p3 = pnand %p9448_p2, %p9442_p11 }
 0xddb   : > { %8349 = vmatpush3.bf16.msra.mxu0 %v9011_v12 }
 0xddc   : > { %v7180_v10 = vadd.f32 %v7176_v35, %v7150_v21  ;;  %v7179_v52 = vadd.f32 %v7173_v32, %v7149_v33  ;;  %8350 = vmatprep.subr.bf16.mxu0 %v9012_v38 }
 0xdde   : > { %v7210_v23 = vadd.f32 %v7206_v53, %v7180_v10  ;;  %v7209_v54 = vadd.f32 %v7203_v0, %v7179_v52 }
 0xddf   : > { %8351 = vmatpush3.bf16.msra.mxu0 %v9013_v31 }
 0xde0   : > { %v7223_v40 = vadd.f32 %v7219_v61, %v7210_v23  ;;  %v7222_v58 = vadd.f32 %v7215_v46, %v7209_v54  ;;  %8352 = vmatprep.subr.bf16.mxu0 %v9014_v50 }
 0xde2   : > { %v7225_v16 = vmax.f32 %v7223_v40, 0.0  ;;  %v7224_v44 = vmax.f32 %v7222_v58, 0.0 }
 0xde3   : > { %8353 = vmatpush3.bf16.msra.mxu0 %v9015_v48 }
 0xde4   : > { %v7227_v34 = vpack.c.bf16 %v7225_v16, %v7225_v16  ;;  %v7226_v13 = vpack.c.bf16 %v7224_v44, %v7224_v44  ;;  %8354 = vmatprep.subr.bf16.mxu0 %v9016_v56 }
 0xde6   : > { %7464 = vmatprep.mubr.bf16.mxu1 %v7227_v34 }
 0xde7   : > { %7465 = vmatmul.mubr.bf16.vlgmr.msra.gmra.mxu1 %v7226_v13  ;;  %8355 = vmatpush3.bf16.msra.mxu0 %v9017_v5 }
 0xea7   : > { %v7466_v25 = vpop.f32.mrf.mxu1 }
 0xea8   : > { %v7467_v30 = vadd.f32 %v7466_v25, %v7265_v43 }
 0xea9   : > { %v7468_v51 = vpop.f32.mrf.mxu1 }
 0xeaa   : > { %v7469_v41 = vadd.f32 %v7468_v51, %v7269_v6  ;;  %v7473_v11 = vmax.f32 %v7467_v30, 0.0 }
 0xeab   : > { %v7470_v15 = vpop.f32.mrf.mxu1 }
 0xeac   : > { %v7474_v7 = vmax.f32 %v7469_v41, 0.0 }
 0xead   : > { %v7471_v36 = vpop.f32.mrf.mxu1 }
 0xeae   : > { %v7477_v4 = vcombine.low %v7473_v11, %v7474_v7 }
 0xeb0   : > { %v7484_v20 = vrot.slane %v7477_v4, %v12238_v18 }
 0xeb2   : > { %v7491_v14 = vrot.slane %v7484_v20, %v12238_v18 }
 0xeb4   : > { %7495 = vst.msk [vmem:[#allocation15 + $0x21] ss:$8 sm:$0x3] %vm12250_vm8, %v7491_v14 }
 0xebb   : > { %v7497_v2 = vld [vmem:[#allocation15 + $0x21] ss:$8 sm:$0x3] }
 0xebc   : > { %v7504_v39 = vrot.slane %v7497_v2, %v10502_v27  ;;  %v7508_v49 = vrot.slane %v7497_v2, %v10505_v28 }
 0xebe   : > { %v7511_v19 = vpack.c.bf16 %v7504_v39, %v7504_v39  ;;  %v7512_v45 = vpack.c.bf16 %v7508_v49, %v7508_v49 }
 0xec0   : > { %7674 = vmatprep.mubr.bf16.mxu0 %v7512_v45 }
 0xec1   : > { %7675 = vmatmul.mubr.bf16.vlgmr.msra.gmra.mxu0 %v7511_v19 }
 0xf81   : > { %v8356_v29 = vpop.f32.mrf.mxu0 }
 0xf83   : > { %v8357_v63 = vpop.f32.mrf.mxu0 }
 0xf84   : > { %v8358_v18 = vadd.f32 %v8357_v63, %v8356_v29 }
 0xf85   : > { %v8359_v42 = vpop.f32.mrf.mxu0 }
 0xf86   : > { %v7677_v37 = vadd.f32 %v8358_v18, %v7545_v17 }
 0xf87   : > { %v8360_v27 = vpop.f32.mrf.mxu0 }
 0xf88   : > { %7683 = vst.msk [vmem:[%s1879_s11] sm:$0x1] %vm7682_vm6, %v7677_v37 }
 0xf89   : > { %9452 = shalt.err (!%p9449_p3)
}
 0xf8a   : > { %s9453_s15 = scalar_lea.hbm %s12328_s2, 16  ;;  %s9457_s7 = scalar_lea.hbm %s12460_s4, 32 }
 0xf8b   : > { %p9454_p9 = scmp.ne.s32.totalorder %s12328_s2, %s9453_s15  ;;  %p9458_p13 = scmp.lt.s32.totalorder %s12328_s2, %s12460_s4 }
 0xf8c   : > { %p9459_p6 = scmp.lt.s32.totalorder %s9457_s7, %s9453_s15 }
 0xf8d   : > { %p9455_p4 = pnand %p9454_p9, %p12558_p7 }
 0xf8e   : > { %p9460_p10 = por %p9459_p6, %p9458_p13 }
 0xf8f   : > { %p9456_p5 = pneg %p9455_p4 }
 0xf91   : > { %p9461_p12 = pnand %p9460_p10, %p9456_p5 }
 0xf93   : > { %9464 = shalt.err (!%p9461_p12)
}
 0xf94   : > { %8661 = dma.vmem_to_hbm [thread:$0]  (%p12558_p7), %s7698_s1, 16, %s12328_s2, %s7685_s3  }
 0xf95 PF: > { %s12559_s5 = sld [smem:[#allocation101_spill]] }
 0xf96   : > { %s12560_s6 = sld [smem:[#allocation99_spill]] }
 0xf97   : > { %s12561_s8 = sld [smem:[#allocation104_spill]] }
 0xf9b   : > { %p8748_p8 = scmp.ge.s32.totalorder %s12559_s5, 2 }
 0xf9c   : > { %s7709_s11 = sand.u32 1, %s12560_s6  }
 0xf9d   : > { %p12562_p11 = scmp.ne.s32.totalorder %s12561_s8, 0  ;;  %s7710_s0 = scalar_lea.sflag [#allocation18], %s7709_s11 }
 0xf9f   : > { %p8713_p0 = pnand %p8748_p8, %p12562_p11 }
 0xfa1   : > { %p8714_p1 = pneg %p8713_p0 }
 0xfa3   : > { %9518 = dma.done.wait (%p8714_p1), %s7710_s0, 16  }
 0xfa4   : > { %9520 = vsyncadd (%p8714_p1), %s7710_s0, 4294967280  ;;  %s12563_s15 = sld [smem:[#allocation102_spill]]  ;;  %s12566_s7 = smov %s9527_s10 }
 0xfa5   : > { %s12564_s4 = sld [smem:[#allocation100_spill]] }
 0xfa6   : > { %s12565_s11 = sld [smem:[#allocation103_spill]] }
 0xfaa   : > { %p134_p2 = scmp.ge.s32.totalorder %s12563_s15, 4  }
 0xfab   : > { %s12567_s10 = smov %s12564_s4 }
 0xfac   :  { %136 = sbr.rel (!%p134_p2) target bundleno = 127 (0x7f), region = 434 }
 0xfb1   :  { %7714 = vsyncpa [#allocation17], 1 }
 0xfb2   :  { %7716 = vsyncpa [#allocation17 + $0x1], 1 }
 0xfb3   :  { %7717 = vsyncpa [#allocation20], 1 }
 0xfb4   :  { %7718 = vsyncpa [#allocation23], 1 }
 0xfb5   :  { %7719 = vsyncpa [#allocation26], 1 }
 0xfb6   :  { %7720 = vsyncpa [#allocation29], 1 }
 0xfb7   :  { %7721 = vsyncpa [#allocation32], 1 }
 0xfb8   :  { %7722 = vsyncpa [#allocation35], 1 }
 0xfb9   :  { %7723 = vsyncpa [#allocation38], 1 }
 0xfba   :  { %7724 = vsyncpa [#allocation41], 1 }
 0xfbb   :  { %7725 = vsyncpa [#allocation18], 1 }
 0xfbc   :  { %7727 = vsyncpa [#allocation18 + $0x1], 1 }

</bundles_post_ra>
